<compile_context>
chip_gen: v5e
topology: v5e:2x2
jax: 0.10.0
libtpu: 0.0.40
codegen_flags: <defaults>
</compile_context>

<pallas_src>
import jax
import jax.numpy as jnp
from jax import lax
from jax.experimental import pallas as pl
from jax.experimental.pallas import tpu as pltpu


def _resblock_kernel(x_ref, w1_ref, s1_ref, b1_ref, w2_ref, s2_ref, b2_ref,
                     o_ref, slab_ref):
    """NB folded batch elements per grid step.

    x_ref    : (NB, H, W, C)       f32  input (NHWC); also the exact residual
    w1_ref   : (3, 3C, C)          bf16 conv1 weights, (dy, dx*Cin+cin, cout)
    s1_ref   : (1, C)              f32  folded BN1 scale
    b1_ref   : (1, C)              f32  folded BN1 bias (incl. conv1 bias)
    w2_ref   : (3, 3C, C)          bf16 conv2 weights
    s2_ref   : (1, C)              f32  folded BN2 scale
    b2_ref   : (1, C)              f32  folded BN2 bias (incl. conv2 bias)
    o_ref    : (NB, H, W, C)       f32  output
    slab_ref : (NB, H+2, W, 3C)    bf16 im2col slab: 3 dx-shifted taps + halo
    """
    NB, H, W, C = x_ref.shape

    # --- zero the halo ring of the slab -------------------------------------
    # Only the thin ring the conv taps actually read is zeroed; the interior
    # is fully rewritten at every staging.  Re-zeroing each step (it is cheap)
    # keeps the kernel correct when the parallel grid axis is split across
    # TensorCores (per-core scratch would miss a program_id==0 init).
    zrow = jnp.zeros((NB, 1, W, 3 * C), jnp.bfloat16)
    slab_ref[:, 0:1, :, :] = zrow                               # top halo row
    slab_ref[:, H + 1:H + 2, :, :] = zrow                       # bottom halo row
    zcol = jnp.zeros((NB, H, 1, C), jnp.bfloat16)
    slab_ref[:, 1:H + 1, 0:1, 0:C] = zcol                       # dx=0 left edge
    slab_ref[:, 1:H + 1, W - 1:W, 2 * C:3 * C] = zcol           # dx=2 right edge

    def stage(b, act_hwc):
        """Write the 3 dx-shifted bf16 copies of a (H, W, C) activation."""
        a = act_hwc.astype(jnp.bfloat16)
        slab_ref[b, 1:H + 1, :, C:2 * C] = a                        # dx = 1
        slab_ref[b, 1:H + 1, 1:W, 0:C] = a[:, 0:W - 1, :]           # dx = 0
        slab_ref[b, 1:H + 1, 0:W - 1, 2 * C:3 * C] = a[:, 1:W, :]   # dx = 2

    def conv3x3(b, w_ref):
        """3 accumulated (H, W, 3C) x (3C, C) bf16 MXU matmuls, f32 accum."""
        acc = jnp.zeros((H, W, C), jnp.float32)
        for dy in range(3):
            acc = acc + jnp.dot(slab_ref[b, dy:dy + H, :, :], w_ref[dy],
                                preferred_element_type=jnp.float32)
        return acc

    for b in range(NB):
        # conv1 + BN1 + ReLU
        stage(b, x_ref[b])
        y1 = jnp.maximum(conv3x3(b, w1_ref) * s1_ref[0] + b1_ref[0], 0.0)

        # conv2 + BN2 + residual (exact f32 x, re-read at point of use) + ReLU
        stage(b, y1)
        y2 = conv3x3(b, w2_ref) * s2_ref[0] + b2_ref[0] + x_ref[b]
        o_ref[b] = jnp.maximum(y2, 0.0).astype(o_ref.dtype)


def _ceil_to(a, m):
    return -(-a // m) * m


def _vmem_estimate_bytes(nb, H, W, C):
    """Rough per-grid-step VMEM footprint (layout-padded, double-buffered)."""
    lane = lambda n: _ceil_to(n, 128)
    x_blk = 2 * nb * H * _ceil_to(W, 8) * lane(C) * 4          # f32 in, 2 bufs
    o_blk = 2 * nb * H * _ceil_to(W, 8) * lane(C) * 4          # f32 out, 2 bufs
    slab = nb * (H + 2) * _ceil_to(W, 16) * lane(3 * C) * 2    # bf16 scratch
    wgts = 2 * 2 * 3 * _ceil_to(3 * C, 16) * lane(C) * 2       # w1 + w2, 2 bufs
    vecs = 4 * 2 * 8 * 128 * 4                                 # scales / biases
    return x_blk + o_blk + slab + wgts + vecs


def _pick_batch_fold(N, H, W, C, max_rows=2048, vmem_budget=40 * 2 ** 20):
    """Largest divisor nb of N with nb*H*W <= max_rows that fits the budget."""
    nb = 1
    for cand in range(1, N + 1):
        if N % cand:
            continue
        rows_ok = (cand == 1) or (cand * H * W <= max_rows)
        if rows_ok and _vmem_estimate_bytes(cand, H, W, C) <= vmem_budget:
            nb = cand
    return nb


def residual_block_pallas(x_nchw, w1, s1, b1, w2, s2, b2):
    """x_nchw: (N, C, H, W) f32; w1/w2: (3, 3, C, C) HWIO.  Returns NCHW f32."""
    N, C, H, W = x_nchw.shape

    # NCHW -> NHWC (kernel-native layout).  x stays f32: no extra HBM cast
    # pass, and the residual path is exact.
    x = jnp.transpose(x_nchw, (0, 2, 3, 1))

    # Weights in per-dy im2col layout: (dy, dx*Cin + cin, cout), bf16 for MXU.
    w1_3d = w1.reshape(3, 3 * C, C).astype(jnp.bfloat16)
    w2_3d = w2.reshape(3, 3 * C, C).astype(jnp.bfloat16)
    s1r, b1r = s1.reshape(1, C), b1.reshape(1, C)
    s2r, b2r = s2.reshape(1, C), b2.reshape(1, C)

    nb = _pick_batch_fold(N, H, W, C)
    est = _vmem_estimate_bytes(nb, H, W, C)
    if est > 48 * 2 ** 20:
        # TODO(synk): H-tiling with 1-row halos for whole-image footprints that
        #             do not fit v7x's 64 MiB VMEM.
        raise NotImplementedError(
            "per-step VMEM footprint too large for whole-image tiling; "
            "needs the H-tiled variant")
    vmem_limit = int(max(32 * 2 ** 20, min(2 * est, 56 * 2 ** 20)))

    out_nhwc = pl.pallas_call(
        _resblock_kernel,
        out_shape=jax.ShapeDtypeStruct((N, H, W, C), jnp.float32),
        grid=(N // nb,),
        in_specs=[
            pl.BlockSpec((nb, H, W, C), lambda n: (n, 0, 0, 0)),
            pl.BlockSpec((3, 3 * C, C), lambda n: (0, 0, 0)),
            pl.BlockSpec((1, C), lambda n: (0, 0)),
            pl.BlockSpec((1, C), lambda n: (0, 0)),
            pl.BlockSpec((3, 3 * C, C), lambda n: (0, 0, 0)),
            pl.BlockSpec((1, C), lambda n: (0, 0)),
            pl.BlockSpec((1, C), lambda n: (0, 0)),
        ],
        out_specs=pl.BlockSpec((nb, H, W, C), lambda n: (n, 0, 0, 0)),
        scratch_shapes=[
            pltpu.VMEM((nb, H + 2, W, 3 * C), jnp.bfloat16),   # bf16 im2col slab
        ],
        compiler_params=pltpu.CompilerParams(
            dimension_semantics=("parallel",),
            vmem_limit_bytes=vmem_limit),
    )(x, w1_3d, s1r, b1r, w2_3d, s2r, b2r)

    return jnp.transpose(out_nhwc, (0, 3, 1, 2))               # NHWC -> NCHW


def _reference_forward(x_nchw, w1, s1, b1, w2, s2, b2):
    """Plain-JAX reference (same math, via lax.conv, f32)."""
    x = jnp.transpose(x_nchw, (0, 2, 3, 1))
    dn = ("NHWC", "HWIO", "NHWC")
    y = lax.conv_general_dilated(x, w1, (1, 1), "SAME", dimension_numbers=dn)
    y = jnp.maximum(y * s1 + b1, 0.0)
    y = lax.conv_general_dilated(y, w2, (1, 1), "SAME", dimension_numbers=dn)
    y = jnp.maximum(y * s2 + b2 + x, 0.0)
    return jnp.transpose(y, (0, 3, 1, 2))


def _make_params(key, c_in, c_out):
    """Deterministic parameter init; BN folded to per-channel scale/bias."""
    ks = jax.random.split(key, 10)
    eps = 1e-5
    fan1 = c_in * 9
    w1 = jax.random.uniform(ks[0], (3, 3, c_in, c_out), jnp.float32,
                            -1.0, 1.0) / jnp.sqrt(fan1)
    cb1 = jax.random.uniform(ks[1], (c_out,), jnp.float32, -1.0, 1.0) / jnp.sqrt(fan1)
    fan2 = c_out * 9
    w2 = jax.random.uniform(ks[2], (3, 3, c_out, c_out), jnp.float32,
                            -1.0, 1.0) / jnp.sqrt(fan2)
    cb2 = jax.random.uniform(ks[3], (c_out,), jnp.float32, -1.0, 1.0) / jnp.sqrt(fan2)
    g1 = 1.0 + 0.1 * jax.random.normal(ks[4], (c_out,), jnp.float32)
    be1 = 0.1 * jax.random.normal(ks[5], (c_out,), jnp.float32)
    m1 = 0.1 * jax.random.normal(ks[6], (c_out,), jnp.float32)
    v1 = jnp.abs(1.0 + 0.1 * jax.random.normal(ks[7], (c_out,), jnp.float32))
    g2 = 1.0 + 0.1 * jax.random.normal(ks[8], (c_out,), jnp.float32)
    be2 = 0.1 * jax.random.normal(ks[9], (c_out,), jnp.float32)
    m2 = jnp.zeros((c_out,), jnp.float32)
    v2 = jnp.ones((c_out,), jnp.float32)
    # Fold BN + conv bias:  BN(conv + b) = scale*conv + (beta - mean*scale + b*scale)
    s1 = g1 / jnp.sqrt(v1 + eps)
    b1 = be1 - m1 * s1 + cb1 * s1
    s2 = g2 / jnp.sqrt(v2 + eps)
    b2 = be2 - m2 * s2 + cb2 * s2
    return w1, s1, b1, w2, s2, b2


if __name__ == "__main__":
    key = jax.random.PRNGKey(0)
    k_x, k_p = jax.random.split(key)

    N, C, H, W = 2, 4, 16, 16          # in_channels == out_channels == 4
    x = jax.random.normal(k_x, (N, C, H, W), jnp.float32)
    w1, s1, b1, w2, s2, b2 = _make_params(k_p, C, C)

    out = residual_block_pallas(x, w1, s1, b1, w2, s2, b2)
    out = jax.block_until_ready(out)

    ref = _reference_forward(x, w1, s1, b1, w2, s2, b2)
    assert out.shape == (N, C, H, W)
    # bf16 MXU operands => looser tolerance vs the f32 reference (residual is exact f32).
    assert jnp.allclose(out, ref, rtol=2e-2, atol=2e-2), "mismatch vs reference"

    print("KERNEL_OK")
</pallas_src>

<mosaic_0001>
module attributes {stable_mosaic.version = 11 : i64} {
  func.func @_resblock_kernel(%arg0: i32, %arg1: memref<2x16x16x4xf32, #tpu.memory_space<vmem>>, %arg2: memref<3x12x4xbf16, #tpu.memory_space<vmem>>, %arg3: memref<1x4xf32, #tpu.memory_space<vmem>>, %arg4: memref<1x4xf32, #tpu.memory_space<vmem>>, %arg5: memref<3x12x4xbf16, #tpu.memory_space<vmem>>, %arg6: memref<1x4xf32, #tpu.memory_space<vmem>>, %arg7: memref<1x4xf32, #tpu.memory_space<vmem>>, %arg8: memref<2x16x16x4xf32, #tpu.memory_space<vmem>>, %arg9: memref<2x18x16x12xbf16, #tpu.memory_space<vmem>>) attributes {dimension_semantics = [#tpu.dimension_semantics<parallel>], iteration_bounds = array<i64: 1>, scalar_prefetch = 0 : i64, scratch_operands = 1 : i64, tpu.core_type = #tpu.core_type<tc>, window_params = [{transform_indices = @transform_0, window_bounds = array<i64: 2, 16, 16, 4>}, {pipeline_mode = #tpu.pipeline_mode<synchronous>, transform_indices = @transform_1, window_bounds = array<i64: 3, 12, 4>}, {pipeline_mode = #tpu.pipeline_mode<synchronous>, transform_indices = @transform_2, window_bounds = array<i64: 1, 4>}, {pipeline_mode = #tpu.pipeline_mode<synchronous>, transform_indices = @transform_3, window_bounds = array<i64: 1, 4>}, {pipeline_mode = #tpu.pipeline_mode<synchronous>, transform_indices = @transform_4, window_bounds = array<i64: 3, 12, 4>}, {pipeline_mode = #tpu.pipeline_mode<synchronous>, transform_indices = @transform_5, window_bounds = array<i64: 1, 4>}, {pipeline_mode = #tpu.pipeline_mode<synchronous>, transform_indices = @transform_6, window_bounds = array<i64: 1, 4>}, {transform_indices = @transform_7, window_bounds = array<i64: 2, 16, 16, 4>}]} {
    %cst = arith.constant 0.000000e+00 : bf16
    %0 = vector.broadcast %cst : bf16 to vector<2x1x16x12xbf16>
    %c0 = arith.constant 0 : index
    %c0_0 = arith.constant 0 : index
    %c0_1 = arith.constant 0 : index
    %c0_2 = arith.constant 0 : index
    %1 = vector.load %arg9[%c0, %c0_0, %c0_1, %c0_2] : memref<2x18x16x12xbf16, #tpu.memory_space<vmem>>, vector<2x1x16x12xbf16>
    tpu.vector_store %arg9[%c0, %c0_0, %c0_1, %c0_2], %0 {strides = array<i32>} : memref<2x18x16x12xbf16, #tpu.memory_space<vmem>>, vector<2x1x16x12xbf16>,
    %c0_3 = arith.constant 0 : index
    %c17 = arith.constant 17 : index
    %c0_4 = arith.constant 0 : index
    %c0_5 = arith.constant 0 : index
    %2 = vector.load %arg9[%c0_3, %c17, %c0_4, %c0_5] : memref<2x18x16x12xbf16, #tpu.memory_space<vmem>>, vector<2x1x16x12xbf16>
    tpu.vector_store %arg9[%c0_3, %c17, %c0_4, %c0_5], %0 {strides = array<i32>} : memref<2x18x16x12xbf16, #tpu.memory_space<vmem>>, vector<2x1x16x12xbf16>,
    %cst_6 = arith.constant 0.000000e+00 : bf16
    %3 = vector.broadcast %cst_6 : bf16 to vector<2x16x1x4xbf16>
    %c0_7 = arith.constant 0 : index
    %c1 = arith.constant 1 : index
    %c0_8 = arith.constant 0 : index
    %c0_9 = arith.constant 0 : index
    %4 = vector.load %arg9[%c0_7, %c1, %c0_8, %c0_9] : memref<2x18x16x12xbf16, #tpu.memory_space<vmem>>, vector<2x16x1x4xbf16>
    tpu.vector_store %arg9[%c0_7, %c1, %c0_8, %c0_9], %3 {strides = array<i32>} : memref<2x18x16x12xbf16, #tpu.memory_space<vmem>>, vector<2x16x1x4xbf16>,
    %c0_10 = arith.constant 0 : index
    %c1_11 = arith.constant 1 : index
    %c15 = arith.constant 15 : index
    %c8 = arith.constant 8 : index
    %5 = vector.load %arg9[%c0_10, %c1_11, %c15, %c8] : memref<2x18x16x12xbf16, #tpu.memory_space<vmem>>, vector<2x16x1x4xbf16>
    tpu.vector_store %arg9[%c0_10, %c1_11, %c15, %c8], %3 {strides = array<i32>} : memref<2x18x16x12xbf16, #tpu.memory_space<vmem>>, vector<2x16x1x4xbf16>,
    %c0_12 = arith.constant 0 : index
    %c0_13 = arith.constant 0 : index
    %c0_14 = arith.constant 0 : index
    %c0_15 = arith.constant 0 : index
    %6 = vector.load %arg1[%c0_12, %c0_13, %c0_14, %c0_15] : memref<2x16x16x4xf32, #tpu.memory_space<vmem>>, vector<1x16x16x4xf32>
    %7 = vector.shape_cast %6 : vector<1x16x16x4xf32> to vector<16x16x4xf32>
    %8 = arith.truncf %7 : vector<16x16x4xf32> to vector<16x16x4xbf16>
    %c0_16 = arith.constant 0 : index
    %c1_17 = arith.constant 1 : index
    %c0_18 = arith.constant 0 : index
    %c4 = arith.constant 4 : index
    %9 = vector.load %arg9[%c0_16, %c1_17, %c0_18, %c4] : memref<2x18x16x12xbf16, #tpu.memory_space<vmem>>, vector<1x16x16x4xbf16>
    %10 = vector.shape_cast %9 : vector<1x16x16x4xbf16> to vector<16x16x4xbf16>
    %11 = vector.shape_cast %8 : vector<16x16x4xbf16> to vector<1x16x16x4xbf16>
    tpu.vector_store %arg9[%c0_16, %c1_17, %c0_18, %c4], %11 {strides = array<i32>} : memref<2x18x16x12xbf16, #tpu.memory_space<vmem>>, vector<1x16x16x4xbf16>,
    %12 = vector.extract_strided_slice %8 {offsets = [0, 0, 0], sizes = [16, 15, 4], strides = [1, 1, 1]} : vector<16x16x4xbf16> to vector<16x15x4xbf16>
    %c0_19 = arith.constant 0 : index
    %c1_20 = arith.constant 1 : index
    %c1_21 = arith.constant 1 : index
    %c0_22 = arith.constant 0 : index
    %13 = vector.load %arg9[%c0_19, %c1_20, %c1_21, %c0_22] : memref<2x18x16x12xbf16, #tpu.memory_space<vmem>>, vector<1x16x15x4xbf16>
    %14 = vector.shape_cast %13 : vector<1x16x15x4xbf16> to vector<16x15x4xbf16>
    %15 = vector.shape_cast %12 : vector<16x15x4xbf16> to vector<1x16x15x4xbf16>
    tpu.vector_store %arg9[%c0_19, %c1_20, %c1_21, %c0_22], %15 {strides = array<i32>} : memref<2x18x16x12xbf16, #tpu.memory_space<vmem>>, vector<1x16x15x4xbf16>,
    %16 = vector.extract_strided_slice %8 {offsets = [0, 1, 0], sizes = [16, 15, 4], strides = [1, 1, 1]} : vector<16x16x4xbf16> to vector<16x15x4xbf16>
    %c0_23 = arith.constant 0 : index
    %c1_24 = arith.constant 1 : index
    %c0_25 = arith.constant 0 : index
    %c8_26 = arith.constant 8 : index
    %17 = vector.load %arg9[%c0_23, %c1_24, %c0_25, %c8_26] : memref<2x18x16x12xbf16, #tpu.memory_space<vmem>>, vector<1x16x15x4xbf16>
    %18 = vector.shape_cast %17 : vector<1x16x15x4xbf16> to vector<16x15x4xbf16>
    %19 = vector.shape_cast %16 : vector<16x15x4xbf16> to vector<1x16x15x4xbf16>
    tpu.vector_store %arg9[%c0_23, %c1_24, %c0_25, %c8_26], %19 {strides = array<i32>} : memref<2x18x16x12xbf16, #tpu.memory_space<vmem>>, vector<1x16x15x4xbf16>,
    %cst_27 = arith.constant 0.000000e+00 : f32
    %20 = vector.broadcast %cst_27 : f32 to vector<16x16x4xf32>
    %c0_28 = arith.constant 0 : index
    %c0_29 = arith.constant 0 : index
    %c0_30 = arith.constant 0 : index
    %c0_31 = arith.constant 0 : index
    %21 = vector.load %arg9[%c0_28, %c0_29, %c0_30, %c0_31] : memref<2x18x16x12xbf16, #tpu.memory_space<vmem>>, vector<1x16x16x12xbf16>
    %22 = vector.shape_cast %21 : vector<1x16x16x12xbf16> to vector<16x16x12xbf16>
    %c0_32 = arith.constant 0 : index
    %c0_33 = arith.constant 0 : index
    %c0_34 = arith.constant 0 : index
    %23 = vector.load %arg2[%c0_32, %c0_33, %c0_34] : memref<3x12x4xbf16, #tpu.memory_space<vmem>>, vector<1x12x4xbf16>
    %24 = vector.shape_cast %23 : vector<1x12x4xbf16> to vector<12x4xbf16>
    %cst_35 = arith.constant dense<0.000000e+00> : vector<16x16x4xf32>
    %25 = tpu.matmul %22, %24, %cst_35 {dimension_numbers = #tpu.dot_dimension_numbers<[2], [0], [0, 1], [1], [0, 0, 0, 1, 1, 1], [], []>} : vector<16x16x12xbf16>, vector<12x4xbf16>, vector<16x16x4xf32> -> vector<16x16x4xf32>
    %26 = arith.addf %20, %25 : vector<16x16x4xf32>
    %c0_36 = arith.constant 0 : index
    %c1_37 = arith.constant 1 : index
    %c0_38 = arith.constant 0 : index
    %c0_39 = arith.constant 0 : index
    %27 = vector.load %arg9[%c0_36, %c1_37, %c0_38, %c0_39] : memref<2x18x16x12xbf16, #tpu.memory_space<vmem>>, vector<1x16x16x12xbf16>
    %28 = vector.shape_cast %27 : vector<1x16x16x12xbf16> to vector<16x16x12xbf16>
    %c1_40 = arith.constant 1 : index
    %c0_41 = arith.constant 0 : index
    %c0_42 = arith.constant 0 : index
    %29 = vector.load %arg2[%c1_40, %c0_41, %c0_42] : memref<3x12x4xbf16, #tpu.memory_space<vmem>>, vector<1x12x4xbf16>
    %30 = vector.shape_cast %29 : vector<1x12x4xbf16> to vector<12x4xbf16>
    %cst_43 = arith.constant dense<0.000000e+00> : vector<16x16x4xf32>
    %31 = tpu.matmul %28, %30, %cst_43 {dimension_numbers = #tpu.dot_dimension_numbers<[2], [0], [0, 1], [1], [0, 0, 0, 1, 1, 1], [], []>} : vector<16x16x12xbf16>, vector<12x4xbf16>, vector<16x16x4xf32> -> vector<16x16x4xf32>
    %32 = arith.addf %26, %31 : vector<16x16x4xf32>
    %c0_44 = arith.constant 0 : index
    %c2 = arith.constant 2 : index
    %c0_45 = arith.constant 0 : index
    %c0_46 = arith.constant 0 : index
    %33 = vector.load %arg9[%c0_44, %c2, %c0_45, %c0_46] : memref<2x18x16x12xbf16, #tpu.memory_space<vmem>>, vector<1x16x16x12xbf16>
    %34 = vector.shape_cast %33 : vector<1x16x16x12xbf16> to vector<16x16x12xbf16>
    %c2_47 = arith.constant 2 : index
    %c0_48 = arith.constant 0 : index
    %c0_49 = arith.constant 0 : index
    %35 = vector.load %arg2[%c2_47, %c0_48, %c0_49] : memref<3x12x4xbf16, #tpu.memory_space<vmem>>, vector<1x12x4xbf16>
    %36 = vector.shape_cast %35 : vector<1x12x4xbf16> to vector<12x4xbf16>
    %cst_50 = arith.constant dense<0.000000e+00> : vector<16x16x4xf32>
    %37 = tpu.matmul %34, %36, %cst_50 {dimension_numbers = #tpu.dot_dimension_numbers<[2], [0], [0, 1], [1], [0, 0, 0, 1, 1, 1], [], []>} : vector<16x16x12xbf16>, vector<12x4xbf16>, vector<16x16x4xf32> -> vector<16x16x4xf32>
    %38 = arith.addf %32, %37 : vector<16x16x4xf32>
    %c0_51 = arith.constant 0 : index
    %c0_52 = arith.constant 0 : index
    %39 = vector.load %arg3[%c0_51, %c0_52] : memref<1x4xf32, #tpu.memory_space<vmem>>, vector<1x4xf32>
    %40 = vector.shape_cast %39 : vector<1x4xf32> to vector<4xf32>
    %41 = vector.shape_cast %40 : vector<4xf32> to vector<1x1x4xf32>
    %42 = vector.broadcast %41 : vector<1x1x4xf32> to vector<16x16x4xf32>
    %43 = arith.mulf %38, %42 : vector<16x16x4xf32>
    %c0_53 = arith.constant 0 : index
    %c0_54 = arith.constant 0 : index
    %44 = vector.load %arg4[%c0_53, %c0_54] : memref<1x4xf32, #tpu.memory_space<vmem>>, vector<1x4xf32>
    %45 = vector.shape_cast %44 : vector<1x4xf32> to vector<4xf32>
    %46 = vector.shape_cast %45 : vector<4xf32> to vector<1x1x4xf32>
    %47 = vector.broadcast %46 : vector<1x1x4xf32> to vector<16x16x4xf32>
    %48 = arith.addf %43, %47 : vector<16x16x4xf32>
    %cst_55 = arith.constant 0.000000e+00 : f32
    %49 = vector.broadcast %cst_55 : f32 to vector<16x16x4xf32>
    %50 = arith.maximumf %48, %49 : vector<16x16x4xf32>
    %51 = arith.truncf %50 : vector<16x16x4xf32> to vector<16x16x4xbf16>
    %c0_56 = arith.constant 0 : index
    %c1_57 = arith.constant 1 : index
    %c0_58 = arith.constant 0 : index
    %c4_59 = arith.constant 4 : index
    %52 = vector.load %arg9[%c0_56, %c1_57, %c0_58, %c4_59] : memref<2x18x16x12xbf16, #tpu.memory_space<vmem>>, vector<1x16x16x4xbf16>
    %53 = vector.shape_cast %52 : vector<1x16x16x4xbf16> to vector<16x16x4xbf16>
    %54 = vector.shape_cast %51 : vector<16x16x4xbf16> to vector<1x16x16x4xbf16>
    tpu.vector_store %arg9[%c0_56, %c1_57, %c0_58, %c4_59], %54 {strides = array<i32>} : memref<2x18x16x12xbf16, #tpu.memory_space<vmem>>, vector<1x16x16x4xbf16>,
    %55 = vector.extract_strided_slice %51 {offsets = [0, 0, 0], sizes = [16, 15, 4], strides = [1, 1, 1]} : vector<16x16x4xbf16> to vector<16x15x4xbf16>
    %c0_60 = arith.constant 0 : index
    %c1_61 = arith.constant 1 : index
    %c1_62 = arith.constant 1 : index
    %c0_63 = arith.constant 0 : index
    %56 = vector.load %arg9[%c0_60, %c1_61, %c1_62, %c0_63] : memref<2x18x16x12xbf16, #tpu.memory_space<vmem>>, vector<1x16x15x4xbf16>
    %57 = vector.shape_cast %56 : vector<1x16x15x4xbf16> to vector<16x15x4xbf16>
    %58 = vector.shape_cast %55 : vector<16x15x4xbf16> to vector<1x16x15x4xbf16>
    tpu.vector_store %arg9[%c0_60, %c1_61, %c1_62, %c0_63], %58 {strides = array<i32>} : memref<2x18x16x12xbf16, #tpu.memory_space<vmem>>, vector<1x16x15x4xbf16>,
    %59 = vector.extract_strided_slice %51 {offsets = [0, 1, 0], sizes = [16, 15, 4], strides = [1, 1, 1]} : vector<16x16x4xbf16> to vector<16x15x4xbf16>
    %c0_64 = arith.constant 0 : index
    %c1_65 = arith.constant 1 : index
    %c0_66 = arith.constant 0 : index
    %c8_67 = arith.constant 8 : index
    %60 = vector.load %arg9[%c0_64, %c1_65, %c0_66, %c8_67] : memref<2x18x16x12xbf16, #tpu.memory_space<vmem>>, vector<1x16x15x4xbf16>
    %61 = vector.shape_cast %60 : vector<1x16x15x4xbf16> to vector<16x15x4xbf16>
    %62 = vector.shape_cast %59 : vector<16x15x4xbf16> to vector<1x16x15x4xbf16>
    tpu.vector_store %arg9[%c0_64, %c1_65, %c0_66, %c8_67], %62 {strides = array<i32>} : memref<2x18x16x12xbf16, #tpu.memory_space<vmem>>, vector<1x16x15x4xbf16>,
    %cst_68 = arith.constant 0.000000e+00 : f32
    %63 = vector.broadcast %cst_68 : f32 to vector<16x16x4xf32>
    %c0_69 = arith.constant 0 : index
    %c0_70 = arith.constant 0 : index
    %c0_71 = arith.constant 0 : index
    %c0_72 = arith.constant 0 : index
    %64 = vector.load %arg9[%c0_69, %c0_70, %c0_71, %c0_72] : memref<2x18x16x12xbf16, #tpu.memory_space<vmem>>, vector<1x16x16x12xbf16>
    %65 = vector.shape_cast %64 : vector<1x16x16x12xbf16> to vector<16x16x12xbf16>
    %c0_73 = arith.constant 0 : index
    %c0_74 = arith.constant 0 : index
    %c0_75 = arith.constant 0 : index
    %66 = vector.load %arg5[%c0_73, %c0_74, %c0_75] : memref<3x12x4xbf16, #tpu.memory_space<vmem>>, vector<1x12x4xbf16>
    %67 = vector.shape_cast %66 : vector<1x12x4xbf16> to vector<12x4xbf16>
    %cst_76 = arith.constant dense<0.000000e+00> : vector<16x16x4xf32>
    %68 = tpu.matmul %65, %67, %cst_76 {dimension_numbers = #tpu.dot_dimension_numbers<[2], [0], [0, 1], [1], [0, 0, 0, 1, 1, 1], [], []>} : vector<16x16x12xbf16>, vector<12x4xbf16>, vector<16x16x4xf32> -> vector<16x16x4xf32>
    %69 = arith.addf %63, %68 : vector<16x16x4xf32>
    %c0_77 = arith.constant 0 : index
    %c1_78 = arith.constant 1 : index
    %c0_79 = arith.constant 0 : index
    %c0_80 = arith.constant 0 : index
    %70 = vector.load %arg9[%c0_77, %c1_78, %c0_79, %c0_80] : memref<2x18x16x12xbf16, #tpu.memory_space<vmem>>, vector<1x16x16x12xbf16>
    %71 = vector.shape_cast %70 : vector<1x16x16x12xbf16> to vector<16x16x12xbf16>
    %c1_81 = arith.constant 1 : index
    %c0_82 = arith.constant 0 : index
    %c0_83 = arith.constant 0 : index
    %72 = vector.load %arg5[%c1_81, %c0_82, %c0_83] : memref<3x12x4xbf16, #tpu.memory_space<vmem>>, vector<1x12x4xbf16>
    %73 = vector.shape_cast %72 : vector<1x12x4xbf16> to vector<12x4xbf16>
    %cst_84 = arith.constant dense<0.000000e+00> : vector<16x16x4xf32>
    %74 = tpu.matmul %71, %73, %cst_84 {dimension_numbers = #tpu.dot_dimension_numbers<[2], [0], [0, 1], [1], [0, 0, 0, 1, 1, 1], [], []>} : vector<16x16x12xbf16>, vector<12x4xbf16>, vector<16x16x4xf32> -> vector<16x16x4xf32>
    %75 = arith.addf %69, %74 : vector<16x16x4xf32>
    %c0_85 = arith.constant 0 : index
    %c2_86 = arith.constant 2 : index
    %c0_87 = arith.constant 0 : index
    %c0_88 = arith.constant 0 : index
    %76 = vector.load %arg9[%c0_85, %c2_86, %c0_87, %c0_88] : memref<2x18x16x12xbf16, #tpu.memory_space<vmem>>, vector<1x16x16x12xbf16>
    %77 = vector.shape_cast %76 : vector<1x16x16x12xbf16> to vector<16x16x12xbf16>
    %c2_89 = arith.constant 2 : index
    %c0_90 = arith.constant 0 : index
    %c0_91 = arith.constant 0 : index
    %78 = vector.load %arg5[%c2_89, %c0_90, %c0_91] : memref<3x12x4xbf16, #tpu.memory_space<vmem>>, vector<1x12x4xbf16>
    %79 = vector.shape_cast %78 : vector<1x12x4xbf16> to vector<12x4xbf16>
    %cst_92 = arith.constant dense<0.000000e+00> : vector<16x16x4xf32>
    %80 = tpu.matmul %77, %79, %cst_92 {dimension_numbers = #tpu.dot_dimension_numbers<[2], [0], [0, 1], [1], [0, 0, 0, 1, 1, 1], [], []>} : vector<16x16x12xbf16>, vector<12x4xbf16>, vector<16x16x4xf32> -> vector<16x16x4xf32>
    %81 = arith.addf %75, %80 : vector<16x16x4xf32>
    %c0_93 = arith.constant 0 : index
    %c0_94 = arith.constant 0 : index
    %82 = vector.load %arg6[%c0_93, %c0_94] : memref<1x4xf32, #tpu.memory_space<vmem>>, vector<1x4xf32>
    %83 = vector.shape_cast %82 : vector<1x4xf32> to vector<4xf32>
    %84 = vector.shape_cast %83 : vector<4xf32> to vector<1x1x4xf32>
    %85 = vector.broadcast %84 : vector<1x1x4xf32> to vector<16x16x4xf32>
    %86 = arith.mulf %81, %85 : vector<16x16x4xf32>
    %c0_95 = arith.constant 0 : index
    %c0_96 = arith.constant 0 : index
    %87 = vector.load %arg7[%c0_95, %c0_96] : memref<1x4xf32, #tpu.memory_space<vmem>>, vector<1x4xf32>
    %88 = vector.shape_cast %87 : vector<1x4xf32> to vector<4xf32>
    %89 = vector.shape_cast %88 : vector<4xf32> to vector<1x1x4xf32>
    %90 = vector.broadcast %89 : vector<1x1x4xf32> to vector<16x16x4xf32>
    %91 = arith.addf %86, %90 : vector<16x16x4xf32>
    %c0_97 = arith.constant 0 : index
    %c0_98 = arith.constant 0 : index
    %c0_99 = arith.constant 0 : index
    %c0_100 = arith.constant 0 : index
    %92 = vector.load %arg1[%c0_97, %c0_98, %c0_99, %c0_100] : memref<2x16x16x4xf32, #tpu.memory_space<vmem>>, vector<1x16x16x4xf32>
    %93 = vector.shape_cast %92 : vector<1x16x16x4xf32> to vector<16x16x4xf32>
    %94 = arith.addf %91, %93 : vector<16x16x4xf32>
    %cst_101 = arith.constant 0.000000e+00 : f32
    %95 = vector.broadcast %cst_101 : f32 to vector<16x16x4xf32>
    %96 = arith.maximumf %94, %95 : vector<16x16x4xf32>
    %c0_102 = arith.constant 0 : index
    %c0_103 = arith.constant 0 : index
    %c0_104 = arith.constant 0 : index
    %c0_105 = arith.constant 0 : index
    %97 = vector.load %arg8[%c0_102, %c0_103, %c0_104, %c0_105] : memref<2x16x16x4xf32, #tpu.memory_space<vmem>>, vector<1x16x16x4xf32>
    %98 = vector.shape_cast %97 : vector<1x16x16x4xf32> to vector<16x16x4xf32>
    %99 = vector.shape_cast %96 : vector<16x16x4xf32> to vector<1x16x16x4xf32>
    tpu.vector_store %arg8[%c0_102, %c0_103, %c0_104, %c0_105], %99 {strides = array<i32>} : memref<2x16x16x4xf32, #tpu.memory_space<vmem>>, vector<1x16x16x4xf32>,
    %c1_106 = arith.constant 1 : index
    %c0_107 = arith.constant 0 : index
    %c0_108 = arith.constant 0 : index
    %c0_109 = arith.constant 0 : index
    %100 = vector.load %arg1[%c1_106, %c0_107, %c0_108, %c0_109] : memref<2x16x16x4xf32, #tpu.memory_space<vmem>>, vector<1x16x16x4xf32>
    %101 = vector.shape_cast %100 : vector<1x16x16x4xf32> to vector<16x16x4xf32>
    %102 = arith.truncf %101 : vector<16x16x4xf32> to vector<16x16x4xbf16>
    %c1_110 = arith.constant 1 : index
    %c1_111 = arith.constant 1 : index
    %c0_112 = arith.constant 0 : index
    %c4_113 = arith.constant 4 : index
    %103 = vector.load %arg9[%c1_110, %c1_111, %c0_112, %c4_113] : memref<2x18x16x12xbf16, #tpu.memory_space<vmem>>, vector<1x16x16x4xbf16>
    %104 = vector.shape_cast %103 : vector<1x16x16x4xbf16> to vector<16x16x4xbf16>
    %105 = vector.shape_cast %102 : vector<16x16x4xbf16> to vector<1x16x16x4xbf16>
    tpu.vector_store %arg9[%c1_110, %c1_111, %c0_112, %c4_113], %105 {strides = array<i32>} : memref<2x18x16x12xbf16, #tpu.memory_space<vmem>>, vector<1x16x16x4xbf16>,
    %106 = vector.extract_strided_slice %102 {offsets = [0, 0, 0], sizes = [16, 15, 4], strides = [1, 1, 1]} : vector<16x16x4xbf16> to vector<16x15x4xbf16>
    %c1_114 = arith.constant 1 : index
    %c1_115 = arith.constant 1 : index
    %c1_116 = arith.constant 1 : index
    %c0_117 = arith.constant 0 : index
    %107 = vector.load %arg9[%c1_114, %c1_115, %c1_116, %c0_117] : memref<2x18x16x12xbf16, #tpu.memory_space<vmem>>, vector<1x16x15x4xbf16>
    %108 = vector.shape_cast %107 : vector<1x16x15x4xbf16> to vector<16x15x4xbf16>
    %109 = vector.shape_cast %106 : vector<16x15x4xbf16> to vector<1x16x15x4xbf16>
    tpu.vector_store %arg9[%c1_114, %c1_115, %c1_116, %c0_117], %109 {strides = array<i32>} : memref<2x18x16x12xbf16, #tpu.memory_space<vmem>>, vector<1x16x15x4xbf16>,
    %110 = vector.extract_strided_slice %102 {offsets = [0, 1, 0], sizes = [16, 15, 4], strides = [1, 1, 1]} : vector<16x16x4xbf16> to vector<16x15x4xbf16>
    %c1_118 = arith.constant 1 : index
    %c1_119 = arith.constant 1 : index
    %c0_120 = arith.constant 0 : index
    %c8_121 = arith.constant 8 : index
    %111 = vector.load %arg9[%c1_118, %c1_119, %c0_120, %c8_121] : memref<2x18x16x12xbf16, #tpu.memory_space<vmem>>, vector<1x16x15x4xbf16>
    %112 = vector.shape_cast %111 : vector<1x16x15x4xbf16> to vector<16x15x4xbf16>
    %113 = vector.shape_cast %110 : vector<16x15x4xbf16> to vector<1x16x15x4xbf16>
    tpu.vector_store %arg9[%c1_118, %c1_119, %c0_120, %c8_121], %113 {strides = array<i32>} : memref<2x18x16x12xbf16, #tpu.memory_space<vmem>>, vector<1x16x15x4xbf16>,
    %cst_122 = arith.constant 0.000000e+00 : f32
    %114 = vector.broadcast %cst_122 : f32 to vector<16x16x4xf32>
    %c1_123 = arith.constant 1 : index
    %c0_124 = arith.constant 0 : index
    %c0_125 = arith.constant 0 : index
    %c0_126 = arith.constant 0 : index
    %115 = vector.load %arg9[%c1_123, %c0_124, %c0_125, %c0_126] : memref<2x18x16x12xbf16, #tpu.memory_space<vmem>>, vector<1x16x16x12xbf16>
    %116 = vector.shape_cast %115 : vector<1x16x16x12xbf16> to vector<16x16x12xbf16>
    %c0_127 = arith.constant 0 : index
    %c0_128 = arith.constant 0 : index
    %c0_129 = arith.constant 0 : index
    %117 = vector.load %arg2[%c0_127, %c0_128, %c0_129] : memref<3x12x4xbf16, #tpu.memory_space<vmem>>, vector<1x12x4xbf16>
    %118 = vector.shape_cast %117 : vector<1x12x4xbf16> to vector<12x4xbf16>
    %cst_130 = arith.constant dense<0.000000e+00> : vector<16x16x4xf32>
    %119 = tpu.matmul %116, %118, %cst_130 {dimension_numbers = #tpu.dot_dimension_numbers<[2], [0], [0, 1], [1], [0, 0, 0, 1, 1, 1], [], []>} : vector<16x16x12xbf16>, vector<12x4xbf16>, vector<16x16x4xf32> -> vector<16x16x4xf32>
    %120 = arith.addf %114, %119 : vector<16x16x4xf32>
    %c1_131 = arith.constant 1 : index
    %c1_132 = arith.constant 1 : index
    %c0_133 = arith.constant 0 : index
    %c0_134 = arith.constant 0 : index
    %121 = vector.load %arg9[%c1_131, %c1_132, %c0_133, %c0_134] : memref<2x18x16x12xbf16, #tpu.memory_space<vmem>>, vector<1x16x16x12xbf16>
    %122 = vector.shape_cast %121 : vector<1x16x16x12xbf16> to vector<16x16x12xbf16>
    %c1_135 = arith.constant 1 : index
    %c0_136 = arith.constant 0 : index
    %c0_137 = arith.constant 0 : index
    %123 = vector.load %arg2[%c1_135, %c0_136, %c0_137] : memref<3x12x4xbf16, #tpu.memory_space<vmem>>, vector<1x12x4xbf16>
    %124 = vector.shape_cast %123 : vector<1x12x4xbf16> to vector<12x4xbf16>
    %cst_138 = arith.constant dense<0.000000e+00> : vector<16x16x4xf32>
    %125 = tpu.matmul %122, %124, %cst_138 {dimension_numbers = #tpu.dot_dimension_numbers<[2], [0], [0, 1], [1], [0, 0, 0, 1, 1, 1], [], []>} : vector<16x16x12xbf16>, vector<12x4xbf16>, vector<16x16x4xf32> -> vector<16x16x4xf32>
    %126 = arith.addf %120, %125 : vector<16x16x4xf32>
    %c1_139 = arith.constant 1 : index
    %c2_140 = arith.constant 2 : index
    %c0_141 = arith.constant 0 : index
    %c0_142 = arith.constant 0 : index
    %127 = vector.load %arg9[%c1_139, %c2_140, %c0_141, %c0_142] : memref<2x18x16x12xbf16, #tpu.memory_space<vmem>>, vector<1x16x16x12xbf16>
    %128 = vector.shape_cast %127 : vector<1x16x16x12xbf16> to vector<16x16x12xbf16>
    %c2_143 = arith.constant 2 : index
    %c0_144 = arith.constant 0 : index
    %c0_145 = arith.constant 0 : index
    %129 = vector.load %arg2[%c2_143, %c0_144, %c0_145] : memref<3x12x4xbf16, #tpu.memory_space<vmem>>, vector<1x12x4xbf16>
    %130 = vector.shape_cast %129 : vector<1x12x4xbf16> to vector<12x4xbf16>
    %cst_146 = arith.constant dense<0.000000e+00> : vector<16x16x4xf32>
    %131 = tpu.matmul %128, %130, %cst_146 {dimension_numbers = #tpu.dot_dimension_numbers<[2], [0], [0, 1], [1], [0, 0, 0, 1, 1, 1], [], []>} : vector<16x16x12xbf16>, vector<12x4xbf16>, vector<16x16x4xf32> -> vector<16x16x4xf32>
    %132 = arith.addf %126, %131 : vector<16x16x4xf32>
    %c0_147 = arith.constant 0 : index
    %c0_148 = arith.constant 0 : index
    %133 = vector.load %arg3[%c0_147, %c0_148] : memref<1x4xf32, #tpu.memory_space<vmem>>, vector<1x4xf32>
    %134 = vector.shape_cast %133 : vector<1x4xf32> to vector<4xf32>
    %135 = vector.shape_cast %134 : vector<4xf32> to vector<1x1x4xf32>
    %136 = vector.broadcast %135 : vector<1x1x4xf32> to vector<16x16x4xf32>
    %137 = arith.mulf %132, %136 : vector<16x16x4xf32>
    %c0_149 = arith.constant 0 : index
    %c0_150 = arith.constant 0 : index
    %138 = vector.load %arg4[%c0_149, %c0_150] : memref<1x4xf32, #tpu.memory_space<vmem>>, vector<1x4xf32>
    %139 = vector.shape_cast %138 : vector<1x4xf32> to vector<4xf32>
    %140 = vector.shape_cast %139 : vector<4xf32> to vector<1x1x4xf32>
    %141 = vector.broadcast %140 : vector<1x1x4xf32> to vector<16x16x4xf32>
    %142 = arith.addf %137, %141 : vector<16x16x4xf32>
    %cst_151 = arith.constant 0.000000e+00 : f32
    %143 = vector.broadcast %cst_151 : f32 to vector<16x16x4xf32>
    %144 = arith.maximumf %142, %143 : vector<16x16x4xf32>
    %145 = arith.truncf %144 : vector<16x16x4xf32> to vector<16x16x4xbf16>
    %c1_152 = arith.constant 1 : index
    %c1_153 = arith.constant 1 : index
    %c0_154 = arith.constant 0 : index
    %c4_155 = arith.constant 4 : index
    %146 = vector.load %arg9[%c1_152, %c1_153, %c0_154, %c4_155] : memref<2x18x16x12xbf16, #tpu.memory_space<vmem>>, vector<1x16x16x4xbf16>
    %147 = vector.shape_cast %146 : vector<1x16x16x4xbf16> to vector<16x16x4xbf16>
    %148 = vector.shape_cast %145 : vector<16x16x4xbf16> to vector<1x16x16x4xbf16>
    tpu.vector_store %arg9[%c1_152, %c1_153, %c0_154, %c4_155], %148 {strides = array<i32>} : memref<2x18x16x12xbf16, #tpu.memory_space<vmem>>, vector<1x16x16x4xbf16>,
    %149 = vector.extract_strided_slice %145 {offsets = [0, 0, 0], sizes = [16, 15, 4], strides = [1, 1, 1]} : vector<16x16x4xbf16> to vector<16x15x4xbf16>
    %c1_156 = arith.constant 1 : index
    %c1_157 = arith.constant 1 : index
    %c1_158 = arith.constant 1 : index
    %c0_159 = arith.constant 0 : index
    %150 = vector.load %arg9[%c1_156, %c1_157, %c1_158, %c0_159] : memref<2x18x16x12xbf16, #tpu.memory_space<vmem>>, vector<1x16x15x4xbf16>
    %151 = vector.shape_cast %150 : vector<1x16x15x4xbf16> to vector<16x15x4xbf16>
    %152 = vector.shape_cast %149 : vector<16x15x4xbf16> to vector<1x16x15x4xbf16>
    tpu.vector_store %arg9[%c1_156, %c1_157, %c1_158, %c0_159], %152 {strides = array<i32>} : memref<2x18x16x12xbf16, #tpu.memory_space<vmem>>, vector<1x16x15x4xbf16>,
    %153 = vector.extract_strided_slice %145 {offsets = [0, 1, 0], sizes = [16, 15, 4], strides = [1, 1, 1]} : vector<16x16x4xbf16> to vector<16x15x4xbf16>
    %c1_160 = arith.constant 1 : index
    %c1_161 = arith.constant 1 : index
    %c0_162 = arith.constant 0 : index
    %c8_163 = arith.constant 8 : index
    %154 = vector.load %arg9[%c1_160, %c1_161, %c0_162, %c8_163] : memref<2x18x16x12xbf16, #tpu.memory_space<vmem>>, vector<1x16x15x4xbf16>
    %155 = vector.shape_cast %154 : vector<1x16x15x4xbf16> to vector<16x15x4xbf16>
    %156 = vector.shape_cast %153 : vector<16x15x4xbf16> to vector<1x16x15x4xbf16>
    tpu.vector_store %arg9[%c1_160, %c1_161, %c0_162, %c8_163], %156 {strides = array<i32>} : memref<2x18x16x12xbf16, #tpu.memory_space<vmem>>, vector<1x16x15x4xbf16>,
    %cst_164 = arith.constant 0.000000e+00 : f32
    %157 = vector.broadcast %cst_164 : f32 to vector<16x16x4xf32>
    %c1_165 = arith.constant 1 : index
    %c0_166 = arith.constant 0 : index
    %c0_167 = arith.constant 0 : index
    %c0_168 = arith.constant 0 : index
    %158 = vector.load %arg9[%c1_165, %c0_166, %c0_167, %c0_168] : memref<2x18x16x12xbf16, #tpu.memory_space<vmem>>, vector<1x16x16x12xbf16>
    %159 = vector.shape_cast %158 : vector<1x16x16x12xbf16> to vector<16x16x12xbf16>
    %c0_169 = arith.constant 0 : index
    %c0_170 = arith.constant 0 : index
    %c0_171 = arith.constant 0 : index
    %160 = vector.load %arg5[%c0_169, %c0_170, %c0_171] : memref<3x12x4xbf16, #tpu.memory_space<vmem>>, vector<1x12x4xbf16>
    %161 = vector.shape_cast %160 : vector<1x12x4xbf16> to vector<12x4xbf16>
    %cst_172 = arith.constant dense<0.000000e+00> : vector<16x16x4xf32>
    %162 = tpu.matmul %159, %161, %cst_172 {dimension_numbers = #tpu.dot_dimension_numbers<[2], [0], [0, 1], [1], [0, 0, 0, 1, 1, 1], [], []>} : vector<16x16x12xbf16>, vector<12x4xbf16>, vector<16x16x4xf32> -> vector<16x16x4xf32>
    %163 = arith.addf %157, %162 : vector<16x16x4xf32>
    %c1_173 = arith.constant 1 : index
    %c1_174 = arith.constant 1 : index
    %c0_175 = arith.constant 0 : index
    %c0_176 = arith.constant 0 : index
    %164 = vector.load %arg9[%c1_173, %c1_174, %c0_175, %c0_176] : memref<2x18x16x12xbf16, #tpu.memory_space<vmem>>, vector<1x16x16x12xbf16>
    %165 = vector.shape_cast %164 : vector<1x16x16x12xbf16> to vector<16x16x12xbf16>
    %c1_177 = arith.constant 1 : index
    %c0_178 = arith.constant 0 : index
    %c0_179 = arith.constant 0 : index
    %166 = vector.load %arg5[%c1_177, %c0_178, %c0_179] : memref<3x12x4xbf16, #tpu.memory_space<vmem>>, vector<1x12x4xbf16>
    %167 = vector.shape_cast %166 : vector<1x12x4xbf16> to vector<12x4xbf16>
    %cst_180 = arith.constant dense<0.000000e+00> : vector<16x16x4xf32>
    %168 = tpu.matmul %165, %167, %cst_180 {dimension_numbers = #tpu.dot_dimension_numbers<[2], [0], [0, 1], [1], [0, 0, 0, 1, 1, 1], [], []>} : vector<16x16x12xbf16>, vector<12x4xbf16>, vector<16x16x4xf32> -> vector<16x16x4xf32>
    %169 = arith.addf %163, %168 : vector<16x16x4xf32>
    %c1_181 = arith.constant 1 : index
    %c2_182 = arith.constant 2 : index
    %c0_183 = arith.constant 0 : index
    %c0_184 = arith.constant 0 : index
    %170 = vector.load %arg9[%c1_181, %c2_182, %c0_183, %c0_184] : memref<2x18x16x12xbf16, #tpu.memory_space<vmem>>, vector<1x16x16x12xbf16>
    %171 = vector.shape_cast %170 : vector<1x16x16x12xbf16> to vector<16x16x12xbf16>
    %c2_185 = arith.constant 2 : index
    %c0_186 = arith.constant 0 : index
    %c0_187 = arith.constant 0 : index
    %172 = vector.load %arg5[%c2_185, %c0_186, %c0_187] : memref<3x12x4xbf16, #tpu.memory_space<vmem>>, vector<1x12x4xbf16>
    %173 = vector.shape_cast %172 : vector<1x12x4xbf16> to vector<12x4xbf16>
    %cst_188 = arith.constant dense<0.000000e+00> : vector<16x16x4xf32>
    %174 = tpu.matmul %171, %173, %cst_188 {dimension_numbers = #tpu.dot_dimension_numbers<[2], [0], [0, 1], [1], [0, 0, 0, 1, 1, 1], [], []>} : vector<16x16x12xbf16>, vector<12x4xbf16>, vector<16x16x4xf32> -> vector<16x16x4xf32>
    %175 = arith.addf %169, %174 : vector<16x16x4xf32>
    %c0_189 = arith.constant 0 : index
    %c0_190 = arith.constant 0 : index
    %176 = vector.load %arg6[%c0_189, %c0_190] : memref<1x4xf32, #tpu.memory_space<vmem>>, vector<1x4xf32>
    %177 = vector.shape_cast %176 : vector<1x4xf32> to vector<4xf32>
    %178 = vector.shape_cast %177 : vector<4xf32> to vector<1x1x4xf32>
    %179 = vector.broadcast %178 : vector<1x1x4xf32> to vector<16x16x4xf32>
    %180 = arith.mulf %175, %179 : vector<16x16x4xf32>
    %c0_191 = arith.constant 0 : index
    %c0_192 = arith.constant 0 : index
    %181 = vector.load %arg7[%c0_191, %c0_192] : memref<1x4xf32, #tpu.memory_space<vmem>>, vector<1x4xf32>
    %182 = vector.shape_cast %181 : vector<1x4xf32> to vector<4xf32>
    %183 = vector.shape_cast %182 : vector<4xf32> to vector<1x1x4xf32>
    %184 = vector.broadcast %183 : vector<1x1x4xf32> to vector<16x16x4xf32>
    %185 = arith.addf %180, %184 : vector<16x16x4xf32>
    %c1_193 = arith.constant 1 : index
    %c0_194 = arith.constant 0 : index
    %c0_195 = arith.constant 0 : index
    %c0_196 = arith.constant 0 : index
    %186 = vector.load %arg1[%c1_193, %c0_194, %c0_195, %c0_196] : memref<2x16x16x4xf32, #tpu.memory_space<vmem>>, vector<1x16x16x4xf32>
    %187 = vector.shape_cast %186 : vector<1x16x16x4xf32> to vector<16x16x4xf32>
    %188 = arith.addf %185, %187 : vector<16x16x4xf32>
    %cst_197 = arith.constant 0.000000e+00 : f32
    %189 = vector.broadcast %cst_197 : f32 to vector<16x16x4xf32>
    %190 = arith.maximumf %188, %189 : vector<16x16x4xf32>
    %c1_198 = arith.constant 1 : index
    %c0_199 = arith.constant 0 : index
    %c0_200 = arith.constant 0 : index
    %c0_201 = arith.constant 0 : index
    %191 = vector.load %arg8[%c1_198, %c0_199, %c0_200, %c0_201] : memref<2x16x16x4xf32, #tpu.memory_space<vmem>>, vector<1x16x16x4xf32>
    %192 = vector.shape_cast %191 : vector<1x16x16x4xf32> to vector<16x16x4xf32>
    %193 = vector.shape_cast %190 : vector<16x16x4xf32> to vector<1x16x16x4xf32>
    tpu.vector_store %arg8[%c1_198, %c0_199, %c0_200, %c0_201], %193 {strides = array<i32>} : memref<2x16x16x4xf32, #tpu.memory_space<vmem>>, vector<1x16x16x4xf32>,
    return
  }
  func.func @transform_0(%arg0: i32) -> (i32, i32, i32, i32) {
    %c0_i32 = arith.constant 0 : i32
    %c0_i32_0 = arith.constant 0 : i32
    %c0_i32_1 = arith.constant 0 : i32
    %c0_i32_2 = arith.constant 0 : i32
    return %arg0, %c0_i32, %c0_i32_0, %c0_i32_1 : i32, i32, i32, i32
  }
  func.func @transform_1(%arg0: i32) -> (i32, i32, i32) {
    %c0_i32 = arith.constant 0 : i32
    %c0_i32_0 = arith.constant 0 : i32
    %c0_i32_1 = arith.constant 0 : i32
    %c0_i32_2 = arith.constant 0 : i32
    return %c0_i32, %c0_i32_0, %c0_i32_1 : i32, i32, i32
  }
  func.func @transform_2(%arg0: i32) -> (i32, i32) {
    %c0_i32 = arith.constant 0 : i32
    %c0_i32_0 = arith.constant 0 : i32
    %c0_i32_1 = arith.constant 0 : i32
    return %c0_i32, %c0_i32_0 : i32, i32
  }
  func.func @transform_3(%arg0: i32) -> (i32, i32) {
    %c0_i32 = arith.constant 0 : i32
    %c0_i32_0 = arith.constant 0 : i32
    %c0_i32_1 = arith.constant 0 : i32
    return %c0_i32, %c0_i32_0 : i32, i32
  }
  func.func @transform_4(%arg0: i32) -> (i32, i32, i32) {
    %c0_i32 = arith.constant 0 : i32
    %c0_i32_0 = arith.constant 0 : i32
    %c0_i32_1 = arith.constant 0 : i32
    %c0_i32_2 = arith.constant 0 : i32
    return %c0_i32, %c0_i32_0, %c0_i32_1 : i32, i32, i32
  }
  func.func @transform_5(%arg0: i32) -> (i32, i32) {
    %c0_i32 = arith.constant 0 : i32
    %c0_i32_0 = arith.constant 0 : i32
    %c0_i32_1 = arith.constant 0 : i32
    return %c0_i32, %c0_i32_0 : i32, i32
  }
  func.func @transform_6(%arg0: i32) -> (i32, i32) {
    %c0_i32 = arith.constant 0 : i32
    %c0_i32_0 = arith.constant 0 : i32
    %c0_i32_1 = arith.constant 0 : i32
    return %c0_i32, %c0_i32_0 : i32, i32
  }
  func.func @transform_7(%arg0: i32) -> (i32, i32, i32, i32) {
    %c0_i32 = arith.constant 0 : i32
    %c0_i32_0 = arith.constant 0 : i32
    %c0_i32_1 = arith.constant 0 : i32
    %c0_i32_2 = arith.constant 0 : i32
    return %arg0, %c0_i32, %c0_i32_0, %c0_i32_1 : i32, i32, i32, i32
  }
}

</mosaic_0001>

<bundles_post_ra>
// kernel: tpu_custom_call.1
= control target key start
LH: loop header
LB: loop body
LE: loop exit
PB: predicated region body
PF: predicated region fallthrough
CT: control target
= control target key end

     0   :  { %s8907_s11 = smov 4   ;;  %vm819_vm0 = vsmask.f32 3328  ;;  %s8908_s12 = smov 8   ;;  %vm820_vm1 = vsmask.f32 7440  ;;  %s12433_s0 = inlined_call_operand.vmem [shape: f32[2,16,16,4], index: 0, kind: input, shape index: {}]   ;;  %s12434_s1 = inlined_call_operand.vmem [shape: bf16[3,12,4], index: 1, kind: input, shape index: {}]   ;;  %s12435_s2 = inlined_call_operand.vmem [shape: f32[1,4], index: 2, kind: input, shape index: {}]   ;;  %s12436_s3 = inlined_call_operand.vmem [shape: f32[1,4], index: 3, kind: input, shape index: {}]   ;;  %s12437_s4 = inlined_call_operand.vmem [shape: bf16[3,12,4], index: 4, kind: input, shape index: {}]   ;;  %s12438_s5 = inlined_call_operand.vmem [shape: f32[1,4], index: 5, kind: input, shape index: {}]   ;;  %s12439_s6 = inlined_call_operand.vmem [shape: f32[1,4], index: 6, kind: input, shape index: {}]   ;;  %s12440_s7 = inlined_call_operand.vmem [shape: f32[2,16,16,4], index: 7, kind: output, shape index: {}]  }
   0x1   :  { %v236_v0 = vld [vmem:[%s12433_s0] sm:$0xff]  ;;  %v237_v1 = vld [vmem:[%s12433_s0 + $0x8] sm:$0xff]  ;;  %v238_v2 = vld [vmem:[%s12433_s0 + $0x10] sm:$0xff]  ;;  %vm38_vm3 = vcmask 24576   ;;  %vm39_vm4 = vsmask.f32 256 }
   0x2   :  { %v268_v3 = vpack.c.bf16 %v236_v0, %v236_v0  ;;  %v269_v4 = vpack.c.bf16 %v237_v1, %v237_v1  ;;  %v8959_v5 = vpack.c.bf16 %v238_v2, %v238_v2  ;;  %v239_v6 = vld [vmem:[%s12433_s0 + $0x18] sm:$0xff]  ;;  %v241_v7 = vld [vmem:[%s12433_s0 + $0x28] sm:$0xff]  ;;  %v242_v40 = vld [vmem:[%s12433_s0 + $0x30] sm:$0xff]  ;;  %vm27_vm6 = vcmask 93184  }
   0x3   :  { %v271_v8 = vpack.c.bf16 %v239_v6, %v239_v6  ;;  %v8967_v9 = vpack.c.bf16 %v241_v7, %v241_v7  ;;  %v240_v41 = vld [vmem:[%s12433_s0 + $0x20] sm:$0xff]  ;;  %v9000_v43 = vpack.c.bf16 %v242_v40, %v242_v40  ;;  %vm9011_vm2 = vmor %vm819_vm0, %vm820_vm1  ;;  %v245_v0 = vld [vmem:[%s12433_s0 + $0x48] sm:$0xff]  ;;  %vm137_vm7 = vcmask 93251  }
   0x4   :  { %332 = vrot.lane.b32.xlu0 %v268_v3, %s8907_s11  ;;  %v464_v10 = vshrl.u32 %v268_v3, 16  ;;  %v467_v11 = vshll.u32 %v268_v3, 16  ;;  %v472_v12 = vshrl.u32 %v269_v4, 16  ;;  %v475_v13 = vshll.u32 %v269_v4, 16  ;;  %v244_v45 = vld [vmem:[%s12433_s0 + $0x40] sm:$0xff]  ;;  %v243_v6 = vld [vmem:[%s12433_s0 + $0x38] sm:$0xff]  ;;  %vm9106_vm5 = vmand %vm38_vm3, %vm39_vm4 }
   0x5   :  { %v480_v14 = vshrl.u32 %v8959_v5, 16  ;;  %v483_v15 = vshll.u32 %v8959_v5, 16  ;;  %v488_v16 = vshrl.u32 %v271_v8, 16  ;;  %v491_v17 = vshll.u32 %v271_v8, 16  ;;  %338 = vrot.lane.b32.xlu2 %v271_v8, %s8907_s11 }
   0x6   :  { %v8973_v18 = vrot.slane %v464_v10, 7  ;;  %v826_v19 = vrot.slane %v475_v13, 5  ;;  %v828_v20 = vrot.slane %v472_v12, 4  ;;  %v474_v21 = vrot.slane %v472_v12, 7 }
   0x7   :  { %v8975_v22 = vrot.slane %v480_v14, 7  ;;  %v490_v23 = vrot.slane %v488_v16, 7  ;;  %v8977_v24 = vrot.slane %v491_v17, 5  ;;  %v837_v25 = vrot.slane %v488_v16, 4 }
   0x8   :  { %v8980_v26 = vor.u32 %v467_v11, %v8973_v18  ;;  %v829_v27 = vor.u32 %v828_v20, %v826_v19  ;;  %v8982_v28 = vor.u32 %v475_v13, %v474_v21  ;;  %v504_v32 = vshrl.u32 %v8967_v9, 16  ;;  %v247_v21 = vld [vmem:[%s12433_s0 + $0x58] sm:$0xff] }
   0x9   :  { %v8985_v29 = vor.u32 %v483_v15, %v8975_v22  ;;  %v8987_v30 = vor.u32 %v491_v17, %v490_v23  ;;  %v838_v33 = vor.u32 %v837_v25, %v8977_v24  ;;  %v822_v34 = vrot.slane %v464_v10, 4 }
   0xa   :  { %v830_v31 = vrot.slane %v829_v27, 4  ;;  %v823_v35 = vrot.slane %v467_v11, 5  ;;  %v831_v36 = vrot.slane %v480_v14, 4  ;;  %v832_v37 = vrot.slane %v483_v15, 5 }
   0xb   :  { %v506_v38 = vrot.slane %v504_v32, 7  ;;  %v507_v39 = vshll.u32 %v8967_v9, 16  ;;  %v272_v44 = vpack.c.bf16 %v240_v41, %v240_v41  ;;  %v9007_v47 = vpack.c.bf16 %v244_v45, %v244_v45 }
   0xc   :  { %968 = vrot.lane.b32.xlu1 %v830_v31, %s8908_s12  ;;  %334 = vrot.lane.b32.xlu0 %v269_v4, %s8907_s11  ;;  %v824_v42 = vor.u32 %v823_v35, %v822_v34  ;;  %v512_v49 = vshrl.u32 %v9000_v43, 16  ;;  %v839_v50 = vrot.slane %v838_v33, 4  ;;  %v833_v52 = vor.u32 %v832_v37, %v831_v36 }
   0xd   :  { %v9005_v46 = vor.u32 %v507_v39, %v506_v38  ;;  %v496_v53 = vshrl.u32 %v272_v44, 16  ;;  %v515_v56 = vshll.u32 %v9000_v43, 16  ;;  %v499_v57 = vshll.u32 %v272_v44, 16 }
   0xe   :  { %v825_v48 = vrot.slane %v824_v42, 4  ;;  %v9017_v55 = vrot.slane %v512_v49, 7  ;;  %v528_v59 = vshrl.u32 %v9007_v47, 16  ;;  %v531_v63 = vshll.u32 %v9007_v47, 16 }
   0xf   :  { %v9021_v58 = vrot.slane %v496_v53, 7  ;;  %v834_v1 = vrot.slane %v833_v52, 4  ;;  %v840_v2 = vrot.slane %v496_v53, 4  ;;  %v841_v3 = vrot.slane %v499_v57, 5 }
  0x10   :  { %v827_v54 = vsel %vm9011_vm2, %v825_v48, %v826_v19  ;;  %v9025_v60 = vor.u32 %v515_v56, %v9017_v55  ;;  %v9033_v62 = vrot.slane %v528_v59, 7  ;;  %v9039_v4 = vpack.c.bf16 %v245_v0, %v245_v0  ;;  %v250_v0 = vld [vmem:[%s12433_s0 + $0x70] sm:$0xff] }
  0x11   :  { %966 = vrot.lane.b32.xlu2 %v827_v54, %s8908_s12  ;;  %v9031_v61 = vor.u32 %v499_v57, %v9021_v58  ;;  %v842_v7 = vor.u32 %v841_v3, %v840_v2  ;;  %v844_v10 = vrot.slane %v507_v39, 5  ;;  %v846_v11 = vrot.slane %v504_v32, 4  ;;  %v246_v54 = vld [vmem:[%s12433_s0 + $0x50] sm:$0xff] }
  0x12   :  { %v536_v8 = vshrl.u32 %v9039_v4, 16  ;;  %v836_v12 = vsel %vm9011_vm2, %v834_v1, %v8977_v24  ;;  %v539_v14 = vshll.u32 %v9039_v4, 16  ;;  %v275_v15 = vpack.c.bf16 %v243_v6, %v243_v6 }
  0x13   :  { %v843_v16 = vrot.slane %v842_v7, 4  ;;  %v847_v19 = vor.u32 %v846_v11, %v844_v10  ;;  %v849_v24 = vrot.slane %v512_v49, 4  ;;  %v850_v25 = vrot.slane %v515_v56, 5 }
  0x14   :  { %336 = vrot.lane.b32.xlu1 %v8959_v5, %s8907_s11  ;;  %972 = vrot.lane.b32.xlu0 %v839_v50, %s8908_s12  ;;  %v9042_v5 = vor.u32 %v531_v63, %v9033_v62  ;;  %v538_v13 = vrot.slane %v536_v8, 7  ;;  %v523_v20 = vshll.u32 %v275_v15, 16  ;;  %v520_v23 = vshrl.u32 %v275_v15, 16 }
  0x15   :  { %v279_v27 = vpack.c.bf16 %v247_v21, %v247_v21  ;;  %v845_v33 = vsel %vm9011_vm2, %v843_v16, %v844_v10  ;;  %v848_v35 = vrot.slane %v847_v19, 4  ;;  %v862_v45 = vrot.slane %v539_v14, 5  ;;  %v41_v19 = vld [vmem:[#allocation2 + $0x8] sm:$0x1] }
  0x16   :  { %v9053_v17 = vor.u32 %v539_v14, %v538_v13  ;;  %v522_v31 = vrot.slane %v520_v23, 7  ;;  %v855_v32 = vrot.slane %v520_v23, 4  ;;  %v853_v36 = vrot.slane %v523_v20, 5 }
  0x17   :  { %v552_v34 = vshrl.u32 %v279_v27, 16  ;;  %v555_v39 = vshll.u32 %v279_v27, 16  ;;  %v864_v48 = vrot.slane %v536_v8, 4  ;;  %v858_v52 = vrot.slane %v528_v59, 4 }
  0x18   :  { %v9063_v37 = vor.u32 %v523_v20, %v522_v31  ;;  %v856_v40 = vor.u32 %v855_v32, %v853_v36  ;;  %v859_v53 = vrot.slane %v531_v63, 5  ;;  %v278_v57 = vpack.c.bf16 %v246_v54, %v246_v54  ;;  %v249_v31 = vld [vmem:[%s12433_s0 + $0x68] sm:$0xff] }
  0x19   :  { %340 = vrot.lane.b32.xlu2 %v272_v44, %s8907_s11  ;;  %v554_v38 = vrot.slane %v552_v34, 7  ;;  %v865_v50 = vor.u32 %v864_v48, %v862_v45  ;;  %v282_v1 = vpack.c.bf16 %v250_v0, %v250_v0  ;;  %v42_v21 = vsel %vm9106_vm5, 0, %v41_v19  ;;  %v8702_v19 = vld [vmem:[%s12434_s1] sm:$0x30] }
  0x1a   :  { %v857_v44 = vrot.slane %v856_v40, 4  ;;  %v544_v3 = vshrl.u32 %v278_v57, 16  ;;  %v860_v59 = vor.u32 %v859_v53, %v858_v52  ;;  %v547_v11 = vshll.u32 %v278_v57, 16  ;;  %43 = vst [vmem:[#allocation2 + $0x8] sm:$0x1] %v42_v21 }
  0x1b   :  { %v9066_v41 = vor.u32 %v555_v39, %v554_v38  ;;  %v866_v6 = vrot.slane %v865_v50, 4  ;;  %v576_v63 = vshrl.u32 %v282_v1, 16  ;;  %v579_v13 = vshll.u32 %v282_v1, 16 }
  0x1c   :  { %970 = vrot.lane.b32.xlu1 %v836_v12, %s8908_s12  ;;  %342 = vrot.lane.b32.xlu0 %v8967_v9, %s8907_s11  ;;  %v851_v9 = vor.u32 %v850_v25, %v849_v24  ;;  %v9087_v10 = vrot.slane %v544_v3, 7  ;;  %v871_v23 = vrot.slane %v555_v39, 5  ;;  %v873_v24 = vrot.slane %v552_v34, 4 }
  0x1d   :  { %v9091_v12 = vrot.slane %v576_v63, 7  ;;  %v867_v40 = vrot.slane %v544_v3, 4  ;;  %v470_v3 = vrot.slane %v8973_v18, 4  ;;  %vm138_vm8 = vsmask.f32 7950 }
  0x1e   :  { %v852_v42 = vrot.slane %v851_v9, 4  ;;  %v874_v25 = vor.u32 %v873_v24, %v871_v23  ;;  %vm9150_vm9 = vmand %vm137_vm7, %vm138_vm8  ;;  %v7718_v18 = vld [vmem:[%s12434_s1] sm:$0xf]  ;;  %vm461_vm10 = vsmask.f32 4368  ;;  %vm1332_vm12 = vcmask 1045504  }
  0x1f   :  { %v9103_v16 = vor.u32 %v579_v13, %v9091_v12  ;;  %vm9168_vm11 = vmor %vm39_vm4, %vm461_vm10  ;;  %vm1283_vm13 = vcmask 97280   ;;  %vm428_vm14 = vcmask 60448   ;;  %vm751_vm15 = vcmask 27648  }
  0x20   :  { %v854_v49 = vsel %vm9011_vm2, %v852_v42, %v853_v36  ;;  %v875_v34 = vrot.slane %v874_v25, 4  ;;  %v868_v42 = vrot.slane %v547_v11, 5  ;;  %v9175_v24 = vsel %vm9168_vm11, %v470_v3, %v8982_v28  ;;  %v253_v28 = vld [vmem:[%s12433_s0 + $0x88] sm:$0xff] }
  0x21   :  { %974 = vrot.lane.b32.xlu2 %v845_v33, %s8908_s12  ;;  %vm752_vm1 = vsmask.f32 7938  ;;  %vm1062_vm4 = vcmask 93248  }
  0x22   :  { %vm9263_vm3 = vmand %vm751_vm15, %vm752_vm1 }
  0x24   :  { %976 = vrot.lane.b32.xlu1 %v848_v35, %s8908_s12  ;;  %344 = vrot.lane.b32.xlu0 %v9000_v43, %s8907_s11  ;;  %v248_v43 = vld [vmem:[%s12433_s0 + $0x60] sm:$0xff]  ;;  %v9120_v35 = vpack.c.bf16 %v249_v31, %v249_v31 }
  0x25   :  { %v280_v56 = vpack.c.bf16 %v248_v43, %v248_v43 }
  0x26   :  { %v571_v36 = vshll.u32 %v9120_v35, 16 }
  0x27   :  { %v560_v2 = vshrl.u32 %v280_v56, 16  ;;  %v563_v8 = vshll.u32 %v280_v56, 16 }
  0x29   :  { %980 = vrot.lane.b32.xlu2 %v857_v44, %s8908_s12  ;;  %v9085_v7 = vrot.slane %v560_v2, 7  ;;  %v876_v32 = vrot.slane %v560_v2, 4  ;;  %v877_v33 = vrot.slane %v563_v8, 5  ;;  %v869_v44 = vor.u32 %v868_v42, %v867_v40  ;;  %v44_v42 = vld [vmem:[#allocation2 + $0x10] sm:$0x1] }
  0x2a   :  { %v486_v40 = vrot.slane %v8975_v22, 4 }
  0x2b   :  { %v9094_v14 = vor.u32 %v563_v8, %v9085_v7  ;;  %v878_v9 = vor.u32 %v877_v33, %v876_v32 }
  0x2c   :  { %346 = vrot.lane.b32.xlu1 %v275_v15, %s8907_s11  ;;  %978 = vrot.lane.b32.xlu0 %v854_v49, %s8908_s12  ;;  %v9097_v15 = vor.u32 %v547_v11, %v9087_v10  ;;  %v870_v49 = vrot.slane %v869_v44, 4 }
  0x2d   :  { %v879_v38 = vrot.slane %v878_v9, 4 }
  0x2e   :  { %v872_v53 = vsel %vm9011_vm2, %v870_v49, %v871_v23  ;;  %v7719_v23 = vor.u32 %v8702_v19, %v7718_v18  ;;  %v7804_v19 = vld [vmem:[%s12434_s1 + $0x10] sm:$0xf] }
  0x30   :  { %v1559_v31 = vsel %vm1332_vm12, %v7719_v23, 0 }
  0x31   :  { %350 = vrot.lane.b32.xlu2 %v9039_v4, %s8907_s11  ;;  %v861_v4 = vrot.slane %v860_v59, 4  ;;  %1568 = vmatpush.bf16.msra.mxu1 %v1559_v31 }
  0x34   :  { %348 = vrot.lane.b32.xlu1 %v9007_v47, %s8907_s11  ;;  %984 = vrot.lane.b32.xlu0 %v866_v6, %s8908_s12  ;;  %v863_v47 = vsel %vm9011_vm2, %v861_v4, %v862_v45  ;;  %v251_v45 = vld [vmem:[%s12433_s0 + $0x78] sm:$0xff]  ;;  %v568_v4 = vshrl.u32 %v9120_v35, 16 }
  0x35   :  { %v9138_v48 = vpack.c.bf16 %v251_v45, %v251_v45 }
  0x37   :  { %v584_v50 = vshrl.u32 %v9138_v48, 16  ;;  %v587_v52 = vshll.u32 %v9138_v48, 16 }
  0x39   :  { %352 = vrot.lane.b32.xlu2 %v278_v57, %s8907_s11  ;;  %v889_v43 = vrot.slane %v587_v52, 5  ;;  %v891_v54 = vrot.slane %v584_v50, 4  ;;  %v886_v57 = vrot.slane %v579_v13, 5  ;;  %v586_v25 = vrot.slane %v584_v50, 7 }
  0x3a   :  { %v45_v50 = vsel %vm9106_vm5, 0, %v44_v42 }
  0x3b   :  { %v892_v0 = vor.u32 %v891_v54, %v889_v43  ;;  %v9182_v33 = vor.u32 %v587_v52, %v586_v25  ;;  %v570_v54 = vrot.slane %v568_v4, 7  ;;  %46 = vst [vmem:[#allocation2 + $0x10] sm:$0x1] %v45_v50 }
  0x3c   :  { %982 = vrot.lane.b32.xlu1 %v863_v47, %s8908_s12  ;;  %354 = vrot.lane.b32.xlu0 %v279_v27, %s8907_s11  ;;  %v9127_v27 = vrot.slane %v571_v36, 5  ;;  %v882_v47 = vrot.slane %v568_v4, 4 }
  0x3d   :  { %v893_v6 = vrot.slane %v892_v0, 4  ;;  %v7634_v0 = vld [vmem:[%s12434_s1 + $0x8] sm:$0xf] }
  0x3e   :  { %v881_v39 = vsel %vm9011_vm2, %v879_v38, %v9127_v27  ;;  %v883_v32 = vor.u32 %v882_v47, %v9127_v27  ;;  %v285_v38 = vpack.c.bf16 %v253_v28, %v253_v28  ;;  %v143_v27 = vld [vmem:[#allocation2 + $0x14] sm:$0x8]  ;;  %v8736_v47 = vld [vmem:[%s12434_s1 + $0x10] sm:$0x30] }
  0x3f   :  { %v144_v49 = vsel %vm9150_vm9, 0, %v143_v27  ;;  %v252_v27 = vld [vmem:[%s12433_s0 + $0x80] sm:$0xff] }
  0x40   :  { %v600_v44 = vshrl.u32 %v285_v38, 16  ;;  %v603_v45 = vshll.u32 %v285_v38, 16  ;;  %145 = vst [vmem:[#allocation2 + $0x14] sm:$0x8] %v144_v49 }
  0x41   :  { %986 = vrot.lane.b32.xlu2 %v872_v53, %s8908_s12  ;;  %v494_v53 = vsel %vm9168_vm11, %v486_v40, %v8987_v30 }
  0x42   :  { %v9197_v52 = vrot.slane %v603_v45, 5  ;;  %v900_v22 = vrot.slane %v600_v44, 4 }
  0x44   :  { %988 = vrot.lane.b32.xlu1 %v875_v34, %s8908_s12  ;;  %356 = vrot.lane.b32.xlu0 %v280_v56, %s8907_s11  ;;  %v885_v56 = vrot.slane %v576_v63, 4  ;;  %v140_v63 = vld [vmem:[#allocation2 + $0xc] sm:$0x8] }
  0x45   :  { %v141_v13 = vsel %vm9150_vm9, 0, %v140_v63  ;;  %v254_v63 = vld [vmem:[%s12433_s0 + $0x90] sm:$0xff] }
  0x46   :  { %v887_v2 = vor.u32 %v886_v57, %v885_v56  ;;  %142 = vst [vmem:[#allocation2 + $0xc] sm:$0x8] %v141_v13  ;;  %v9207_v57 = vor.u32 %v571_v36, %v570_v54  ;;  %v47_v13 = vld [vmem:[#allocation2 + $0x18] sm:$0x1] }
  0x47   :  { %v48_v23 = vsel %vm9106_vm5, 0, %v47_v13  ;;  %v256_v13 = vld [vmem:[%s12433_s0 + $0xa0] sm:$0xff] }
  0x48   :  { %v888_v59 = vrot.slane %v887_v2, 4  ;;  %v8719_v2 = vld [vmem:[%s12434_s1 + $0x8] sm:$0x30]  ;;  %49 = vst [vmem:[#allocation2 + $0x18] sm:$0x1] %v48_v23 }
  0x49   :  { %v7635_v3 = vor.u32 %v8719_v2, %v7634_v0 }
  0x4a   :  { %v890_v11 = vsel %vm9011_vm2, %v888_v59, %v889_v43  ;;  %v901_v43 = vor.u32 %v900_v22, %v9197_v52  ;;  %v255_v59 = vld [vmem:[%s12433_s0 + $0x98] sm:$0xff] }
  0x4b   :  { %v1334_v36 = vsel %vm1332_vm12, %v7635_v3, 0  ;;  %v9230_v18 = vpack.c.bf16 %v255_v59, %v255_v59  ;;  %v518_v3 = vrot.slane %v9017_v55, 4 }
  0x4c   :  { %358 = vrot.lane.b32.xlu1 %v9120_v35, %s8907_s11  ;;  %990 = vrot.lane.b32.xlu0 %v881_v39, %s8908_s12  ;;  %v884_v39 = vrot.slane %v883_v32, 4  ;;  %v902_v56 = vrot.slane %v901_v43, 4  ;;  %v502_v35 = vrot.slane %v9021_v58, 4  ;;  %v7805_v32 = vor.u32 %v8736_v47, %v7804_v19  ;;  %v50_v47 = vld [vmem:[#allocation2 + $0x20] sm:$0x1] }
  0x4d   :  { %1343 = vmatpush.bf16.msra.mxu0 %v1334_v36  ;;  %v619_v42 = vshll.u32 %v9230_v18, 16  ;;  %v9302_v23 = vsel %vm9168_vm11, %v518_v3, %v9063_v37 }
  0x4e   :  { %992 = vrot.lane.b32.xlu2 %v884_v39, %s8908_s12  ;;  %v9235_v58 = vsel %vm9168_vm11, %v502_v35, %v9005_v46 }
  0x4f   :  { %v9269_v22 = vrot.slane %v619_v42, 5 }
  0x54   :  { %360 = vrot.lane.b32.xlu1 %v282_v1, %s8907_s11  ;;  %v8909_v1 = vmov 0   ;;  %996 = vrot.lane.b32.xlu0 %v893_v6, %s8908_s12  ;;  %v602_v6 = vrot.slane %v600_v44, 7 }
  0x55   :  { %28 = vst.msk [vmem:[#allocation2] sm:$0xf] %vm27_vm6, %v8909_v1 }
  0x56   :  { %29 = vst.msk [vmem:[#allocation2 + $0x4] sm:$0xf] %vm27_vm6, %v8909_v1  ;;  %362 = vrot.lane.b32.xlu2 %v9138_v48, %s8907_s11  ;;  %v286_v48 = vpack.c.bf16 %v254_v63, %v254_v63 }
  0x57   :  { %30 = vst.msk [vmem:[#allocation2 + $0x90] sm:$0xf] %vm27_vm6, %v8909_v1 }
  0x58   :  { %31 = vst.msk [vmem:[#allocation2 + $0x94] sm:$0xf] %vm27_vm6, %v8909_v1  ;;  %v608_v46 = vshrl.u32 %v286_v48, 16  ;;  %v611_v25 = vshll.u32 %v286_v48, 16 }
  0x59   :  { %33 = vst.msk [vmem:[#allocation2 + $0x88] sm:$0xf] %vm27_vm6, %v8909_v1 }
  0x5a   :  { %34 = vst.msk [vmem:[#allocation2 + $0x8c] sm:$0xf] %vm27_vm6, %v8909_v1  ;;  %v9251_v28 = vrot.slane %v608_v46, 7  ;;  %v904_v39 = vrot.slane %v611_v25, 5 }
  0x5b   :  { %35 = vst.msk [vmem:[#allocation2 + $0x118] sm:$0xf] %vm27_vm6, %v8909_v1 }
  0x5c   :  { %994 = vrot.lane.b32.xlu1 %v890_v11, %s8908_s12  ;;  %36 = vst.msk [vmem:[#allocation2 + $0x11c] sm:$0xf] %vm27_vm6, %v8909_v1  ;;  %366 = vrot.lane.b32.xlu0 %v285_v38, %s8907_s11  ;;  %v9222_v1 = vor.u32 %v603_v45, %v602_v6  ;;  %v146_v11 = vld [vmem:[#allocation2 + $0x1c] sm:$0x8]  ;;  %v903_v38 = vrot.slane %v608_v46, 4  ;;  %v9256_v40 = vor.u32 %v611_v25, %v9251_v28  ;;  %v51_v25 = vsel %vm9106_vm5, 0, %v50_v47  ;;  %vm9316_vm6 = vmand %vm1062_vm4, %vm819_vm0 }
  0x5d   :  { %v8686_v34 = vld [vmem:[#allocation2] sm:$0xff]  ;;  %v147_v4 = vsel %vm9150_vm9, 0, %v146_v11  ;;  %v284_v45 = vpack.c.bf16 %v252_v27, %v252_v27  ;;  %52 = vst [vmem:[#allocation2 + $0x20] sm:$0x1] %v51_v25  ;;  %vm3874_vm0 = vcmask 31744  }
  0x5e   :  { %7720 = vmatmul.msk.bf16.vlgmr.msra.gmra.mxu1 %vm1283_vm13, %v8686_v34  ;;  %148 = vst [vmem:[#allocation2 + $0x1c] sm:$0x8] %v147_v4  ;;  %v905_v44 = vor.u32 %v904_v39, %v903_v38  ;;  %v288_v4 = vpack.c.bf16 %v256_v13, %v256_v13  ;;  %v616_v13 = vshrl.u32 %v9230_v18, 16 }
  0x5f   :  { %v339_v9 = vpop.permute.xlu2 %338  ;;  %v595_v43 = vshll.u32 %v284_v45, 16  ;;  %364 = vrot.lane.b32.xlu2 %v284_v45, %s8907_s11 }
  0x60   :  { %432 = vst.msk [vmem:[#allocation2 + $0x14] sm:$0xf] %vm428_vm14, %v339_v9  ;;  %v1820_v9 = vsel %vm1332_vm12, %v7805_v32, 0  ;;  %v906_v50 = vrot.slane %v905_v44, 4  ;;  %v624_v32 = vshrl.u32 %v288_v4, 16 }
  0x61   :  { %762 = vst.msk [vmem:[#allocation2 + $0x14] sm:$0xf] %vm751_vm15, %v494_v53  ;;  %1829 = vmatpush.bf16.msra.mxu2 %v1820_v9  ;;  %v592_v53 = vshrl.u32 %v284_v45, 16 }
  0x62   :  { %v908_v2 = vsel %vm9011_vm2, %v906_v50, %v9269_v22  ;;  %v9326_v50 = vrot.slane %v624_v32, 7 }
  0x63   :  { %v9280_v6 = vrot.slane %v592_v53, 7  ;;  %v894_v63 = vrot.slane %v592_v53, 4 }
  0x64   :  { %1000 = vrot.lane.b32.xlu1 %v902_v56, %s8908_s12  ;;  %368 = vrot.lane.b32.xlu0 %v286_v48, %s8907_s11  ;;  %v895_v48 = vrot.slane %v595_v43, 5 }
  0x66   :  { %v896_v19 = vor.u32 %v895_v48, %v894_v63 }
  0x68   :  { %v1070_v11 = vld [vmem:[#allocation2 + $0x14] sm:$0xf] }
  0x6b   :  { %v9215_v30 = vpop.permute.xlu2 %966 }
  0x6c   :  { %370 = vrot.lane.b32.xlu1 %v9230_v18, %s8907_s11  ;;  %1002 = vrot.lane.b32.xlu0 %v908_v2, %s8908_s12 }
  0x73   :  { %v341_v31 = vpop.permute.xlu2 %340 }
  0x74   :  { %433 = vst.msk [vmem:[#allocation2 + $0x18] sm:$0xf] %vm428_vm14, %v341_v31  ;;  %v897_v31 = vrot.slane %v896_v19, 4  ;;  %372 = vrot.lane.b32.xlu1 %v288_v4, %s8907_s11 }
  0x76   :  { %v333_v34 = vpop.permute.xlu0 %332  ;;  %v899_v44 = vsel %vm9011_vm2, %v897_v31, %v9197_v52 }
  0x77   :  { %429 = vst.msk [vmem:[#allocation2 + $0x8] sm:$0xf] %vm428_vm14, %v333_v34  ;;  %v627_v34 = vshll.u32 %v288_v4, 16  ;;  %998 = vrot.lane.b32.xlu2 %v899_v44, %s8908_s12 }
  0x79   :  { %v913_v2 = vrot.slane %v627_v34, 5  ;;  %v9332_v52 = vor.u32 %v627_v34, %v9326_v50  ;;  %v618_v34 = vrot.slane %v616_v13, 7 }
  0x7b   :  { %v763_v36 = vld [vmem:[#allocation2 + $0x18] sm:$0xf]  ;;  %v975_v55 = vpop.permute.xlu2 %974  ;;  %v9367_v44 = vor.u32 %v619_v42, %v618_v34 }
  0x7c   :  { %v764_v59 = vsel %vm9263_vm3, %v9031_v61, %v763_v36  ;;  %v257_v61 = vld [vmem:[%s12433_s0 + $0xa8] sm:$0xff] }
  0x7d   :  { %765 = vst [vmem:[#allocation2 + $0x18] sm:$0xf] %v764_v59 }
  0x7e   :  { %v754_v54 = vld [vmem:[#allocation2 + $0x8] sm:$0xf]  ;;  %v969_v56 = vpop.permute.xlu1 %968  ;;  %v335_v0 = vpop.permute.xlu0 %334  ;;  %1073 = vst.msk [vmem:[#allocation2 + $0x18] sm:$0xf] %vm1062_vm4, %v975_v55 }
  0x7f   :  { %v755_v35 = vsel %vm9263_vm3, %v8980_v26, %v754_v54  ;;  %430 = vst.msk [vmem:[#allocation2 + $0xc] sm:$0xf] %vm428_vm14, %v335_v0  ;;  %v9289_v26 = vor.u32 %v595_v43, %v9280_v6  ;;  %v912_v0 = vrot.slane %v624_v32, 4 }
  0x80   :  { %756 = vst [vmem:[#allocation2 + $0x8] sm:$0xf] %v755_v35 }
  0x81   :  { %758 = vst.msk [vmem:[#allocation2 + $0xc] sm:$0xf] %vm751_vm15, %v9175_v24  ;;  %v149_v24 = vld [vmem:[#allocation2 + $0x24] sm:$0x8]  ;;  %v914_v59 = vor.u32 %v913_v2, %v912_v0 }
  0x82   :  { %1063 = vst.msk [vmem:[#allocation2 + $0x8] sm:$0xf] %vm1062_vm4, %v9215_v30  ;;  %v9304_v30 = vpack.c.bf16 %v257_v61, %v257_v61  ;;  %v150_v46 = vsel %vm9150_vm9, 0, %v149_v24  ;;  %v534_v24 = vrot.slane %v9033_v62, 4  ;;  %v259_v62 = vld [vmem:[%s12433_s0 + $0xb8] sm:$0xff] }
  0x83   :  { %151 = vst [vmem:[#allocation2 + $0x24] sm:$0x8] %v150_v46  ;;  %v9334_v48 = vpop.permute.xlu2 %980  ;;  %v909_v46 = vrot.slane %v616_v13, 4 }
  0x84   :  { %v632_v37 = vshrl.u32 %v9304_v30, 16  ;;  %v635_v9 = vshll.u32 %v9304_v30, 16 }
  0x85   :  { %v910_v32 = vor.u32 %v909_v46, %v9269_v22  ;;  %v542_v22 = vsel %vm9168_vm11, %v534_v24, %v9053_v17 }
  0x86   :  { %v337_v39 = vpop.permute.xlu1 %336  ;;  %v973_v27 = vpop.permute.xlu0 %972  ;;  %v916_v53 = vrot.slane %v635_v9, 5  ;;  %v918_v43 = vrot.slane %v632_v37, 4  ;;  %v634_v36 = vrot.slane %v632_v37, 7 }
  0x87   :  { %431 = vst.msk [vmem:[#allocation2 + $0x10] sm:$0xf] %vm428_vm14, %v337_v39  ;;  %v1071_v45 = vsel %vm9316_vm6, %v973_v27, %v1070_v11  ;;  %v915_v11 = vrot.slane %v914_v59, 4  ;;  %v911_v37 = vrot.slane %v910_v32, 4  ;;  %v152_v39 = vld [vmem:[#allocation2 + $0x2c] sm:$0x8] }
  0x88   :  { %v1066_v54 = vld [vmem:[#allocation2 + $0xc] sm:$0xf]  ;;  %1072 = vst [vmem:[#allocation2 + $0x14] sm:$0xf] %v1071_v45  ;;  %v919_v35 = vor.u32 %v918_v43, %v916_v53  ;;  %v9336_v55 = vor.u32 %v635_v9, %v634_v36  ;;  %v53_v9 = vld [vmem:[#allocation2 + $0x28] sm:$0x1] }
  0x89   :  { %v1067_v3 = vsel %vm9316_vm6, %v969_v56, %v1066_v54  ;;  %v917_v4 = vsel %vm9011_vm2, %v915_v11, %v916_v53  ;;  %v153_v27 = vsel %vm9150_vm9, 0, %v152_v39  ;;  %1004 = vrot.lane.b32.xlu2 %v911_v37, %s8908_s12  ;;  %v56_v32 = vld [vmem:[#allocation2 + $0x30] sm:$0x1]  ;;  %v566_v39 = vrot.slane %v9085_v7, 4 }
  0x8a   :  { %1068 = vst [vmem:[#allocation2 + $0xc] sm:$0xf] %v1067_v3  ;;  %v920_v63 = vrot.slane %v919_v35, 4  ;;  %1006 = vrot.lane.b32.xlu1 %v917_v4, %s8908_s12 }
  0x8b   :  { %v351_v45 = vpop.permute.xlu2 %350  ;;  %154 = vst [vmem:[#allocation2 + $0x2c] sm:$0x8] %v153_v27 }
  0x8c   :  { %1008 = vrot.lane.b32.xlu0 %v920_v63, %s8908_s12  ;;  %438 = vst.msk [vmem:[#allocation2 + $0x2c] sm:$0xf] %vm428_vm14, %v351_v45 }
  0x8d   :  { %774 = vst.msk [vmem:[#allocation2 + $0x2c] sm:$0xf] %vm751_vm15, %v542_v22 }
  0x8e   :  { %v759_v19 = vld [vmem:[#allocation2 + $0x10] sm:$0xf]  ;;  %v971_v61 = vpop.permute.xlu1 %970  ;;  %v343_v56 = vpop.permute.xlu0 %342 }
  0x8f   :  { %v760_v47 = vsel %vm9263_vm3, %v8985_v29, %v759_v19  ;;  %434 = vst.msk [vmem:[#allocation2 + $0x1c] sm:$0xf] %vm428_vm14, %v343_v56  ;;  %v291_v29 = vpack.c.bf16 %v259_v62, %v259_v62  ;;  %v57_v62 = vsel %vm9106_vm5, 0, %v56_v32 }
  0x90   :  { %761 = vst [vmem:[#allocation2 + $0x10] sm:$0xf] %v760_v47 }
  0x91   :  { %1069 = vst.msk [vmem:[#allocation2 + $0x10] sm:$0xf] %vm1062_vm4, %v971_v61  ;;  %v8703_v25 = vld [vmem:[#allocation2 + $0x8] sm:$0xff]  ;;  %v648_v53 = vshrl.u32 %v291_v29, 16  ;;  %v651_v43 = vshll.u32 %v291_v29, 16  ;;  %374 = vrot.lane.b32.xlu2 %v9304_v30, %s8907_s11  ;;  %v550_v61 = vrot.slane %v9087_v10, 4 }
  0x92   :  { %v8687_v31 = vld [vmem:[#allocation2 + $0x8] sm:$0xff]  ;;  %766 = vst.msk [vmem:[#allocation2 + $0x1c] sm:$0xf] %vm751_vm15, %v9235_v58  ;;  %7636 = vmatmul.msk.bf16.vlgmr.msra.gmra.mxu0 %vm1283_vm13, %v8703_v25  ;;  %v54_v58 = vsel %vm9106_vm5, 0, %v53_v9  ;;  %v155_v30 = vld [vmem:[#allocation2 + $0x34] sm:$0x8] }
  0x93   :  { %7721 = vmatmul.msk.bf16.gmra.mxu1 %vm1283_vm13, %v8687_v31  ;;  %55 = vst [vmem:[#allocation2 + $0x28] sm:$0x1] %v54_v58  ;;  %v9371_v0 = vrot.slane %v651_v43, 5  ;;  %v927_v2 = vrot.slane %v648_v53, 4  ;;  %v650_v36 = vrot.slane %v648_v53, 7  ;;  %v261_v10 = vld [vmem:[%s12433_s0 + $0xc8] sm:$0xff]  ;;  %v353_v27 = vpop.permute.xlu2 %352 }
  0x94   :  { %378 = vrot.lane.b32.xlu0 %v291_v29, %s8907_s11  ;;  %v1082_v47 = vld [vmem:[#allocation2 + $0x2c] sm:$0xf]  ;;  %v9405_v46 = vpack.c.bf16 %v261_v10, %v261_v10  ;;  %v156_v31 = vsel %vm9150_vm9, 0, %v155_v30  ;;  %58 = vst [vmem:[#allocation2 + $0x30] sm:$0x1] %v57_v62 }
  0x95   :  { %v928_v42 = vor.u32 %v927_v2, %v9371_v0  ;;  %v9379_v63 = vor.u32 %v651_v43, %v650_v36  ;;  %157 = vst [vmem:[#allocation2 + $0x34] sm:$0x8] %v156_v31  ;;  %v9438_v36 = vsel %vm9168_vm11, %v566_v39, %v9207_v57 }
  0x96   :  { %v977_v54 = vpop.permute.xlu1 %976  ;;  %v345_v17 = vpop.permute.xlu0 %344  ;;  %439 = vst.msk [vmem:[#allocation2 + $0x30] sm:$0xf] %vm428_vm14, %v353_v27  ;;  %v667_v2 = vshll.u32 %v9405_v46, 16  ;;  %v263_v27 = vld [vmem:[%s12433_s0 + $0xd8] sm:$0xff] }
  0x97   :  { %435 = vst.msk [vmem:[#allocation2 + $0x20] sm:$0xf] %vm428_vm14, %v345_v17  ;;  %v929_v59 = vrot.slane %v928_v42, 4  ;;  %v258_v17 = vld [vmem:[%s12433_s0 + $0xb0] sm:$0xff] }
  0x98   :  { %v8720_v3 = vld [vmem:[#allocation2 + $0x10] sm:$0xff] }
  0x99   :  { %v1074_v18 = vld [vmem:[#allocation2 + $0x1c] sm:$0xf]  ;;  %7806 = vmatmul.msk.bf16.vlgmr.msra.gmra.mxu2 %vm1283_vm13, %v8720_v3  ;;  %1012 = vrot.lane.b32.xlu1 %v929_v59, %s8908_s12  ;;  %v8704_v4 = vld [vmem:[#allocation2 + $0x10] sm:$0xff]  ;;  %v59_v59 = vld [vmem:[#allocation2 + $0x38] sm:$0x1] }
  0x9a   :  { %v1075_v35 = vsel %vm9316_vm6, %v977_v54, %v1074_v18  ;;  %v8688_v24 = vld [vmem:[#allocation2 + $0x10] sm:$0xff]  ;;  %v290_v18 = vpack.c.bf16 %v258_v17, %v258_v17 }
  0x9b   :  { %1076 = vst [vmem:[#allocation2 + $0x1c] sm:$0xf] %v1075_v35  ;;  %v262_v3 = vld [vmem:[%s12433_s0 + $0xd0] sm:$0xff]  ;;  %v158_v35 = vld [vmem:[#allocation2 + $0x3c] sm:$0x8] }
  0x9c   :  { %v294_v42 = vpack.c.bf16 %v262_v3, %v262_v3  ;;  %376 = vrot.lane.b32.xlu2 %v290_v18, %s8907_s11 }
  0x9e   :  { %v347_v11 = vpop.permute.xlu1 %346  ;;  %v767_v13 = vld [vmem:[#allocation2 + $0x20] sm:$0xf]  ;;  %v979_v19 = vpop.permute.xlu0 %978 }
  0x9f   :  { %436 = vst.msk [vmem:[#allocation2 + $0x24] sm:$0xf] %vm428_vm14, %v347_v11  ;;  %v768_v56 = vsel %vm9263_vm3, %v9025_v60, %v767_v13  ;;  %v260_v60 = vld [vmem:[%s12433_s0 + $0xc0] sm:$0xff]  ;;  %v9442_v13 = vrot.slane %v667_v2, 5 }
  0xa0   :  { %770 = vst.msk [vmem:[#allocation2 + $0x24] sm:$0xf] %vm751_vm15, %v9302_v23  ;;  %v9403_v23 = vsel %vm9168_vm11, %v550_v61, %v9066_v41  ;;  %v292_v25 = vpack.c.bf16 %v260_v60, %v260_v60  ;;  %v60_v61 = vsel %vm9106_vm5, 0, %v59_v59 }
  0xa1   :  { %769 = vst [vmem:[#allocation2 + $0x20] sm:$0xf] %v768_v56  ;;  %382 = vrot.lane.b32.xlu1 %v9405_v46, %s8907_s11  ;;  %v640_v56 = vshrl.u32 %v290_v18, 16 }
  0xa2   :  { %1077 = vst.msk [vmem:[#allocation2 + $0x20] sm:$0xf] %vm1062_vm4, %v979_v19  ;;  %7637 = vmatmul.msk.bf16.gmra.mxu0 %vm1283_vm13, %v8704_v4  ;;  %v8721_v29 = vld [vmem:[#allocation2 + $0x18] sm:$0xff]  ;;  %v656_v41 = vshrl.u32 %v292_v25, 16  ;;  %v659_v9 = vshll.u32 %v292_v25, 16  ;;  %380 = vrot.lane.b32.xlu0 %v292_v25, %s8907_s11  ;;  %v159_v19 = vsel %vm9150_vm9, 0, %v158_v35 }
  0xa3   :  { %7722 = vmatmul.msk.bf16.gmra.mxu1 %vm1283_vm13, %v8688_v24  ;;  %v643_v4 = vshll.u32 %v290_v18, 16  ;;  %v672_v24 = vshrl.u32 %v294_v42, 16  ;;  %160 = vst [vmem:[#allocation2 + $0x3c] sm:$0x8] %v159_v19  ;;  %v9457_v31 = vrot.slane %v640_v56, 7  ;;  %v921_v62 = vrot.slane %v640_v56, 4 }
  0xa4   :  { %v9421_v53 = vrot.slane %v656_v41, 7  ;;  %v930_v43 = vrot.slane %v656_v41, 4  ;;  %v931_v54 = vrot.slane %v659_v9, 5  ;;  %61 = vst [vmem:[#allocation2 + $0x38] sm:$0x1] %v60_v61  ;;  %v582_v18 = vrot.slane %v9091_v12, 4 }
  0xa5   :  { %v9460_v32 = vrot.slane %v672_v24, 7  ;;  %v775_v41 = vld [vmem:[#allocation2 + $0x30] sm:$0xf]  ;;  %v939_v59 = vrot.slane %v672_v24, 4 }
  0xa6   :  { %v349_v34 = vpop.permute.xlu1 %348  ;;  %v985_v37 = vpop.permute.xlu0 %984  ;;  %v9425_v7 = vor.u32 %v659_v9, %v9421_v53  ;;  %v9464_v9 = vor.u32 %v643_v4, %v9457_v31 }
  0xa7   :  { %v1078_v22 = vld [vmem:[#allocation2 + $0x24] sm:$0xf]  ;;  %437 = vst.msk [vmem:[#allocation2 + $0x28] sm:$0xf] %vm428_vm14, %v349_v34  ;;  %v1083_v58 = vsel %vm9316_vm6, %v985_v37, %v1082_v47  ;;  %v675_v47 = vshll.u32 %v294_v42, 16  ;;  %v8705_v34 = vld [vmem:[#allocation2 + $0x18] sm:$0xff] }
  0xa8   :  { %v1079_v45 = vsel %vm9316_vm6, %v9334_v48, %v1078_v22  ;;  %1084 = vst [vmem:[#allocation2 + $0x2c] sm:$0xf] %v1083_v58  ;;  %v932_v48 = vor.u32 %v931_v54, %v930_v43  ;;  %v8689_v37 = vld [vmem:[#allocation2 + $0x18] sm:$0xff]  ;;  %v776_v22 = vsel %vm9263_vm3, %v9097_v15, %v775_v41 }
  0xa9   :  { %1080 = vst [vmem:[#allocation2 + $0x24] sm:$0xf] %v1079_v45  ;;  %7807 = vmatmul.msk.bf16.gmra.mxu2 %vm1283_vm13, %v8721_v29  ;;  %384 = vrot.lane.b32.xlu1 %v294_v42, %s8907_s11  ;;  %v922_v29 = vrot.slane %v643_v4, 5  ;;  %v9467_v39 = vor.u32 %v675_v47, %v9460_v32  ;;  %v9479_v45 = vpack.c.bf16 %v263_v27, %v263_v27 }
  0xaa   :  { %v933_v11 = vrot.slane %v932_v48, 4  ;;  %777 = vst [vmem:[#allocation2 + $0x30] sm:$0xf] %v776_v22 }
  0xab   :  { %v923_v58 = vor.u32 %v922_v29, %v921_v62  ;;  %v683_v54 = vshll.u32 %v9479_v45, 16  ;;  %v161_v29 = vld [vmem:[#allocation2 + $0x44] sm:$0x8] }
  0xac   :  { %v935_v30 = vsel %vm9011_vm2, %v933_v11, %v9442_v13  ;;  %v940_v11 = vrot.slane %v675_v47, 5 }
  0xad   :  { %1014 = vrot.lane.b32.xlu0 %v935_v30, %s8908_s12  ;;  %v924_v43 = vrot.slane %v923_v58, 4  ;;  %v943_v42 = vrot.slane %v683_v54, 5 }
  0xae   :  { %v771_v57 = vld [vmem:[#allocation2 + $0x28] sm:$0xf]  ;;  %v983_v10 = vpop.permute.xlu1 %982  ;;  %v355_v60 = vpop.permute.xlu0 %354 }
  0xaf   :  { %v772_v25 = vsel %vm9263_vm3, %v9042_v5, %v771_v57  ;;  %440 = vst.msk [vmem:[#allocation2 + $0x34] sm:$0xf] %vm428_vm14, %v355_v60  ;;  %v987_v5 = vpop.permute.xlu2 %986  ;;  %v926_v3 = vsel %vm9011_vm2, %v924_v43, %v9371_v0  ;;  %v941_v57 = vor.u32 %v940_v11, %v939_v59  ;;  %v664_v0 = vshrl.u32 %v9405_v46, 16 }
  0xb0   :  { %773 = vst [vmem:[#allocation2 + $0x28] sm:$0xf] %v772_v25  ;;  %v8722_v15 = vld [vmem:[#allocation2 + $0x20] sm:$0xff]  ;;  %1010 = vrot.lane.b32.xlu2 %v926_v3, %s8908_s12  ;;  %v590_v60 = vsel %vm9168_vm11, %v582_v18, %v9182_v33  ;;  %v265_v33 = vld [vmem:[%s12433_s0 + $0xe8] sm:$0xff] }
  0xb1   :  { %1081 = vst.msk [vmem:[#allocation2 + $0x28] sm:$0xf] %vm1062_vm4, %v983_v10  ;;  %v62_v10 = vld [vmem:[#allocation2 + $0x40] sm:$0x1]  ;;  %v942_v30 = vrot.slane %v941_v57, 4  ;;  %v666_v47 = vrot.slane %v664_v0, 7 }
  0xb2   :  { %778 = vst.msk [vmem:[#allocation2 + $0x34] sm:$0xf] %vm751_vm15, %v9403_v23  ;;  %7638 = vmatmul.msk.bf16.gmra.mxu0 %vm1283_vm13, %v8705_v34  ;;  %v680_v23 = vshrl.u32 %v9479_v45, 16  ;;  %v936_v25 = vrot.slane %v664_v0, 4  ;;  %v63_v62 = vsel %vm9106_vm5, 0, %v62_v10  ;;  %v8706_v58 = vld [vmem:[#allocation2 + $0x20] sm:$0xff] }
  0xb3   :  { %7723 = vmatmul.msk.bf16.gmra.mxu1 %vm1283_vm13, %v8689_v37  ;;  %1085 = vst.msk [vmem:[#allocation2 + $0x30] sm:$0xf] %vm1062_vm4, %v987_v5  ;;  %v944_v41 = vsel %vm9011_vm2, %v942_v30, %v943_v42  ;;  %v9509_v5 = vor.u32 %v667_v2, %v666_v47  ;;  %v162_v2 = vsel %vm9150_vm9, 0, %v161_v29  ;;  %v164_v47 = vld [vmem:[#allocation2 + $0x4c] sm:$0x8] }
  0xb4   :  { %v945_v35 = vrot.slane %v680_v23, 4  ;;  %v682_v4 = vrot.slane %v680_v23, 7  ;;  %v937_v22 = vor.u32 %v936_v25, %v9442_v13  ;;  %64 = vst [vmem:[#allocation2 + $0x40] sm:$0x1] %v63_v62  ;;  %1018 = vrot.lane.b32.xlu1 %v944_v41, %s8908_s12  ;;  %v8690_v23 = vld [vmem:[#allocation2 + $0x20] sm:$0xff]  ;;  %v297_v13 = vpack.c.bf16 %v265_v33, %v265_v33 }
  0xb5   :  { %163 = vst [vmem:[#allocation2 + $0x44] sm:$0x8] %v162_v2  ;;  %v65_v25 = vld [vmem:[#allocation2 + $0x48] sm:$0x1] }
  0xb6   :  { %v989_v17 = vpop.permute.xlu1 %988  ;;  %v357_v48 = vpop.permute.xlu0 %356  ;;  %v946_v61 = vor.u32 %v945_v35, %v943_v42  ;;  %v9497_v24 = vor.u32 %v683_v54, %v682_v4  ;;  %v938_v46 = vrot.slane %v937_v22, 4  ;;  %v696_v3 = vshrl.u32 %v297_v13, 16 }
  0xb7   :  { %441 = vst.msk [vmem:[#allocation2 + $0x38] sm:$0xf] %vm428_vm14, %v357_v48  ;;  %v993_v43 = vpop.permute.xlu2 %992  ;;  %v699_v18 = vshll.u32 %v297_v13, 16 }
  0xb8   :  { %v947_v12 = vrot.slane %v946_v61, 4  ;;  %1016 = vrot.lane.b32.xlu2 %v938_v46, %s8908_s12  ;;  %v698_v57 = vrot.slane %v696_v3, 7  ;;  %v8707_v33 = vld [vmem:[#allocation2 + $0x28] sm:$0xff] }
  0xb9   :  { %v1086_v19 = vld [vmem:[#allocation2 + $0x34] sm:$0xf]  ;;  %7808 = vmatmul.msk.bf16.gmra.mxu2 %vm1283_vm13, %v8722_v15  ;;  %v598_v15 = vrot.slane %v9280_v6, 4  ;;  %v952_v61 = vrot.slane %v699_v18, 5 }
  0xba   :  { %v1087_v56 = vsel %vm9316_vm6, %v989_v17, %v1086_v19  ;;  %1020 = vrot.lane.b32.xlu0 %v947_v12, %s8908_s12  ;;  %v8723_v17 = vld [vmem:[#allocation2 + $0x28] sm:$0xff]  ;;  %v9543_v62 = vor.u32 %v699_v18, %v698_v57 }
  0xbb   :  { %1088 = vst [vmem:[#allocation2 + $0x34] sm:$0xf] %v1087_v56  ;;  %v954_v56 = vrot.slane %v696_v3, 4  ;;  %v606_v10 = vsel %vm9168_vm11, %v598_v15, %v9222_v1  ;;  %v68_v15 = vld [vmem:[#allocation2 + $0x50] sm:$0x1] }
  0xbc   :  { %v8753_v3 = vld [vmem:[%s12437_s4] sm:$0x30] }
  0xbd   :  { %v955_v0 = vor.u32 %v954_v56, %v952_v61 }
  0xbe   :  { %v359_v34 = vpop.permute.xlu1 %358  ;;  %v779_v37 = vld [vmem:[#allocation2 + $0x38] sm:$0xf]  ;;  %v991_v54 = vpop.permute.xlu0 %990 }
  0xbf   :  { %442 = vst.msk [vmem:[#allocation2 + $0x3c] sm:$0xf] %vm428_vm14, %v359_v34  ;;  %v780_v27 = vsel %vm9263_vm3, %v9094_v14, %v779_v37  ;;  %v264_v14 = vld [vmem:[%s12433_s0 + $0xe0] sm:$0xff]  ;;  %v363_v11 = vpop.permute.xlu2 %362  ;;  %v956_v29 = vrot.slane %v955_v0, 4  ;;  %v66_v37 = vsel %vm9106_vm5, 0, %v65_v25 }
  0xc0   :  { %782 = vst.msk [vmem:[#allocation2 + $0x3c] sm:$0xf] %vm751_vm15, %v9438_v36  ;;  %v296_v36 = vpack.c.bf16 %v264_v14, %v264_v14  ;;  %386 = vrot.lane.b32.xlu2 %v9479_v45, %s8907_s11  ;;  %v165_v45 = vsel %vm9150_vm9, 0, %v164_v47 }
  0xc1   :  { %781 = vst [vmem:[#allocation2 + $0x38] sm:$0xf] %v780_v27  ;;  %v8691_v27 = vld [vmem:[#allocation2 + $0x28] sm:$0xff] }
  0xc2   :  { %1089 = vst.msk [vmem:[#allocation2 + $0x38] sm:$0xf] %vm1062_vm4, %v991_v54  ;;  %7639 = vmatmul.msk.bf16.gmra.mxu0 %vm1283_vm13, %v8706_v58  ;;  %390 = vrot.lane.b32.xlu0 %v297_v13, %s8907_s11  ;;  %v688_v42 = vshrl.u32 %v296_v36, 16  ;;  %v691_v35 = vshll.u32 %v296_v36, 16  ;;  %v8724_v46 = vld [vmem:[#allocation2 + $0x30] sm:$0xff] }
  0xc3   :  { %7724 = vmatmul.msk.bf16.gmra.mxu1 %vm1283_vm13, %v8690_v23  ;;  %444 = vst.msk [vmem:[#allocation2 + $0x44] sm:$0xf] %vm428_vm14, %v363_v11 }
  0xc4   :  { %v948_v6 = vrot.slane %v688_v42, 4  ;;  %v949_v4 = vrot.slane %v691_v35, 5  ;;  %786 = vst.msk [vmem:[#allocation2 + $0x44] sm:$0xf] %vm751_vm15, %v590_v60  ;;  %v9538_v12 = vrot.slane %v688_v42, 7 }
  0xc5   :  { %166 = vst [vmem:[#allocation2 + $0x4c] sm:$0x8] %v165_v45 }
  0xc6   :  { %v361_v48 = vpop.permute.xlu1 %360  ;;  %v950_v30 = vor.u32 %v949_v4, %v948_v6  ;;  %v9546_v34 = vor.u32 %v691_v35, %v9538_v12  ;;  %v997_v1 = vpop.permute.xlu0 %996  ;;  %67 = vst [vmem:[#allocation2 + $0x48] sm:$0x1] %v66_v37  ;;  %v8692_v35 = vld [vmem:[#allocation2 + $0x30] sm:$0xff]  ;;  %v71_v37 = vld [vmem:[#allocation2 + $0x58] sm:$0x1] }
  0xc7   :  { %v1090_v59 = vld [vmem:[#allocation2 + $0x3c] sm:$0xf]  ;;  %443 = vst.msk [vmem:[#allocation2 + $0x40] sm:$0xf] %vm428_vm14, %v361_v48  ;;  %v365_v13 = vpop.permute.xlu2 %364  ;;  %v69_v48 = vsel %vm9106_vm5, 0, %v68_v15 }
  0xc8   :  { %v1091_v19 = vsel %vm9316_vm6, %v993_v43, %v1090_v59  ;;  %v951_v60 = vrot.slane %v950_v30, 4  ;;  %388 = vrot.lane.b32.xlu2 %v296_v36, %s8907_s11  ;;  %445 = vst.msk [vmem:[#allocation2 + $0x48] sm:$0xf] %vm428_vm14, %v365_v13  ;;  %v167_v36 = vld [vmem:[#allocation2 + $0x54] sm:$0x8] }
  0xc9   :  { %1092 = vst [vmem:[#allocation2 + $0x3c] sm:$0xf] %v1091_v19  ;;  %7809 = vmatmul.msk.bf16.gmra.mxu2 %vm1283_vm13, %v8723_v17  ;;  %v168_v17 = vsel %vm9150_vm9, 0, %v167_v36  ;;  %v646_v36 = vrot.slane %v9457_v31, 4  ;;  %v173_v15 = vld [vmem:[#allocation2 + $0x64] sm:$0x8] }
  0xca   :  { %1024 = vrot.lane.b32.xlu0 %v956_v29, %s8908_s12  ;;  %v953_v58 = vsel %vm9011_vm2, %v951_v60, %v952_v61  ;;  %169 = vst [vmem:[#allocation2 + $0x54] sm:$0x8] %v168_v17 }
  0xcb   :  { %1022 = vrot.lane.b32.xlu1 %v953_v58, %s8908_s12  ;;  %v1094_v23 = vld [vmem:[#allocation2 + $0x44] sm:$0xf]  ;;  %70 = vst [vmem:[#allocation2 + $0x50] sm:$0x1] %v69_v48  ;;  %v174_v48 = vsel %vm9150_vm9, 0, %v173_v15  ;;  %v678_v15 = vrot.slane %v9460_v32, 4 }
  0xcc   :  { %v1095_v54 = vsel %vm9316_vm6, %v997_v1, %v1094_v23  ;;  %175 = vst [vmem:[#allocation2 + $0x64] sm:$0x8] %v174_v48 }
  0xcd   :  { %1096 = vst [vmem:[#allocation2 + $0x44] sm:$0xf] %v1095_v54 }
  0xce   :  { %v783_v41 = vld [vmem:[#allocation2 + $0x40] sm:$0xf]  ;;  %v995_v43 = vpop.permute.xlu1 %994  ;;  %v367_v2 = vpop.permute.xlu0 %366 }
  0xcf   :  { %v784_v22 = vsel %vm9263_vm3, %v9103_v16, %v783_v41  ;;  %v614_v16 = vrot.slane %v9251_v28, 4  ;;  %446 = vst.msk [vmem:[#allocation2 + $0x4c] sm:$0xf] %vm428_vm14, %v367_v2  ;;  %v7974_v28 = vld [vmem:[%s12437_s4] sm:$0xf] }
  0xd0   :  { %785 = vst [vmem:[#allocation2 + $0x40] sm:$0xf] %v784_v22  ;;  %v7975_v18 = vor.u32 %v8753_v3, %v7974_v28  ;;  %v787_v19 = vld [vmem:[#allocation2 + $0x48] sm:$0xf]  ;;  %v8725_v4 = vld [vmem:[#allocation2 + $0x38] sm:$0xff] }
  0xd1   :  { %1093 = vst.msk [vmem:[#allocation2 + $0x40] sm:$0xf] %vm1062_vm4, %v995_v43  ;;  %v622_v14 = vsel %vm9168_vm11, %v614_v16, %v9367_v44  ;;  %v8708_v44 = vld [vmem:[#allocation2 + $0x30] sm:$0xff]  ;;  %v999_v56 = vpop.permute.xlu2 %998  ;;  %v788_v6 = vsel %vm9263_vm3, %v9289_v26, %v787_v19  ;;  %v630_v26 = vrot.slane %v9326_v50, 4  ;;  %v8693_v47 = vld [vmem:[#allocation2 + $0x38] sm:$0xff]  ;;  %v72_v50 = vsel %vm9106_vm5, 0, %v71_v37 }
  0xd2   :  { %7640 = vmatmul.msk.bf16.gmra.mxu0 %vm1283_vm13, %v8707_v33  ;;  %790 = vst.msk [vmem:[#allocation2 + $0x4c] sm:$0xf] %vm751_vm15, %v606_v10  ;;  %v3323_v59 = vsel %vm1332_vm12, %v7975_v18, 0  ;;  %v8709_v10 = vld [vmem:[#allocation2 + $0x38] sm:$0xff]  ;;  %v74_v28 = vld [vmem:[#allocation2 + $0x60] sm:$0x1] }
  0xd3   :  { %7725 = vmatmul.msk.bf16.gmra.mxu1 %vm1283_vm13, %v8691_v27  ;;  %3332 = vmatpush.bf16.msrb.mxu0 %v3323_v59  ;;  %789 = vst [vmem:[#allocation2 + $0x48] sm:$0xf] %v788_v6  ;;  %v170_v41 = vld [vmem:[#allocation2 + $0x5c] sm:$0x8]  ;;  %v638_v1 = vsel %vm9168_vm11, %v630_v26, %v9336_v55  ;;  %v75_v18 = vsel %vm9106_vm5, 0, %v74_v28 }
  0xd4   :  { %1097 = vst.msk [vmem:[#allocation2 + $0x48] sm:$0xf] %vm1062_vm4, %v999_v56  ;;  %v171_v22 = vsel %vm9150_vm9, 0, %v170_v41 }
  0xd5   :  { %73 = vst [vmem:[#allocation2 + $0x58] sm:$0x1] %v72_v50  ;;  %v9678_v50 = vld [vmem:[%s12435_s2] ss:$0 sm:$0xff] }
  0xd6   :  { %v1001_v42 = vpop.permute.xlu1 %1000  ;;  %v369_v0 = vpop.permute.xlu0 %368  ;;  %172 = vst [vmem:[#allocation2 + $0x5c] sm:$0x8] %v171_v22 }
  0xd7   :  { %447 = vst.msk [vmem:[#allocation2 + $0x50] sm:$0xf] %vm428_vm14, %v369_v0 }
  0xd8   :  { %v8726_v55 = vld [vmem:[#allocation2 + $0x40] sm:$0xff]  ;;  %76 = vst [vmem:[#allocation2 + $0x60] sm:$0x1] %v75_v18 }
  0xd9   :  { %7810 = vmatmul.msk.bf16.gmra.mxu2 %vm1283_vm13, %v8724_v46  ;;  %v1098_v11 = vld [vmem:[#allocation2 + $0x4c] sm:$0xf]  ;;  %v8710_v43 = vld [vmem:[#allocation2 + $0x40] sm:$0xff] }
  0xda   :  { %v1099_v61 = vsel %vm9316_vm6, %v1001_v42, %v1098_v11  ;;  %v8694_v16 = vld [vmem:[#allocation2 + $0x40] sm:$0xff]  ;;  %v662_v42 = vrot.slane %v9421_v53, 4 }
  0xdb   :  { %1100 = vst [vmem:[#allocation2 + $0x4c] sm:$0xf] %v1099_v61 }
  0xdc   :  { %v670_v0 = vsel %vm9168_vm11, %v662_v42, %v9509_v5  ;;  %v266_v5 = vld [vmem:[%s12433_s0 + $0xf0] sm:$0xff] }
  0xde   :  { %v371_v57 = vpop.permute.xlu1 %370  ;;  %v791_v29 = vld [vmem:[#allocation2 + $0x50] sm:$0xf]  ;;  %v1003_v45 = vpop.permute.xlu0 %1002 }
  0xdf   :  { %448 = vst.msk [vmem:[#allocation2 + $0x54] sm:$0xf] %vm428_vm14, %v371_v57  ;;  %v792_v33 = vsel %vm9263_vm3, %v9256_v40, %v791_v29  ;;  %v9616_v40 = vpop.f32.mrf.mxu1  ;;  %v176_v57 = vld [vmem:[#allocation2 + $0x6c] sm:$0x8] }
  0xe0   :  { %794 = vst.msk [vmem:[#allocation2 + $0x54] sm:$0xf] %vm751_vm15, %v622_v14  ;;  %v177_v26 = vsel %vm9150_vm9, 0, %v176_v57 }
  0xe1   :  { %793 = vst [vmem:[#allocation2 + $0x50] sm:$0xf] %v792_v33 }
  0xe2   :  { %7641 = vmatmul.msk.bf16.gmra.mxu0 %vm1283_vm13, %v8708_v44  ;;  %1101 = vst.msk [vmem:[#allocation2 + $0x50] sm:$0xf] %vm1062_vm4, %v1003_v45  ;;  %v654_v44 = vsel %vm9168_vm11, %v646_v36, %v9379_v63  ;;  %v8695_v11 = vld [vmem:[#allocation2 + $0x48] sm:$0xff]  ;;  %v80_v36 = vld [vmem:[#allocation2 + $0x70] sm:$0x1] }
  0xe3   :  { %7726 = vmatmul.msk.bf16.gmra.mxu1 %vm1283_vm13, %v8692_v35  ;;  %v1005_v30 = vpop.permute.xlu2 %1004  ;;  %v8711_v35 = vld [vmem:[#allocation2 + $0x48] sm:$0xff]  ;;  %178 = vst [vmem:[#allocation2 + $0x6c] sm:$0x8] %v177_v26  ;;  %v81_v32 = vsel %vm9106_vm5, 0, %v80_v36  ;;  %v686_v26 = vsel %vm9168_vm11, %v678_v15, %v9497_v24 }
  0xe4   :  { %82 = vst [vmem:[#allocation2 + $0x70] sm:$0x1] %v81_v32 }
  0xe6   :  { %v373_v58 = vpop.permute.xlu1 %372 }
  0xe7   :  { %v1102_v25 = vld [vmem:[#allocation2 + $0x54] sm:$0xf]  ;;  %449 = vst.msk [vmem:[#allocation2 + $0x58] sm:$0xf] %vm428_vm14, %v373_v58  ;;  %v9627_v17 = vpop.f32.mrf.mxu1 }
  0xe8   :  { %v1103_v60 = vsel %vm9316_vm6, %v1005_v30, %v1102_v25 }
  0xe9   :  { %7811 = vmatmul.msk.bf16.gmra.mxu2 %vm1283_vm13, %v8725_v4  ;;  %1104 = vst [vmem:[#allocation2 + $0x54] sm:$0xf] %v1103_v60 }
  0xeb   :  { %v375_v27 = vpop.permute.xlu2 %374 }
  0xec   :  { %450 = vst.msk [vmem:[#allocation2 + $0x5c] sm:$0xf] %vm428_vm14, %v375_v27  ;;  %v9689_v27 = vld [vmem:[%s12436_s3] ss:$0 sm:$0xff] }
  0xed   :  { %798 = vst.msk [vmem:[#allocation2 + $0x5c] sm:$0xf] %vm751_vm15, %v638_v1 }
  0xee   :  { %v795_v23 = vld [vmem:[#allocation2 + $0x58] sm:$0xf] }
  0xef   :  { %v796_v46 = vsel %vm9263_vm3, %v9332_v52, %v795_v23  ;;  %v8727_v52 = vld [vmem:[#allocation2 + $0x48] sm:$0xff] }
  0xf0   :  { %797 = vst [vmem:[#allocation2 + $0x58] sm:$0xf] %v796_v46  ;;  %v8696_v23 = vld [vmem:[#allocation2 + $0x50] sm:$0xff] }
  0xf2   :  { %7642 = vmatmul.msk.bf16.gmra.mxu0 %vm1283_vm13, %v8709_v10  ;;  %v77_v10 = vld [vmem:[#allocation2 + $0x68] sm:$0x1] }
  0xf3   :  { %7727 = vmatmul.msk.bf16.gmra.mxu1 %vm1283_vm13, %v8693_v47  ;;  %v78_v30 = vsel %vm9106_vm5, 0, %v77_v10  ;;  %v8728_v47 = vld [vmem:[#allocation2 + $0x50] sm:$0xff] }
  0xf4   :  { %v1106_v2 = vld [vmem:[#allocation2 + $0x5c] sm:$0xf]  ;;  %79 = vst [vmem:[#allocation2 + $0x68] sm:$0x1] %v78_v30 }
  0xf6   :  { %v377_v31 = vpop.permute.xlu2 %376 }
  0xf7   :  { %451 = vst.msk [vmem:[#allocation2 + $0x60] sm:$0xf] %vm428_vm14, %v377_v31 }
  0xf9   :  { %7812 = vmatmul.msk.bf16.gmra.mxu2 %vm1283_vm13, %v8726_v55 }
  0xfc   :  { %v1007_v13 = vpop.permute.xlu1 %1006 }
  0xfd   :  { %1105 = vst.msk [vmem:[#allocation2 + $0x58] sm:$0xf] %vm1062_vm4, %v1007_v13 }
  0xfe   :  { %v1009_v54 = vpop.permute.xlu0 %1008  ;;  %v799_v6 = vld [vmem:[#allocation2 + $0x60] sm:$0xf] }
  0xff   :  { %v1107_v14 = vsel %vm9316_vm6, %v1009_v54, %v1106_v2  ;;  %v800_v53 = vsel %vm9263_vm3, %v9464_v9, %v799_v6  ;;  %v9661_v9 = vpack.c.bf16 %v266_v5, %v266_v5  ;;  %v267_v2 = vld [vmem:[%s12433_s0 + $0xf8] sm:$0xff] }
 0x100   :  { %1108 = vst [vmem:[#allocation2 + $0x5c] sm:$0xf] %v1107_v14 }
 0x101   :  { %801 = vst [vmem:[#allocation2 + $0x60] sm:$0xf] %v800_v53  ;;  %v704_v37 = vshrl.u32 %v9661_v9, 16  ;;  %v707_v1 = vshll.u32 %v9661_v9, 16 }
 0x102   :  { %7643 = vmatmul.msk.bf16.gmra.mxu0 %vm1283_vm13, %v8710_v43 }
 0x103   :  { %7728 = vmatmul.msk.bf16.gmra.mxu1 %vm1283_vm13, %v8694_v16  ;;  %v9671_v41 = vrot.slane %v704_v37, 7 }
 0x105   :  { %v9684_v55 = vor.u32 %v707_v1, %v9671_v41 }
 0x106   :  { %v379_v3 = vpop.permute.xlu0 %378 }
 0x107   :  { %452 = vst.msk [vmem:[#allocation2 + $0x64] sm:$0xf] %vm428_vm14, %v379_v3  ;;  %v9703_v3 = vpack.c.bf16 %v267_v2, %v267_v2  ;;  %v8713_v2 = vld [vmem:[#allocation2 + $0x58] sm:$0xff] }
 0x108   :  { %802 = vst.msk [vmem:[#allocation2 + $0x64] sm:$0xf] %vm751_vm15, %v654_v44  ;;  %v8697_v36 = vld [vmem:[#allocation2 + $0x58] sm:$0xff] }
 0x109   :  { %7813 = vmatmul.msk.bf16.gmra.mxu2 %vm1283_vm13, %v8727_v52  ;;  %v715_v10 = vshll.u32 %v9703_v3, 16 }
 0x10a   :  { %v1011_v4 = vpop.permute.xlu2 %1010 }
 0x10b   :  { %v1013_v59 = vpop.permute.xlu1 %1012  ;;  %1109 = vst.msk [vmem:[#allocation2 + $0x60] sm:$0xf] %vm1062_vm4, %v1011_v4 }
 0x10f   :  { %v1345_v19 = vpop.f32.mrf.mxu0  ;;  %v1110_v56 = vld [vmem:[#allocation2 + $0x64] sm:$0xf] }
 0x110   :  { %v9641_v61 = vpop.f32.mrf.mxu1  ;;  %v1111_v63 = vsel %vm9316_vm6, %v1013_v59, %v1110_v56  ;;  %v1571_v33 = vadd.f32 %v9616_v40, %v1345_v19  ;;  %v8712_v40 = vld [vmem:[#allocation2 + $0x50] sm:$0xff]  ;;  %v8729_v56 = vld [vmem:[#allocation2 + $0x58] sm:$0xff] }
 0x111   :  { %1112 = vst [vmem:[#allocation2 + $0x64] sm:$0xf] %v1111_v63  ;;  %v179_v59 = vld [vmem:[#allocation2 + $0x74] sm:$0x8] }
 0x112   :  { %7644 = vmatmul.msk.bf16.gmra.mxu0 %vm1283_vm13, %v8711_v35  ;;  %v1017_v43 = vpop.permute.xlu2 %1016 }
 0x113   :  { %7729 = vmatmul.msk.bf16.gmra.mxu1 %vm1283_vm13, %v8695_v11  ;;  %v383_v60 = vpop.permute.xlu1 %382 }
 0x114   :  { %v381_v45 = vpop.permute.xlu0 %380  ;;  %454 = vst.msk [vmem:[#allocation2 + $0x6c] sm:$0xf] %vm428_vm14, %v383_v60 }
 0x115   :  { %806 = vst.msk [vmem:[#allocation2 + $0x6c] sm:$0xf] %vm751_vm15, %v670_v0 }
 0x116   :  { %453 = vst.msk [vmem:[#allocation2 + $0x68] sm:$0xf] %vm428_vm14, %v381_v45 }
 0x117   :  { %v1347_v25 = vpop.f32.mrf.mxu0 }
 0x118   :  { %v9663_v29 = vpop.f32.mrf.mxu1  ;;  %v1573_v18 = vadd.f32 %v9627_v17, %v1347_v25  ;;  %v180_v17 = vsel %vm9150_vm9, 0, %v179_v59 }
 0x119   :  { %7814 = vmatmul.msk.bf16.gmra.mxu2 %vm1283_vm13, %v8728_v47  ;;  %181 = vst [vmem:[#allocation2 + $0x74] sm:$0x8] %v180_v17 }
 0x11a   :  { %v387_v63 = vpop.permute.xlu2 %386 }
 0x11b   :  { %v385_v35 = vpop.permute.xlu1 %384  ;;  %456 = vst.msk [vmem:[#allocation2 + $0x74] sm:$0xf] %vm428_vm14, %v387_v63 }
 0x11c   :  { %v1831_v22 = vpop.f32.mrf.mxu2  ;;  %v1114_v14 = vld [vmem:[#allocation2 + $0x6c] sm:$0xf]  ;;  %455 = vst.msk [vmem:[#allocation2 + $0x70] sm:$0xf] %vm428_vm14, %v385_v35 }
 0x11d   :  { %v1911_v58 = vadd.f32 %v1831_v22, %v1571_v33  ;;  %v803_v28 = vld [vmem:[#allocation2 + $0x68] sm:$0xf]  ;;  %v1115_v52 = vsel %vm9316_vm6, %v1017_v43, %v1114_v14  ;;  %810 = vst.msk [vmem:[#allocation2 + $0x74] sm:$0xf] %vm751_vm15, %v686_v26 }
 0x11e   :  { %v804_v31 = vsel %vm9263_vm3, %v9425_v7, %v803_v28  ;;  %1116 = vst [vmem:[#allocation2 + $0x6c] sm:$0xf] %v1115_v52  ;;  %v712_v7 = vshrl.u32 %v9703_v3, 16 }
 0x11f   :  { %v1947_v54 = vmul.f32 %v9678_v50, %v1911_v58  ;;  %v1350_v16 = vpop.f32.mrf.mxu0  ;;  %v1015_v48 = vpop.permute.xlu0 %1014  ;;  %805 = vst [vmem:[#allocation2 + $0x68] sm:$0xf] %v804_v31 }
 0x120   :  { %v9692_v46 = vpop.f32.mrf.mxu1  ;;  %1113 = vst.msk [vmem:[#allocation2 + $0x68] sm:$0xf] %vm1062_vm4, %v1015_v48  ;;  %v714_v30 = vrot.slane %v712_v7, 7  ;;  %v1576_v45 = vadd.f32 %v9641_v61, %v1350_v16 }
 0x121   :  { %v1983_v13 = vadd.f32 %v9689_v27, %v1947_v54  ;;  %v694_v54 = vrot.slane %v9538_v12, 4 }
 0x122   :  { %7645 = vmatmul.msk.bf16.gmra.mxu0 %vm1283_vm13, %v8712_v40  ;;  %v9732_v24 = vor.u32 %v715_v10, %v714_v30 }
 0x123   :  { %7730 = vmatmul.msk.bf16.gmra.mxu1 %vm1283_vm13, %v8696_v23  ;;  %v2015_v44 = vmax.f32 %v1983_v13, 0.0  ;;  %v807_v13 = vld [vmem:[#allocation2 + $0x70] sm:$0xf] }
 0x124   :  { %v1833_v42 = vpop.f32.mrf.mxu2  ;;  %v808_v12 = vsel %vm9263_vm3, %v9467_v39, %v807_v13  ;;  %v1118_v59 = vld [vmem:[#allocation2 + $0x74] sm:$0xf]  ;;  %v182_v39 = vld [vmem:[#allocation2 + $0x7c] sm:$0x8]  ;;  %v961_v13 = vrot.slane %v715_v10, 5 }
 0x125   :  { %v1912_v11 = vadd.f32 %v1833_v42, %v1573_v18  ;;  %v2047_v19 = vpack.c.bf16 %v2015_v44, %v2015_v44  ;;  %809 = vst [vmem:[#allocation2 + $0x70] sm:$0xf] %v808_v12  ;;  %v183_v26 = vsel %vm9150_vm9, 0, %v182_v39 }
 0x126   :  { %v1019_v44 = vpop.permute.xlu1 %1018  ;;  %184 = vst [vmem:[#allocation2 + $0x7c] sm:$0x8] %v183_v26 }
 0x127   :  { %v1948_v6 = vmul.f32 %v9678_v50, %v1912_v11  ;;  %v1352_v4 = vpop.f32.mrf.mxu0  ;;  %2111 = vrot.lane.b32.xlu1 %v2047_v19, %s8907_s11  ;;  %v2240_v0 = vshrl.u32 %v2047_v19, 16  ;;  %v2243_v53 = vshll.u32 %v2047_v19, 16  ;;  %1117 = vst.msk [vmem:[#allocation2 + $0x70] sm:$0xf] %vm1062_vm4, %v1019_v44 }
 0x128   :  { %v9716_v57 = vpop.f32.mrf.mxu1  ;;  %v1578_v48 = vadd.f32 %v9663_v29, %v1352_v4  ;;  %v702_v29 = vsel %vm9168_vm11, %v694_v54, %v9543_v62  ;;  %v83_v62 = vld [vmem:[#allocation2 + $0x78] sm:$0x1] }
 0x129   :  { %v2242_v47 = vrot.slane %v2240_v0, 7  ;;  %7815 = vmatmul.msk.bf16.gmra.mxu2 %vm1283_vm13, %v8729_v56  ;;  %v1984_v5 = vadd.f32 %v9689_v27, %v1948_v6  ;;  %v2591_v25 = vrot.slane %v2240_v0, 4  ;;  %v2592_v60 = vrot.slane %v2243_v53, 5 }
 0x12a   :  { %v957_v0 = vrot.slane %v704_v37, 4  ;;  %v84_v37 = vsel %vm9106_vm5, 0, %v83_v62 }
 0x12b   :  { %v9735_v33 = vor.u32 %v2243_v53, %v2242_v47  ;;  %v2016_v22 = vmax.f32 %v1984_v5, 0.0  ;;  %v2593_v40 = vor.u32 %v2592_v60, %v2591_v25  ;;  %v2246_v11 = vrot.slane %v2242_v47, 4  ;;  %v8730_v25 = vld [vmem:[#allocation2 + $0x60] sm:$0xff]  ;;  %85 = vst [vmem:[#allocation2 + $0x78] sm:$0x1] %v84_v37  ;;  %v8731_v37 = vld [vmem:[#allocation2 + $0x68] sm:$0xff] }
 0x12c   :  { %v1836_v58 = vpop.f32.mrf.mxu2  ;;  %v1021_v14 = vpop.permute.xlu0 %1020  ;;  %v958_v53 = vrot.slane %v707_v1, 5 }
 0x12d   :  { %v1913_v43 = vadd.f32 %v1836_v58, %v1576_v45  ;;  %v2048_v23 = vpack.c.bf16 %v2016_v22, %v2016_v22  ;;  %v2594_v18 = vrot.slane %v2593_v40, 4  ;;  %v1119_v19 = vsel %vm9316_vm6, %v1021_v14, %v1118_v59  ;;  %v389_v22 = vpop.permute.xlu2 %388 }
 0x12e   :  { %1120 = vst [vmem:[#allocation2 + $0x74] sm:$0xf] %v1119_v19  ;;  %v963_v14 = vrot.slane %v712_v7, 4 }
 0x12f   :  { %v1949_v15 = vmul.f32 %v9678_v50, %v1913_v43  ;;  %v1355_v28 = vpop.f32.mrf.mxu0  ;;  %2113 = vrot.lane.b32.xlu2 %v2048_v23, %s8907_s11  ;;  %v2251_v61 = vshll.u32 %v2048_v23, 16  ;;  %392 = vrot.lane.b32.xlu1 %v9661_v9, %s8907_s11  ;;  %v2248_v16 = vshrl.u32 %v2048_v23, 16  ;;  %v959_v43 = vor.u32 %v958_v53, %v957_v0  ;;  %457 = vst.msk [vmem:[#allocation2 + $0x78] sm:$0xf] %vm428_vm14, %v389_v22 }
 0x130   :  { %v9739_v52 = vpop.f32.mrf.mxu1  ;;  %v964_v44 = vor.u32 %v963_v14, %v961_v13 }
 0x131   :  { %v1985_v31 = vadd.f32 %v9689_v27, %v1949_v15  ;;  %v2595_v32 = vrot.slane %v2251_v61, 5  ;;  %v2597_v42 = vrot.slane %v2248_v16, 4  ;;  %v2250_v35 = vrot.slane %v2248_v16, 7 }
 0x132   :  { %7646 = vmatmul.msk.bf16.gmra.mxu0 %vm1283_vm13, %v8713_v2  ;;  %v960_v12 = vrot.slane %v959_v43, 4 }
 0x133   :  { %7731 = vmatmul.msk.bf16.gmra.mxu1 %vm1283_vm13, %v8697_v36  ;;  %v2596_v56 = vsel %vm9011_vm2, %v2594_v18, %v2595_v32  ;;  %v2598_v17 = vor.u32 %v2597_v42, %v2595_v32  ;;  %v2253_v63 = vor.u32 %v2251_v61, %v2250_v35  ;;  %v2017_v6 = vmax.f32 %v1985_v31, 0.0  ;;  %v8714_v31 = vld [vmem:[#allocation2 + $0x60] sm:$0xff] }
 0x134   :  { %v1838_v4 = vpop.f32.mrf.mxu2  ;;  %2735 = vrot.lane.b32.xlu0 %v2596_v56, %s8908_s12  ;;  %v391_v45 = vpop.permute.xlu0 %390  ;;  %v1581_v36 = vadd.f32 %v9692_v46, %v1355_v28  ;;  %v8698_v32 = vld [vmem:[#allocation2 + $0x60] sm:$0xff]  ;;  %v962_v59 = vsel %vm9011_vm2, %v960_v12, %v961_v13 }
 0x135   :  { %v1914_v30 = vadd.f32 %v1838_v4, %v1578_v48  ;;  %v2599_v47 = vrot.slane %v2598_v17, 4  ;;  %v9768_v5 = vsel %vm9168_vm11, %v2246_v11, %v2253_v63  ;;  %v2049_v60 = vpack.c.bf16 %v2017_v6, %v2017_v6  ;;  %458 = vst.msk [vmem:[#allocation2 + $0x7c] sm:$0xf] %vm428_vm14, %v391_v45 }
 0x136   :  { %814 = vst.msk [vmem:[#allocation2 + $0x7c] sm:$0xf] %vm751_vm15, %v702_v29  ;;  %v811_v17 = vld [vmem:[#allocation2 + $0x78] sm:$0xf] }
 0x137   :  { %v1950_v9 = vmul.f32 %v9678_v50, %v1914_v30  ;;  %v1357_v1 = vpop.f32.mrf.mxu0  ;;  %2737 = vrot.lane.b32.xlu2 %v2599_v47, %s8908_s12  ;;  %v2256_v40 = vshrl.u32 %v2049_v60, 16  ;;  %v2259_v54 = vshll.u32 %v2049_v60, 16  ;;  %v812_v6 = vsel %vm9263_vm3, %v9546_v34, %v811_v17 }
 0x138   :  { %v9773_v58 = vpop.f32.mrf.mxu1  ;;  %v1583_v63 = vadd.f32 %v9716_v57, %v1357_v1  ;;  %813 = vst [vmem:[#allocation2 + $0x78] sm:$0xf] %v812_v6 }
 0x139   :  { %7816 = vmatmul.msk.bf16.gmra.mxu2 %vm1283_vm13, %v8730_v25  ;;  %v2258_v23 = vrot.slane %v2256_v40, 7  ;;  %v1986_v2 = vadd.f32 %v9689_v27, %v1950_v9  ;;  %v2600_v57 = vrot.slane %v2256_v40, 4  ;;  %v2601_v25 = vrot.slane %v2259_v54, 5 }
 0x13b   :  { %v9786_v15 = vor.u32 %v2259_v54, %v2258_v23  ;;  %v2018_v61 = vmax.f32 %v1986_v2, 0.0  ;;  %v2262_v53 = vrot.slane %v2258_v23, 4  ;;  %v2602_v54 = vor.u32 %v2601_v25, %v2600_v57  ;;  %v8732_v57 = vld [vmem:[#allocation2 + $0x70] sm:$0xff] }
 0x13c   :  { %v1841_v16 = vpop.f32.mrf.mxu2  ;;  %2115 = vrot.lane.b32.xlu0 %v2049_v60, %s8907_s11  ;;  %v1025_v11 = vpop.permute.xlu0 %1024 }
 0x13d   :  { %v1915_v48 = vadd.f32 %v1841_v16, %v1581_v36  ;;  %v2050_v18 = vpack.c.bf16 %v2018_v61, %v2018_v61  ;;  %v1122_v35 = vld [vmem:[#allocation2 + $0x7c] sm:$0xf]  ;;  %v1023_v0 = vpop.permute.xlu1 %1022 }
 0x13e   :  { %v1123_v4 = vsel %vm9316_vm6, %v1025_v11, %v1122_v35  ;;  %1121 = vst.msk [vmem:[#allocation2 + $0x78] sm:$0xf] %vm1062_vm4, %v1023_v0 }
 0x13f   :  { %v1951_v10 = vmul.f32 %v9678_v50, %v1915_v48  ;;  %v1360_v42 = vpop.f32.mrf.mxu0  ;;  %394 = vrot.lane.b32.xlu2 %v9703_v3, %s8907_s11  ;;  %2117 = vrot.lane.b32.xlu1 %v2050_v18, %s8907_s11  ;;  %v2264_v46 = vshrl.u32 %v2050_v18, 16  ;;  %v2267_v7 = vshll.u32 %v2050_v18, 16  ;;  %v965_v3 = vrot.slane %v964_v44, 4  ;;  %1124 = vst [vmem:[#allocation2 + $0x7c] sm:$0xf] %v1123_v4 }
 0x140   :  { %v9793_v28 = vpop.f32.mrf.mxu1  ;;  %v1586_v61 = vadd.f32 %v9739_v52, %v1360_v42  ;;  %v2603_v18 = vrot.slane %v2602_v54, 4 }
 0x141   :  { %v1987_v19 = vadd.f32 %v9689_v27, %v1951_v10  ;;  %v2604_v39 = vrot.slane %v2267_v7, 5  ;;  %v2606_v29 = vrot.slane %v2264_v46, 4  ;;  %v2266_v56 = vrot.slane %v2264_v46, 7  ;;  %v8715_v46 = vld [vmem:[#allocation2 + $0x68] sm:$0xff] }
 0x142   :  { %7647 = vmatmul.msk.bf16.gmra.mxu0 %vm1283_vm13, %v8714_v31 }
 0x143   :  { %7732 = vmatmul.msk.bf16.gmra.mxu1 %vm1283_vm13, %v8698_v32  ;;  %v2607_v26 = vor.u32 %v2606_v29, %v2604_v39  ;;  %v2269_v62 = vor.u32 %v2267_v7, %v2266_v56  ;;  %v2019_v30 = vmax.f32 %v1987_v19, 0.0  ;;  %v2605_v10 = vsel %vm9011_vm2, %v2603_v18, %v2604_v39  ;;  %v8699_v7 = vld [vmem:[#allocation2 + $0x68] sm:$0xff] }
 0x144   :  { %v1843_v47 = vpop.f32.mrf.mxu2  ;;  %1026 = vrot.lane.b32.xlu0 %v962_v59, %s8908_s12 }
 0x145   :  { %v1916_v60 = vadd.f32 %v1843_v47, %v1583_v63  ;;  %v2608_v45 = vrot.slane %v2607_v26, 4  ;;  %v9809_v34 = vsel %vm9168_vm11, %v2262_v53, %v2269_v62  ;;  %v2051_v22 = vpack.c.bf16 %v2019_v30, %v2019_v30 }
 0x147   :  { %v1952_v9 = vmul.f32 %v9678_v50, %v1916_v60  ;;  %v1362_v1 = vpop.f32.mrf.mxu0  ;;  %1028 = vrot.lane.b32.xlu2 %v965_v3, %s8908_s12  ;;  %2741 = vrot.lane.b32.xlu1 %v2608_v45, %s8908_s12  ;;  %v2272_v40 = vshrl.u32 %v2051_v22, 16  ;;  %v2275_v43 = vshll.u32 %v2051_v22, 16 }
 0x148   :  { %v9815_v23 = vpop.f32.mrf.mxu1  ;;  %v1588_v39 = vadd.f32 %v9773_v58, %v1362_v1 }
 0x149   :  { %7817 = vmatmul.msk.bf16.gmra.mxu2 %vm1283_vm13, %v8731_v37  ;;  %v2274_v2 = vrot.slane %v2272_v40, 7  ;;  %v1988_v13 = vadd.f32 %v9689_v27, %v1952_v9  ;;  %v2609_v14 = vrot.slane %v2272_v40, 4  ;;  %v2610_v36 = vrot.slane %v2275_v43, 5 }
 0x14b   :  { %v9820_v16 = vor.u32 %v2275_v43, %v2274_v2  ;;  %v2020_v12 = vmax.f32 %v1988_v13, 0.0  ;;  %v2611_v44 = vor.u32 %v2610_v36, %v2609_v14  ;;  %v2278_v3 = vrot.slane %v2274_v2, 4 }
 0x14c   :  { %v1846_v48 = vpop.f32.mrf.mxu2  ;;  %2119 = vrot.lane.b32.xlu0 %v2051_v22, %s8907_s11 }
 0x14d   :  { %v1917_v31 = vadd.f32 %v1846_v48, %v1586_v61  ;;  %v2052_v32 = vpack.c.bf16 %v2020_v12, %v2020_v12  ;;  %v2612_v19 = vrot.slane %v2611_v44, 4  ;;  %v8716_v48 = vld [vmem:[#allocation2 + $0x70] sm:$0xff] }
 0x14f   :  { %v1953_v35 = vmul.f32 %v9678_v50, %v1917_v31  ;;  %2121 = vrot.lane.b32.xlu1 %v2052_v32, %s8907_s11  ;;  %2739 = vrot.lane.b32.xlu2 %v2605_v10, %s8908_s12  ;;  %v2283_v52 = vshll.u32 %v2052_v32, 16  ;;  %v2280_v42 = vshrl.u32 %v2052_v32, 16  ;;  %v1365_v59 = vpop.f32.mrf.mxu0 }
 0x150   :  { %v9828_v11 = vpop.f32.mrf.mxu1  ;;  %v1591_v9 = vadd.f32 %v9793_v28, %v1365_v59 }
 0x151   :  { %v1989_v29 = vadd.f32 %v9689_v27, %v1953_v35  ;;  %v2613_v56 = vrot.slane %v2283_v52, 5  ;;  %v2282_v17 = vrot.slane %v2280_v42, 7  ;;  %v2615_v63 = vrot.slane %v2280_v42, 4 }
 0x152   :  { %7648 = vmatmul.msk.bf16.gmra.mxu0 %vm1283_vm13, %v8715_v46 }
 0x153   :  { %7733 = vmatmul.msk.bf16.gmra.mxu1 %vm1283_vm13, %v8699_v7  ;;  %v2614_v6 = vsel %vm9011_vm2, %v2612_v19, %v2613_v56  ;;  %v2021_v4 = vmax.f32 %v1989_v29, 0.0  ;;  %v2285_v0 = vor.u32 %v2283_v52, %v2282_v17  ;;  %v2616_v53 = vor.u32 %v2615_v63, %v2613_v56 }
 0x154   :  { %v1848_v26 = vpop.f32.mrf.mxu2  ;;  %2743 = vrot.lane.b32.xlu0 %v2614_v6, %s8908_s12 }
 0x155   :  { %v1918_v62 = vadd.f32 %v1848_v26, %v1588_v39  ;;  %v2053_v30 = vpack.c.bf16 %v2021_v4, %v2021_v4  ;;  %v9839_v47 = vsel %vm9168_vm11, %v2278_v3, %v2285_v0  ;;  %v2617_v58 = vrot.slane %v2616_v53, 4  ;;  %v8733_v4 = vld [vmem:[#allocation2 + $0x78] sm:$0xff] }
 0x157   :  { %v1954_v25 = vmul.f32 %v9678_v50, %v1918_v62  ;;  %v2288_v60 = vshrl.u32 %v2053_v30, 16  ;;  %v2291_v45 = vshll.u32 %v2053_v30, 16  ;;  %2123 = vrot.lane.b32.xlu1 %v2053_v30, %s8907_s11  ;;  %2745 = vrot.lane.b32.xlu2 %v2617_v58, %s8908_s12  ;;  %v1367_v37 = vpop.f32.mrf.mxu0 }
 0x158   :  { %v9844_v22 = vpop.f32.mrf.mxu1  ;;  %v1593_v10 = vadd.f32 %v9815_v23, %v1367_v37 }
 0x159   :  { %v2290_v1 = vrot.slane %v2288_v60, 7  ;;  %7818 = vmatmul.msk.bf16.gmra.mxu2 %vm1283_vm13, %v8732_v57  ;;  %v1990_v40 = vadd.f32 %v9689_v27, %v1954_v25  ;;  %v2618_v43 = vrot.slane %v2288_v60, 4  ;;  %v2619_v54 = vrot.slane %v2291_v45, 5 }
 0x15b   :  { %v9849_v2 = vor.u32 %v2291_v45, %v2290_v1  ;;  %v2022_v13 = vmax.f32 %v1990_v40, 0.0  ;;  %v2620_v36 = vor.u32 %v2619_v54, %v2618_v43  ;;  %v2294_v59 = vrot.slane %v2290_v1, 4 }
 0x15c   :  { %v1851_v14 = vpop.f32.mrf.mxu2 }
 0x15d   :  { %v1919_v61 = vadd.f32 %v1851_v14, %v1591_v9  ;;  %v2054_v12 = vpack.c.bf16 %v2022_v13, %v2022_v13  ;;  %v2621_v46 = vrot.slane %v2620_v36, 4  ;;  %v8700_v13 = vld [vmem:[#allocation2 + $0x70] sm:$0xff] }
 0x15f   :  { %v1955_v18 = vmul.f32 %v9678_v50, %v1919_v61  ;;  %2125 = vrot.lane.b32.xlu2 %v2054_v12, %s8907_s11  ;;  %v2299_v28 = vshll.u32 %v2054_v12, 16  ;;  %v2296_v44 = vshrl.u32 %v2054_v12, 16  ;;  %v1370_v31 = vpop.f32.mrf.mxu0 }
 0x160   :  { %v9853_v32 = vpop.f32.mrf.mxu1  ;;  %v1596_v58 = vadd.f32 %v9828_v11, %v1370_v31 }
 0x161   :  { %v1991_v7 = vadd.f32 %v9689_v27, %v1955_v18  ;;  %v2622_v35 = vrot.slane %v2299_v28, 5  ;;  %v2298_v52 = vrot.slane %v2296_v44, 7  ;;  %v2624_v42 = vrot.slane %v2296_v44, 4  ;;  %v8717_v44 = vld [vmem:[#allocation2 + $0x78] sm:$0xff] }
 0x162   :  { %7649 = vmatmul.msk.bf16.gmra.mxu0 %vm1283_vm13, %v8716_v48 }
 0x163   :  { %v2623_v19 = vsel %vm9011_vm2, %v2621_v46, %v2622_v35  ;;  %v2301_v29 = vor.u32 %v2299_v28, %v2298_v52  ;;  %v2625_v56 = vor.u32 %v2624_v42, %v2622_v35  ;;  %v2023_v17 = vmax.f32 %v1991_v7, 0.0  ;;  %7734 = vmatmul.msk.bf16.gmra.mxu1 %vm1283_vm13, %v8700_v13 }
 0x164   :  { %v1853_v63 = vpop.f32.mrf.mxu2  ;;  %2747 = vrot.lane.b32.xlu1 %v2623_v19, %s8908_s12 }
 0x165   :  { %v1920_v39 = vadd.f32 %v1853_v63, %v1593_v10  ;;  %v9863_v23 = vsel %vm9168_vm11, %v2294_v59, %v2301_v29  ;;  %v2626_v3 = vrot.slane %v2625_v56, 4  ;;  %v2055_v6 = vpack.c.bf16 %v2023_v17, %v2023_v17 }
 0x167   :  { %v1956_v0 = vmul.f32 %v9678_v50, %v1920_v39  ;;  %2749 = vrot.lane.b32.xlu0 %v2626_v3, %s8908_s12  ;;  %v2304_v53 = vshrl.u32 %v2055_v6, 16  ;;  %v2307_v26 = vshll.u32 %v2055_v6, 16  ;;  %2127 = vrot.lane.b32.xlu2 %v2055_v6, %s8907_s11  ;;  %v1372_v62 = vpop.f32.mrf.mxu0 }
 0x168   :  { %v9868_v30 = vpop.f32.mrf.mxu1  ;;  %v1598_v28 = vadd.f32 %v9844_v22, %v1372_v62 }
 0x169   :  { %v2306_v57 = vrot.slane %v2304_v53, 7  ;;  %7819 = vmatmul.msk.bf16.gmra.mxu2 %vm1283_vm13, %v8733_v4  ;;  %v1992_v25 = vadd.f32 %v9689_v27, %v1956_v0  ;;  %v2627_v60 = vrot.slane %v2304_v53, 4  ;;  %v2628_v45 = vrot.slane %v2307_v26, 5 }
 0x16b   :  { %v9873_v37 = vor.u32 %v2307_v26, %v2306_v57  ;;  %v2024_v9 = vmax.f32 %v1992_v25, 0.0  ;;  %v2629_v1 = vor.u32 %v2628_v45, %v2627_v60  ;;  %v2310_v18 = vrot.slane %v2306_v57, 4 }
 0x16c   :  { %v1856_v40 = vpop.f32.mrf.mxu2 }
 0x16d   :  { %v1921_v43 = vadd.f32 %v1856_v40, %v1596_v58  ;;  %v2056_v54 = vpack.c.bf16 %v2024_v9, %v2024_v9  ;;  %v2630_v12 = vrot.slane %v2629_v1, 4  ;;  %v8701_v40 = vld [vmem:[#allocation2 + $0x78] sm:$0xff] }
 0x16f   :  { %v1957_v14 = vmul.f32 %v9678_v50, %v1921_v43  ;;  %2129 = vrot.lane.b32.xlu0 %v2056_v54, %s8907_s11  ;;  %v2312_v11 = vshrl.u32 %v2056_v54, 16  ;;  %v2315_v36 = vshll.u32 %v2056_v54, 16  ;;  %v1375_v61 = vpop.f32.mrf.mxu0 }
 0x170   :  { %v9877_v48 = vpop.f32.mrf.mxu1  ;;  %v1601_v0 = vadd.f32 %v9853_v32, %v1375_v61 }
 0x171   :  { %v1993_v31 = vadd.f32 %v9689_v27, %v1957_v14  ;;  %v2314_v10 = vrot.slane %v2312_v11, 7  ;;  %v2631_v46 = vrot.slane %v2315_v36, 5  ;;  %v2633_v7 = vrot.slane %v2312_v11, 4 }
 0x172   :  { %7650 = vmatmul.msk.bf16.gmra.mxu0 %vm1283_vm13, %v8717_v44 }
 0x173   :  { %v2317_v35 = vor.u32 %v2315_v36, %v2314_v10  ;;  %v2634_v52 = vor.u32 %v2633_v7, %v2631_v46  ;;  %v2025_v42 = vmax.f32 %v1993_v31, 0.0  ;;  %v2632_v59 = vsel %vm9011_vm2, %v2630_v12, %v2631_v46  ;;  %7735 = vmatmul.msk.bf16.gmra.mxu1 %vm1283_vm13, %v8701_v40 }
 0x174   :  { %v1858_v19 = vpop.f32.mrf.mxu2  ;;  %2751 = vrot.lane.b32.xlu2 %v2632_v59, %s8908_s12  ;;  %v710_v36 = vrot.slane %v9671_v41, 4 }
 0x175   :  { %v1922_v29 = vadd.f32 %v1858_v19, %v1598_v28  ;;  %v9888_v22 = vsel %vm9168_vm11, %v2310_v18, %v2317_v35  ;;  %v2635_v56 = vrot.slane %v2634_v52, 4  ;;  %v2057_v17 = vpack.c.bf16 %v2025_v42, %v2025_v42  ;;  %v185_v52 = vld [vmem:[#allocation2 + $0x84] sm:$0x8] }
 0x176   :  { %v186_v41 = vsel %vm9150_vm9, 0, %v185_v52 }
 0x177   :  { %v1958_v63 = vmul.f32 %v9678_v50, %v1922_v29  ;;  %2753 = vrot.lane.b32.xlu1 %v2635_v56, %s8908_s12  ;;  %v2320_v39 = vshrl.u32 %v2057_v17, 16  ;;  %v2323_v3 = vshll.u32 %v2057_v17, 16  ;;  %2131 = vrot.lane.b32.xlu0 %v2057_v17, %s8907_s11  ;;  %v1377_v6 = vpop.f32.mrf.mxu0  ;;  %187 = vst [vmem:[#allocation2 + $0x84] sm:$0x8] %v186_v41 }
 0x178   :  { %v9893_v4 = vpop.f32.mrf.mxu1  ;;  %v1603_v12 = vadd.f32 %v9868_v30, %v1377_v6  ;;  %v9915_v30 = vsel %vm9168_vm11, %v710_v36, %v9732_v24 }
 0x179   :  { %v2322_v53 = vrot.slane %v2320_v39, 7  ;;  %v1994_v26 = vadd.f32 %v9689_v27, %v1958_v63  ;;  %v2636_v62 = vrot.slane %v2320_v39, 4  ;;  %v2637_v58 = vrot.slane %v2323_v3, 5 }
 0x17b   :  { %v9897_v57 = vor.u32 %v2323_v3, %v2322_v53  ;;  %v2026_v25 = vmax.f32 %v1994_v26, 0.0  ;;  %v2638_v60 = vor.u32 %v2637_v58, %v2636_v62  ;;  %v2326_v61 = vrot.slane %v2322_v53, 4 }
 0x17c   :  { %v1861_v45 = vpop.f32.mrf.mxu2 }
 0x17d   :  { %v1923_v9 = vadd.f32 %v1861_v45, %v1601_v0  ;;  %v2058_v1 = vpack.c.bf16 %v2026_v25, %v2026_v25  ;;  %v2639_v32 = vrot.slane %v2638_v60, 4  ;;  %v7890_v25 = vld [vmem:[%s12437_s4 + $0x8] sm:$0xf]  ;;  %v8770_v60 = vld [vmem:[%s12437_s4 + $0x8] sm:$0x30] }
 0x17f   :  { %v1959_v43 = vmul.f32 %v9678_v50, %v1923_v9  ;;  %2133 = vrot.lane.b32.xlu1 %v2058_v1, %s8907_s11  ;;  %v2328_v54 = vshrl.u32 %v2058_v1, 16  ;;  %v2331_v13 = vshll.u32 %v2058_v1, 16  ;;  %v1380_v14 = vpop.f32.mrf.mxu0  ;;  %v86_v9 = vld [vmem:[#allocation2 + $0x80] sm:$0x1] }
 0x180   :  { %v9901_v11 = vpop.f32.mrf.mxu1  ;;  %v1606_v24 = vadd.f32 %v9877_v48, %v1380_v14 }
 0x181   :  { %v1995_v18 = vadd.f32 %v9689_v27, %v1959_v43  ;;  %v2330_v28 = vrot.slane %v2328_v54, 7  ;;  %v2640_v44 = vrot.slane %v2331_v13, 5  ;;  %v2642_v31 = vrot.slane %v2328_v54, 4 }
 0x182   :  { %v87_v43 = vsel %vm9106_vm5, 0, %v86_v9  ;;  %v7891_v54 = vor.u32 %v8770_v60, %v7890_v25 }
 0x183   :  { %v2027_v10 = vmax.f32 %v1995_v18, 0.0  ;;  %v2333_v46 = vor.u32 %v2331_v13, %v2330_v28  ;;  %v2643_v7 = vor.u32 %v2642_v31, %v2640_v44  ;;  %v2641_v35 = vsel %vm9011_vm2, %v2639_v32, %v2640_v44  ;;  %88 = vst [vmem:[#allocation2 + $0x80] sm:$0x1] %v87_v43 }
 0x184   :  { %v1863_v42 = vpop.f32.mrf.mxu2  ;;  %2755 = vrot.lane.b32.xlu0 %v2641_v35, %s8908_s12  ;;  %v3098_v14 = vsel %vm1332_vm12, %v7891_v54, 0 }
 0x185   :  { %v1924_v59 = vadd.f32 %v1863_v42, %v1603_v12  ;;  %v2059_v19 = vpack.c.bf16 %v2027_v10, %v2027_v10  ;;  %v9919_v29 = vsel %vm9168_vm11, %v2326_v61, %v2333_v46  ;;  %v2644_v56 = vrot.slane %v2643_v7, 4  ;;  %3107 = vmatpush.bf16.msra.mxu3 %v3098_v14 }
 0x187   :  { %v1960_v17 = vmul.f32 %v9678_v50, %v1924_v59  ;;  %v2336_v63 = vshrl.u32 %v2059_v19, 16  ;;  %v2339_v39 = vshll.u32 %v2059_v19, 16  ;;  %2135 = vrot.lane.b32.xlu1 %v2059_v19, %s8907_s11  ;;  %2757 = vrot.lane.b32.xlu2 %v2644_v56, %s8908_s12  ;;  %v1382_v3 = vpop.f32.mrf.mxu0 }
 0x188   :  { %v9925_v6 = vpop.f32.mrf.mxu1  ;;  %v1608_v28 = vadd.f32 %v9893_v4, %v1382_v3 }
 0x189   :  { %v2338_v0 = vrot.slane %v2336_v63, 7  ;;  %v2114_v53 = vpop.permute.xlu2 %2113  ;;  %v1996_v26 = vadd.f32 %v9689_v27, %v1960_v17  ;;  %v2645_v62 = vrot.slane %v2336_v63, 4  ;;  %v2646_v58 = vrot.slane %v2339_v39, 5 }
 0x18a   :  { %2208 = vst.msk [vmem:[#allocation2 + $0xc] sm:$0xf] %vm428_vm14, %v2114_v53 }
 0x18b   :  { %v9935_v45 = vor.u32 %v2339_v39, %v2338_v0  ;;  %2530 = vst.msk [vmem:[#allocation2 + $0xc] sm:$0xf] %vm751_vm15, %v9768_v5  ;;  %v2028_v48 = vmax.f32 %v1996_v26, 0.0  ;;  %v2647_v40 = vor.u32 %v2646_v58, %v2645_v62  ;;  %v2342_v18 = vrot.slane %v2338_v0, 4 }
 0x18c   :  { %v1866_v1 = vpop.f32.mrf.mxu2 }
 0x18d   :  { %v1925_v13 = vadd.f32 %v1866_v1, %v1606_v24  ;;  %v2060_v32 = vpack.c.bf16 %v2028_v48, %v2028_v48  ;;  %v2648_v44 = vrot.slane %v2647_v40, 4 }
 0x18f   :  { %v1961_v36 = vmul.f32 %v9678_v50, %v1925_v13  ;;  %2137 = vrot.lane.b32.xlu2 %v2060_v32, %s8907_s11  ;;  %v2344_v61 = vshrl.u32 %v2060_v32, 16  ;;  %v2347_v12 = vshll.u32 %v2060_v32, 16  ;;  %v1385_v5 = vpop.f32.mrf.mxu0 }
 0x190   :  { %v9946_v42 = vpop.f32.mrf.mxu1  ;;  %v1611_v58 = vadd.f32 %v9901_v11, %v1385_v5 }
 0x191   :  { %v1997_v31 = vadd.f32 %v9689_v27, %v1961_v36  ;;  %v2738_v10 = vpop.permute.xlu2 %2737  ;;  %v2346_v46 = vrot.slane %v2344_v61, 7  ;;  %v2649_v7 = vrot.slane %v2347_v12, 5  ;;  %v2651_v35 = vrot.slane %v2344_v61, 4 }
 0x192   :  { %v2832_v52 = vld [vmem:[#allocation2 + $0xc] sm:$0xf] }
 0x193   :  { %v2833_v41 = vsel %vm9316_vm6, %v2738_v10, %v2832_v52  ;;  %v2349_v59 = vor.u32 %v2347_v12, %v2346_v46  ;;  %v2652_v19 = vor.u32 %v2651_v35, %v2649_v7  ;;  %v2029_v56 = vmax.f32 %v1997_v31, 0.0  ;;  %v8787_v10 = vld [vmem:[%s12437_s4 + $0x10] sm:$0x30] }
 0x194   :  { %2834 = vst [vmem:[#allocation2 + $0xc] sm:$0xf] %v2833_v41  ;;  %v1868_v17 = vpop.f32.mrf.mxu2  ;;  %v2650_v4 = vsel %vm9011_vm2, %v2648_v44, %v2649_v7 }
 0x195   :  { %v1926_v63 = vadd.f32 %v1868_v17, %v1608_v28  ;;  %v9954_v39 = vsel %vm9168_vm11, %v2342_v18, %v2349_v59  ;;  %v2653_v3 = vrot.slane %v2652_v19, 4  ;;  %v2061_v24 = vpack.c.bf16 %v2029_v56, %v2029_v56  ;;  %2759 = vrot.lane.b32.xlu1 %v2650_v4, %s8908_s12 }
 0x197   :  { %v1962_v0 = vmul.f32 %v9678_v50, %v1926_v63  ;;  %2761 = vrot.lane.b32.xlu0 %v2653_v3, %s8908_s12  ;;  %v2352_v53 = vshrl.u32 %v2061_v24, 16  ;;  %v2355_v26 = vshll.u32 %v2061_v24, 16  ;;  %2139 = vrot.lane.b32.xlu2 %v2061_v24, %s8907_s11  ;;  %v1387_v62 = vpop.f32.mrf.mxu0 }
 0x198   :  { %v9968_v11 = vpop.f32.mrf.mxu1  ;;  %v1613_v31 = vadd.f32 %v9925_v6, %v1387_v62 }
 0x199   :  { %v2354_v25 = vrot.slane %v2352_v53, 7  ;;  %v2112_v60 = vpop.permute.xlu1 %2111  ;;  %v395_v48 = vpop.permute.xlu2 %394  ;;  %v1998_v9 = vadd.f32 %v9689_v27, %v1962_v0  ;;  %v2654_v1 = vrot.slane %v2352_v53, 4  ;;  %v2655_v40 = vrot.slane %v2355_v26, 5 }
 0x19a   :  { %2207 = vst.msk [vmem:[#allocation2 + $0x8] sm:$0xf] %vm428_vm14, %v2112_v60 }
 0x19b   :  { %v9963_v43 = vor.u32 %v2355_v26, %v2354_v25  ;;  %460 = vst.msk [vmem:[#allocation2 + $0x84] sm:$0xf] %vm428_vm14, %v395_v48  ;;  %v2030_v54 = vmax.f32 %v1998_v9, 0.0  ;;  %v2656_v13 = vor.u32 %v2655_v40, %v2654_v1  ;;  %v2358_v44 = vrot.slane %v2354_v25, 4 }
 0x19c   :  { %818 = vst.msk [vmem:[#allocation2 + $0x84] sm:$0xf] %vm751_vm15, %v9915_v30  ;;  %v1871_v32 = vpop.f32.mrf.mxu2  ;;  %v8060_v30 = vld [vmem:[%s12437_s4 + $0x10] sm:$0xf] }
 0x19d   :  { %v1927_v14 = vadd.f32 %v1871_v32, %v1611_v58  ;;  %v2062_v36 = vpack.c.bf16 %v2030_v54, %v2030_v54  ;;  %v2657_v28 = vrot.slane %v2656_v13, 4  ;;  %v8061_v56 = vor.u32 %v8787_v10, %v8060_v30 }
 0x19f   :  { %v1963_v61 = vmul.f32 %v9678_v50, %v1927_v14  ;;  %2141 = vrot.lane.b32.xlu0 %v2062_v36, %s8907_s11  ;;  %v2360_v12 = vshrl.u32 %v2062_v36, 16  ;;  %v2363_v5 = vshll.u32 %v2062_v36, 16  ;;  %v1390_v18 = vpop.f32.mrf.mxu0  ;;  %v3583_v26 = vsel %vm1332_vm12, %v8061_v56, 0  ;;  %v10022_v56 = vld [vmem:[%s12436_s3] ss:$0 sm:$0xff] }
 0x1a0   :  { %3592 = vmatpush.bf16.msrb.mxu1 %v3583_v26  ;;  %v9994_v48 = vpop.f32.mrf.mxu1  ;;  %v1616_v13 = vadd.f32 %v9946_v42, %v1390_v18 }
 0x1a1   :  { %v2527_v46 = vld [vmem:[#allocation2 + $0x8] sm:$0xf]  ;;  %v1999_v7 = vadd.f32 %v9689_v27, %v1963_v61  ;;  %v1029_v35 = vpop.permute.xlu2 %1028  ;;  %v2362_v52 = vrot.slane %v2360_v12, 7  ;;  %v2658_v41 = vrot.slane %v2363_v5, 5  ;;  %v2660_v59 = vrot.slane %v2360_v12, 4  ;;  %v393_v19 = vpop.permute.xlu1 %392 }
 0x1a2   :  { %v2528_v6 = vsel %vm9263_vm3, %v9735_v33, %v2527_v46  ;;  %459 = vst.msk [vmem:[#allocation2 + $0x80] sm:$0xf] %vm428_vm14, %v393_v19 }
 0x1a3   :  { %2529 = vst [vmem:[#allocation2 + $0x8] sm:$0xf] %v2528_v6  ;;  %v1126_v17 = vld [vmem:[#allocation2 + $0x84] sm:$0xf]  ;;  %v2365_v4 = vor.u32 %v2363_v5, %v2362_v52  ;;  %v2661_v63 = vor.u32 %v2660_v59, %v2658_v41  ;;  %v2031_v3 = vmax.f32 %v1999_v7, 0.0  ;;  %v2659_v24 = vsel %vm9011_vm2, %v2657_v28, %v2658_v41 }
 0x1a4   :  { %v1127_v0 = vsel %vm9316_vm6, %v1029_v35, %v1126_v17  ;;  %v1873_v53 = vpop.f32.mrf.mxu2  ;;  %2763 = vrot.lane.b32.xlu2 %v2659_v24, %s8908_s12 }
 0x1a5   :  { %1128 = vst [vmem:[#allocation2 + $0x84] sm:$0xf] %v1127_v0  ;;  %v1928_v33 = vadd.f32 %v1873_v53, %v1613_v31  ;;  %v9992_v62 = vsel %vm9168_vm11, %v2358_v44, %v2365_v4  ;;  %v2662_v58 = vrot.slane %v2661_v63, 4  ;;  %v2063_v25 = vpack.c.bf16 %v2031_v3, %v2031_v3 }
 0x1a6   :  { %v2736_v60 = vpop.permute.xlu0 %2735 }
 0x1a7   :  { %v1964_v9 = vmul.f32 %v9678_v50, %v1928_v33  ;;  %2831 = vst.msk [vmem:[#allocation2 + $0x8] sm:$0xf] %vm1062_vm4, %v2736_v60  ;;  %2765 = vrot.lane.b32.xlu1 %v2662_v58, %s8908_s12  ;;  %v2368_v1 = vshrl.u32 %v2063_v25, 16  ;;  %v2371_v40 = vshll.u32 %v2063_v25, 16  ;;  %2143 = vrot.lane.b32.xlu0 %v2063_v25, %s8907_s11  ;;  %v1392_v54 = vpop.f32.mrf.mxu0 }
 0x1a8   :  { %v1618_v19 = vadd.f32 %v9968_v11, %v1392_v54  ;;  %v10017_v6 = vpop.f32.mrf.mxu1 }
 0x1a9   :  { %v2370_v32 = vrot.slane %v2368_v1, 7  ;;  %v815_v14 = vld [vmem:[#allocation2 + $0x80] sm:$0xf]  ;;  %v2740_v36 = vpop.permute.xlu2 %2739  ;;  %v2000_v61 = vadd.f32 %v9689_v27, %v1964_v9  ;;  %v2663_v12 = vrot.slane %v2368_v1, 4  ;;  %v2664_v5 = vrot.slane %v2371_v40, 5 }
 0x1aa   :  { %v816_v50 = vsel %vm9263_vm3, %v9684_v55, %v815_v14  ;;  %v10010_v27 = vld [vmem:[%s12435_s2] ss:$0 sm:$0xff] }
 0x1ab   :  { %v10005_v28 = vor.u32 %v2371_v40, %v2370_v32  ;;  %817 = vst [vmem:[#allocation2 + $0x80] sm:$0xf] %v816_v50  ;;  %v2032_v44 = vmax.f32 %v2000_v61, 0.0  ;;  %v2665_v31 = vor.u32 %v2664_v5, %v2663_v12  ;;  %v2374_v59 = vrot.slane %v2370_v32, 4 }
 0x1ac   :  { %v1876_v30 = vpop.f32.mrf.mxu2 }
 0x1ad   :  { %v1929_v10 = vadd.f32 %v1876_v30, %v1616_v13  ;;  %v2064_v46 = vpack.c.bf16 %v2032_v44, %v2032_v44  ;;  %v2666_v52 = vrot.slane %v2665_v31, 4 }
 0x1ae   :  { %v2116_v42 = vpop.permute.xlu0 %2115  ;;  %v8754_v18 = vld [vmem:[#allocation2 + $0x8] sm:$0xff] }
 0x1af   :  { %v1965_v7 = vmul.f32 %v10010_v27, %v1929_v10  ;;  %2209 = vst.msk [vmem:[#allocation2 + $0x10] sm:$0xf] %vm428_vm14, %v2116_v42  ;;  %2145 = vrot.lane.b32.xlu1 %v2064_v46, %s8907_s11  ;;  %v2376_v55 = vshrl.u32 %v2064_v46, 16  ;;  %v2379_v35 = vshll.u32 %v2064_v46, 16  ;;  %v1395_v41 = vpop.f32.mrf.mxu0  ;;  %7892 = vmatmul.msk.bf16.vlgmr.msra.gmra.mxu3 %vm1283_vm13, %v8754_v18 }
 0x1b0   :  { %v1621_v12 = vadd.f32 %v9994_v48, %v1395_v41  ;;  %v1625_v46 = vpop.f32.mrf.mxu1 }
 0x1b1   :  { %v2001_v17 = vadd.f32 %v10022_v56, %v1965_v7  ;;  %v2118_v4 = vpop.permute.xlu1 %2117  ;;  %v10025_v63 = vpop.permute.xlu2 %2745  ;;  %v2378_v3 = vrot.slane %v2376_v55, 7  ;;  %v2667_v24 = vrot.slane %v2379_v35, 5  ;;  %v2669_v0 = vrot.slane %v2376_v55, 4 }
 0x1b2   :  { %2210 = vst.msk [vmem:[#allocation2 + $0x14] sm:$0xf] %vm428_vm14, %v2118_v4 }
 0x1b3   :  { %2534 = vst.msk [vmem:[#allocation2 + $0x14] sm:$0xf] %vm751_vm15, %v9809_v34  ;;  %v2033_v11 = vmax.f32 %v2001_v17, 0.0  ;;  %v2381_v53 = vor.u32 %v2379_v35, %v2378_v3  ;;  %v2670_v26 = vor.u32 %v2669_v0, %v2667_v24  ;;  %v2668_v33 = vsel %vm9011_vm2, %v2666_v52, %v2667_v24 }
 0x1b4   :  { %v1878_v58 = vpop.f32.mrf.mxu2  ;;  %2767 = vrot.lane.b32.xlu0 %v2668_v33, %s8908_s12 }
 0x1b5   :  { %v1930_v25 = vadd.f32 %v1878_v58, %v1618_v19  ;;  %v2065_v60 = vpack.c.bf16 %v2033_v11, %v2033_v11  ;;  %v10035_v9 = vsel %vm9168_vm11, %v2374_v59, %v2381_v53  ;;  %v2671_v1 = vrot.slane %v2670_v26, 4 }
 0x1b6   :  { %v2531_v40 = vld [vmem:[#allocation2 + $0x10] sm:$0xf]  ;;  %v1027_v54 = vpop.permute.xlu0 %1026 }
 0x1b7   :  { %v2532_v34 = vsel %vm9263_vm3, %v9786_v15, %v2531_v40  ;;  %v1966_v13 = vmul.f32 %v10010_v27, %v1930_v25  ;;  %1125 = vst.msk [vmem:[#allocation2 + $0x80] sm:$0xf] %vm1062_vm4, %v1027_v54  ;;  %v2384_v32 = vshrl.u32 %v2065_v60, 16  ;;  %v2387_v14 = vshll.u32 %v2065_v60, 16  ;;  %2147 = vrot.lane.b32.xlu1 %v2065_v60, %s8907_s11  ;;  %2769 = vrot.lane.b32.xlu2 %v2671_v1, %s8908_s12  ;;  %v1397_v61 = vpop.f32.mrf.mxu0 }
 0x1b8   :  { %2533 = vst [vmem:[#allocation2 + $0x10] sm:$0xf] %v2532_v34  ;;  %v1623_v0 = vadd.f32 %v10017_v6, %v1397_v61 }
 0x1b9   :  { %2835 = vst.msk [vmem:[#allocation2 + $0x10] sm:$0xf] %vm1062_vm4, %v2740_v36  ;;  %v2386_v5 = vrot.slane %v2384_v32, 7  ;;  %v2742_v50 = vpop.permute.xlu1 %2741  ;;  %v2126_v44 = vpop.permute.xlu2 %2125  ;;  %v2002_v15 = vadd.f32 %v10022_v56, %v1966_v13  ;;  %v2672_v31 = vrot.slane %v2384_v32, 4  ;;  %v2673_v30 = vrot.slane %v2387_v14, 5 }
 0x1ba   :  { %v2836_v10 = vld [vmem:[#allocation2 + $0x14] sm:$0xf]  ;;  %2214 = vst.msk [vmem:[#allocation2 + $0x24] sm:$0xf] %vm428_vm14, %v2126_v44  ;;  %v1627_v32 = vpop.f32.mrf.mxu1 }
 0x1bb   :  { %v10048_v42 = vor.u32 %v2387_v14, %v2386_v5  ;;  %v2837_v18 = vsel %vm9316_vm6, %v2742_v50, %v2836_v10  ;;  %2542 = vst.msk [vmem:[#allocation2 + $0x24] sm:$0xf] %vm751_vm15, %v9863_v23  ;;  %v2034_v48 = vmax.f32 %v2002_v15, 0.0  ;;  %v2674_v7 = vor.u32 %v2673_v30, %v2672_v31 }
 0x1bc   :  { %2838 = vst [vmem:[#allocation2 + $0x14] sm:$0xf] %v2837_v18  ;;  %v1881_v36 = vpop.f32.mrf.mxu2  ;;  %v2390_v23 = vrot.slane %v2386_v5, 4 }
 0x1bd   :  { %v1931_v55 = vadd.f32 %v1881_v36, %v1621_v12  ;;  %v2066_v35 = vpack.c.bf16 %v2034_v48, %v2034_v48  ;;  %v2675_v3 = vrot.slane %v2674_v7, 4 }
 0x1be   :  { %v2120_v52 = vpop.permute.xlu0 %2119  ;;  %v8718_v41 = vld [vmem:[#allocation2 + $0x80] sm:$0xff] }
 0x1bf   :  { %v8734_v59 = vld [vmem:[#allocation2 + $0x80] sm:$0xff]  ;;  %v1967_v19 = vmul.f32 %v10010_v27, %v1931_v55  ;;  %2211 = vst.msk [vmem:[#allocation2 + $0x18] sm:$0xf] %vm428_vm14, %v2120_v52  ;;  %2149 = vrot.lane.b32.xlu2 %v2066_v35, %s8907_s11  ;;  %v2392_v17 = vshrl.u32 %v2066_v35, 16  ;;  %v2395_v4 = vshll.u32 %v2066_v35, 16  ;;  %v1400_v24 = vpop.f32.mrf.mxu0  ;;  %7651 = vmatmul.msk.bf16.gmra.mxu0 %vm1283_vm13, %v8718_v41 }
 0x1c0   :  { %7820 = vmatmul.msk.bf16.gmra.mxu2 %vm1283_vm13, %v8734_v59  ;;  %v1626_v18 = vadd.f32 %v1625_v46, %v1400_v24 }
 0x1c1   :  { %v2003_v11 = vadd.f32 %v10022_v56, %v1967_v19  ;;  %v2122_v53 = vpop.permute.xlu1 %2121  ;;  %v2128_v26 = vpop.permute.xlu2 %2127  ;;  %v2394_v33 = vrot.slane %v2392_v17, 7  ;;  %v2676_v58 = vrot.slane %v2395_v4, 5  ;;  %v2678_v25 = vrot.slane %v2392_v17, 4 }
 0x1c2   :  { %2212 = vst.msk [vmem:[#allocation2 + $0x1c] sm:$0xf] %vm428_vm14, %v2122_v53  ;;  %v1630_v53 = vpop.f32.mrf.mxu1 }
 0x1c3   :  { %2538 = vst.msk [vmem:[#allocation2 + $0x1c] sm:$0xf] %vm751_vm15, %v9839_v47  ;;  %v8755_v60 = vld [vmem:[#allocation2 + $0x10] sm:$0xff]  ;;  %v2397_v40 = vor.u32 %v2395_v4, %v2394_v33  ;;  %v2679_v54 = vor.u32 %v2678_v25, %v2676_v58  ;;  %v2035_v34 = vmax.f32 %v2003_v11, 0.0  ;;  %v2677_v6 = vsel %vm9011_vm2, %v2675_v3, %v2676_v58  ;;  %v8735_v4 = vld [vmem:[#allocation2 + $0x88] sm:$0xff]  ;;  %v8737_v3 = vld [vmem:[#allocation2] sm:$0xff] }
 0x1c4   :  { %v8771_v1 = vld [vmem:[#allocation2 + $0x10] sm:$0xff]  ;;  %2215 = vst.msk [vmem:[#allocation2 + $0x28] sm:$0xf] %vm428_vm14, %v2128_v26  ;;  %v1883_v13 = vpop.f32.mrf.mxu2  ;;  %2771 = vrot.lane.b32.xlu1 %v2677_v6, %s8908_s12  ;;  %7893 = vmatmul.msk.bf16.gmra.mxu3 %vm1283_vm13, %v8755_v60 }
 0x1c5   :  { %v1932_v14 = vadd.f32 %v1883_v13, %v1623_v0  ;;  %8062 = vmatmul.msk.bf16.vlgmr.msrb.gmra.mxu1 %vm1283_vm13, %v8771_v1  ;;  %v10072_v47 = vsel %vm9168_vm11, %v2390_v23, %v2397_v40  ;;  %v2680_v61 = vrot.slane %v2679_v54, 4  ;;  %v2067_v12 = vpack.c.bf16 %v2035_v34, %v2035_v34 }
 0x1c6   :  { %v2535_v5 = vld [vmem:[#allocation2 + $0x18] sm:$0xf]  ;;  %v2744_v10 = vpop.permute.xlu0 %2743 }
 0x1c7   :  { %v2536_v50 = vsel %vm9263_vm3, %v9820_v16, %v2535_v5  ;;  %v1968_v44 = vmul.f32 %v10010_v27, %v1932_v14  ;;  %2773 = vrot.lane.b32.xlu0 %v2680_v61, %s8908_s12  ;;  %v2400_v15 = vshrl.u32 %v2067_v12, 16  ;;  %v2403_v31 = vshll.u32 %v2067_v12, 16  ;;  %2151 = vrot.lane.b32.xlu2 %v2067_v12, %s8907_s11  ;;  %v1402_v30 = vpop.f32.mrf.mxu0 }
 0x1c8   :  { %2537 = vst [vmem:[#allocation2 + $0x18] sm:$0xf] %v2536_v50  ;;  %v1628_v60 = vadd.f32 %v1627_v32, %v1402_v30 }
 0x1c9   :  { %2839 = vst.msk [vmem:[#allocation2 + $0x18] sm:$0xf] %vm1062_vm4, %v2744_v10  ;;  %v2402_v48 = vrot.slane %v2400_v15, 7  ;;  %v2124_v36 = vpop.permute.xlu1 %2123  ;;  %v2004_v7 = vadd.f32 %v10022_v56, %v1968_v44  ;;  %v2681_v55 = vrot.slane %v2400_v15, 4  ;;  %v2682_v16 = vrot.slane %v2403_v31, 5 }
 0x1ca   :  { %2213 = vst.msk [vmem:[#allocation2 + $0x20] sm:$0xf] %vm428_vm14, %v2124_v36  ;;  %v2840_v35 = vld [vmem:[#allocation2 + $0x1c] sm:$0xf] }
 0x1cb   :  { %v2543_v52 = vld [vmem:[#allocation2 + $0x28] sm:$0xf]  ;;  %v10083_v41 = vor.u32 %v2403_v31, %v2402_v48  ;;  %v2036_v59 = vmax.f32 %v2004_v7, 0.0  ;;  %v2841_v19 = vsel %vm9316_vm6, %v10025_v63, %v2840_v35  ;;  %v2683_v24 = vor.u32 %v2682_v16, %v2681_v55  ;;  %v1632_v55 = vpop.f32.mrf.mxu1 }
 0x1cc   :  { %v2544_v46 = vsel %vm9263_vm3, %v9873_v37, %v2543_v52  ;;  %v1886_v17 = vpop.f32.mrf.mxu2  ;;  %2842 = vst [vmem:[#allocation2 + $0x1c] sm:$0xf] %v2841_v19  ;;  %v2406_v25 = vrot.slane %v2402_v48, 4  ;;  %v2844_v52 = vld [vmem:[#allocation2 + $0x24] sm:$0xf] }
 0x1cd   :  { %2545 = vst [vmem:[#allocation2 + $0x28] sm:$0xf] %v2544_v46  ;;  %v1933_v23 = vadd.f32 %v1886_v17, %v1626_v18  ;;  %v2068_v0 = vpack.c.bf16 %v2036_v59, %v2036_v59  ;;  %v2684_v37 = vrot.slane %v2683_v24, 4 }
 0x1ce   :  { %v2752_v11 = vpop.permute.xlu2 %2751 }
 0x1cf   :  { %v1969_v26 = vmul.f32 %v10010_v27, %v1933_v23  ;;  %2153 = vrot.lane.b32.xlu0 %v2068_v0, %s8907_s11  ;;  %v2408_v33 = vshrl.u32 %v2068_v0, 16  ;;  %v2411_v63 = vshll.u32 %v2068_v0, 16  ;;  %2847 = vst.msk [vmem:[#allocation2 + $0x28] sm:$0xf] %vm1062_vm4, %v2752_v11  ;;  %v1405_v58 = vpop.f32.mrf.mxu0  ;;  %7976 = vmatmul.msk.bf16.vlgmr.msrb.gmra.mxu0 %vm1283_vm13, %v8737_v3 }
 0x1d0   :  { %7821 = vmatmul.msk.bf16.gmra.mxu2 %vm1283_vm13, %v8735_v4  ;;  %v1631_v7 = vadd.f32 %v1630_v53, %v1405_v58 }
 0x1d1   :  { %v2539_v1 = vld [vmem:[#allocation2 + $0x20] sm:$0xf]  ;;  %v2005_v40 = vadd.f32 %v10022_v56, %v1969_v26  ;;  %v2410_v54 = vrot.slane %v2408_v33, 7  ;;  %v2685_v34 = vrot.slane %v2411_v63, 5  ;;  %v2687_v6 = vrot.slane %v2408_v33, 4  ;;  %v8738_v26 = vld [vmem:[#allocation2 + $0x8] sm:$0xff] }
 0x1d2   :  { %v2540_v13 = vsel %vm9263_vm3, %v9849_v2, %v2539_v1 }
 0x1d3   :  { %2541 = vst [vmem:[#allocation2 + $0x20] sm:$0xf] %v2540_v13  ;;  %v8756_v14 = vld [vmem:[#allocation2 + $0x18] sm:$0xff]  ;;  %v2413_v12 = vor.u32 %v2411_v63, %v2410_v54  ;;  %v2688_v5 = vor.u32 %v2687_v6, %v2685_v34  ;;  %v2037_v50 = vmax.f32 %v2005_v40, 0.0  ;;  %v2686_v44 = vsel %vm9011_vm2, %v2684_v37, %v2685_v34 }
 0x1d4   :  { %v8772_v61 = vld [vmem:[#allocation2 + $0x18] sm:$0xff]  ;;  %v1888_v32 = vpop.f32.mrf.mxu2  ;;  %2775 = vrot.lane.b32.xlu2 %v2686_v44, %s8908_s12  ;;  %7894 = vmatmul.msk.bf16.gmra.mxu3 %vm1283_vm13, %v8756_v14 }
 0x1d5   :  { %v1934_v15 = vadd.f32 %v1888_v32, %v1628_v60  ;;  %8063 = vmatmul.msk.bf16.gmra.mxu1 %vm1283_vm13, %v8772_v61  ;;  %v10107_v2 = vsel %vm9168_vm11, %v2406_v25, %v2413_v12  ;;  %v2689_v31 = vrot.slane %v2688_v5, 4  ;;  %v2069_v30 = vpack.c.bf16 %v2037_v50, %v2037_v50 }
 0x1d6   :  { %v2748_v10 = vpop.permute.xlu1 %2747 }
 0x1d7   :  { %v1970_v18 = vmul.f32 %v10010_v27, %v1934_v15  ;;  %2843 = vst.msk [vmem:[#allocation2 + $0x20] sm:$0xf] %vm1062_vm4, %v2748_v10  ;;  %2777 = vrot.lane.b32.xlu1 %v2689_v31, %s8908_s12  ;;  %v2416_v48 = vshrl.u32 %v2069_v30, 16  ;;  %v2419_v36 = vshll.u32 %v2069_v30, 16  ;;  %2155 = vrot.lane.b32.xlu0 %v2069_v30, %s8907_s11  ;;  %v1407_v19 = vpop.f32.mrf.mxu0  ;;  %v1635_v15 = vpop.f32.mrf.mxu1  ;;  %v8178_v31 = vld [vmem:[%s12434_s1 + $0x8] sm:$0xf] }
 0x1d8   :  { %v1633_v60 = vadd.f32 %v1632_v55, %v1407_v19  ;;  %v8821_v10 = vld [vmem:[%s12434_s1 + $0x8] sm:$0x30] }
 0x1d9   :  { %v2418_v16 = vrot.slane %v2416_v48, 7  ;;  %v2750_v35 = vpop.permute.xlu0 %2749  ;;  %v2006_v59 = vadd.f32 %v10022_v56, %v1970_v18  ;;  %v2690_v46 = vrot.slane %v2416_v48, 4  ;;  %v2691_v17 = vrot.slane %v2419_v36, 5  ;;  %v8804_v18 = vld [vmem:[%s12434_s1] sm:$0x30] }
 0x1da   :  { %v2845_v4 = vsel %vm9316_vm6, %v2750_v35, %v2844_v52  ;;  %v8348_v52 = vld [vmem:[%s12434_s1 + $0x10] sm:$0xf] }
 0x1db   :  { %v10116_v3 = vor.u32 %v2419_v36, %v2418_v16  ;;  %2846 = vst [vmem:[#allocation2 + $0x24] sm:$0xf] %v2845_v4  ;;  %v2038_v24 = vmax.f32 %v2006_v59, 0.0  ;;  %v2692_v23 = vor.u32 %v2691_v17, %v2690_v46  ;;  %v2422_v25 = vrot.slane %v2418_v16, 4  ;;  %v8838_v59 = vld [vmem:[%s12434_s1 + $0x10] sm:$0x30] }
 0x1dc   :  { %v1891_v0 = vpop.f32.mrf.mxu2  ;;  %v8179_v16 = vor.u32 %v8821_v10, %v8178_v31  ;;  %v8349_v4 = vor.u32 %v8838_v59, %v8348_v52 }
 0x1dd   :  { %v1935_v11 = vadd.f32 %v1891_v0, %v1631_v7  ;;  %v2070_v53 = vpack.c.bf16 %v2038_v24, %v2038_v24  ;;  %v2693_v37 = vrot.slane %v2692_v23, 4 }
 0x1de   :  { %v4992_v23 = vsel %vm1332_vm12, %v8179_v16, 0 }
 0x1df   :  { %v1971_v33 = vmul.f32 %v10010_v27, %v1935_v11  ;;  %2157 = vrot.lane.b32.xlu1 %v2070_v53, %s8907_s11  ;;  %v2424_v63 = vshrl.u32 %v2070_v53, 16  ;;  %v2427_v58 = vshll.u32 %v2070_v53, 16  ;;  %7977 = vmatmul.msk.bf16.gmra.mxu0 %vm1283_vm13, %v8738_v26  ;;  %v1410_v32 = vpop.f32.mrf.mxu0 }
 0x1e0   :  { %v1636_v24 = vadd.f32 %v1635_v15, %v1410_v32  ;;  %5001 = vmatpush.bf16.msrb.mxu2 %v4992_v23 }
 0x1e1   :  { %v2007_v1 = vadd.f32 %v10022_v56, %v1971_v33  ;;  %v2130_v40 = vpop.permute.xlu0 %2129  ;;  %v10122_v54 = vpop.permute.xlu2 %2757  ;;  %v2426_v34 = vrot.slane %v2424_v63, 7  ;;  %v2694_v6 = vrot.slane %v2427_v58, 5  ;;  %v2696_v13 = vrot.slane %v2424_v63, 4 }
 0x1e2   :  { %2216 = vst.msk [vmem:[#allocation2 + $0x2c] sm:$0xf] %vm428_vm14, %v2130_v40  ;;  %v8757_v14 = vld [vmem:[#allocation2 + $0x20] sm:$0xff] }
 0x1e3   :  { %v8773_v61 = vld [vmem:[#allocation2 + $0x20] sm:$0xff]  ;;  %2546 = vst.msk [vmem:[#allocation2 + $0x2c] sm:$0xf] %vm751_vm15, %v9888_v22  ;;  %v2039_v12 = vmax.f32 %v2007_v1, 0.0  ;;  %v2429_v5 = vor.u32 %v2427_v58, %v2426_v34  ;;  %v2697_v50 = vor.u32 %v2696_v13, %v2694_v6  ;;  %v2695_v44 = vsel %vm9011_vm2, %v2693_v37, %v2694_v6 }
 0x1e4   :  { %v1893_v30 = vpop.f32.mrf.mxu2  ;;  %2779 = vrot.lane.b32.xlu0 %v2695_v44, %s8908_s12  ;;  %v8262_v22 = vld [vmem:[%s12434_s1] sm:$0xf]  ;;  %7895 = vmatmul.msk.bf16.gmra.mxu3 %vm1283_vm13, %v8757_v14 }
 0x1e5   :  { %v1936_v48 = vadd.f32 %v1893_v30, %v1633_v60  ;;  %8064 = vmatmul.msk.bf16.gmra.mxu1 %vm1283_vm13, %v8773_v61  ;;  %v2071_v36 = vpack.c.bf16 %v2039_v12, %v2039_v12  ;;  %v10146_v7 = vsel %vm9168_vm11, %v2422_v25, %v2429_v5  ;;  %v2698_v55 = vrot.slane %v2697_v50, 4  ;;  %v1637_v5 = vpop.f32.mrf.mxu1  ;;  %v8739_v50 = vld [vmem:[#allocation2 + $0x10] sm:$0xff] }
 0x1e6   :  { %v8263_v35 = vor.u32 %v8804_v18, %v8262_v22  ;;  %v5477_v60 = vsel %vm1332_vm12, %v8349_v4, 0 }
 0x1e7   :  { %v1972_v19 = vmul.f32 %v10010_v27, %v1936_v48  ;;  %v2432_v46 = vshrl.u32 %v2071_v36, 16  ;;  %v2435_v17 = vshll.u32 %v2071_v36, 16  ;;  %2159 = vrot.lane.b32.xlu1 %v2071_v36, %s8907_s11  ;;  %2781 = vrot.lane.b32.xlu2 %v2698_v55, %s8908_s12  ;;  %v1412_v12 = vpop.f32.mrf.mxu0 }
 0x1e8   :  { %v5217_v0 = vsel %vm1332_vm12, %v8263_v35, 0  ;;  %5486 = vmatpush.bf16.msra.mxu0 %v5477_v60  ;;  %v1638_v10 = vadd.f32 %v1637_v5, %v1412_v12 }
 0x1e9   :  { %v2434_v11 = vrot.slane %v2432_v46, 7  ;;  %v2754_v53 = vpop.permute.xlu1 %2753  ;;  %v2132_v26 = vpop.permute.xlu0 %2131  ;;  %v2008_v33 = vadd.f32 %v10022_v56, %v1972_v19  ;;  %v2699_v63 = vrot.slane %v2432_v46, 4  ;;  %v2700_v58 = vrot.slane %v2435_v17, 5  ;;  %5226 = vmatpush.bf16.msrb.mxu3 %v5217_v0 }
 0x1ea   :  { %v2848_v37 = vld [vmem:[#allocation2 + $0x2c] sm:$0xf]  ;;  %2217 = vst.msk [vmem:[#allocation2 + $0x30] sm:$0xf] %vm428_vm14, %v2132_v26  ;;  %v2138_v25 = vpop.permute.xlu2 %2137 }
 0x1eb   :  { %v10162_v1 = vor.u32 %v2435_v17, %v2434_v11  ;;  %v2849_v40 = vsel %vm9316_vm6, %v2754_v53, %v2848_v37  ;;  %2220 = vst.msk [vmem:[#allocation2 + $0x3c] sm:$0xf] %vm428_vm14, %v2138_v25  ;;  %v2040_v34 = vmax.f32 %v2008_v33, 0.0  ;;  %v2701_v13 = vor.u32 %v2700_v58, %v2699_v63 }
 0x1ec   :  { %2850 = vst [vmem:[#allocation2 + $0x2c] sm:$0xf] %v2849_v40  ;;  %v1896_v6 = vpop.f32.mrf.mxu2  ;;  %v2438_v30 = vrot.slane %v2434_v11, 4 }
 0x1ed   :  { %2554 = vst.msk [vmem:[#allocation2 + $0x3c] sm:$0xf] %vm751_vm15, %v9954_v39  ;;  %v1937_v14 = vadd.f32 %v1896_v6, %v1636_v24  ;;  %v2072_v61 = vpack.c.bf16 %v2040_v34, %v2040_v34  ;;  %v2702_v31 = vrot.slane %v2701_v13, 4 }
 0x1ef   :  { %v1973_v44 = vmul.f32 %v10010_v27, %v1937_v14  ;;  %2161 = vrot.lane.b32.xlu2 %v2072_v61, %s8907_s11  ;;  %v2440_v32 = vshrl.u32 %v2072_v61, 16  ;;  %v2443_v15 = vshll.u32 %v2072_v61, 16  ;;  %7978 = vmatmul.msk.bf16.gmra.mxu0 %vm1283_vm13, %v8739_v50  ;;  %v8740_v50 = vld [vmem:[#allocation2 + $0x18] sm:$0xff] }
 0x1f1   :  { %v2547_v22 = vld [vmem:[#allocation2 + $0x30] sm:$0xf]  ;;  %v2009_v18 = vadd.f32 %v10022_v56, %v1973_v44  ;;  %v2134_v39 = vpop.permute.xlu1 %2133  ;;  %v2442_v48 = vrot.slane %v2440_v32, 7  ;;  %v2703_v36 = vrot.slane %v2443_v15, 5  ;;  %v2705_v55 = vrot.slane %v2440_v32, 4 }
 0x1f2   :  { %v2548_v16 = vsel %vm9263_vm3, %v9897_v57, %v2547_v22  ;;  %2218 = vst.msk [vmem:[#allocation2 + $0x34] sm:$0xf] %vm428_vm14, %v2134_v39  ;;  %v2140_v35 = vpop.permute.xlu2 %2139 }
 0x1f3   :  { %2549 = vst [vmem:[#allocation2 + $0x30] sm:$0xf] %v2548_v16  ;;  %v8758_v52 = vld [vmem:[#allocation2 + $0x28] sm:$0xff]  ;;  %v2445_v19 = vor.u32 %v2443_v15, %v2442_v48  ;;  %v2706_v46 = vor.u32 %v2705_v55, %v2703_v36  ;;  %v2041_v17 = vmax.f32 %v2009_v18, 0.0  ;;  %v2704_v4 = vsel %vm9011_vm2, %v2702_v31, %v2703_v36 }
 0x1f4   :  { %v8774_v59 = vld [vmem:[#allocation2 + $0x28] sm:$0xff]  ;;  %2550 = vst.msk [vmem:[#allocation2 + $0x34] sm:$0xf] %vm751_vm15, %v9919_v29  ;;  %v1898_v24 = vpop.f32.mrf.mxu2  ;;  %2783 = vrot.lane.b32.xlu1 %v2704_v4, %s8908_s12  ;;  %7896 = vmatmul.msk.bf16.gmra.mxu3 %vm1283_vm13, %v8758_v52 }
 0x1f5   :  { %2221 = vst.msk [vmem:[#allocation2 + $0x40] sm:$0xf] %vm428_vm14, %v2140_v35  ;;  %v1938_v57 = vadd.f32 %v1898_v24, %v1638_v10  ;;  %8065 = vmatmul.msk.bf16.gmra.mxu1 %vm1283_vm13, %v8774_v59  ;;  %v10187_v23 = vsel %vm9168_vm11, %v2438_v30, %v2445_v19  ;;  %v2707_v0 = vrot.slane %v2706_v46, 4  ;;  %v2073_v11 = vpack.c.bf16 %v2041_v17, %v2041_v17  ;;  %v2856_v19 = vld [vmem:[#allocation2 + $0x3c] sm:$0xf]  ;;  %v8741_v17 = vld [vmem:[#allocation2 + $0x20] sm:$0xff] }
 0x1f6   :  { %v2756_v53 = vpop.permute.xlu0 %2755 }
 0x1f7   :  { %v1974_v26 = vmul.f32 %v10010_v27, %v1938_v57  ;;  %2785 = vrot.lane.b32.xlu0 %v2707_v0, %s8908_s12  ;;  %2851 = vst.msk [vmem:[#allocation2 + $0x30] sm:$0xf] %vm1062_vm4, %v2756_v53  ;;  %v2448_v29 = vshrl.u32 %v2073_v11, 16  ;;  %v2451_v33 = vshll.u32 %v2073_v11, 16  ;;  %2163 = vrot.lane.b32.xlu2 %v2073_v11, %s8907_s11 }
 0x1f9   :  { %v2136_v63 = vpop.permute.xlu1 %2135  ;;  %v2010_v58 = vadd.f32 %v10022_v56, %v1974_v26  ;;  %v2450_v37 = vrot.slane %v2448_v29, 7  ;;  %v2708_v25 = vrot.slane %v2448_v29, 4  ;;  %v2709_v60 = vrot.slane %v2451_v33, 5 }
 0x1fa   :  { %2219 = vst.msk [vmem:[#allocation2 + $0x38] sm:$0xf] %vm428_vm14, %v2136_v63  ;;  %v1640_v63 = vpop.f32.mrf.mxu1 }
 0x1fb   :  { %v2042_v40 = vmax.f32 %v2010_v58, 0.0  ;;  %v2852_v34 = vld [vmem:[#allocation2 + $0x34] sm:$0xf]  ;;  %v10195_v13 = vor.u32 %v2451_v33, %v2450_v37  ;;  %v2710_v61 = vor.u32 %v2709_v60, %v2708_v25 }
 0x1fc   :  { %v2555_v6 = vld [vmem:[#allocation2 + $0x40] sm:$0xf]  ;;  %v2853_v14 = vsel %vm9316_vm6, %v10122_v54, %v2852_v34  ;;  %v2454_v54 = vrot.slane %v2450_v37, 4 }
 0x1fd   :  { %v2556_v12 = vsel %vm9263_vm3, %v9963_v43, %v2555_v6  ;;  %v2074_v5 = vpack.c.bf16 %v2042_v40, %v2042_v40  ;;  %2854 = vst [vmem:[#allocation2 + $0x34] sm:$0xf] %v2853_v14  ;;  %v2711_v31 = vrot.slane %v2710_v61, 4  ;;  %v1415_v14 = vpop.f32.mrf.mxu0 }
 0x1fe   :  { %2557 = vst [vmem:[#allocation2 + $0x40] sm:$0xf] %v2556_v12  ;;  %v2764_v44 = vpop.permute.xlu2 %2763 }
 0x1ff   :  { %2165 = vrot.lane.b32.xlu0 %v2074_v5, %s8907_s11  ;;  %v2456_v32 = vshrl.u32 %v2074_v5, 16  ;;  %v2459_v15 = vshll.u32 %v2074_v5, 16  ;;  %2859 = vst.msk [vmem:[#allocation2 + $0x40] sm:$0xf] %vm1062_vm4, %v2764_v44  ;;  %7979 = vmatmul.msk.bf16.gmra.mxu0 %vm1283_vm13, %v8740_v50 }
 0x201   :  { %v2551_v30 = vld [vmem:[#allocation2 + $0x38] sm:$0xf]  ;;  %v2458_v10 = vrot.slane %v2456_v32, 7  ;;  %v2712_v22 = vrot.slane %v2459_v15, 5  ;;  %v2714_v18 = vrot.slane %v2456_v32, 4 }
 0x202   :  { %v2552_v43 = vsel %vm9263_vm3, %v9935_v45, %v2551_v30 }
 0x203   :  { %2553 = vst [vmem:[#allocation2 + $0x38] sm:$0xf] %v2552_v43  ;;  %v2461_v39 = vor.u32 %v2459_v15, %v2458_v10  ;;  %v2715_v48 = vor.u32 %v2714_v18, %v2712_v22  ;;  %v2713_v36 = vsel %vm9011_vm2, %v2711_v31, %v2712_v22 }
 0x204   :  { %v8759_v55 = vld [vmem:[#allocation2 + $0x30] sm:$0xff]  ;;  %2787 = vrot.lane.b32.xlu2 %v2713_v36, %s8908_s12 }
 0x205   :  { %v8775_v16 = vld [vmem:[#allocation2 + $0x30] sm:$0xff]  ;;  %v10214_v35 = vsel %vm9168_vm11, %v2454_v54, %v2461_v39  ;;  %v2716_v52 = vrot.slane %v2715_v48, 4  ;;  %7897 = vmatmul.msk.bf16.gmra.mxu3 %vm1283_vm13, %v8759_v55  ;;  %v1417_v10 = vpop.f32.mrf.mxu0 }
 0x206   :  { %8066 = vmatmul.msk.bf16.gmra.mxu1 %vm1283_vm13, %v8775_v16  ;;  %v8743_v50 = vld [vmem:[#allocation2 + $0x30] sm:$0xff] }
 0x207   :  { %2789 = vrot.lane.b32.xlu1 %v2716_v52, %s8908_s12  ;;  %v2760_v45 = vpop.permute.xlu1 %2759 }
 0x208   :  { %2855 = vst.msk [vmem:[#allocation2 + $0x38] sm:$0xf] %vm1062_vm4, %v2760_v45  ;;  %v1641_v45 = vadd.f32 %v1640_v63, %v1415_v14 }
 0x209   :  { %v2762_v59 = vpop.permute.xlu0 %2761 }
 0x20a   :  { %v2857_v46 = vsel %vm9316_vm6, %v2762_v59, %v2856_v19 }
 0x20b   :  { %2858 = vst [vmem:[#allocation2 + $0x3c] sm:$0xf] %v2857_v46 }
 0x20f   :  { %7980 = vmatmul.msk.bf16.gmra.mxu0 %vm1283_vm13, %v8741_v17 }
 0x211   :  { %v2142_v4 = vpop.permute.xlu0 %2141  ;;  %v2770_v24 = vpop.permute.xlu2 %2769 }
 0x212   :  { %2222 = vst.msk [vmem:[#allocation2 + $0x44] sm:$0xf] %vm428_vm14, %v2142_v4  ;;  %v8760_v57 = vld [vmem:[#allocation2 + $0x38] sm:$0xff] }
 0x213   :  { %v8776_v0 = vld [vmem:[#allocation2 + $0x38] sm:$0xff]  ;;  %2558 = vst.msk [vmem:[#allocation2 + $0x44] sm:$0xf] %vm751_vm15, %v9992_v62  ;;  %v8742_v62 = vld [vmem:[#allocation2 + $0x28] sm:$0xff] }
 0x214   :  { %v8744_v36 = vld [vmem:[#allocation2 + $0x38] sm:$0xff] }
 0x215   :  { %7898 = vmatmul.msk.bf16.gmra.mxu3 %vm1283_vm13, %v8760_v57 }
 0x216   :  { %8067 = vmatmul.msk.bf16.gmra.mxu1 %vm1283_vm13, %v8776_v0 }
 0x219   :  { %v2766_v11 = vpop.permute.xlu1 %2765  ;;  %v2144_v53 = vpop.permute.xlu0 %2143 }
 0x21a   :  { %v2860_v26 = vld [vmem:[#allocation2 + $0x44] sm:$0xf]  ;;  %2223 = vst.msk [vmem:[#allocation2 + $0x48] sm:$0xf] %vm428_vm14, %v2144_v53  ;;  %v2150_v29 = vpop.permute.xlu2 %2149 }
 0x21b   :  { %v2861_v33 = vsel %vm9316_vm6, %v2766_v11, %v2860_v26  ;;  %2226 = vst.msk [vmem:[#allocation2 + $0x54] sm:$0xf] %vm428_vm14, %v2150_v29 }
 0x21c   :  { %2862 = vst [vmem:[#allocation2 + $0x44] sm:$0xf] %v2861_v33 }
 0x21d   :  { %2566 = vst.msk [vmem:[#allocation2 + $0x54] sm:$0xf] %vm751_vm15, %v10072_v47  ;;  %v1642_v47 = vpop.f32.mrf.mxu1 }
 0x21e   :  { %v1643_v29 = vadd.f32 %v1642_v47, %v1417_v10 }
 0x21f   :  { %7981 = vmatmul.msk.bf16.gmra.mxu0 %vm1283_vm13, %v8742_v62 }
 0x221   :  { %v2559_v58 = vld [vmem:[#allocation2 + $0x48] sm:$0xf]  ;;  %v2146_v37 = vpop.permute.xlu1 %2145 }
 0x222   :  { %v2560_v25 = vsel %vm9263_vm3, %v10005_v28, %v2559_v58  ;;  %2224 = vst.msk [vmem:[#allocation2 + $0x4c] sm:$0xf] %vm428_vm14, %v2146_v37  ;;  %v2152_v60 = vpop.permute.xlu2 %2151 }
 0x223   :  { %2561 = vst [vmem:[#allocation2 + $0x48] sm:$0xf] %v2560_v25  ;;  %v8761_v40 = vld [vmem:[#allocation2 + $0x40] sm:$0xff] }
 0x224   :  { %v8777_v34 = vld [vmem:[#allocation2 + $0x40] sm:$0xff]  ;;  %2562 = vst.msk [vmem:[#allocation2 + $0x4c] sm:$0xf] %vm751_vm15, %v10035_v9  ;;  %v2868_v43 = vld [vmem:[#allocation2 + $0x54] sm:$0xf] }
 0x225   :  { %2227 = vst.msk [vmem:[#allocation2 + $0x58] sm:$0xf] %vm428_vm14, %v2152_v60  ;;  %7899 = vmatmul.msk.bf16.gmra.mxu3 %vm1283_vm13, %v8761_v40  ;;  %v10252_v32 = vpop.f32.mrf.mxu1 }
 0x226   :  { %8068 = vmatmul.msk.bf16.gmra.mxu1 %vm1283_vm13, %v8777_v34  ;;  %v2768_v6 = vpop.permute.xlu0 %2767 }
 0x227   :  { %2863 = vst.msk [vmem:[#allocation2 + $0x48] sm:$0xf] %vm1062_vm4, %v2768_v6  ;;  %v10293_v6 = vld [vmem:[%s12438_s5] ss:$0 sm:$0xff] }
 0x229   :  { %v2148_v28 = vpop.permute.xlu1 %2147 }
 0x22a   :  { %2225 = vst.msk [vmem:[#allocation2 + $0x50] sm:$0xf] %vm428_vm14, %v2148_v28 }
 0x22b   :  { %v2864_v61 = vld [vmem:[#allocation2 + $0x4c] sm:$0xf] }
 0x22c   :  { %v2567_v12 = vld [vmem:[#allocation2 + $0x58] sm:$0xf]  ;;  %v2865_v5 = vsel %vm9316_vm6, %v2770_v24, %v2864_v61  ;;  %v8745_v61 = vld [vmem:[#allocation2 + $0x40] sm:$0xff] }
 0x22d   :  { %v2568_v9 = vsel %vm9263_vm3, %v10083_v41, %v2567_v12  ;;  %2866 = vst [vmem:[#allocation2 + $0x4c] sm:$0xf] %v2865_v5  ;;  %v10261_v39 = vpop.f32.mrf.mxu1  ;;  %v10299_v5 = vld [vmem:[%s12439_s6] ss:$0 sm:$0xff] }
 0x22e   :  { %2569 = vst [vmem:[#allocation2 + $0x58] sm:$0xf] %v2568_v9  ;;  %v2776_v44 = vpop.permute.xlu2 %2775 }
 0x22f   :  { %2871 = vst.msk [vmem:[#allocation2 + $0x58] sm:$0xf] %vm1062_vm4, %v2776_v44  ;;  %7982 = vmatmul.msk.bf16.gmra.mxu0 %vm1283_vm13, %v8743_v50 }
 0x231   :  { %v2563_v15 = vld [vmem:[#allocation2 + $0x50] sm:$0xf] }
 0x232   :  { %v2564_v31 = vsel %vm9263_vm3, %v10048_v42, %v2563_v15  ;;  %v3109_v41 = vpop.f32.mrf.mxu3 }
 0x233   :  { %2565 = vst [vmem:[#allocation2 + $0x50] sm:$0xf] %v2564_v31 }
 0x234   :  { %v8762_v54 = vld [vmem:[#allocation2 + $0x48] sm:$0xff] }
 0x235   :  { %v8778_v30 = vld [vmem:[#allocation2 + $0x48] sm:$0xff]  ;;  %7900 = vmatmul.msk.bf16.gmra.mxu3 %vm1283_vm13, %v8762_v54 }
 0x236   :  { %8069 = vmatmul.msk.bf16.gmra.mxu1 %vm1283_vm13, %v8778_v30  ;;  %v2772_v22 = vpop.permute.xlu1 %2771  ;;  %v8079_v30 = vld [vmem:[%s12433_s0 + $0x108] sm:$0xff] }
 0x237   :  { %2867 = vst.msk [vmem:[#allocation2 + $0x50] sm:$0xf] %vm1062_vm4, %v2772_v22 }
 0x239   :  { %v2774_v18 = vpop.permute.xlu0 %2773 }
 0x23a   :  { %v2869_v48 = vsel %vm9316_vm6, %v2774_v18, %v2868_v43  ;;  %v10265_v55 = vpop.f32.mrf.mxu3 }
 0x23b   :  { %2870 = vst [vmem:[#allocation2 + $0x54] sm:$0xf] %v2869_v48 }
 0x23c   :  { %v1420_v42 = vpop.f32.mrf.mxu0 }
 0x23d   :  { %v1646_v10 = vadd.f32 %v10252_v32, %v1420_v42 }
 0x23f   :  { %7983 = vmatmul.msk.bf16.gmra.mxu0 %vm1283_vm13, %v8744_v36  ;;  %v3778_v36 = vld [vmem:[%s12433_s0] sm:$0xff] }
 0x241   :  { %v2154_v16 = vpop.permute.xlu0 %2153  ;;  %v10268_v52 = vpop.permute.xlu2 %2781 }
 0x242   :  { %2228 = vst.msk [vmem:[#allocation2 + $0x5c] sm:$0xf] %vm428_vm14, %v2154_v16  ;;  %v3594_v59 = vpop.f32.mrf.mxu1  ;;  %v8763_v19 = vld [vmem:[#allocation2 + $0x50] sm:$0xff] }
 0x243   :  { %v8779_v46 = vld [vmem:[#allocation2 + $0x50] sm:$0xff]  ;;  %2570 = vst.msk [vmem:[#allocation2 + $0x5c] sm:$0xf] %vm751_vm15, %v10107_v2  ;;  %v1901_v17 = vpop.f32.mrf.mxu2 }
 0x244   :  { %v1939_v4 = vadd.f32 %v1901_v17, %v1641_v45  ;;  %v10273_v24 = vpop.f32.mrf.mxu0 }
 0x245   :  { %7901 = vmatmul.msk.bf16.gmra.mxu3 %vm1283_vm13, %v8763_v19  ;;  %v10327_v19 = vpack.c.bf16 %v8079_v30, %v8079_v30 }
 0x246   :  { %v1975_v57 = vmul.f32 %v10010_v27, %v1939_v4  ;;  %8070 = vmatmul.msk.bf16.gmra.mxu1 %vm1283_vm13, %v8779_v46 }
 0x247   :  { %v10279_v11 = vpop.f32.mrf.mxu3 }
 0x248   :  { %v2011_v0 = vadd.f32 %v10022_v56, %v1975_v57 }
 0x249   :  { %v2778_v53 = vpop.permute.xlu1 %2777  ;;  %v2156_v26 = vpop.permute.xlu0 %2155 }
 0x24a   :  { %v2872_v33 = vld [vmem:[#allocation2 + $0x5c] sm:$0xf]  ;;  %2229 = vst.msk [vmem:[#allocation2 + $0x60] sm:$0xf] %vm428_vm14, %v2156_v26  ;;  %v2162_v2 = vpop.permute.xlu2 %2161  ;;  %v10282_v63 = vpop.f32.mrf.mxu1  ;;  %v2043_v62 = vmax.f32 %v2011_v0, 0.0 }
 0x24b   :  { %v2873_v58 = vsel %vm9316_vm6, %v2778_v53, %v2872_v33  ;;  %2232 = vst.msk [vmem:[#allocation2 + $0x6c] sm:$0xf] %vm428_vm14, %v2162_v2  ;;  %v1903_v37 = vpop.f32.mrf.mxu2 }
 0x24c   :  { %2874 = vst [vmem:[#allocation2 + $0x5c] sm:$0xf] %v2873_v58  ;;  %v1940_v25 = vadd.f32 %v1903_v37, %v1643_v29  ;;  %v2075_v60 = vpack.c.bf16 %v2043_v62, %v2043_v62  ;;  %v3334_v40 = vpop.f32.mrf.mxu0 }
 0x24d   :  { %2578 = vst.msk [vmem:[#allocation2 + $0x6c] sm:$0xf] %vm751_vm15, %v10187_v23  ;;  %v3335_v47 = vadd.f32 %v3334_v40, %v3109_v41 }
 0x24e   :  { %v1976_v34 = vmul.f32 %v10010_v27, %v1940_v25  ;;  %2167 = vrot.lane.b32.xlu0 %v2075_v60, %s8907_s11  ;;  %v2464_v28 = vshrl.u32 %v2075_v60, 16  ;;  %v2467_v14 = vshll.u32 %v2075_v60, 16 }
 0x24f   :  { %v3674_v12 = vadd.f32 %v3594_v59, %v3335_v47  ;;  %v10303_v9 = vpop.f32.mrf.mxu3  ;;  %7984 = vmatmul.msk.bf16.gmra.mxu0 %vm1283_vm13, %v8745_v61  ;;  %v4145_v47 = vshll.u32 %v10327_v19, 16 }
 0x250   :  { %v10301_v23 = vrot.slane %v2464_v28, 7  ;;  %v2012_v50 = vadd.f32 %v10022_v56, %v1976_v34  ;;  %v2717_v31 = vrot.slane %v2464_v28, 4  ;;  %v2718_v54 = vrot.slane %v2467_v14, 5 }
 0x251   :  { %v2571_v44 = vld [vmem:[#allocation2 + $0x60] sm:$0xf]  ;;  %v2158_v15 = vpop.permute.xlu1 %2157  ;;  %v3710_v22 = vmul.f32 %v10293_v6, %v3674_v12 }
 0x252   :  { %v2572_v41 = vsel %vm9263_vm3, %v10116_v3, %v2571_v44  ;;  %v10316_v18 = vor.u32 %v2467_v14, %v10301_v23  ;;  %2230 = vst.msk [vmem:[#allocation2 + $0x64] sm:$0xf] %vm428_vm14, %v2158_v15  ;;  %v2164_v43 = vpop.permute.xlu2 %2163  ;;  %v10319_v48 = vpop.f32.mrf.mxu1  ;;  %v2044_v45 = vmax.f32 %v2012_v50, 0.0  ;;  %v2719_v4 = vor.u32 %v2718_v54, %v2717_v31  ;;  %v3779_v14 = vld [vmem:[%s12433_s0 + $0x8] sm:$0xff] }
 0x253   :  { %2573 = vst [vmem:[#allocation2 + $0x60] sm:$0xf] %v2572_v41  ;;  %v1906_v32 = vpop.f32.mrf.mxu2  ;;  %v8764_v42 = vld [vmem:[#allocation2 + $0x58] sm:$0xff]  ;;  %v3746_v3 = vadd.f32 %v10299_v5, %v3710_v22  ;;  %v2470_v28 = vrot.slane %v10301_v23, 4 }
 0x254   :  { %v8780_v16 = vld [vmem:[#allocation2 + $0x58] sm:$0xff]  ;;  %2574 = vst.msk [vmem:[#allocation2 + $0x64] sm:$0xf] %vm751_vm15, %v10146_v7  ;;  %v1941_v59 = vadd.f32 %v1906_v32, %v1646_v10  ;;  %v3336_v46 = vpop.f32.mrf.mxu0  ;;  %v2076_v17 = vpack.c.bf16 %v2044_v45, %v2044_v45  ;;  %v1648_v7 = vadd.f32 %v10261_v39, %v10273_v24  ;;  %v2720_v25 = vrot.slane %v2719_v4, 4 }
 0x255   :  { %2233 = vst.msk [vmem:[#allocation2 + $0x70] sm:$0xf] %vm428_vm14, %v2164_v43  ;;  %v3810_v57 = vadd.f32 %v3778_v36, %v3746_v3  ;;  %7902 = vmatmul.msk.bf16.gmra.mxu3 %vm1283_vm13, %v8764_v42  ;;  %v3337_v53 = vadd.f32 %v3336_v46, %v10265_v55  ;;  %v4142_v55 = vshrl.u32 %v10327_v19, 16 }
 0x256   :  { %v1977_v0 = vmul.f32 %v10010_v27, %v1941_v59  ;;  %8071 = vmatmul.msk.bf16.gmra.mxu1 %vm1283_vm13, %v8780_v16  ;;  %v2780_v26 = vpop.permute.xlu0 %2779  ;;  %2169 = vrot.lane.b32.xlu1 %v2076_v17, %s8907_s11  ;;  %v2475_v29 = vshll.u32 %v2076_v17, 16  ;;  %v2472_v33 = vshrl.u32 %v2076_v17, 16  ;;  %v8901_v16 = vld [vmem:[%s12435_s2] ss:$0 sm:$0xff] }
 0x257   :  { %2875 = vst.msk [vmem:[#allocation2 + $0x60] sm:$0xf] %vm1062_vm4, %v2780_v26  ;;  %v3842_v2 = vmax.f32 %v3810_v57, 0.0  ;;  %v3675_v62 = vadd.f32 %v10282_v63, %v3337_v53  ;;  %v10340_v58 = vpop.f32.mrf.mxu3  ;;  %v4144_v63 = vrot.slane %v4142_v55, 7 }
 0x258   :  { %v2013_v27 = vadd.f32 %v10022_v56, %v1977_v0  ;;  %v2721_v60 = vrot.slane %v2475_v29, 5  ;;  %v2474_v39 = vrot.slane %v2472_v33, 7  ;;  %v2723_v24 = vrot.slane %v2472_v33, 4 }
 0x259   :  { %v2160_v37 = vpop.permute.xlu1 %2159  ;;  %3875 = vst.msk [vmem:[%s12440_s7] sm:$0xff] %vm3874_vm0, %v3842_v2  ;;  %v3711_v40 = vmul.f32 %v10293_v6, %v3675_v62  ;;  %v10372_v32 = vor.u32 %v4145_v47, %v4144_v63  ;;  %v8080_v62 = vld [vmem:[%s12433_s0 + $0x110] sm:$0xff] }
 0x25a   :  { %v10348_v34 = vpop.f32.mrf.mxu1  ;;  %v2045_v56 = vmax.f32 %v2013_v27, 0.0  ;;  %2231 = vst.msk [vmem:[#allocation2 + $0x68] sm:$0xf] %vm428_vm14, %v2160_v37  ;;  %v2722_v61 = vsel %vm9011_vm2, %v2720_v25, %v2721_v60  ;;  %v2477_v50 = vor.u32 %v2475_v29, %v2474_v39  ;;  %v2724_v44 = vor.u32 %v2723_v24, %v2721_v60  ;;  %v3780_v25 = vld [vmem:[%s12433_s0 + $0x10] sm:$0xff] }
 0x25b   :  { %v1908_v12 = vpop.f32.mrf.mxu2  ;;  %v2876_v15 = vld [vmem:[#allocation2 + $0x64] sm:$0xf]  ;;  %v3747_v54 = vadd.f32 %v10299_v5, %v3711_v40  ;;  %2791 = vrot.lane.b32.xlu0 %v2722_v61, %s8908_s12  ;;  %v10412_v61 = vpack.c.bf16 %v8080_v62, %v8080_v62  ;;  %v8747_v62 = vld [vmem:[#allocation2 + $0x50] sm:$0xff] }
 0x25c   :  { %v2579_v31 = vld [vmem:[#allocation2 + $0x70] sm:$0xf]  ;;  %v1942_v30 = vadd.f32 %v1908_v12, %v1648_v7  ;;  %v2077_v23 = vpack.c.bf16 %v2045_v56, %v2045_v56  ;;  %v2877_v10 = vsel %vm9316_vm6, %v10268_v52, %v2876_v15  ;;  %v3339_v22 = vpop.f32.mrf.mxu0  ;;  %v10370_v43 = vsel %vm9168_vm11, %v2470_v28, %v2477_v50 }
 0x25d   :  { %v2580_v41 = vsel %vm9263_vm3, %v10195_v13, %v2579_v31  ;;  %v2725_v36 = vrot.slane %v2724_v44, 4  ;;  %2878 = vst [vmem:[#allocation2 + $0x64] sm:$0xf] %v2877_v10  ;;  %v3811_v42 = vadd.f32 %v3779_v14, %v3747_v54  ;;  %v3340_v45 = vadd.f32 %v3339_v22, %v10279_v11  ;;  %v8746_v13 = vld [vmem:[#allocation2 + $0x48] sm:$0xff]  ;;  %v8902_v11 = vld [vmem:[%s12436_s3] ss:$0 sm:$0xff] }
 0x25e   :  { %2581 = vst [vmem:[#allocation2 + $0x70] sm:$0xf] %v2580_v41  ;;  %v1978_v52 = vmul.f32 %v8901_v16, %v1942_v30  ;;  %v2480_v3 = vshrl.u32 %v2077_v23, 16  ;;  %v2788_v59 = vpop.permute.xlu2 %2787  ;;  %2171 = vrot.lane.b32.xlu1 %v2077_v23, %s8907_s11  ;;  %v2483_v46 = vshll.u32 %v2077_v23, 16  ;;  %v10408_v28 = vrot.slane %v4145_v47, 5 }
 0x25f   :  { %2793 = vrot.lane.b32.xlu2 %v2725_v36, %s8908_s12  ;;  %2883 = vst.msk [vmem:[#allocation2 + $0x70] sm:$0xf] %vm1062_vm4, %v2788_v59  ;;  %v3843_v17 = vmax.f32 %v3811_v42, 0.0  ;;  %v3676_v4 = vadd.f32 %v10319_v48, %v3340_v45  ;;  %v10384_v0 = vpop.f32.mrf.mxu3  ;;  %7985 = vmatmul.msk.bf16.gmra.mxu0 %vm1283_vm13, %v8746_v13  ;;  %v4491_v14 = vrot.slane %v4142_v55, 4  ;;  %v2880_v41 = vld [vmem:[#allocation2 + $0x6c] sm:$0xf] }
 0x260   :  { %v10382_v57 = vrot.slane %v2480_v3, 7  ;;  %v2014_v53 = vadd.f32 %v8902_v11, %v1978_v52  ;;  %v2726_v26 = vrot.slane %v2480_v3, 4  ;;  %v2727_v7 = vrot.slane %v2483_v46, 5  ;;  %v3781_v13 = vld [vmem:[%s12433_s0 + $0x18] sm:$0xff] }
 0x261   :  { %3876 = vst.msk [vmem:[%s12440_s7 + $0x8] sm:$0xff] %vm3874_vm0, %v3843_v17  ;;  %v2575_v29 = vld [vmem:[#allocation2 + $0x68] sm:$0xf]  ;;  %v3712_v48 = vmul.f32 %v10293_v6, %v3676_v4  ;;  %v4492_v22 = vor.u32 %v4491_v14, %v10408_v28  ;;  %v4150_v36 = vshrl.u32 %v10412_v61, 16  ;;  %v4153_v17 = vshll.u32 %v10412_v61, 16 }
 0x262   :  { %v10396_v33 = vor.u32 %v2483_v46, %v10382_v57  ;;  %v3604_v2 = vpop.f32.mrf.mxu1  ;;  %v2046_v27 = vmax.f32 %v2014_v53, 0.0  ;;  %v2576_v37 = vsel %vm9263_vm3, %v10162_v1, %v2575_v29  ;;  %v2728_v60 = vor.u32 %v2727_v7, %v2726_v26  ;;  %v8078_v53 = vld [vmem:[%s12433_s0 + $0x100] sm:$0xff] }
 0x263   :  { %2577 = vst [vmem:[#allocation2 + $0x68] sm:$0xf] %v2576_v37  ;;  %v3748_v39 = vadd.f32 %v10299_v5, %v3712_v48  ;;  %v2486_v3 = vrot.slane %v10382_v57, 4  ;;  %v10438_v46 = vrot.slane %v4150_v36, 7  ;;  %v3940_v29 = vpack.c.bf16 %v8078_v53, %v8078_v53 }
 0x264   :  { %v8765_v24 = vld [vmem:[#allocation2 + $0x60] sm:$0xff]  ;;  %v2078_v56 = vpack.c.bf16 %v2046_v27, %v2046_v27  ;;  %v3341_v63 = vpop.f32.mrf.mxu0  ;;  %v2729_v47 = vrot.slane %v2728_v60, 4  ;;  %v4493_v37 = vrot.slane %v4492_v22, 4 }
 0x265   :  { %v8781_v40 = vld [vmem:[#allocation2 + $0x60] sm:$0xff]  ;;  %v3812_v1 = vadd.f32 %v3780_v25, %v3748_v39  ;;  %7903 = vmatmul.msk.bf16.gmra.mxu3 %vm1283_vm13, %v8765_v24  ;;  %v3342_v12 = vadd.f32 %v3341_v63, %v10303_v9  ;;  %v10450_v7 = vor.u32 %v4153_v17, %v10438_v46  ;;  %v4134_v24 = vshrl.u32 %v3940_v29, 16 }
 0x266   :  { %8072 = vmatmul.msk.bf16.gmra.mxu1 %vm1283_vm13, %v8781_v40  ;;  %v2784_v50 = vpop.permute.xlu1 %2783  ;;  %v2491_v44 = vshll.u32 %v2078_v56, 16  ;;  %v2488_v15 = vshrl.u32 %v2078_v56, 16  ;;  %v4137_v40 = vshll.u32 %v3940_v29, 16 }
 0x267   :  { %2173 = vrot.lane.b32.xlu2 %v2078_v56, %s8907_s11  ;;  %2879 = vst.msk [vmem:[#allocation2 + $0x68] sm:$0xf] %vm1062_vm4, %v2784_v50  ;;  %v3844_v31 = vmax.f32 %v3812_v1, 0.0  ;;  %v3677_v55 = vadd.f32 %v10348_v34, %v3342_v12  ;;  %v10420_v54 = vpop.f32.mrf.mxu3  ;;  %v8082_v56 = vld [vmem:[%s12433_s0 + $0x120] sm:$0xff]  ;;  %v8081_v12 = vld [vmem:[%s12433_s0 + $0x118] sm:$0xff]  ;;  %v10471_v50 = vrot.slane %v4134_v24, 7 }
 0x268   :  { %v2730_v30 = vrot.slane %v2491_v44, 5  ;;  %v2732_v23 = vrot.slane %v2488_v15, 4  ;;  %v2490_v9 = vrot.slane %v2488_v15, 7  ;;  %v10478_v15 = vpack.c.bf16 %v8082_v56, %v8082_v56 }
 0x269   :  { %v2786_v10 = vpop.permute.xlu0 %2785  ;;  %3877 = vst.msk [vmem:[%s12440_s7 + $0x10] sm:$0xff] %vm3874_vm0, %v3844_v31  ;;  %v3713_v42 = vmul.f32 %v10293_v6, %v3677_v55  ;;  %v4486_v31 = vrot.slane %v4137_v40, 5 }
 0x26a   :  { %v2881_v34 = vsel %vm9316_vm6, %v2786_v10, %v2880_v41  ;;  %v3606_v16 = vpop.f32.mrf.mxu1  ;;  %v2731_v52 = vsel %vm9011_vm2, %v2729_v47, %v2730_v30  ;;  %v2733_v45 = vor.u32 %v2732_v23, %v2730_v30  ;;  %v2493_v59 = vor.u32 %v2491_v44, %v2490_v9  ;;  %v3782_v44 = vld [vmem:[%s12433_s0 + $0x20] sm:$0xff] }
 0x26b   :  { %2882 = vst [vmem:[#allocation2 + $0x6c] sm:$0xf] %v2881_v34  ;;  %2795 = vrot.lane.b32.xlu1 %v2731_v52, %s8908_s12  ;;  %v3749_v4 = vadd.f32 %v10299_v5, %v3713_v42  ;;  %v4485_v47 = vrot.slane %v4134_v24, 4  ;;  %v10484_v30 = vor.u32 %v4137_v40, %v10471_v50  ;;  %v10486_v10 = vpack.c.bf16 %v8081_v12, %v8081_v12  ;;  %v8085_v12 = vld [vmem:[%s12433_s0 + $0x138] sm:$0xff] }
 0x26c   :  { %v2734_v11 = vrot.slane %v2733_v45, 4  ;;  %v3344_v57 = vpop.f32.mrf.mxu0  ;;  %v10447_v26 = vsel %vm9168_vm11, %v2486_v3, %v2493_v59  ;;  %v4494_v42 = vrot.slane %v4150_v36, 4  ;;  %v4495_v34 = vrot.slane %v4153_v17, 5 }
 0x26d   :  { %v3813_v48 = vadd.f32 %v3781_v13, %v3749_v4  ;;  %v3345_v27 = vadd.f32 %v3344_v57, %v10340_v58  ;;  %v4487_v41 = vor.u32 %v4486_v31, %v4485_v47  ;;  %v4166_v52 = vshrl.u32 %v10478_v15, 16 }
 0x26e   :  { %2797 = vrot.lane.b32.xlu0 %v2734_v11, %s8908_s12  ;;  %v4169_v4 = vshll.u32 %v10478_v15, 16  ;;  %v4158_v17 = vshrl.u32 %v10486_v10, 16  ;;  %v4496_v53 = vor.u32 %v4495_v34, %v4494_v42  ;;  %v10534_v31 = vpack.c.bf16 %v8085_v12, %v8085_v12 }
 0x26f   :  { %4004 = vrot.lane.b32.xlu2 %v3940_v29, %s8907_s11  ;;  %v3845_v25 = vmax.f32 %v3813_v48, 0.0  ;;  %v3678_v60 = vadd.f32 %v3604_v2, %v3345_v27  ;;  %v10455_v39 = vpop.f32.mrf.mxu3  ;;  %7986 = vmatmul.msk.bf16.gmra.mxu0 %vm1283_vm13, %v8747_v62  ;;  %v4488_v45 = vrot.slane %v4487_v41, 4  ;;  %v10510_v57 = vrot.slane %v4166_v52, 7  ;;  %v3783_v29 = vld [vmem:[%s12433_s0 + $0x28] sm:$0xff] }
 0x270   :  { %v4503_v62 = vrot.slane %v4166_v52, 4  ;;  %v4504_v40 = vrot.slane %v4169_v4, 5 }
 0x271   :  { %v2166_v63 = vpop.permute.xlu0 %2165  ;;  %3878 = vst.msk [vmem:[%s12440_s7 + $0x18] sm:$0xff] %vm3874_vm0, %v3845_v25  ;;  %v3714_v58 = vmul.f32 %v10293_v6, %v3678_v60  ;;  %v10526_v24 = vor.u32 %v4169_v4, %v10510_v57 }
 0x272   :  { %v10466_v14 = vpop.f32.mrf.mxu1  ;;  %v8766_v2 = vld [vmem:[#allocation2 + $0x68] sm:$0xff]  ;;  %2234 = vst.msk [vmem:[#allocation2 + $0x74] sm:$0xf] %vm428_vm14, %v2166_v63 }
 0x273   :  { %v8782_v1 = vld [vmem:[#allocation2 + $0x68] sm:$0xff]  ;;  %4631 = vrot.lane.b32.xlu1 %v4493_v37, %s8908_s12  ;;  %v3750_v55 = vadd.f32 %v10299_v5, %v3714_v58  ;;  %2582 = vst.msk [vmem:[#allocation2 + $0x74] sm:$0xf] %vm751_vm15, %v10214_v35  ;;  %v4161_v35 = vshll.u32 %v10486_v10, 16  ;;  %v4500_v37 = vrot.slane %v4158_v17, 4 }
 0x274   :  { %v3346_v23 = vpop.f32.mrf.mxu0 }
 0x275   :  { %v3814_v9 = vadd.f32 %v3782_v44, %v3750_v55  ;;  %7904 = vmatmul.msk.bf16.gmra.mxu3 %vm1283_vm13, %v8766_v2  ;;  %v3347_v22 = vadd.f32 %v3346_v23, %v10384_v0  ;;  %v8083_v0 = vld [vmem:[%s12433_s0 + $0x128] sm:$0xff]  ;;  %v4498_v48 = vrot.slane %v4161_v35, 5 }
 0x276   :  { %8073 = vmatmul.msk.bf16.gmra.mxu1 %vm1283_vm13, %v8782_v1  ;;  %4006 = vrot.lane.b32.xlu0 %v10327_v19, %s8907_s11  ;;  %v4490_v19 = vsel %vm9011_vm2, %v4488_v45, %v10408_v28  ;;  %v3945_v27 = vpack.c.bf16 %v8083_v0, %v8083_v0  ;;  %v8748_v1 = vld [vmem:[#allocation2 + $0x58] sm:$0xff] }
 0x277   :  { %v3846_v3 = vmax.f32 %v3814_v9, 0.0  ;;  %v3679_v13 = vadd.f32 %v3606_v16, %v3347_v22  ;;  %v10495_v59 = vpop.f32.mrf.mxu3  ;;  %4629 = vrot.lane.b32.xlu2 %v4490_v19, %s8908_s12  ;;  %v4501_v63 = vor.u32 %v4500_v37, %v4498_v48  ;;  %v4505_v22 = vor.u32 %v4504_v40, %v4503_v62 }
 0x278   :  { %v4174_v44 = vshrl.u32 %v3945_v27, 16  ;;  %v4177_v47 = vshll.u32 %v3945_v27, 16 }
 0x279   :  { %v2790_v36 = vpop.permute.xlu1 %2789  ;;  %3879 = vst.msk [vmem:[%s12440_s7 + $0x20] sm:$0xff] %vm3874_vm0, %v3846_v3  ;;  %v3715_v16 = vmul.f32 %v10293_v6, %v3679_v13  ;;  %v4502_v55 = vrot.slane %v4501_v63, 4  ;;  %v4190_v3 = vshrl.u32 %v10534_v31, 16  ;;  %v4193_v13 = vshll.u32 %v10534_v31, 16 }
 0x27a   :  { %v3611_v11 = vpop.f32.mrf.mxu1  ;;  %v2884_v28 = vld [vmem:[#allocation2 + $0x74] sm:$0xf]  ;;  %v4176_v42 = vrot.slane %v4174_v44, 7  ;;  %v4507_v52 = vrot.slane %v4177_v47, 5  ;;  %v4509_v45 = vrot.slane %v4174_v44, 4  ;;  %v4160_v63 = vrot.slane %v4158_v17, 7 }
 0x27b   :  { %4010 = vrot.lane.b32.xlu1 %v10486_v10, %s8907_s11  ;;  %v3751_v25 = vadd.f32 %v10299_v5, %v3715_v16  ;;  %v2885_v60 = vsel %vm9316_vm6, %v2790_v36, %v2884_v28  ;;  %v10562_v37 = vrot.slane %v4193_v13, 5 }
 0x27c   :  { %2886 = vst [vmem:[#allocation2 + $0x74] sm:$0xf] %v2885_v60  ;;  %v3349_v56 = vpop.f32.mrf.mxu0  ;;  %v10556_v16 = vor.u32 %v4177_v47, %v4176_v42  ;;  %v4510_v62 = vor.u32 %v4509_v45, %v4507_v52  ;;  %v10584_v44 = vor.u32 %v4161_v35, %v4160_v63  ;;  %v3786_v42 = vld [vmem:[%s12433_s0 + $0x40] sm:$0xff]  ;;  %v8087_v45 = vld [vmem:[%s12433_s0 + $0x148] sm:$0xff] }
 0x27d   :  { %v3815_v58 = vadd.f32 %v3783_v29, %v3751_v25  ;;  %v3350_v2 = vadd.f32 %v3349_v56, %v10420_v54  ;;  %v4497_v54 = vrot.slane %v4496_v53, 4  ;;  %v4506_v53 = vrot.slane %v4505_v22, 4 }
 0x27e   :  { %4008 = vrot.lane.b32.xlu0 %v10412_v61, %s8907_s11  ;;  %v4518_v25 = vrot.slane %v4190_v3, 4 }
 0x27f   :  { %v3847_v23 = vmax.f32 %v3815_v58, 0.0  ;;  %v3680_v41 = vadd.f32 %v10466_v14, %v3350_v2  ;;  %v10537_v9 = vpop.f32.mrf.mxu3  ;;  %7987 = vmatmul.msk.bf16.gmra.mxu0 %vm1283_vm13, %v8748_v1  ;;  %4635 = vrot.lane.b32.xlu2 %v4502_v55, %s8908_s12  ;;  %v3784_v14 = vld [vmem:[%s12433_s0 + $0x30] sm:$0xff]  ;;  %v4499_v19 = vsel %vm9011_vm2, %v4497_v54, %v4498_v48  ;;  %v4508_v48 = vsel %vm9011_vm2, %v4506_v53, %v4507_v52  ;;  %v8749_v55 = vld [vmem:[#allocation2 + $0x60] sm:$0xff] }
 0x280   :  { %v4511_v2 = vrot.slane %v4510_v62, 4  ;;  %v4519_v1 = vor.u32 %v4518_v25, %v10562_v37  ;;  %v8084_v53 = vld [vmem:[%s12433_s0 + $0x130] sm:$0xff] }
 0x281   :  { %3880 = vst.msk [vmem:[%s12440_s7 + $0x28] sm:$0xff] %vm3874_vm0, %v3847_v23  ;;  %v3716_v61 = vmul.f32 %v10293_v6, %v3680_v41  ;;  %v8086_v23 = vld [vmem:[%s12433_s0 + $0x140] sm:$0xff] }
 0x282   :  { %v4520_v41 = vrot.slane %v4519_v1, 4 }
 0x283   :  { %v3614_v34 = vpop.f32.mrf.mxu1  ;;  %4012 = vrot.lane.b32.xlu1 %v10478_v15, %s8907_s11  ;;  %v3752_v4 = vadd.f32 %v10299_v5, %v3716_v61  ;;  %v8767_v0 = vld [vmem:[#allocation2 + $0x70] sm:$0xff]  ;;  %v3948_v61 = vpack.c.bf16 %v8086_v23, %v8086_v23  ;;  %v8750_v23 = vld [vmem:[#allocation2 + $0x68] sm:$0xff] }
 0x284   :  { %v8783_v36 = vld [vmem:[#allocation2 + $0x70] sm:$0xff]  ;;  %v3351_v29 = vpop.f32.mrf.mxu0 }
 0x285   :  { %v3816_v28 = vadd.f32 %v3784_v14, %v3752_v4  ;;  %7905 = vmatmul.msk.bf16.gmra.mxu3 %vm1283_vm13, %v8767_v0  ;;  %v3352_v15 = vadd.f32 %v3351_v29, %v10455_v39  ;;  %v4198_v4 = vshrl.u32 %v3948_v61, 16  ;;  %v4201_v0 = vshll.u32 %v3948_v61, 16 }
 0x286   :  { %8074 = vmatmul.msk.bf16.gmra.mxu1 %vm1283_vm13, %v8783_v36  ;;  %4633 = vrot.lane.b32.xlu0 %v4499_v19, %s8908_s12  ;;  %v10615_v29 = vpack.c.bf16 %v8087_v45, %v8087_v45 }
 0x287   :  { %v3848_v60 = vmax.f32 %v3816_v28, 0.0  ;;  %v3681_v40 = vadd.f32 %v3611_v11, %v3352_v15  ;;  %4014 = vrot.lane.b32.xlu2 %v3945_v27, %s8907_s11  ;;  %v3785_v11 = vld [vmem:[%s12433_s0 + $0x38] sm:$0xff]  ;;  %v4521_v62 = vrot.slane %v4198_v4, 4  ;;  %v4522_v25 = vrot.slane %v4201_v0, 5 }
 0x288   :  { %v10566_v56 = vpop.f32.mrf.mxu3 }
 0x289   :  { %3881 = vst.msk [vmem:[%s12440_s7 + $0x30] sm:$0xff] %vm3874_vm0, %v3848_v60  ;;  %v3717_v39 = vmul.f32 %v10293_v6, %v3681_v40  ;;  %v10625_v40 = vrot.slane %v4198_v4, 7  ;;  %v4523_v1 = vor.u32 %v4522_v25, %v4521_v62 }
 0x28b   :  { %v3616_v58 = vpop.f32.mrf.mxu1  ;;  %4637 = vrot.lane.b32.xlu1 %v4508_v48, %s8908_s12  ;;  %v3753_v12 = vadd.f32 %v10299_v5, %v3717_v39  ;;  %v3787_v39 = vld [vmem:[%s12433_s0 + $0x48] sm:$0xff] }
 0x28c   :  { %v3354_v47 = vpop.f32.mrf.mxu0 }
 0x28d   :  { %v3817_v17 = vadd.f32 %v3785_v11, %v3753_v12  ;;  %v3355_v27 = vadd.f32 %v3354_v47, %v10495_v59  ;;  %v4192_v59 = vrot.slane %v4190_v3, 7  ;;  %v4209_v11 = vshll.u32 %v10615_v29, 16 }
 0x28e   :  { %4639 = vrot.lane.b32.xlu0 %v4511_v2, %s8908_s12  ;;  %v10635_v2 = vor.u32 %v4201_v0, %v10625_v40 }
 0x28f   :  { %v3849_v54 = vmax.f32 %v3817_v17, 0.0  ;;  %v3682_v22 = vadd.f32 %v3614_v34, %v3355_v27  ;;  %7988 = vmatmul.msk.bf16.gmra.mxu0 %vm1283_vm13, %v8749_v55  ;;  %v10604_v52 = vor.u32 %v4193_v13, %v4192_v59  ;;  %v3946_v13 = vpack.c.bf16 %v8084_v53, %v8084_v53 }
 0x290   :  { %v10592_v10 = vpop.f32.mrf.mxu3  ;;  %v4525_v45 = vrot.slane %v4209_v11, 5 }
 0x291   :  { %3882 = vst.msk [vmem:[%s12440_s7 + $0x38] sm:$0xff] %vm3874_vm0, %v3849_v54  ;;  %v3718_v35 = vmul.f32 %v10293_v6, %v3682_v22  ;;  %4016 = vrot.lane.b32.xlu2 %v3946_v13, %s8907_s11  ;;  %v4185_v48 = vshll.u32 %v3946_v13, 16  ;;  %v8089_v54 = vld [vmem:[%s12433_s0 + $0x158] sm:$0xff] }
 0x292   :  { %v10645_v59 = vpack.c.bf16 %v8089_v54, %v8089_v54  ;;  %v4206_v54 = vshrl.u32 %v10615_v29, 16 }
 0x293   :  { %v3619_v14 = vpop.f32.mrf.mxu1  ;;  %4643 = vrot.lane.b32.xlu1 %v4520_v41, %s8908_s12  ;;  %v3754_v34 = vadd.f32 %v10299_v5, %v3718_v35  ;;  %v4513_v17 = vrot.slane %v4185_v48, 5  ;;  %v8088_v41 = vld [vmem:[%s12433_s0 + $0x150] sm:$0xff] }
 0x294   :  { %v3356_v36 = vpop.f32.mrf.mxu0  ;;  %v3950_v22 = vpack.c.bf16 %v8088_v41, %v8088_v41 }
 0x295   :  { %v3818_v19 = vadd.f32 %v3786_v42, %v3754_v34  ;;  %v3357_v3 = vadd.f32 %v3356_v36, %v10537_v9  ;;  %v4222_v36 = vshrl.u32 %v10645_v59, 16 }
 0x296   :  { %4018 = vrot.lane.b32.xlu0 %v10534_v31, %s8907_s11  ;;  %v4182_v31 = vshrl.u32 %v3946_v13, 16  ;;  %v4217_v53 = vshll.u32 %v3950_v22, 16  ;;  %v3788_v13 = vld [vmem:[%s12433_s0 + $0x50] sm:$0xff] }
 0x297   :  { %v3850_v28 = vmax.f32 %v3818_v19, 0.0  ;;  %v3683_v15 = vadd.f32 %v3616_v58, %v3357_v3  ;;  %v4225_v19 = vshll.u32 %v10645_v59, 16  ;;  %v4214_v3 = vshrl.u32 %v3950_v22, 16 }
 0x298   :  { %v10617_v60 = vpop.f32.mrf.mxu3  ;;  %v4512_v12 = vrot.slane %v4182_v31, 4  ;;  %v4536_v25 = vrot.slane %v4222_v36, 4 }
 0x299   :  { %3883 = vst.msk [vmem:[%s12440_s7 + $0x40] sm:$0xff] %vm3874_vm0, %v3850_v28  ;;  %v3719_v9 = vmul.f32 %v10293_v6, %v3683_v15  ;;  %v4534_v62 = vrot.slane %v4225_v19, 5 }
 0x29a   :  { %v4514_v35 = vor.u32 %v4513_v17, %v4512_v12  ;;  %v4531_v12 = vrot.slane %v4217_v53, 5 }
 0x29b   :  { %v3621_v63 = vpop.f32.mrf.mxu1  ;;  %4022 = vrot.lane.b32.xlu1 %v10615_v29, %s8907_s11  ;;  %v3755_v58 = vadd.f32 %v10299_v5, %v3719_v9  ;;  %v4537_v17 = vor.u32 %v4536_v25, %v4534_v62 }
 0x29c   :  { %v3359_v47 = vpop.f32.mrf.mxu0  ;;  %v4515_v0 = vrot.slane %v4514_v35, 4  ;;  %v10685_v35 = vrot.slane %v4214_v3, 7 }
 0x29d   :  { %v3819_v27 = vadd.f32 %v3787_v39, %v3755_v58  ;;  %v3360_v55 = vadd.f32 %v3359_v47, %v10566_v56  ;;  %v4524_v56 = vrot.slane %v4523_v1, 4  ;;  %v4530_v58 = vrot.slane %v4214_v3, 4 }
 0x29e   :  { %4020 = vrot.lane.b32.xlu0 %v3948_v61, %s8907_s11  ;;  %v4517_v15 = vsel %vm9011_vm2, %v4515_v0, %v10562_v37 }
 0x29f   :  { %v3851_v42 = vmax.f32 %v3819_v27, 0.0  ;;  %v3684_v34 = vadd.f32 %v3619_v14, %v3360_v55  ;;  %7989 = vmatmul.msk.bf16.gmra.mxu0 %vm1283_vm13, %v8750_v23  ;;  %v10659_v14 = vrot.slane %v4182_v31, 7  ;;  %v4526_v39 = vsel %vm9011_vm2, %v4524_v56, %v4525_v45  ;;  %4641 = vrot.lane.b32.xlu2 %v4517_v15, %s8908_s12 }
 0x2a0   :  { %v10650_v4 = vpop.f32.mrf.mxu3  ;;  %v4532_v27 = vor.u32 %v4531_v12, %v4530_v58  ;;  %v4527_v56 = vrot.slane %v4206_v54, 4 }
 0x2a1   :  { %3884 = vst.msk [vmem:[%s12440_s7 + $0x48] sm:$0xff] %vm3874_vm0, %v3851_v42  ;;  %v3720_v61 = vmul.f32 %v10293_v6, %v3684_v34  ;;  %v10672_v31 = vor.u32 %v4185_v48, %v10659_v14  ;;  %v4538_v34 = vrot.slane %v4537_v17, 4 }
 0x2a2   :  { %v4533_v48 = vrot.slane %v4532_v27, 4  ;;  %v4528_v3 = vor.u32 %v4527_v56, %v4525_v45 }
 0x2a3   :  { %v3624_v28 = vpop.f32.mrf.mxu1  ;;  %4024 = vrot.lane.b32.xlu1 %v3950_v22, %s8907_s11  ;;  %v3756_v9 = vadd.f32 %v10299_v5, %v3720_v61  ;;  %v10694_v61 = vor.u32 %v4217_v53, %v10685_v35 }
 0x2a4   :  { %v3361_v1 = vpop.f32.mrf.mxu0  ;;  %v4529_v58 = vrot.slane %v4528_v3, 4  ;;  %v4208_v3 = vrot.slane %v4206_v54, 7  ;;  %v8092_v54 = vld [vmem:[%s12433_s0 + $0x170] sm:$0xff] }
 0x2a5   :  { %v3820_v47 = vadd.f32 %v3788_v13, %v3756_v9  ;;  %v3362_v37 = vadd.f32 %v3361_v1, %v10592_v10  ;;  %v3789_v10 = vld [vmem:[%s12433_s0 + $0x58] sm:$0xff]  ;;  %v8751_v9 = vld [vmem:[#allocation2 + $0x70] sm:$0xff] }
 0x2a6   :  { %4645 = vrot.lane.b32.xlu0 %v4526_v39, %s8908_s12  ;;  %v8091_v39 = vld [vmem:[%s12433_s0 + $0x168] sm:$0xff] }
 0x2a7   :  { %v3852_v55 = vmax.f32 %v3820_v47, 0.0  ;;  %v3685_v23 = vadd.f32 %v3621_v63, %v3362_v37  ;;  %v4535_v63 = vsel %vm9011_vm2, %v4533_v48, %v4534_v62  ;;  %v10702_v62 = vpack.c.bf16 %v8091_v39, %v8091_v39  ;;  %4647 = vrot.lane.b32.xlu2 %v4529_v58, %s8908_s12  ;;  %v8093_v58 = vld [vmem:[%s12433_s0 + $0x178] sm:$0xff] }
 0x2a8   :  { %v3144_v41 = vpop.f32.mrf.mxu3  ;;  %v4224_v37 = vrot.slane %v4222_v36, 7 }
 0x2a9   :  { %3885 = vst.msk [vmem:[%s12440_s7 + $0x50] sm:$0xff] %vm3874_vm0, %v3852_v55  ;;  %v3721_v22 = vmul.f32 %v10293_v6, %v3685_v23  ;;  %v4238_v45 = vshrl.u32 %v10702_v62, 16 }
 0x2aa   :  { %v10721_v48 = vor.u32 %v4225_v19, %v4224_v37  ;;  %v10753_v37 = vpack.c.bf16 %v8093_v58, %v8093_v58  ;;  %v89_v58 = vld [vmem:[#allocation2 + $0x98] sm:$0x1] }
 0x2ab   :  { %v3626_v42 = vpop.f32.mrf.mxu1  ;;  %v3757_v0 = vadd.f32 %v10299_v5, %v3721_v22  ;;  %4649 = vrot.lane.b32.xlu1 %v4535_v63, %s8908_s12  ;;  %v4545_v55 = vrot.slane %v4238_v45, 4 }
 0x2ac   :  { %v3364_v13 = vpop.f32.mrf.mxu0 }
 0x2ad   :  { %v3821_v15 = vadd.f32 %v3789_v10, %v3757_v0  ;;  %v3365_v25 = vadd.f32 %v3364_v13, %v10617_v60  ;;  %v4241_v60 = vshll.u32 %v10702_v62, 16 }
 0x2ae   :  { %4651 = vrot.lane.b32.xlu0 %v4538_v34, %s8908_s12 }
 0x2af   :  { %v3853_v1 = vmax.f32 %v3821_v15, 0.0  ;;  %v3686_v53 = vadd.f32 %v3624_v28, %v3365_v25  ;;  %7990 = vmatmul.msk.bf16.gmra.mxu0 %vm1283_vm13, %v8751_v9  ;;  %v3790_v28 = vld [vmem:[%s12433_s0 + $0x60] sm:$0xff]  ;;  %v10716_v27 = vrot.slane %v4241_v60, 5  ;;  %4026 = vrot.lane.b32.xlu2 %v10645_v59, %s8907_s11  ;;  %v10745_v59 = vor.u32 %v4209_v11, %v4208_v3 }
 0x2b0   :  { %v3146_v12 = vpop.f32.mrf.mxu3  ;;  %v8090_v3 = vld [vmem:[%s12433_s0 + $0x160] sm:$0xff] }
 0x2b1   :  { %3886 = vst.msk [vmem:[%s12440_s7 + $0x58] sm:$0xff] %vm3874_vm0, %v3853_v1  ;;  %v3722_v47 = vmul.f32 %v10293_v6, %v3686_v53  ;;  %v4546_v10 = vor.u32 %v4545_v55, %v10716_v27 }
 0x2b3   :  { %v3629_v17 = vpop.f32.mrf.mxu1  ;;  %v3758_v23 = vadd.f32 %v10299_v5, %v3722_v47  ;;  %v4547_v63 = vrot.slane %v4546_v10, 4 }
 0x2b4   :  { %v3366_v22 = vpop.f32.mrf.mxu0 }
 0x2b5   :  { %v3822_v34 = vadd.f32 %v3790_v28, %v3758_v23  ;;  %v3367_v36 = vadd.f32 %v3366_v22, %v10650_v4  ;;  %4655 = vrot.lane.b32.xlu1 %v4547_v63, %s8908_s12  ;;  %v3954_v28 = vpack.c.bf16 %v8092_v54, %v8092_v54 }
 0x2b6   :  { %4030 = vrot.lane.b32.xlu0 %v10702_v62, %s8907_s11 }
 0x2b7   :  { %v3854_v56 = vmax.f32 %v3822_v34, 0.0  ;;  %v3687_v0 = vadd.f32 %v3626_v42, %v3367_v36  ;;  %v3791_v42 = vld [vmem:[%s12433_s0 + $0x68] sm:$0xff]  ;;  %v4246_v23 = vshrl.u32 %v3954_v28, 16  ;;  %v4249_v22 = vshll.u32 %v3954_v28, 16 }
 0x2b8   :  { %v10737_v19 = vpop.f32.mrf.mxu3 }
 0x2b9   :  { %v10727_v13 = vpop.permute.xlu2 %2793  ;;  %3887 = vst.msk [vmem:[%s12440_s7 + $0x60] sm:$0xff] %vm3874_vm0, %v3854_v56  ;;  %v3723_v4 = vmul.f32 %v10293_v6, %v3687_v0  ;;  %v4548_v63 = vrot.slane %v4246_v23, 4  ;;  %v4549_v56 = vrot.slane %v4249_v22, 5 }
 0x2bb   :  { %v3631_v15 = vpop.f32.mrf.mxu1  ;;  %v3759_v25 = vadd.f32 %v10299_v5, %v3723_v4 }
 0x2bc   :  { %v3369_v9 = vpop.f32.mrf.mxu0 }
 0x2bd   :  { %v3823_v39 = vadd.f32 %v3791_v42, %v3759_v25  ;;  %v3370_v62 = vadd.f32 %v3369_v9, %v3144_v41  ;;  %v4240_v41 = vrot.slane %v4238_v45, 7  ;;  %4034 = vrot.lane.b32.xlu1 %v10753_v37, %s8907_s11  ;;  %v4257_v42 = vshll.u32 %v10753_v37, 16 }
 0x2be   :  { %4032 = vrot.lane.b32.xlu0 %v3954_v28, %s8907_s11  ;;  %v4550_v25 = vor.u32 %v4549_v56, %v4548_v63 }
 0x2bf   :  { %v3855_v1 = vmax.f32 %v3823_v39, 0.0  ;;  %v3688_v53 = vadd.f32 %v3629_v17, %v3370_v62  ;;  %v3792_v17 = vld [vmem:[%s12433_s0 + $0x70] sm:$0xff]  ;;  %v10773_v34 = vor.u32 %v4241_v60, %v4240_v41  ;;  %v4140_v60 = vrot.slane %v10471_v50, 4  ;;  %v3793_v50 = vld [vmem:[%s12433_s0 + $0x78] sm:$0xff] }
 0x2c0   :  { %v2168_v47 = vpop.permute.xlu0 %2167  ;;  %v10771_v45 = vpop.f32.mrf.mxu3  ;;  %v188_v41 = vld [vmem:[#allocation2 + $0x9c] sm:$0x8] }
 0x2c1   :  { %2235 = vst.msk [vmem:[#allocation2 + $0x78] sm:$0xf] %vm428_vm14, %v2168_v47  ;;  %v2174_v29 = vpop.permute.xlu2 %2173  ;;  %v3724_v11 = vmul.f32 %v10293_v6, %v3688_v53  ;;  %v10787_v53 = vrot.slane %v4257_v42, 5  ;;  %v10797_v47 = vrot.slane %v4246_v23, 7  ;;  %v10821_v63 = vsel %vm9168_vm11, %v4140_v60, %v10372_v32  ;;  %v8094_v32 = vld [vmem:[%s12433_s0 + $0x180] sm:$0xff] }
 0x2c2   :  { %3888 = vst.msk [vmem:[%s12440_s7 + $0x68] sm:$0xff] %vm3874_vm0, %v3855_v1  ;;  %v4551_v1 = vrot.slane %v4550_v25, 4  ;;  %v189_v25 = vsel %vm9150_vm9, 0, %v188_v41  ;;  %v191_v60 = vld [vmem:[#allocation2 + $0xa4] sm:$0x8] }
 0x2c3   :  { %2238 = vst.msk [vmem:[#allocation2 + $0x84] sm:$0xf] %vm428_vm14, %v2174_v29  ;;  %v3634_v55 = vpop.f32.mrf.mxu1  ;;  %v3760_v10 = vadd.f32 %v10299_v5, %v3724_v11  ;;  %v10813_v23 = vor.u32 %v4249_v22, %v10797_v47  ;;  %v3794_v41 = vld [vmem:[%s12433_s0 + $0x80] sm:$0xff] }
 0x2c4   :  { %2590 = vst.msk [vmem:[#allocation2 + $0x84] sm:$0xf] %vm751_vm15, %v10447_v26  ;;  %v3371_v36 = vpop.f32.mrf.mxu0  ;;  %v10779_v26 = vpack.c.bf16 %v8090_v3, %v8090_v3 }
 0x2c5   :  { %v3824_v0 = vadd.f32 %v3792_v17, %v3760_v10  ;;  %v3372_v4 = vadd.f32 %v3371_v36, %v3146_v12  ;;  %190 = vst [vmem:[#allocation2 + $0x9c] sm:$0x8] %v189_v25 }
 0x2c6   :  { %4028 = vrot.lane.b32.xlu2 %v10779_v26, %s8907_s11  ;;  %v4230_v29 = vshrl.u32 %v10779_v26, 16  ;;  %v4233_v11 = vshll.u32 %v10779_v26, 16 }
 0x2c7   :  { %v3856_v9 = vmax.f32 %v3824_v0, 0.0  ;;  %v3689_v62 = vadd.f32 %v3631_v15, %v3372_v4 }
 0x2c8   :  { %v2583_v39 = vld [vmem:[#allocation2 + $0x78] sm:$0xf]  ;;  %v2170_v12 = vpop.permute.xlu1 %2169  ;;  %v4539_v56 = vrot.slane %v4230_v29, 4  ;;  %v4540_v0 = vrot.slane %v4233_v11, 5  ;;  %v10823_v4 = vpop.f32.mrf.mxu3 }
 0x2c9   :  { %v2584_v54 = vsel %vm9263_vm3, %v10316_v18, %v2583_v39  ;;  %3889 = vst.msk [vmem:[%s12440_s7 + $0x70] sm:$0xff] %vm3874_vm0, %v3856_v9  ;;  %v3725_v15 = vmul.f32 %v10293_v6, %v3689_v62  ;;  %v90_v18 = vsel %vm9106_vm5, 0, %v89_v58  ;;  %v4553_v6 = vsel %vm9011_vm2, %v4551_v1, %v10787_v53  ;;  %v4005_v10 = vpop.permute.xlu2 %4004  ;;  %v8095_v39 = vld [vmem:[%s12433_s0 + $0x188] sm:$0xff] }
 0x2ca   :  { %2585 = vst [vmem:[#allocation2 + $0x78] sm:$0xf] %v2584_v54  ;;  %4657 = vrot.lane.b32.xlu0 %v4553_v6, %s8908_s12  ;;  %v4541_v9 = vor.u32 %v4540_v0, %v4539_v56  ;;  %v10838_v58 = vpack.c.bf16 %v8094_v32, %v8094_v32  ;;  %v92_v6 = vld [vmem:[#allocation2 + $0xa0] sm:$0x1] }
 0x2cb   :  { %v10803_v28 = vpop.f32.mrf.mxu1  ;;  %v3761_v17 = vadd.f32 %v10299_v5, %v3725_v15  ;;  %2236 = vst.msk [vmem:[#allocation2 + $0x7c] sm:$0xf] %vm428_vm14, %v2170_v12  ;;  %v10840_v12 = vpack.c.bf16 %v8095_v39, %v8095_v39  ;;  %v10852_v15 = vrot.slane %v4230_v29, 7  ;;  %v10876_v0 = vld [vmem:[%s12439_s6] ss:$0 sm:$0xff] }
 0x2cc   :  { %2586 = vst.msk [vmem:[#allocation2 + $0x7c] sm:$0xf] %vm751_vm15, %v10370_v43  ;;  %v3374_v36 = vpop.f32.mrf.mxu0  ;;  %v4156_v43 = vrot.slane %v10438_v46, 4  ;;  %v4542_v54 = vrot.slane %v4541_v9, 4  ;;  %4036 = vrot.lane.b32.xlu1 %v10838_v58, %s8907_s11  ;;  %v4262_v29 = vshrl.u32 %v10838_v58, 16 }
 0x2cd   :  { %v3825_v5 = vadd.f32 %v3793_v50, %v3761_v17  ;;  %v2792_v3 = vpop.permute.xlu0 %2791  ;;  %v3375_v22 = vadd.f32 %v3374_v36, %v10737_v19  ;;  %91 = vst [vmem:[#allocation2 + $0x98] sm:$0x1] %v90_v18  ;;  %v4254_v19 = vshrl.u32 %v10753_v37, 16  ;;  %v192_v18 = vsel %vm9150_vm9, 0, %v191_v60  ;;  %v8097_v37 = vld [vmem:[%s12433_s0 + $0x198] sm:$0xff] }
 0x2ce   :  { %2887 = vst.msk [vmem:[#allocation2 + $0x78] sm:$0xf] %vm1062_vm4, %v2792_v3  ;;  %v93_v36 = vsel %vm9106_vm5, 0, %v92_v6  ;;  %v4544_v56 = vsel %vm9011_vm2, %v4542_v54, %v10716_v27  ;;  %v10889_v27 = vsel %vm9168_vm11, %v4156_v43, %v10584_v44 }
 0x2cf   :  { %v3857_v62 = vmax.f32 %v3825_v5, 0.0  ;;  %v3690_v26 = vadd.f32 %v3634_v55, %v3375_v22  ;;  %4101 = vst.msk [vmem:[#allocation2 + $0x98] sm:$0xf] %vm428_vm14, %v4005_v10  ;;  %v10849_v55 = vld [vmem:[%s12438_s5] ss:$0 sm:$0xff]  ;;  %v4256_v50 = vrot.slane %v4254_v19, 7  ;;  %v10880_v22 = vor.u32 %v4233_v11, %v10852_v15  ;;  %4653 = vrot.lane.b32.xlu2 %v4544_v56, %s8908_s12 }
 0x2d0   :  { %v2172_v46 = vpop.permute.xlu1 %2171  ;;  %v4265_v10 = vshll.u32 %v10838_v58, 16  ;;  %193 = vst [vmem:[#allocation2 + $0xa4] sm:$0x8] %v192_v18  ;;  %v4270_v11 = vshrl.u32 %v10840_v12, 16 }
 0x2d1   :  { %3890 = vst.msk [vmem:[%s12440_s7 + $0x78] sm:$0xff] %vm3874_vm0, %v3857_v62  ;;  %v3726_v1 = vmul.f32 %v10849_v55, %v3690_v26  ;;  %v10884_v25 = vor.u32 %v4257_v42, %v4256_v50  ;;  %v4630_v32 = vpop.permute.xlu2 %4629  ;;  %v4273_v42 = vshll.u32 %v10840_v12, 16  ;;  %v4557_v62 = vrot.slane %v4262_v29, 4 }
 0x2d2   :  { %2237 = vst.msk [vmem:[#allocation2 + $0x80] sm:$0xf] %vm428_vm14, %v2172_v46  ;;  %v4558_v44 = vrot.slane %v4265_v10, 5  ;;  %v4563_v60 = vrot.slane %v4270_v11, 4 }
 0x2d3   :  { %v10864_v17 = vpop.f32.mrf.mxu1  ;;  %v3762_v5 = vadd.f32 %v10876_v0, %v3726_v1  ;;  %v2888_v3 = vld [vmem:[#allocation2 + $0x7c] sm:$0xf]  ;;  %94 = vst [vmem:[#allocation2 + $0xa0] sm:$0x1] %v93_v36  ;;  %v4561_v46 = vrot.slane %v4273_v42, 5  ;;  %v10911_v36 = vrot.slane %v4262_v29, 7 }
 0x2d4   :  { %v3376_v9 = vpop.f32.mrf.mxu0  ;;  %v2889_v39 = vsel %vm9316_vm6, %v10727_v13, %v2888_v3  ;;  %v10900_v13 = vpop.f32.mrf.mxu3  ;;  %v4559_v18 = vor.u32 %v4558_v44, %v4557_v62 }
 0x2d5   :  { %v3826_v26 = vadd.f32 %v3794_v41, %v3762_v5  ;;  %v3377_v58 = vadd.f32 %v3376_v9, %v10771_v45  ;;  %2890 = vst [vmem:[#allocation2 + $0x7c] sm:$0xf] %v2889_v39  ;;  %v4564_v6 = vor.u32 %v4563_v60, %v4561_v46  ;;  %v10924_v29 = vor.u32 %v4265_v10, %v10911_v36 }
 0x2d6   :  { %v4421_v43 = vld [vmem:[#allocation2 + $0x98] sm:$0xf]  ;;  %v4560_v56 = vrot.slane %v4559_v18, 4  ;;  %v10944_v18 = vpack.c.bf16 %v8097_v37, %v8097_v37 }
 0x2d7   :  { %v3858_v54 = vmax.f32 %v3826_v26, 0.0  ;;  %v3691_v1 = vadd.f32 %v10803_v28, %v3377_v58  ;;  %v4422_v50 = vsel %vm9263_vm3, %v10484_v30, %v4421_v43  ;;  %v3795_v30 = vld [vmem:[%s12433_s0 + $0x88] sm:$0xff]  ;;  %v4565_v3 = vrot.slane %v4564_v6, 4  ;;  %v3796_v6 = vld [vmem:[%s12433_s0 + $0x90] sm:$0xff] }
 0x2d8   :  { %4423 = vst [vmem:[#allocation2 + $0x98] sm:$0xf] %v4422_v50  ;;  %v4562_v39 = vsel %vm9011_vm2, %v4560_v56, %v4561_v46  ;;  %v2892_v50 = vld [vmem:[#allocation2 + $0x84] sm:$0xf]  ;;  %v4272_v56 = vrot.slane %v4270_v11, 7 }
 0x2d9   :  { %3891 = vst.msk [vmem:[%s12440_s7 + $0x80] sm:$0xff] %vm3874_vm0, %v3858_v54  ;;  %v2587_v45 = vld [vmem:[#allocation2 + $0x80] sm:$0xf]  ;;  %v3727_v41 = vmul.f32 %v10849_v55, %v3691_v1  ;;  %v10928_v62 = vpop.permute.xlu2 %4635  ;;  %4663 = vrot.lane.b32.xlu0 %v4565_v3, %s8908_s12  ;;  %4661 = vrot.lane.b32.xlu1 %v4562_v39, %s8908_s12  ;;  %v4289_v39 = vshll.u32 %v10944_v18, 16 }
 0x2da   :  { %v2588_v28 = vsel %vm9263_vm3, %v10396_v33, %v2587_v45  ;;  %4725 = vst.msk [vmem:[#allocation2 + $0x98] sm:$0xf] %vm1062_vm4, %v4630_v32  ;;  %v4554_v33 = vrot.slane %v4254_v19, 4  ;;  %v10967_v11 = vor.u32 %v4273_v42, %v4272_v56 }
 0x2db   :  { %v10919_v5 = vpop.f32.mrf.mxu1  ;;  %2589 = vst [vmem:[#allocation2 + $0x80] sm:$0xf] %v2588_v28  ;;  %v3763_v9 = vadd.f32 %v10876_v0, %v3727_v41  ;;  %v95_v28 = vld [vmem:[#allocation2 + $0xa8] sm:$0x1] }
 0x2dc   :  { %v8768_v58 = vld [vmem:[#allocation2 + $0x78] sm:$0xff]  ;;  %v3379_v44 = vpop.f32.mrf.mxu0  ;;  %v4555_v46 = vor.u32 %v4554_v33, %v10787_v53  ;;  %v4172_v53 = vrot.slane %v10510_v57, 4  ;;  %v194_v57 = vld [vmem:[#allocation2 + $0xac] sm:$0x8] }
 0x2dd   :  { %v2796_v26 = vpop.permute.xlu1 %2795  ;;  %v8752_v43 = vld [vmem:[#allocation2 + $0x78] sm:$0xff]  ;;  %v3827_v60 = vadd.f32 %v3795_v30, %v3763_v9  ;;  %v3380_v10 = vadd.f32 %v3379_v44, %v10823_v4  ;;  %7906 = vmatmul.msk.bf16.gmra.mxu3 %vm1283_vm13, %v8768_v58  ;;  %v96_v30 = vsel %vm9106_vm5, 0, %v95_v28  ;;  %v195_v3 = vsel %vm9150_vm9, 0, %v194_v57  ;;  %v8099_v57 = vld [vmem:[%s12433_s0 + $0x1a8] sm:$0xff] }
 0x2de   :  { %v8784_v32 = vld [vmem:[#allocation2 + $0x78] sm:$0xff]  ;;  %2891 = vst.msk [vmem:[#allocation2 + $0x80] sm:$0xf] %vm1062_vm4, %v2796_v26  ;;  %7991 = vmatmul.msk.bf16.gmra.mxu0 %vm1283_vm13, %v8752_v43  ;;  %v4556_v4 = vrot.slane %v4555_v46, 4  ;;  %v4286_v9 = vshrl.u32 %v10944_v18, 16 }
 0x2df   :  { %v3859_v19 = vmax.f32 %v3827_v60, 0.0  ;;  %v3692_v54 = vadd.f32 %v10864_v17, %v3380_v10  ;;  %8075 = vmatmul.msk.bf16.gmra.mxu1 %vm1283_vm13, %v8784_v32  ;;  %v3159_v17 = vpop.f32.mrf.mxu3  ;;  %97 = vst [vmem:[#allocation2 + $0xa8] sm:$0x1] %v96_v30  ;;  %v4180_v32 = vsel %vm9168_vm11, %v4172_v53, %v10556_v16  ;;  %v10976_v60 = vrot.slane %v4289_v39, 5 }
 0x2e0   :  { %v2798_v1 = vpop.permute.xlu0 %2797  ;;  %4659 = vrot.lane.b32.xlu2 %v4556_v4, %s8908_s12  ;;  %196 = vst [vmem:[#allocation2 + $0xac] sm:$0x8] %v195_v3  ;;  %v4572_v10 = vrot.slane %v4286_v9, 4 }
 0x2e1   :  { %v2893_v45 = vsel %vm9316_vm6, %v2798_v1, %v2892_v50  ;;  %3892 = vst.msk [vmem:[%s12440_s7 + $0x88] sm:$0xff] %vm3874_vm0, %v3859_v19  ;;  %v3728_v41 = vmul.f32 %v10849_v55, %v3692_v54  ;;  %v4015_v58 = vpop.permute.xlu2 %4014  ;;  %4042 = vrot.lane.b32.xlu0 %v10944_v18, %s8907_s11 }
 0x2e2   :  { %2894 = vst [vmem:[#allocation2 + $0x84] sm:$0xf] %v2893_v45  ;;  %v4573_v37 = vor.u32 %v4572_v10, %v10976_v60  ;;  %v197_v10 = vld [vmem:[#allocation2 + $0xb4] sm:$0x8] }
 0x2e3   :  { %v3764_v33 = vadd.f32 %v10876_v0, %v3728_v41  ;;  %v3644_v26 = vpop.f32.mrf.mxu1  ;;  %4106 = vst.msk [vmem:[#allocation2 + $0xac] sm:$0xf] %vm428_vm14, %v4015_v58  ;;  %v4188_v58 = vrot.slane %v10659_v14, 4 }
 0x2e4   :  { %v3381_v44 = vpop.f32.mrf.mxu0  ;;  %4432 = vst.msk [vmem:[#allocation2 + $0xac] sm:$0xf] %vm751_vm15, %v4180_v32  ;;  %v4574_v50 = vrot.slane %v4573_v37, 4  ;;  %v4288_v32 = vrot.slane %v4286_v9, 7 }
 0x2e5   :  { %v4632_v43 = vpop.permute.xlu1 %4631  ;;  %v3828_v46 = vadd.f32 %v3796_v6, %v3764_v33  ;;  %v3382_v42 = vadd.f32 %v3381_v44, %v10900_v13  ;;  %v3797_v13 = vld [vmem:[%s12433_s0 + $0x98] sm:$0xff] }
 0x2e6   :  { %4667 = vrot.lane.b32.xlu1 %v4574_v50, %s8908_s12 }
 0x2e7   :  { %v3860_v19 = vmax.f32 %v3828_v46, 0.0  ;;  %v3693_v54 = vadd.f32 %v10919_v5, %v3382_v42  ;;  %v3161_v5 = vpop.f32.mrf.mxu3  ;;  %v98_v46 = vld [vmem:[#allocation2 + $0xb0] sm:$0x1] }
 0x2e8   :  { %v4007_v1 = vpop.permute.xlu0 %4006  ;;  %4038 = vrot.lane.b32.xlu2 %v10840_v12, %s8907_s11  ;;  %v99_v18 = vsel %vm9106_vm5, 0, %v98_v46 }
 0x2e9   :  { %3893 = vst.msk [vmem:[%s12440_s7 + $0x90] sm:$0xff] %vm3874_vm0, %v3860_v19  ;;  %v3729_v16 = vmul.f32 %v10849_v55, %v3693_v54  ;;  %v8769_v4 = vld [vmem:[#allocation2 + $0x80] sm:$0xff]  ;;  %v11034_v54 = vor.u32 %v4289_v39, %v4288_v32  ;;  %v3799_v32 = vld [vmem:[%s12433_s0 + $0xa8] sm:$0xff] }
 0x2ea   :  { %4102 = vst.msk [vmem:[#allocation2 + $0x9c] sm:$0xf] %vm428_vm14, %v4007_v1  ;;  %v8785_v6 = vld [vmem:[#allocation2 + $0x80] sm:$0xff]  ;;  %v198_v1 = vsel %vm9150_vm9, 0, %v197_v10  ;;  %v8788_v10 = vld [vmem:[#allocation2 + $0x90] sm:$0xff] }
 0x2eb   :  { %v3765_v53 = vadd.f32 %v10876_v0, %v3729_v16  ;;  %4424 = vst.msk [vmem:[#allocation2 + $0x9c] sm:$0xf] %vm751_vm15, %v10821_v63  ;;  %v3646_v12 = vpop.f32.mrf.mxu1  ;;  %v8098_v63 = vld [vmem:[%s12433_s0 + $0x1a0] sm:$0xff] }
 0x2ec   :  { %v3384_v45 = vpop.f32.mrf.mxu0  ;;  %v11011_v33 = vpack.c.bf16 %v8098_v63, %v8098_v63  ;;  %199 = vst [vmem:[#allocation2 + $0xb4] sm:$0x8] %v198_v1 }
 0x2ed   :  { %v4011_v41 = vpop.permute.xlu1 %4010  ;;  %v3829_v56 = vadd.f32 %v3797_v13, %v3765_v53  ;;  %v3385_v28 = vadd.f32 %v3384_v45, %v3159_v17  ;;  %7907 = vmatmul.msk.bf16.gmra.mxu3 %vm1283_vm13, %v8769_v4  ;;  %v11009_v17 = vpack.c.bf16 %v8099_v57, %v8099_v57  ;;  %v11041_v13 = vsel %vm9168_vm11, %v4188_v58, %v10604_v52  ;;  %v8096_v52 = vld [vmem:[%s12433_s0 + $0x190] sm:$0xff] }
 0x2ee   :  { %4104 = vst.msk [vmem:[#allocation2 + $0xa4] sm:$0xf] %vm428_vm14, %v4011_v41  ;;  %4044 = vrot.lane.b32.xlu0 %v11011_v33, %s8907_s11  ;;  %v4294_v14 = vshrl.u32 %v11011_v33, 16  ;;  %v4297_v37 = vshll.u32 %v11011_v33, 16 }
 0x2ef   :  { %4428 = vst.msk [vmem:[#allocation2 + $0xa4] sm:$0xf] %vm751_vm15, %v10889_v27  ;;  %v3861_v30 = vmax.f32 %v3829_v56, 0.0  ;;  %v3694_v3 = vadd.f32 %v3644_v26, %v3385_v28  ;;  %8076 = vmatmul.msk.bf16.gmra.mxu1 %vm1283_vm13, %v8785_v6  ;;  %v3798_v27 = vld [vmem:[%s12433_s0 + $0xa0] sm:$0xff]  ;;  %4046 = vrot.lane.b32.xlu1 %v11009_v17, %s8907_s11  ;;  %v4305_v56 = vshll.u32 %v11009_v17, 16 }
 0x2f0   :  { %v4009_v44 = vpop.permute.xlu0 %4008  ;;  %v4575_v4 = vrot.slane %v4294_v14, 4  ;;  %v4576_v53 = vrot.slane %v4297_v37, 5  ;;  %100 = vst [vmem:[#allocation2 + $0xb0] sm:$0x1] %v99_v18 }
 0x2f1   :  { %3894 = vst.msk [vmem:[%s12440_s7 + $0x98] sm:$0xff] %vm3874_vm0, %v3861_v30  ;;  %v3730_v26 = vmul.f32 %v10849_v55, %v3694_v3  ;;  %v4017_v30 = vpop.permute.xlu2 %4016  ;;  %v11053_v3 = vpack.c.bf16 %v8096_v52, %v8096_v52  ;;  %v8100_v52 = vld [vmem:[%s12433_s0 + $0x1b0] sm:$0xff] }
 0x2f2   :  { %v4726_v42 = vld [vmem:[#allocation2 + $0x9c] sm:$0xf]  ;;  %4103 = vst.msk [vmem:[#allocation2 + $0xa0] sm:$0xf] %vm428_vm14, %v4009_v44  ;;  %v4577_v28 = vor.u32 %v4576_v53, %v4575_v4 }
 0x2f3   :  { %v4727_v19 = vsel %vm9316_vm6, %v4632_v43, %v4726_v42  ;;  %v3766_v9 = vadd.f32 %v10876_v0, %v3730_v26  ;;  %v3164_v43 = vpop.f32.mrf.mxu3  ;;  %4040 = vrot.lane.b32.xlu2 %v11053_v3, %s8907_s11  ;;  %4107 = vst.msk [vmem:[#allocation2 + $0xb0] sm:$0xf] %vm428_vm14, %v4017_v30  ;;  %v4278_v46 = vshrl.u32 %v11053_v3, 16  ;;  %v4281_v42 = vshll.u32 %v11053_v3, 16 }
 0x2f4   :  { %4728 = vst [vmem:[#allocation2 + $0x9c] sm:$0xf] %v4727_v19  ;;  %v3386_v50 = vpop.f32.mrf.mxu0  ;;  %v4578_v58 = vrot.slane %v4577_v28, 4  ;;  %v3962_v30 = vpack.c.bf16 %v8100_v52, %v8100_v52 }
 0x2f5   :  { %v4013_v16 = vpop.permute.xlu1 %4012  ;;  %v3830_v6 = vadd.f32 %v3798_v27, %v3766_v9  ;;  %v3387_v45 = vadd.f32 %v3386_v50, %v3161_v5  ;;  %v3649_v5 = vpop.f32.mrf.mxu1  ;;  %v8786_v9 = vld [vmem:[#allocation2 + $0x88] sm:$0xff]  ;;  %v4566_v53 = vrot.slane %v4278_v46, 4 }
 0x2f6   :  { %v4730_v41 = vld [vmem:[#allocation2 + $0xa4] sm:$0xf]  ;;  %4105 = vst.msk [vmem:[#allocation2 + $0xa8] sm:$0xf] %vm428_vm14, %v4013_v16 }
 0x2f7   :  { %v4731_v39 = vsel %vm9316_vm6, %v10928_v62, %v4730_v41  ;;  %v3862_v57 = vmax.f32 %v3830_v6, 0.0  ;;  %v3695_v63 = vadd.f32 %v3646_v12, %v3387_v45  ;;  %v11057_v62 = vrot.slane %v4305_v56, 5  ;;  %4048 = vrot.lane.b32.xlu1 %v3962_v30, %s8907_s11 }
 0x2f8   :  { %4732 = vst [vmem:[#allocation2 + $0xa4] sm:$0xf] %v4731_v39  ;;  %v4634_v33 = vpop.permute.xlu0 %4633  ;;  %v11064_v12 = vrot.slane %v4294_v14, 7  ;;  %v4567_v6 = vrot.slane %v4281_v42, 5  ;;  %v4204_v45 = vrot.slane %v10625_v40, 4  ;;  %v8101_v40 = vld [vmem:[%s12433_s0 + $0x1b8] sm:$0xff] }
 0x2f9   :  { %3895 = vst.msk [vmem:[%s12440_s7 + $0xa0] sm:$0xff] %vm3874_vm0, %v3862_v57  ;;  %v4425_v27 = vld [vmem:[#allocation2 + $0xa0] sm:$0xf]  ;;  %v3731_v44 = vmul.f32 %v10849_v55, %v3695_v63  ;;  %v4580_v14 = vsel %vm9011_vm2, %v4578_v58, %v11057_v62  ;;  %v4734_v39 = vld [vmem:[#allocation2 + $0xac] sm:$0xf]  ;;  %v11101_v58 = vpack.c.bf16 %v8101_v40, %v8101_v40 }
 0x2fa   :  { %v4426_v26 = vsel %vm9263_vm3, %v10450_v7, %v4425_v27  ;;  %v11082_v1 = vor.u32 %v4297_v37, %v11064_v12  ;;  %4669 = vrot.lane.b32.xlu0 %v4580_v14, %s8908_s12  ;;  %v4568_v28 = vor.u32 %v4567_v6, %v4566_v53 }
 0x2fb   :  { %4427 = vst [vmem:[#allocation2 + $0xa0] sm:$0xf] %v4426_v26  ;;  %v3767_v19 = vadd.f32 %v10876_v0, %v3731_v44  ;;  %v8805_v7 = vld [vmem:[#allocation2 + $0x98] sm:$0xff]  ;;  %v4321_v40 = vshll.u32 %v11101_v58, 16 }
 0x2fc   :  { %4729 = vst.msk [vmem:[#allocation2 + $0xa0] sm:$0xf] %vm1062_vm4, %v4634_v33  ;;  %v3389_v50 = vpop.f32.mrf.mxu0  ;;  %8180 = vmatmul.msk.bf16.vlgmr.msrb.gmra.mxu2 %vm1283_vm13, %v8805_v7  ;;  %v4569_v33 = vrot.slane %v4568_v28, 4  ;;  %v4310_v7 = vshrl.u32 %v3962_v30, 16 }
 0x2fd   :  { %v4429_v16 = vld [vmem:[#allocation2 + $0xa8] sm:$0xf]  ;;  %v4638_v4 = vpop.permute.xlu1 %4637  ;;  %v3831_v41 = vadd.f32 %v3799_v32, %v3767_v19  ;;  %v3390_v18 = vadd.f32 %v3389_v50, %v3164_v43  ;;  %8264 = vmatmul.msk.bf16.vlgmr.msrb.gmra.mxu3 %vm1283_vm13, %v8788_v10  ;;  %v3166_v43 = vpop.f32.mrf.mxu3  ;;  %v4433_v32 = vld [vmem:[#allocation2 + $0xb0] sm:$0xf]  ;;  %v11113_v10 = vrot.slane %v4278_v46, 7  ;;  %v4313_v50 = vshll.u32 %v3962_v30, 16 }
 0x2fe   :  { %v4430_v37 = vsel %vm9263_vm3, %v10526_v24, %v4429_v16  ;;  %v4302_v24 = vshrl.u32 %v11009_v17, 16  ;;  %v3651_v27 = vpop.f32.mrf.mxu1  ;;  %v4642_v19 = vpop.permute.xlu2 %4641  ;;  %v200_v16 = vld [vmem:[#allocation2 + $0xbc] sm:$0x8]  ;;  %v4584_v30 = vrot.slane %v4310_v7, 4  ;;  %v8604_v17 = vld [vmem:[%s12437_s4 + $0x10] sm:$0xf] }
 0x2ff   :  { %4431 = vst [vmem:[#allocation2 + $0xa8] sm:$0xf] %v4430_v37  ;;  %v3863_v57 = vmax.f32 %v3831_v41, 0.0  ;;  %v3696_v63 = vadd.f32 %v3649_v5, %v3390_v18  ;;  %8077 = vmatmul.msk.bf16.gmra.mxu1 %vm1283_vm13, %v8786_v9  ;;  %v3800_v5 = vld [vmem:[%s12433_s0 + $0xb0] sm:$0xff]  ;;  %v4434_v9 = vsel %vm9263_vm3, %v10672_v31, %v4433_v32  ;;  %v11126_v6 = vor.u32 %v4281_v42, %v11113_v10 }
 0x300   :  { %4733 = vst.msk [vmem:[#allocation2 + $0xa8] sm:$0xf] %vm1062_vm4, %v4638_v4  ;;  %v4640_v3 = vpop.permute.xlu0 %4639  ;;  %v4304_v14 = vrot.slane %v4302_v24, 7  ;;  %v4212_v4 = vsel %vm9168_vm11, %v4204_v45, %v10745_v59  ;;  %v201_v31 = vsel %vm9150_vm9, 0, %v200_v16  ;;  %v11137_v59 = vrot.slane %v4310_v7, 7 }
 0x301   :  { %3896 = vst.msk [vmem:[%s12440_s7 + $0xa8] sm:$0xff] %vm3874_vm0, %v3863_v57  ;;  %v3732_v44 = vmul.f32 %v10849_v55, %v3696_v63  ;;  %v4735_v26 = vsel %vm9316_vm6, %v4640_v3, %v4734_v39  ;;  %v101_v45 = vld [vmem:[#allocation2 + $0xb8] sm:$0x1]  ;;  %v4571_v42 = vsel %vm9011_vm2, %v4569_v33, %v10976_v60  ;;  %v4318_v39 = vshrl.u32 %v11101_v58, 16  ;;  %v8518_v57 = vld [vmem:[%s12437_s4] sm:$0xf] }
 0x302   :  { %4736 = vst [vmem:[#allocation2 + $0xac] sm:$0xf] %v4735_v26  ;;  %v11130_v41 = vor.u32 %v4305_v56, %v4304_v14  ;;  %v102_v28 = vsel %vm9106_vm5, 0, %v101_v45  ;;  %4665 = vrot.lane.b32.xlu2 %v4571_v42, %s8908_s12  ;;  %v11152_v60 = vor.u32 %v4313_v50, %v11137_v59  ;;  %v8855_v26 = vld [vmem:[%s12437_s4] sm:$0x30] }
 0x303   :  { %v3768_v46 = vadd.f32 %v10876_v0, %v3732_v44  ;;  %v8822_v53 = vld [vmem:[#allocation2 + $0xa0] sm:$0xff]  ;;  %4435 = vst [vmem:[#allocation2 + $0xb0] sm:$0xf] %v4434_v9  ;;  %v4320_v63 = vrot.slane %v4318_v39, 7  ;;  %v4588_v44 = vrot.slane %v4321_v40, 5 }
 0x304   :  { %v3391_v18 = vpop.f32.mrf.mxu0  ;;  %4737 = vst.msk [vmem:[#allocation2 + $0xb0] sm:$0xf] %vm1062_vm4, %v4642_v19  ;;  %8350 = vmatmul.msk.bf16.vlgmr.msra.gmra.mxu0 %vm1283_vm13, %v8822_v53  ;;  %v8519_v19 = vor.u32 %v8855_v26, %v8518_v57 }
 0x305   :  { %v11134_v37 = vpop.permute.xlu1 %4643  ;;  %v3832_v52 = vadd.f32 %v3800_v5, %v3768_v46  ;;  %v3392_v56 = vadd.f32 %v3391_v18, %v3166_v43  ;;  %202 = vst [vmem:[#allocation2 + $0xbc] sm:$0x8] %v201_v31  ;;  %v4590_v43 = vrot.slane %v4318_v39, 4  ;;  %v4585_v5 = vrot.slane %v4313_v50, 5  ;;  %v3169_v9 = vpop.f32.mrf.mxu3  ;;  %v3801_v50 = vld [vmem:[%s12433_s0 + $0xb8] sm:$0xff]  ;;  %v8806_v18 = vld [vmem:[#allocation2 + $0xa0] sm:$0xff] }
 0x306   :  { %103 = vst [vmem:[#allocation2 + $0xb8] sm:$0x1] %v102_v28  ;;  %v11157_v14 = vor.u32 %v4321_v40, %v4320_v63  ;;  %v6979_v46 = vsel %vm1332_vm12, %v8519_v19, 0  ;;  %v3654_v53 = vpop.f32.mrf.mxu1  ;;  %v11172_v39 = vpop.permute.xlu2 %4647  ;;  %v8789_v28 = vld [vmem:[#allocation2 + $0x98] sm:$0xff] }
 0x307   :  { %v3864_v3 = vmax.f32 %v3832_v52, 0.0  ;;  %v3697_v33 = vadd.f32 %v3651_v27, %v3392_v56  ;;  %v4591_v16 = vor.u32 %v4590_v43, %v4588_v44  ;;  %v4586_v27 = vor.u32 %v4585_v5, %v4584_v30  ;;  %6988 = vmatpush.bf16.msra.mxu2 %v6979_v46  ;;  %v3802_v5 = vld [vmem:[%s12433_s0 + $0xc0] sm:$0xff] }
 0x308   :  { %v4019_v32 = vpop.permute.xlu0 %4018  ;;  %v4581_v52 = vrot.slane %v4302_v24, 4  ;;  %v8889_v24 = vld [vmem:[%s12437_s4 + $0x10] sm:$0x30]  ;;  %v4220_v46 = vrot.slane %v10685_v35, 4 }
 0x309   :  { %3897 = vst.msk [vmem:[%s12440_s7 + $0xb0] sm:$0xff] %vm3874_vm0, %v3864_v3  ;;  %v3733_v7 = vmul.f32 %v10849_v55, %v3697_v33  ;;  %v4592_v45 = vrot.slane %v4591_v16, 4  ;;  %v4587_v42 = vrot.slane %v4586_v27, 4  ;;  %v8605_v33 = vor.u32 %v8889_v24, %v8604_v17  ;;  %v8823_v27 = vld [vmem:[#allocation2 + $0xa8] sm:$0xff] }
 0x30a   :  { %4108 = vst.msk [vmem:[#allocation2 + $0xb4] sm:$0xf] %vm428_vm14, %v4019_v32  ;;  %v4582_v43 = vor.u32 %v4581_v52, %v11057_v62  ;;  %v8434_v62 = vld [vmem:[%s12437_s4 + $0x8] sm:$0xf] }
 0x30b   :  { %v3769_v31 = vadd.f32 %v10876_v0, %v3733_v7  ;;  %4436 = vst.msk [vmem:[#allocation2 + $0xb4] sm:$0xf] %vm751_vm15, %v11041_v13  ;;  %4675 = vrot.lane.b32.xlu0 %v4592_v45, %s8908_s12  ;;  %v4589_v13 = vsel %vm9011_vm2, %v4587_v42, %v4588_v44  ;;  %v8103_v44 = vld [vmem:[%s12433_s0 + $0x1c8] sm:$0xff]  ;;  %v203_v7 = vld [vmem:[#allocation2 + $0xc4] sm:$0x8] }
 0x30c   :  { %v3394_v56 = vpop.f32.mrf.mxu0  ;;  %8181 = vmatmul.msk.bf16.gmra.mxu2 %vm1283_vm13, %v8806_v18  ;;  %4673 = vrot.lane.b32.xlu1 %v4589_v13, %s8908_s12  ;;  %v3965_v32 = vpack.c.bf16 %v8103_v44, %v8103_v44  ;;  %v4583_v19 = vrot.slane %v4582_v43, 4 }
 0x30d   :  { %v4023_v40 = vpop.permute.xlu1 %4022  ;;  %v3833_v57 = vadd.f32 %v3801_v50, %v3769_v31  ;;  %v3395_v63 = vadd.f32 %v3394_v56, %v3169_v9  ;;  %8265 = vmatmul.msk.bf16.gmra.mxu3 %vm1283_vm13, %v8789_v28  ;;  %v7238_v50 = vsel %vm1332_vm12, %v8605_v33, 0  ;;  %v3171_v52 = vpop.f32.mrf.mxu3  ;;  %v204_v28 = vsel %vm9150_vm9, 0, %v203_v7 }
 0x30e   :  { %4110 = vst.msk [vmem:[#allocation2 + $0xbc] sm:$0xf] %vm428_vm14, %v4023_v40  ;;  %7247 = vmatpush.bf16.msra.mxu3 %v7238_v50  ;;  %4671 = vrot.lane.b32.xlu2 %v4583_v19, %s8908_s12  ;;  %v4334_v45 = vshrl.u32 %v3965_v32, 16  ;;  %v4337_v42 = vshll.u32 %v3965_v32, 16  ;;  %v4228_v40 = vsel %vm9168_vm11, %v4220_v46, %v10721_v48  ;;  %v3656_v48 = vpop.f32.mrf.mxu1  ;;  %v8807_v50 = vld [vmem:[#allocation2 + $0xa8] sm:$0xff] }
 0x30f   :  { %4440 = vst.msk [vmem:[#allocation2 + $0xbc] sm:$0xf] %vm751_vm15, %v4212_v4  ;;  %v3865_v30 = vmax.f32 %v3833_v57, 0.0  ;;  %v3698_v3 = vadd.f32 %v3654_v53, %v3395_v63  ;;  %v104_v4 = vld [vmem:[#allocation2 + $0xc0] sm:$0x1] }
 0x310   :  { %v4021_v26 = vpop.permute.xlu0 %4020  ;;  %v105_v9 = vsel %vm9106_vm5, 0, %v104_v4  ;;  %v8872_v53 = vld [vmem:[%s12437_s4 + $0x8] sm:$0x30]  ;;  %v11224_v17 = vrot.slane %v4337_v42, 5  ;;  %v4599_v24 = vrot.slane %v4334_v45, 4  ;;  %v4336_v33 = vrot.slane %v4334_v45, 7 }
 0x311   :  { %3898 = vst.msk [vmem:[%s12440_s7 + $0xb8] sm:$0xff] %vm3874_vm0, %v3865_v30  ;;  %v3734_v16 = vmul.f32 %v10849_v55, %v3698_v3  ;;  %v8435_v18 = vor.u32 %v8872_v53, %v8434_v62  ;;  %v4027_v3 = vpop.permute.xlu2 %4026  ;;  %v3803_v62 = vld [vmem:[%s12433_s0 + $0xc8] sm:$0xff] }
 0x312   :  { %v4738_v31 = vld [vmem:[#allocation2 + $0xb4] sm:$0xf]  ;;  %4109 = vst.msk [vmem:[#allocation2 + $0xb8] sm:$0xf] %vm428_vm14, %v4021_v26  ;;  %v4600_v4 = vor.u32 %v4599_v24, %v11224_v17  ;;  %v11233_v19 = vor.u32 %v4337_v42, %v4336_v33 }
 0x313   :  { %v3770_v56 = vadd.f32 %v10876_v0, %v3734_v16  ;;  %v4739_v35 = vsel %vm9316_vm6, %v11134_v37, %v4738_v31  ;;  %106 = vst [vmem:[#allocation2 + $0xc0] sm:$0x1] %v105_v9  ;;  %v6754_v13 = vsel %vm1332_vm12, %v8435_v18, 0  ;;  %4054 = vrot.lane.b32.xlu0 %v3965_v32, %s8907_s11  ;;  %v206_v18 = vld [vmem:[#allocation2 + $0xcc] sm:$0x8] }
 0x314   :  { %v3396_v57 = vpop.f32.mrf.mxu0  ;;  %4740 = vst [vmem:[#allocation2 + $0xb4] sm:$0xf] %v4739_v35  ;;  %8351 = vmatmul.msk.bf16.gmra.mxu0 %vm1283_vm13, %v8823_v27  ;;  %6763 = vmatpush.bf16.msra.mxu1 %v6754_v13  ;;  %v4601_v32 = vrot.slane %v4600_v4, 4 }
 0x315   :  { %v4025_v63 = vpop.permute.xlu1 %4024  ;;  %v3834_v43 = vadd.f32 %v3802_v5, %v3770_v56  ;;  %v3397_v30 = vadd.f32 %v3396_v57, %v3171_v52  ;;  %205 = vst [vmem:[#allocation2 + $0xc4] sm:$0x8] %v204_v28  ;;  %v107_v56 = vld [vmem:[#allocation2 + $0xc8] sm:$0x1]  ;;  %v4236_v28 = vrot.slane %v10852_v15, 4 }
 0x316   :  { %v4742_v37 = vld [vmem:[#allocation2 + $0xbc] sm:$0xf]  ;;  %4111 = vst.msk [vmem:[#allocation2 + $0xc0] sm:$0xf] %vm428_vm14, %v4025_v63  ;;  %4679 = vrot.lane.b32.xlu1 %v4601_v32, %s8908_s12  ;;  %4050 = vrot.lane.b32.xlu2 %v11101_v58, %s8907_s11  ;;  %v8104_v58 = vld [vmem:[%s12433_s0 + $0x1d0] sm:$0xff] }
 0x317   :  { %v4743_v44 = vsel %vm9316_vm6, %v11172_v39, %v4742_v37  ;;  %v3866_v5 = vmax.f32 %v3834_v43, 0.0  ;;  %v3699_v26 = vadd.f32 %v3656_v48, %v3397_v30  ;;  %4112 = vst.msk [vmem:[#allocation2 + $0xc4] sm:$0xf] %vm428_vm14, %v4027_v3  ;;  %v3966_v52 = vpack.c.bf16 %v8104_v58, %v8104_v58 }
 0x318   :  { %4744 = vst [vmem:[#allocation2 + $0xbc] sm:$0xf] %v4743_v44  ;;  %v4646_v9 = vpop.permute.xlu0 %4645  ;;  %v4244_v15 = vsel %vm9168_vm11, %v4236_v28, %v10773_v34  ;;  %v8102_v34 = vld [vmem:[%s12433_s0 + $0x1c0] sm:$0xff]  ;;  %v110_v28 = vld [vmem:[#allocation2 + $0xd0] sm:$0x1] }
 0x319   :  { %3899 = vst.msk [vmem:[%s12440_s7 + $0xc0] sm:$0xff] %vm3874_vm0, %v3866_v5  ;;  %v3735_v39 = vmul.f32 %v10849_v55, %v3699_v26  ;;  %v4437_v7 = vld [vmem:[#allocation2 + $0xb8] sm:$0xf]  ;;  %v8790_v55 = vld [vmem:[#allocation2 + $0xa0] sm:$0xff]  ;;  %v4342_v13 = vshrl.u32 %v3966_v52, 16  ;;  %v4345_v24 = vshll.u32 %v3966_v52, 16  ;;  %v3964_v26 = vpack.c.bf16 %v8102_v34, %v8102_v34 }
 0x31a   :  { %v4438_v16 = vsel %vm9263_vm3, %v10635_v2, %v4437_v7  ;;  %4444 = vst.msk [vmem:[#allocation2 + $0xc4] sm:$0xf] %vm751_vm15, %v4228_v40  ;;  %v108_v40 = vsel %vm9106_vm5, 0, %v107_v56  ;;  %v209_v56 = vld [vmem:[#allocation2 + $0xd4] sm:$0x8] }
 0x31b   :  { %v3771_v27 = vadd.f32 %v10876_v0, %v3735_v39  ;;  %4439 = vst [vmem:[#allocation2 + $0xb8] sm:$0xf] %v4438_v16  ;;  %v8105_v0 = vld [vmem:[%s12433_s0 + $0x1d8] sm:$0xff]  ;;  %v8824_v57 = vld [vmem:[#allocation2 + $0xb0] sm:$0xff]  ;;  %4056 = vrot.lane.b32.xlu0 %v3966_v52, %s8907_s11  ;;  %v11285_v37 = vrot.slane %v4342_v13, 7  ;;  %v4602_v33 = vrot.slane %v4342_v13, 4 }
 0x31c   :  { %4741 = vst.msk [vmem:[#allocation2 + $0xb8] sm:$0xf] %vm1062_vm4, %v4646_v9  ;;  %8182 = vmatmul.msk.bf16.gmra.mxu2 %vm1283_vm13, %v8807_v50  ;;  %v11265_v42 = vpack.c.bf16 %v8105_v0, %v8105_v0  ;;  %v4603_v48 = vrot.slane %v4345_v24, 5  ;;  %v4329_v16 = vshll.u32 %v3964_v26, 16  ;;  %v8107_v13 = vld [vmem:[%s12433_s0 + $0x1e8] sm:$0xff] }
 0x31d   :  { %v4441_v46 = vld [vmem:[#allocation2 + $0xc0] sm:$0xf]  ;;  %v3835_v53 = vadd.f32 %v3803_v62, %v3771_v27  ;;  %v4650_v31 = vpop.permute.xlu1 %4649  ;;  %8266 = vmatmul.msk.bf16.gmra.mxu3 %vm1283_vm13, %v8790_v55  ;;  %109 = vst [vmem:[#allocation2 + $0xc8] sm:$0x1] %v108_v40  ;;  %v11290_v44 = vor.u32 %v4345_v24, %v11285_v37  ;;  %v4326_v62 = vshrl.u32 %v3964_v26, 16 }
 0x31e   :  { %v4442_v2 = vsel %vm9263_vm3, %v10694_v61, %v4441_v46  ;;  %v207_v61 = vsel %vm9150_vm9, 0, %v206_v18  ;;  %4058 = vrot.lane.b32.xlu1 %v11265_v42, %s8907_s11  ;;  %v4350_v30 = vshrl.u32 %v11265_v42, 16  ;;  %v4353_v5 = vshll.u32 %v11265_v42, 16  ;;  %4052 = vrot.lane.b32.xlu2 %v3964_v26, %s8907_s11  ;;  %v8109_v42 = vld [vmem:[%s12433_s0 + $0x1f8] sm:$0xff] }
 0x31f   :  { %4443 = vst [vmem:[#allocation2 + $0xc0] sm:$0xf] %v4442_v2  ;;  %v3867_v45 = vmax.f32 %v3835_v53, 0.0  ;;  %v4604_v9 = vor.u32 %v4603_v48, %v4602_v33  ;;  %v11305_v50 = vrot.slane %v4326_v62, 7  ;;  %v8808_v53 = vld [vmem:[#allocation2 + $0xb0] sm:$0xff]  ;;  %v4593_v18 = vrot.slane %v4326_v62, 4 }
 0x320   :  { %4745 = vst.msk [vmem:[#allocation2 + $0xc0] sm:$0xf] %vm1062_vm4, %v4650_v31  ;;  %v4652_v35 = vpop.permute.xlu0 %4651  ;;  %v4029_v3 = vpop.permute.xlu2 %4028  ;;  %v4352_v4 = vrot.slane %v4350_v30, 7  ;;  %v11300_v39 = vrot.slane %v4353_v5, 5  ;;  %v8791_v31 = vld [vmem:[#allocation2 + $0xa8] sm:$0xff] }
 0x321   :  { %208 = vst [vmem:[#allocation2 + $0xcc] sm:$0x8] %v207_v61  ;;  %v4746_v63 = vld [vmem:[#allocation2 + $0xc4] sm:$0xf]  ;;  %v4605_v27 = vrot.slane %v4604_v9, 4  ;;  %v11315_v58 = vor.u32 %v4329_v16, %v11305_v50 }
 0x322   :  { %3900 = vst.msk [vmem:[%s12440_s7 + $0xc8] sm:$0xff] %vm3874_vm0, %v3867_v45  ;;  %v4747_v43 = vsel %vm9316_vm6, %v4652_v35, %v4746_v63  ;;  %v11298_v32 = vor.u32 %v4353_v5, %v4352_v4  ;;  %v4594_v45 = vrot.slane %v4329_v16, 5  ;;  %v8106_v61 = vld [vmem:[%s12433_s0 + $0x1e0] sm:$0xff]  ;;  %v4252_v35 = vrot.slane %v10797_v47, 4 }
 0x323   :  { %4748 = vst [vmem:[#allocation2 + $0xc4] sm:$0xf] %v4747_v43  ;;  %v4607_v46 = vsel %vm9011_vm2, %v4605_v27, %v11300_v39  ;;  %v3968_v40 = vpack.c.bf16 %v8106_v61, %v8106_v61  ;;  %v111_v63 = vsel %vm9106_vm5, 0, %v110_v28  ;;  %v8825_v24 = vld [vmem:[#allocation2 + $0xb8] sm:$0xff] }
 0x324   :  { %4113 = vst.msk [vmem:[#allocation2 + $0xc8] sm:$0xf] %vm428_vm14, %v4029_v3  ;;  %8352 = vmatmul.msk.bf16.gmra.mxu0 %vm1283_vm13, %v8824_v57  ;;  %4681 = vrot.lane.b32.xlu0 %v4607_v46, %s8908_s12  ;;  %v210_v57 = vsel %vm9150_vm9, 0, %v209_v56  ;;  %v4260_v47 = vsel %vm9168_vm11, %v4252_v35, %v10884_v25  ;;  %v4608_v56 = vrot.slane %v4350_v30, 4  ;;  %v8792_v35 = vld [vmem:[#allocation2 + $0xb0] sm:$0xff]  ;;  %v3971_v30 = vpack.c.bf16 %v8109_v42, %v8109_v42 }
 0x325   :  { %211 = vst [vmem:[#allocation2 + $0xd4] sm:$0x8] %v210_v57  ;;  %v4358_v33 = vshrl.u32 %v3968_v40, 16  ;;  %v4361_v48 = vshll.u32 %v3968_v40, 16 }
 0x326   :  { %4060 = vrot.lane.b32.xlu1 %v3968_v40, %s8907_s11  ;;  %112 = vst [vmem:[#allocation2 + $0xd0] sm:$0x1] %v111_v63  ;;  %v4609_v63 = vor.u32 %v4608_v56, %v11300_v39  ;;  %v113_v39 = vld [vmem:[#allocation2 + $0xd8] sm:$0x1]  ;;  %v116_v56 = vld [vmem:[#allocation2 + $0xe0] sm:$0x1] }
 0x327   :  { %v4656_v55 = vpop.permute.xlu1 %4655  ;;  %v11344_v26 = vrot.slane %v4358_v33, 7  ;;  %v4611_v27 = vrot.slane %v4358_v33, 4  ;;  %v4268_v33 = vrot.slane %v10911_v36, 4 }
 0x328   :  { %v4031_v7 = vpop.permute.xlu0 %4030 }
 0x329   :  { %4114 = vst.msk [vmem:[#allocation2 + $0xcc] sm:$0xf] %vm428_vm14, %v4031_v7  ;;  %v4654_v52 = vpop.permute.xlu2 %4653 }
 0x32a   :  { %4448 = vst.msk [vmem:[#allocation2 + $0xcc] sm:$0xf] %vm751_vm15, %v4244_v15  ;;  %v11334_v15 = vpack.c.bf16 %v8107_v13, %v8107_v13 }
 0x32b   :  { %v4445_v2 = vld [vmem:[#allocation2 + $0xc8] sm:$0xf] }
 0x32c   :  { %v4446_v0 = vsel %vm9263_vm3, %v10880_v22, %v4445_v2  ;;  %8183 = vmatmul.msk.bf16.gmra.mxu2 %vm1283_vm13, %v8808_v53  ;;  %v4595_v22 = vor.u32 %v4594_v45, %v4593_v18  ;;  %v4366_v5 = vshrl.u32 %v11334_v15, 16  ;;  %v4369_v25 = vshll.u32 %v11334_v15, 16 }
 0x32d   :  { %4447 = vst [vmem:[#allocation2 + $0xc8] sm:$0xf] %v4446_v0  ;;  %8267 = vmatmul.msk.bf16.gmra.mxu3 %vm1283_vm13, %v8791_v31 }
 0x32e   :  { %4749 = vst.msk [vmem:[#allocation2 + $0xc8] sm:$0xf] %vm1062_vm4, %v4654_v52  ;;  %v4596_v43 = vrot.slane %v4595_v22, 4  ;;  %v4615_v62 = vrot.slane %v4369_v25, 5  ;;  %v4617_v16 = vrot.slane %v4366_v5, 4  ;;  %v4368_v46 = vrot.slane %v4366_v5, 7 }
 0x32f   :  { %v4035_v9 = vpop.permute.xlu1 %4034  ;;  %v8809_v52 = vld [vmem:[#allocation2 + $0xb8] sm:$0xff]  ;;  %v4385_v5 = vshll.u32 %v3971_v30, 16 }
 0x330   :  { %v4598_v4 = vsel %vm9011_vm2, %v4596_v43, %v11224_v17  ;;  %v4033_v7 = vpop.permute.xlu0 %4032  ;;  %4116 = vst.msk [vmem:[#allocation2 + $0xd4] sm:$0xf] %vm428_vm14, %v4035_v9  ;;  %v11350_v17 = vor.u32 %v4361_v48, %v11344_v26  ;;  %v4618_v53 = vor.u32 %v4617_v16, %v4615_v62  ;;  %v11354_v31 = vor.u32 %v4369_v25, %v4368_v46  ;;  %v212_v43 = vld [vmem:[#allocation2 + $0xdc] sm:$0x8]  ;;  %v3399_v16 = vpop.f32.mrf.mxu0 }
 0x331   :  { %v4750_v3 = vld [vmem:[#allocation2 + $0xcc] sm:$0xf]  ;;  %4677 = vrot.lane.b32.xlu2 %v4598_v4, %s8908_s12  ;;  %4452 = vst.msk [vmem:[#allocation2 + $0xd4] sm:$0xf] %vm751_vm15, %v4260_v47  ;;  %v8826_v47 = vld [vmem:[#allocation2 + $0xc0] sm:$0xff]  ;;  %v4276_v25 = vsel %vm9168_vm11, %v4268_v33, %v10967_v11  ;;  %v8793_v11 = vld [vmem:[#allocation2 + $0xb8] sm:$0xff] }
 0x332   :  { %v4751_v34 = vsel %vm9316_vm6, %v4656_v55, %v4750_v3  ;;  %v4612_v55 = vrot.slane %v4361_v48, 5  ;;  %4115 = vst.msk [vmem:[#allocation2 + $0xd0] sm:$0xf] %vm428_vm14, %v4033_v7  ;;  %v4619_v0 = vrot.slane %v4618_v53, 4  ;;  %v213_v3 = vsel %vm9150_vm9, 0, %v212_v43 }
 0x333   :  { %4752 = vst [vmem:[#allocation2 + $0xcc] sm:$0xf] %v4751_v34  ;;  %v4382_v48 = vshrl.u32 %v3971_v30, 16  ;;  %v11386_v7 = vrot.slane %v4385_v5, 5 }
 0x334   :  { %8353 = vmatmul.msk.bf16.gmra.mxu0 %vm1283_vm13, %v8825_v24  ;;  %v4613_v2 = vor.u32 %v4612_v55, %v4611_v27  ;;  %4687 = vrot.lane.b32.xlu0 %v4619_v0, %s8908_s12  ;;  %v4610_v24 = vrot.slane %v4609_v63, 4  ;;  %214 = vst [vmem:[#allocation2 + $0xdc] sm:$0x8] %v213_v3  ;;  %v8810_v27 = vld [vmem:[#allocation2 + $0xc0] sm:$0xff] }
 0x335   :  { %v4626_v9 = vrot.slane %v4382_v48, 4 }
 0x336   :  { %v4614_v18 = vrot.slane %v4613_v2, 4 }
 0x337   :  { %v4627_v36 = vor.u32 %v4626_v9, %v11386_v7 }
 0x338   :  { %v4616_v45 = vsel %vm9011_vm2, %v4614_v18, %v4615_v62  ;;  %v4754_v28 = vld [vmem:[#allocation2 + $0xd4] sm:$0xf]  ;;  %v4384_v18 = vrot.slane %v4382_v48, 7 }
 0x339   :  { %4685 = vrot.lane.b32.xlu1 %v4616_v45, %s8908_s12  ;;  %v4449_v22 = vld [vmem:[#allocation2 + $0xd0] sm:$0xf]  ;;  %4683 = vrot.lane.b32.xlu2 %v4610_v24, %s8908_s12  ;;  %v4628_v62 = vrot.slane %v4627_v36, 4  ;;  %v11428_v36 = vld [vmem:[%s12438_s5] ss:$0 sm:$0xff] }
 0x33a   :  { %v4660_v61 = vpop.permute.xlu2 %4659  ;;  %v4450_v13 = vsel %vm9263_vm3, %v10813_v23, %v4449_v22  ;;  %v114_v23 = vsel %vm9106_vm5, 0, %v113_v39  ;;  %v117_v22 = vsel %vm9106_vm5, 0, %v116_v56  ;;  %v8811_v39 = vld [vmem:[#allocation2 + $0xc8] sm:$0xff] }
 0x33b   :  { %v4755_v40 = vsel %vm9316_vm6, %v4660_v61, %v4754_v28  ;;  %4451 = vst [vmem:[#allocation2 + $0xd0] sm:$0xf] %v4450_v13  ;;  %v11402_v61 = vor.u32 %v4385_v5, %v4384_v18  ;;  %v4284_v28 = vrot.slane %v11113_v10, 4  ;;  %v8108_v10 = vld [vmem:[%s12433_s0 + $0x1f0] sm:$0xff]  ;;  %v119_v56 = vld [vmem:[#allocation2 + $0xe8] sm:$0x1] }
 0x33c   :  { %8184 = vmatmul.msk.bf16.gmra.mxu2 %vm1283_vm13, %v8809_v52  ;;  %v4658_v57 = vpop.permute.xlu0 %4657  ;;  %4756 = vst [vmem:[#allocation2 + $0xd4] sm:$0xf] %v4755_v40  ;;  %4066 = vrot.lane.b32.xlu0 %v3971_v30, %s8907_s11  ;;  %v8827_v52 = vld [vmem:[#allocation2 + $0xc8] sm:$0xff]  ;;  %v3970_v42 = vpack.c.bf16 %v8108_v10, %v8108_v10 }
 0x33d   :  { %8268 = vmatmul.msk.bf16.gmra.mxu3 %vm1283_vm13, %v8792_v35  ;;  %4753 = vst.msk [vmem:[#allocation2 + $0xd0] sm:$0xf] %vm1062_vm4, %v4658_v57  ;;  %v3401_v57 = vpop.f32.mrf.mxu0  ;;  %v4292_v63 = vsel %vm9168_vm11, %v4284_v28, %v11034_v54 }
 0x33e   :  { %115 = vst [vmem:[#allocation2 + $0xd8] sm:$0x1] %v114_v23  ;;  %v4037_v34 = vpop.permute.xlu1 %4036  ;;  %v4374_v24 = vshrl.u32 %v3970_v42, 16  ;;  %v4377_v54 = vshll.u32 %v3970_v42, 16  ;;  %v8794_v23 = vld [vmem:[#allocation2 + $0xc0] sm:$0xff] }
 0x33f   :  { %4117 = vst.msk [vmem:[#allocation2 + $0xd8] sm:$0xf] %vm428_vm14, %v4037_v34 }
 0x340   :  { %118 = vst [vmem:[#allocation2 + $0xe0] sm:$0x1] %v117_v22  ;;  %v4620_v48 = vrot.slane %v4374_v24, 4  ;;  %v4621_v34 = vrot.slane %v4377_v54, 5 }
 0x341   :  { %4062 = vrot.lane.b32.xlu2 %v11334_v15, %s8907_s11  ;;  %4691 = vrot.lane.b32.xlu1 %v4628_v62, %s8908_s12  ;;  %v3174_v15 = vpop.f32.mrf.mxu3 }
 0x342   :  { %v4039_v4 = vpop.permute.xlu2 %4038  ;;  %v4622_v9 = vor.u32 %v4621_v34, %v4620_v48 }
 0x343   :  { %4118 = vst.msk [vmem:[#allocation2 + $0xdc] sm:$0xf] %vm428_vm14, %v4039_v4 }
 0x344   :  { %8354 = vmatmul.msk.bf16.gmra.mxu0 %vm1283_vm13, %v8826_v47  ;;  %4456 = vst.msk [vmem:[#allocation2 + $0xdc] sm:$0xf] %vm751_vm15, %v4276_v25  ;;  %v3400_v47 = vadd.f32 %v3399_v16, %v3174_v15  ;;  %v11431_v16 = vrot.slane %v4374_v24, 7  ;;  %v8828_v15 = vld [vmem:[#allocation2 + $0xd0] sm:$0xff] }
 0x345   :  { %v3404_v25 = vpop.f32.mrf.mxu0 }
 0x346   :  { %v4453_v55 = vld [vmem:[#allocation2 + $0xd8] sm:$0xf]  ;;  %v11446_v18 = vor.u32 %v4377_v54, %v11431_v16 }
 0x347   :  { %v4454_v46 = vsel %vm9263_vm3, %v10924_v29, %v4453_v55  ;;  %v215_v29 = vld [vmem:[#allocation2 + $0xe4] sm:$0x8] }
 0x348   :  { %4455 = vst [vmem:[#allocation2 + $0xd8] sm:$0xf] %v4454_v46  ;;  %v216_v35 = vsel %vm9150_vm9, 0, %v215_v29  ;;  %v4623_v46 = vrot.slane %v4622_v9, 4  ;;  %v4300_v29 = vrot.slane %v11064_v12, 4 }
 0x349   :  { %217 = vst [vmem:[#allocation2 + $0xe4] sm:$0x8] %v216_v35  ;;  %v3176_v30 = vpop.f32.mrf.mxu3  ;;  %4064 = vrot.lane.b32.xlu2 %v3970_v42, %s8907_s11 }
 0x34a   :  { %v4625_v35 = vsel %vm9011_vm2, %v4623_v46, %v11386_v7  ;;  %v3402_v28 = vadd.f32 %v3401_v57, %v3176_v30 }
 0x34b   :  { %v4664_v53 = vpop.permute.xlu0 %4663  ;;  %v4758_v2 = vld [vmem:[#allocation2 + $0xdc] sm:$0xf]  ;;  %v4662_v0 = vpop.permute.xlu1 %4661 }
 0x34c   :  { %8185 = vmatmul.msk.bf16.gmra.mxu2 %vm1283_vm13, %v8810_v27  ;;  %v4759_v45 = vsel %vm9316_vm6, %v4664_v53, %v4758_v2  ;;  %4757 = vst.msk [vmem:[#allocation2 + $0xd8] sm:$0xf] %vm1062_vm4, %v4662_v0  ;;  %v11442_v53 = vld [vmem:[%s12439_s6] ss:$0 sm:$0xff] }
 0x34d   :  { %8269 = vmatmul.msk.bf16.gmra.mxu3 %vm1283_vm13, %v8793_v11  ;;  %4760 = vst [vmem:[#allocation2 + $0xdc] sm:$0xf] %v4759_v45  ;;  %v4041_v40 = vpop.permute.xlu2 %4040  ;;  %v218_v45 = vld [vmem:[#allocation2 + $0xec] sm:$0x8]  ;;  %v3406_v30 = vpop.f32.mrf.mxu0 }
 0x34e   :  { %4119 = vst.msk [vmem:[#allocation2 + $0xe0] sm:$0xf] %vm428_vm14, %v4041_v40  ;;  %v120_v40 = vsel %vm9106_vm5, 0, %v119_v56 }
 0x34f   :  { %121 = vst [vmem:[#allocation2 + $0xe8] sm:$0x1] %v120_v40 }
 0x351   :  { %4689 = vrot.lane.b32.xlu2 %v4625_v35, %s8908_s12 }
 0x353   :  { %v4043_v13 = vpop.permute.xlu0 %4042 }
 0x354   :  { %8355 = vmatmul.msk.bf16.gmra.mxu0 %vm1283_vm13, %v8827_v52  ;;  %4120 = vst.msk [vmem:[#allocation2 + $0xe4] sm:$0xf] %vm428_vm14, %v4043_v13  ;;  %v219_v52 = vsel %vm9150_vm9, 0, %v218_v45  ;;  %v4308_v13 = vsel %vm9168_vm11, %v4300_v29, %v11130_v41  ;;  %v3805_v41 = vld [vmem:[%s12433_s0 + $0xd8] sm:$0xff]  ;;  %v4316_v29 = vrot.slane %v11137_v59, 4 }
 0x355   :  { %4460 = vst.msk [vmem:[#allocation2 + $0xe4] sm:$0xf] %vm751_vm15, %v4292_v63  ;;  %v4457_v3 = vld [vmem:[#allocation2 + $0xe0] sm:$0xf] }
 0x356   :  { %v4458_v5 = vsel %vm9263_vm3, %v11126_v6, %v4457_v3  ;;  %v3804_v6 = vld [vmem:[%s12433_s0 + $0xd0] sm:$0xff]  ;;  %220 = vst [vmem:[#allocation2 + $0xec] sm:$0x8] %v219_v52  ;;  %v8795_v3 = vld [vmem:[#allocation2 + $0xc8] sm:$0xff] }
 0x357   :  { %4459 = vst [vmem:[#allocation2 + $0xe0] sm:$0xf] %v4458_v5 }
 0x358   :  { %v4668_v33 = vpop.permute.xlu1 %4667 }
 0x35c   :  { %v3659_v43 = vpop.f32.mrf.mxu1  ;;  %8186 = vmatmul.msk.bf16.gmra.mxu2 %vm1283_vm13, %v8811_v39  ;;  %v4762_v27 = vld [vmem:[#allocation2 + $0xe4] sm:$0xf]  ;;  %v4666_v55 = vpop.permute.xlu2 %4665 }
 0x35d   :  { %v3700_v4 = vadd.f32 %v3659_v43, %v3400_v47  ;;  %8270 = vmatmul.msk.bf16.gmra.mxu3 %vm1283_vm13, %v8794_v23  ;;  %v4763_v11 = vsel %vm9316_vm6, %v4668_v33, %v4762_v27  ;;  %4761 = vst.msk [vmem:[#allocation2 + $0xe0] sm:$0xf] %vm1062_vm4, %v4666_v55  ;;  %v8812_v43 = vld [vmem:[#allocation2 + $0xd0] sm:$0xff]  ;;  %v3409_v27 = vpop.f32.mrf.mxu0  ;;  %v3806_v55 = vld [vmem:[%s12433_s0 + $0xe0] sm:$0xff] }
 0x35e   :  { %4764 = vst [vmem:[#allocation2 + $0xe4] sm:$0xf] %v4763_v11 }
 0x35f   :  { %v3736_v62 = vmul.f32 %v11428_v36, %v3700_v4 }
 0x360   :  { %v3179_v0 = vpop.f32.mrf.mxu3  ;;  %v4045_v7 = vpop.permute.xlu0 %4044 }
 0x361   :  { %v3772_v2 = vadd.f32 %v11442_v53, %v3736_v62  ;;  %v4047_v10 = vpop.permute.xlu1 %4046  ;;  %4121 = vst.msk [vmem:[#allocation2 + $0xe8] sm:$0xf] %vm428_vm14, %v4045_v7  ;;  %v3405_v47 = vadd.f32 %v3404_v25, %v3179_v0  ;;  %v122_v0 = vld [vmem:[#allocation2 + $0xf0] sm:$0x1] }
 0x362   :  { %4122 = vst.msk [vmem:[#allocation2 + $0xec] sm:$0xf] %vm428_vm14, %v4047_v10  ;;  %v123_v45 = vsel %vm9106_vm5, 0, %v122_v0  ;;  %v3807_v10 = vld [vmem:[%s12433_s0 + $0xe8] sm:$0xff] }
 0x363   :  { %v3836_v22 = vadd.f32 %v3804_v6, %v3772_v2  ;;  %4464 = vst.msk [vmem:[#allocation2 + $0xec] sm:$0xf] %vm751_vm15, %v4308_v13  ;;  %v8829_v6 = vld [vmem:[#allocation2 + $0xd8] sm:$0xff] }
 0x364   :  { %v3661_v63 = vpop.f32.mrf.mxu1  ;;  %8356 = vmatmul.msk.bf16.gmra.mxu0 %vm1283_vm13, %v8828_v15  ;;  %v221_v15 = vld [vmem:[#allocation2 + $0xf4] sm:$0x8]  ;;  %124 = vst [vmem:[#allocation2 + $0xf0] sm:$0x1] %v123_v45 }
 0x365   :  { %v3868_v12 = vmax.f32 %v3836_v22, 0.0  ;;  %v3701_v42 = vadd.f32 %v3661_v63, %v3402_v28  ;;  %v222_v52 = vsel %vm9150_vm9, 0, %v221_v15  ;;  %v4324_v22 = vsel %vm9168_vm11, %v4316_v29, %v11157_v14 }
 0x366   :  { %223 = vst [vmem:[#allocation2 + $0xf4] sm:$0x8] %v222_v52  ;;  %v4332_v15 = vrot.slane %v11305_v50, 4 }
 0x367   :  { %3901 = vst.msk [vmem:[%s12440_s7 + $0xd0] sm:$0xff] %vm3874_vm0, %v3868_v12  ;;  %v3737_v57 = vmul.f32 %v11428_v36, %v3701_v42  ;;  %v3411_v42 = vpop.f32.mrf.mxu0 }
 0x368   :  { %v3181_v54 = vpop.f32.mrf.mxu3  ;;  %v4672_v33 = vpop.permute.xlu2 %4671  ;;  %v4461_v9 = vld [vmem:[#allocation2 + $0xe8] sm:$0xf] }
 0x369   :  { %v3773_v24 = vadd.f32 %v11442_v53, %v3737_v57  ;;  %v4462_v11 = vsel %vm9263_vm3, %v11082_v1, %v4461_v9  ;;  %v3407_v56 = vadd.f32 %v3406_v30, %v3181_v54  ;;  %v4049_v1 = vpop.permute.xlu1 %4048  ;;  %v8813_v30 = vld [vmem:[#allocation2 + $0xd8] sm:$0xff]  ;;  %v8796_v54 = vld [vmem:[#allocation2 + $0xd0] sm:$0xff] }
 0x36a   :  { %v4766_v4 = vld [vmem:[#allocation2 + $0xec] sm:$0xf]  ;;  %4463 = vst [vmem:[#allocation2 + $0xe8] sm:$0xf] %v4462_v11  ;;  %v125_v11 = vld [vmem:[#allocation2 + $0xf8] sm:$0x1] }
 0x36b   :  { %v3837_v39 = vadd.f32 %v3805_v41, %v3773_v24  ;;  %v4767_v5 = vsel %vm9316_vm6, %v4672_v33, %v4766_v4  ;;  %4123 = vst.msk [vmem:[#allocation2 + $0xf0] sm:$0xf] %vm428_vm14, %v4049_v1  ;;  %v126_v45 = vsel %vm9106_vm5, 0, %v125_v11 }
 0x36c   :  { %v3664_v23 = vpop.f32.mrf.mxu1  ;;  %8187 = vmatmul.msk.bf16.gmra.mxu2 %vm1283_vm13, %v8812_v43  ;;  %v4670_v62 = vpop.permute.xlu0 %4669  ;;  %4768 = vst [vmem:[#allocation2 + $0xec] sm:$0xf] %v4767_v5 }
 0x36d   :  { %v3869_v48 = vmax.f32 %v3837_v39, 0.0  ;;  %v3702_v34 = vadd.f32 %v3664_v23, %v3405_v47  ;;  %8271 = vmatmul.msk.bf16.gmra.mxu3 %vm1283_vm13, %v8795_v3  ;;  %4765 = vst.msk [vmem:[#allocation2 + $0xe8] sm:$0xf] %vm1062_vm4, %v4670_v62  ;;  %v5600_v39 = vld [vmem:[%s12435_s2] sm:$0x1] }
 0x36e   :  { %v11530_v5 = vperm.slane %v5600_v39, 0  ;;  %127 = vst [vmem:[#allocation2 + $0xf8] sm:$0x1] %v126_v45 }
 0x36f   :  { %3902 = vst.msk [vmem:[%s12440_s7 + $0xd8] sm:$0xff] %vm3874_vm0, %v3869_v48  ;;  %v3738_v25 = vmul.f32 %v11428_v36, %v3702_v34  ;;  %v5636_v48 = vld [vmem:[%s12436_s3] sm:$0x1]  ;;  %v3808_v34 = vld [vmem:[%s12433_s0 + $0xf0] sm:$0xff] }
 0x370   :  { %v3184_v2 = vpop.f32.mrf.mxu3  ;;  %v4051_v40 = vpop.permute.xlu2 %4050 }
 0x371   :  { %v3774_v46 = vadd.f32 %v11442_v53, %v3738_v25  ;;  %4124 = vst.msk [vmem:[#allocation2 + $0xf4] sm:$0xf] %vm428_vm14, %v4051_v40  ;;  %v3410_v7 = vadd.f32 %v3409_v27, %v3184_v2  ;;  %v8830_v25 = vld [vmem:[#allocation2 + $0xe0] sm:$0xff] }
 0x372   :  { %4468 = vst.msk [vmem:[#allocation2 + $0xf4] sm:$0xf] %vm751_vm15, %v4324_v22  ;;  %v4465_v41 = vld [vmem:[#allocation2 + $0xf0] sm:$0xf]  ;;  %v4340_v22 = vsel %vm9168_vm11, %v4332_v15, %v11233_v19  ;;  %v3809_v19 = vld [vmem:[%s12433_s0 + $0xf8] sm:$0xff] }
 0x373   :  { %v3838_v35 = vadd.f32 %v3806_v55, %v3774_v46  ;;  %v4466_v47 = vsel %vm9263_vm3, %v11152_v60, %v4465_v41 }
 0x374   :  { %v3666_v28 = vpop.f32.mrf.mxu1  ;;  %8357 = vmatmul.msk.bf16.gmra.mxu0 %vm1283_vm13, %v8829_v6  ;;  %4467 = vst [vmem:[#allocation2 + $0xf0] sm:$0xf] %v4466_v47  ;;  %v224_v6 = vld [vmem:[#allocation2 + $0xfc] sm:$0x8] }
 0x375   :  { %v3870_v63 = vmax.f32 %v3838_v35, 0.0  ;;  %v3703_v13 = vadd.f32 %v3666_v28, %v3407_v56  ;;  %v225_v0 = vsel %vm9150_vm9, 0, %v224_v6  ;;  %v11541_v28 = vperm.slane %v5636_v48, 0  ;;  %v8797_v47 = vld [vmem:[#allocation2 + $0xd8] sm:$0xff] }
 0x376   :  { %226 = vst [vmem:[#allocation2 + $0xfc] sm:$0x8] %v225_v0 }
 0x377   :  { %3903 = vst.msk [vmem:[%s12440_s7 + $0xe0] sm:$0xff] %vm3874_vm0, %v3870_v63  ;;  %v3739_v59 = vmul.f32 %v11428_v36, %v3703_v13 }
 0x378   :  { %v3186_v12 = vpop.f32.mrf.mxu3  ;;  %v4053_v56 = vpop.permute.xlu2 %4052 }
 0x379   :  { %v3775_v14 = vadd.f32 %v11442_v53, %v3739_v59  ;;  %v4770_v60 = vld [vmem:[#allocation2 + $0xf4] sm:$0xf]  ;;  %v3412_v52 = vadd.f32 %v3411_v42, %v3186_v12  ;;  %4125 = vst.msk [vmem:[#allocation2 + $0xf8] sm:$0xf] %vm428_vm14, %v4053_v56 }
 0x37b   :  { %v3839_v57 = vadd.f32 %v3807_v10, %v3775_v14 }
 0x37c   :  { %v3669_v24 = vpop.f32.mrf.mxu1  ;;  %8188 = vmatmul.msk.bf16.gmra.mxu2 %vm1283_vm13, %v8813_v30 }
 0x37d   :  { %v3871_v43 = vmax.f32 %v3839_v57, 0.0  ;;  %v3704_v23 = vadd.f32 %v3669_v24, %v3410_v7  ;;  %8272 = vmatmul.msk.bf16.gmra.mxu3 %vm1283_vm13, %v8796_v54  ;;  %v4676_v33 = vpop.permute.xlu0 %4675 }
 0x37e   :  { %v4771_v9 = vsel %vm9316_vm6, %v4676_v33, %v4770_v60  ;;  %v4674_v62 = vpop.permute.xlu1 %4673 }
 0x37f   :  { %3904 = vst.msk [vmem:[%s12440_s7 + $0xe8] sm:$0xff] %vm3874_vm0, %v3871_v43  ;;  %v3740_v3 = vmul.f32 %v11428_v36, %v3704_v23  ;;  %v5003_v4 = vpop.f32.mrf.mxu2 }
 0x380   :  { %v5228_v55 = vpop.f32.mrf.mxu3  ;;  %4772 = vst [vmem:[#allocation2 + $0xf4] sm:$0xf] %v4771_v9  ;;  %v4469_v39 = vld [vmem:[#allocation2 + $0xf8] sm:$0xf]  ;;  %v227_v9 = vld [vmem:[#allocation2 + $0x104] sm:$0x8] }
 0x381   :  { %v3776_v27 = vadd.f32 %v11442_v53, %v3740_v3  ;;  %v5229_v46 = vadd.f32 %v5228_v55, %v5003_v4  ;;  %v5488_v2 = vpop.f32.mrf.mxu0  ;;  %4769 = vst.msk [vmem:[#allocation2 + $0xf0] sm:$0xf] %vm1062_vm4, %v4674_v62  ;;  %v8831_v4 = vld [vmem:[#allocation2 + $0xe8] sm:$0xff]  ;;  %v128_v62 = vld [vmem:[#allocation2 + $0x100] sm:$0x1]  ;;  %v228_v11 = vsel %vm9150_vm9, 0, %v227_v9 }
 0x382   :  { %229 = vst [vmem:[#allocation2 + $0x104] sm:$0x8] %v228_v11  ;;  %v129_v45 = vsel %vm9106_vm5, 0, %v128_v62  ;;  %v230_v9 = vld [vmem:[#allocation2 + $0x10c] sm:$0x8] }
 0x383   :  { %v3840_v29 = vadd.f32 %v3808_v34, %v3776_v27  ;;  %v5568_v1 = vadd.f32 %v5488_v2, %v5229_v46  ;;  %v4348_v46 = vrot.slane %v11285_v37, 4  ;;  %130 = vst [vmem:[#allocation2 + $0x100] sm:$0x1] %v129_v45 }
 0x384   :  { %v3671_v35 = vpop.f32.mrf.mxu1  ;;  %8358 = vmatmul.msk.bf16.gmra.mxu0 %vm1283_vm13, %v8830_v25 }
 0x385   :  { %v3872_v40 = vmax.f32 %v3840_v29, 0.0  ;;  %v3705_v63 = vadd.f32 %v3671_v35, %v3412_v52  ;;  %v5604_v50 = vmul.f32 %v11530_v5, %v5568_v1  ;;  %v4055_v59 = vpop.permute.xlu0 %4054  ;;  %v4356_v52 = vsel %vm9168_vm11, %v4348_v46, %v11298_v32 }
 0x386   :  { %4126 = vst.msk [vmem:[#allocation2 + $0xfc] sm:$0xf] %vm428_vm14, %v4055_v59 }
 0x387   :  { %3905 = vst.msk [vmem:[%s12440_s7 + $0xf0] sm:$0xff] %vm3874_vm0, %v3872_v40  ;;  %v3741_v13 = vmul.f32 %v11428_v36, %v3705_v63  ;;  %v5640_v10 = vadd.f32 %v11541_v28, %v5604_v50  ;;  %v5005_v14 = vpop.f32.mrf.mxu2  ;;  %v8814_v36 = vld [vmem:[#allocation2 + $0xe0] sm:$0xff] }
 0x388   :  { %v5230_v42 = vpop.f32.mrf.mxu3  ;;  %4472 = vst.msk [vmem:[#allocation2 + $0xfc] sm:$0xf] %vm751_vm15, %v4340_v22  ;;  %v4680_v43 = vpop.permute.xlu1 %4679 }
 0x389   :  { %v3777_v12 = vadd.f32 %v11442_v53, %v3741_v13  ;;  %v5672_v7 = vmax.f32 %v5640_v10, 0.0  ;;  %v5231_v57 = vadd.f32 %v5230_v42, %v5005_v14  ;;  %v5490_v30 = vpop.f32.mrf.mxu0  ;;  %v4470_v53 = vsel %vm9263_vm3, %v11315_v58, %v4469_v39 }
 0x38a   :  { %4471 = vst [vmem:[#allocation2 + $0xf8] sm:$0xf] %v4470_v53 }
 0x38b   :  { %v3841_v41 = vadd.f32 %v3809_v19, %v3777_v12  ;;  %v11561_v24 = vpack.c.bf16 %v5672_v7, %v5672_v7  ;;  %v5569_v54 = vadd.f32 %v5490_v30, %v5231_v57  ;;  %v4678_v3 = vpop.permute.xlu2 %4677  ;;  %v8815_v19 = vld [vmem:[#allocation2 + $0xe8] sm:$0xff]  ;;  %v8798_v57 = vld [vmem:[#allocation2 + $0xe0] sm:$0xff] }
 0x38c   :  { %8189 = vmatmul.msk.bf16.gmra.mxu2 %vm1283_vm13, %v8814_v36  ;;  %4773 = vst.msk [vmem:[#allocation2 + $0xf8] sm:$0xf] %vm1062_vm4, %v4678_v3 }
 0x38d   :  { %v3873_v23 = vmax.f32 %v3841_v41, 0.0  ;;  %v5605_v33 = vmul.f32 %v11530_v5, %v5569_v54  ;;  %8273 = vmatmul.msk.bf16.gmra.mxu3 %vm1283_vm13, %v8797_v47  ;;  %5768 = vrot.lane.b32.xlu2 %v11561_v24, %s8907_s11  ;;  %v4057_v29 = vpop.permute.xlu0 %4056 }
 0x38e   :  { %4127 = vst.msk [vmem:[#allocation2 + $0x100] sm:$0xf] %vm428_vm14, %v4057_v29 }
 0x38f   :  { %3906 = vst.msk [vmem:[%s12440_s7 + $0xf8] sm:$0xff] %vm3874_vm0, %v3873_v23  ;;  %v5641_v60 = vadd.f32 %v11541_v28, %v5605_v33  ;;  %v5008_v48 = vpop.f32.mrf.mxu2  ;;  %v4774_v34 = vld [vmem:[#allocation2 + $0xfc] sm:$0xf] }
 0x390   :  { %v5233_v58 = vpop.f32.mrf.mxu3  ;;  %v4775_v25 = vsel %vm9316_vm6, %v4680_v43, %v4774_v34  ;;  %v4059_v15 = vpop.permute.xlu1 %4058 }
 0x391   :  { %v5673_v27 = vmax.f32 %v5641_v60, 0.0  ;;  %v5234_v55 = vadd.f32 %v5233_v58, %v5008_v48  ;;  %v5493_v6 = vpop.f32.mrf.mxu0  ;;  %4776 = vst [vmem:[#allocation2 + $0xfc] sm:$0xf] %v4775_v25  ;;  %v8832_v58 = vld [vmem:[#allocation2 + $0xf0] sm:$0xff]  ;;  %v131_v25 = vld [vmem:[#allocation2 + $0x108] sm:$0x1] }
 0x392   :  { %4128 = vst.msk [vmem:[#allocation2 + $0x104] sm:$0xf] %vm428_vm14, %v4059_v15  ;;  %v132_v46 = vsel %vm9106_vm5, 0, %v131_v25 }
 0x393   :  { %v5705_v2 = vpack.c.bf16 %v5673_v27, %v5673_v27  ;;  %v5570_v0 = vadd.f32 %v5493_v6, %v5234_v55  ;;  %4476 = vst.msk [vmem:[#allocation2 + $0x104] sm:$0xf] %vm751_vm15, %v4356_v52  ;;  %v4684_v12 = vpop.permute.xlu2 %4683 }
 0x394   :  { %8359 = vmatmul.msk.bf16.gmra.mxu0 %vm1283_vm13, %v8831_v4  ;;  %133 = vst [vmem:[#allocation2 + $0x108] sm:$0x1] %v132_v46 }
 0x395   :  { %v5905_v56 = vshrl.u32 %v5705_v2, 16  ;;  %v5606_v35 = vmul.f32 %v11530_v5, %v5570_v0  ;;  %5770 = vrot.lane.b32.xlu0 %v5705_v2, %s8907_s11  ;;  %v5908_v37 = vshll.u32 %v5705_v2, 16  ;;  %v4473_v43 = vld [vmem:[#allocation2 + $0x100] sm:$0xf]  ;;  %v231_v0 = vsel %vm9150_vm9, 0, %v230_v9 }
 0x396   :  { %v4682_v48 = vpop.permute.xlu0 %4681  ;;  %v4474_v4 = vsel %vm9263_vm3, %v11290_v44, %v4473_v43  ;;  %v4364_v44 = vrot.slane %v11344_v26, 4  ;;  %232 = vst [vmem:[#allocation2 + $0x10c] sm:$0x8] %v231_v0 }
 0x397   :  { %v5907_v1 = vrot.slane %v5905_v56, 7  ;;  %v5642_v22 = vadd.f32 %v11541_v28, %v5606_v35  ;;  %v5010_v40 = vpop.f32.mrf.mxu2  ;;  %v11596_v10 = vrot.slane %v5908_v37, 5  ;;  %v6254_v14 = vrot.slane %v5905_v56, 4  ;;  %4475 = vst [vmem:[#allocation2 + $0x100] sm:$0xf] %v4474_v4 }
 0x398   :  { %v5235_v63 = vpop.f32.mrf.mxu3  ;;  %4777 = vst.msk [vmem:[#allocation2 + $0x100] sm:$0xf] %vm1062_vm4, %v4682_v48  ;;  %v4061_v2 = vpop.permute.xlu1 %4060  ;;  %v4372_v56 = vsel %vm9168_vm11, %v4364_v44, %v11354_v31  ;;  %v8833_v0 = vld [vmem:[#allocation2 + $0xf8] sm:$0xff] }
 0x399   :  { %v11594_v32 = vor.u32 %v5908_v37, %v5907_v1  ;;  %v5674_v50 = vmax.f32 %v5642_v22, 0.0  ;;  %v5236_v13 = vadd.f32 %v5235_v63, %v5010_v40  ;;  %v5495_v59 = vpop.f32.mrf.mxu0  ;;  %v6255_v39 = vor.u32 %v6254_v14, %v11596_v10  ;;  %4129 = vst.msk [vmem:[#allocation2 + $0x108] sm:$0xf] %vm428_vm14, %v4061_v2 }
 0x39a   :  { %v4778_v30 = vld [vmem:[#allocation2 + $0x104] sm:$0xf]  ;;  %v5897_v1 = vshrl.u32 %v11561_v24, 16  ;;  %v5900_v22 = vshll.u32 %v11561_v24, 16 }
 0x39b   :  { %v5706_v42 = vpack.c.bf16 %v5674_v50, %v5674_v50  ;;  %v5571_v7 = vadd.f32 %v5495_v59, %v5236_v13  ;;  %v4779_v47 = vsel %vm9316_vm6, %v4684_v12, %v4778_v30  ;;  %v6256_v52 = vrot.slane %v6255_v39, 4  ;;  %v4063_v29 = vpop.permute.xlu2 %4062 }
 0x39c   :  { %8190 = vmatmul.msk.bf16.gmra.mxu2 %vm1283_vm13, %v8815_v19  ;;  %4780 = vst [vmem:[#allocation2 + $0x104] sm:$0xf] %v4779_v47  ;;  %v6249_v47 = vrot.slane %v5900_v22, 5 }
 0x39d   :  { %v5913_v41 = vshrl.u32 %v5706_v42, 16  ;;  %v5916_v36 = vshll.u32 %v5706_v42, 16  ;;  %v5607_v54 = vmul.f32 %v11530_v5, %v5571_v7  ;;  %8274 = vmatmul.msk.bf16.gmra.mxu3 %vm1283_vm13, %v8798_v57  ;;  %5772 = vrot.lane.b32.xlu0 %v5706_v42, %s8907_s11  ;;  %4130 = vst.msk [vmem:[#allocation2 + $0x10c] sm:$0xf] %vm428_vm14, %v4063_v29 }
 0x39e   :  { %4480 = vst.msk [vmem:[#allocation2 + $0x10c] sm:$0xf] %vm751_vm15, %v4372_v56 }
 0x39f   :  { %v5915_v23 = vrot.slane %v5913_v41, 7  ;;  %v5643_v53 = vadd.f32 %v11541_v28, %v5607_v54  ;;  %v5013_v3 = vpop.f32.mrf.mxu2  ;;  %v6257_v33 = vrot.slane %v5913_v41, 4  ;;  %v6258_v60 = vrot.slane %v5916_v36, 5  ;;  %v8816_v41 = vld [vmem:[#allocation2 + $0xf0] sm:$0xff] }
 0x3a0   :  { %v5238_v34 = vpop.f32.mrf.mxu3  ;;  %v6248_v54 = vrot.slane %v5897_v1, 4 }
 0x3a1   :  { %v11609_v62 = vor.u32 %v5916_v36, %v5915_v23  ;;  %v5675_v27 = vmax.f32 %v5643_v53, 0.0  ;;  %v5239_v55 = vadd.f32 %v5238_v34, %v5013_v3  ;;  %v5498_v6 = vpop.f32.mrf.mxu0  ;;  %v6259_v11 = vor.u32 %v6258_v60, %v6257_v33  ;;  %v8799_v53 = vld [vmem:[#allocation2 + $0xe8] sm:$0xff] }
 0x3a2   :  { %v5919_v19 = vrot.slane %v5915_v23, 4  ;;  %v4477_v3 = vld [vmem:[#allocation2 + $0x108] sm:$0xf]  ;;  %v6250_v9 = vor.u32 %v6249_v47, %v6248_v54 }
 0x3a3   :  { %v5707_v15 = vpack.c.bf16 %v5675_v27, %v5675_v27  ;;  %v5572_v45 = vadd.f32 %v5498_v6, %v5239_v55  ;;  %v6260_v40 = vrot.slane %v6259_v11, 4  ;;  %v4478_v48 = vsel %vm9263_vm3, %v11350_v17, %v4477_v3  ;;  %v4065_v8 = vpop.permute.xlu2 %4064  ;;  %v8817_v3 = vld [vmem:[#allocation2 + $0xf8] sm:$0xff] }
 0x3a4   :  { %8360 = vmatmul.msk.bf16.gmra.mxu0 %vm1283_vm13, %v8832_v58  ;;  %4479 = vst [vmem:[#allocation2 + $0x108] sm:$0xf] %v4478_v48 }
 0x3a5   :  { %v5921_v35 = vshrl.u32 %v5707_v15, 16  ;;  %v5608_v37 = vmul.f32 %v11530_v5, %v5572_v45  ;;  %6394 = vrot.lane.b32.xlu0 %v6256_v52, %s8908_s12  ;;  %5774 = vrot.lane.b32.xlu1 %v5707_v15, %s8907_s11  ;;  %v5924_v26 = vshll.u32 %v5707_v15, 16  ;;  %v4782_v27 = vld [vmem:[#allocation2 + $0x10c] sm:$0xf]  ;;  %v233_v15 = vld [vmem:[#allocation2 + $0x114] sm:$0x8] }
 0x3a6   :  { %v4688_v33 = vpop.permute.xlu0 %4687  ;;  %v134_v45 = vld [vmem:[#allocation2 + $0x110] sm:$0x1] }
 0x3a7   :  { %v5923_v63 = vrot.slane %v5921_v35, 7  ;;  %v5644_v50 = vadd.f32 %v11541_v28, %v5608_v37  ;;  %v5015_v31 = vpop.f32.mrf.mxu2  ;;  %v6261_v13 = vrot.slane %v5924_v26, 5  ;;  %v6263_v59 = vrot.slane %v5921_v35, 4 }
 0x3a8   :  { %v5240_v14 = vpop.f32.mrf.mxu3  ;;  %v4783_v44 = vsel %vm9316_vm6, %v4688_v33, %v4782_v27 }
 0x3a9   :  { %v5676_v12 = vmax.f32 %v5644_v50, 0.0  ;;  %v5241_v42 = vadd.f32 %v5240_v14, %v5015_v31  ;;  %v6262_v7 = vsel %vm9011_vm2, %v6260_v40, %v6261_v13  ;;  %v5926_v57 = vor.u32 %v5924_v26, %v5923_v63  ;;  %v5500_v30 = vpop.f32.mrf.mxu0  ;;  %4784 = vst [vmem:[#allocation2 + $0x10c] sm:$0xf] %v4783_v44 }
 0x3aa   :  { %6396 = vrot.lane.b32.xlu2 %v6262_v7, %s8908_s12  ;;  %v6264_v36 = vor.u32 %v6263_v59, %v6261_v13  ;;  %v234_v26 = vsel %vm9150_vm9, 0, %v233_v15  ;;  %v4380_v40 = vrot.slane %v11431_v16, 4  ;;  %v6251_v31 = vrot.slane %v6250_v9, 4 }
 0x3ab   :  { %v5708_v39 = vpack.c.bf16 %v5676_v12, %v5676_v12  ;;  %v11639_v43 = vsel %vm9168_vm11, %v5919_v19, %v5926_v57  ;;  %v5573_v23 = vadd.f32 %v5500_v30, %v5241_v42  ;;  %v4686_v34 = vpop.permute.xlu1 %4685  ;;  %235 = vst [vmem:[#allocation2 + $0x114] sm:$0x8] %v234_v26  ;;  %v135_v59 = vsel %vm9106_vm5, 0, %v134_v45  ;;  %v4690_v45 = vpop.permute.xlu2 %4689 }
 0x3ac   :  { %8191 = vmatmul.msk.bf16.gmra.mxu2 %vm1283_vm13, %v8816_v41  ;;  %v6265_v60 = vrot.slane %v6264_v36, 4  ;;  %4781 = vst.msk [vmem:[#allocation2 + $0x108] sm:$0xf] %vm1062_vm4, %v4686_v34  ;;  %v4388_v19 = vsel %vm9168_vm11, %v4380_v40, %v11402_v61  ;;  %v6253_v12 = vsel %vm9011_vm2, %v6251_v31, %v11596_v10 }
 0x3ad   :  { %v5929_v58 = vshrl.u32 %v5708_v39, 16  ;;  %v5932_v4 = vshll.u32 %v5708_v39, 16  ;;  %v5609_v25 = vmul.f32 %v11530_v5, %v5573_v23  ;;  %8275 = vmatmul.msk.bf16.gmra.mxu3 %vm1283_vm13, %v8799_v53  ;;  %136 = vst [vmem:[#allocation2 + $0x110] sm:$0x1] %v135_v59 }
 0x3ae   :  { %6398 = vrot.lane.b32.xlu1 %v6265_v60, %s8908_s12  ;;  %v4067_v13 = vpop.permute.xlu0 %4066  ;;  %4131 = vst.msk [vmem:[#allocation2 + $0x110] sm:$0xf] %vm428_vm14, %v4065_v8 }
 0x3af   :  { %v5931_v55 = vrot.slane %v5929_v58, 7  ;;  %v5645_v6 = vadd.f32 %v11541_v28, %v5609_v25  ;;  %v5018_v11 = vpop.f32.mrf.mxu2  ;;  %v6266_v46 = vrot.slane %v5929_v58, 4  ;;  %v6267_v17 = vrot.slane %v5932_v4, 5  ;;  %4132 = vst.msk [vmem:[#allocation2 + $0x114] sm:$0xf] %vm428_vm14, %v4067_v13  ;;  %v8800_v58 = vld [vmem:[#allocation2 + $0xf0] sm:$0xff] }
 0x3b0   :  { %v5243_v2 = vpop.f32.mrf.mxu3  ;;  %4484 = vst.msk [vmem:[#allocation2 + $0x114] sm:$0xf] %vm751_vm15, %v4388_v19 }
 0x3b1   :  { %v11652_v52 = vor.u32 %v5932_v4, %v5931_v55  ;;  %v5677_v29 = vmax.f32 %v5645_v6, 0.0  ;;  %v5244_v56 = vadd.f32 %v5243_v2, %v5018_v11  ;;  %v5503_v35 = vpop.f32.mrf.mxu0  ;;  %v6268_v37 = vor.u32 %v6267_v17, %v6266_v46 }
 0x3b2   :  { %5776 = vrot.lane.b32.xlu2 %v5708_v39, %s8907_s11  ;;  %v5935_v36 = vrot.slane %v5931_v55, 4 }
 0x3b3   :  { %v5709_v63 = vpack.c.bf16 %v5677_v29, %v5677_v29  ;;  %v5574_v50 = vadd.f32 %v5503_v35, %v5244_v56  ;;  %v6269_v42 = vrot.slane %v6268_v37, 4  ;;  %v4692_v25 = vpop.permute.xlu1 %4691  ;;  %v8834_v56 = vld [vmem:[#allocation2 + $0x100] sm:$0xff] }
 0x3b4   :  { %8361 = vmatmul.msk.bf16.gmra.mxu0 %vm1283_vm13, %v8833_v0 }
 0x3b5   :  { %v5937_v14 = vshrl.u32 %v5709_v63, 16  ;;  %v5610_v16 = vmul.f32 %v11530_v5, %v5574_v50  ;;  %5778 = vrot.lane.b32.xlu0 %v5709_v63, %s8907_s11  ;;  %v5940_v20 = vshll.u32 %v5709_v63, 16  ;;  %v4481_v46 = vld [vmem:[#allocation2 + $0x110] sm:$0xf] }
 0x3b6   :  { %6392 = vrot.lane.b32.xlu1 %v6253_v12, %s8908_s12  ;;  %v4482_v35 = vsel %vm9263_vm3, %v11446_v18, %v4481_v46 }
 0x3b7   :  { %v5939_v61 = vrot.slane %v5937_v14, 7  ;;  %v5646_v7 = vadd.f32 %v11541_v28, %v5610_v16  ;;  %v5020_v57 = vpop.f32.mrf.mxu2  ;;  %v6270_v30 = vrot.slane %v5940_v20, 5  ;;  %v6272_v41 = vrot.slane %v5937_v14, 4  ;;  %v4786_v9 = vld [vmem:[#allocation2 + $0x114] sm:$0xf] }
 0x3b8   :  { %v5245_v54 = vpop.f32.mrf.mxu3  ;;  %v4787_v11 = vsel %vm9316_vm6, %v4692_v25, %v4786_v9  ;;  %4483 = vst [vmem:[#allocation2 + $0x110] sm:$0xf] %v4482_v35 }
 0x3b9   :  { %v5678_v10 = vmax.f32 %v5646_v7, 0.0  ;;  %v5246_v47 = vadd.f32 %v5245_v54, %v5020_v57  ;;  %v6271_v39 = vsel %vm9011_vm2, %v6269_v42, %v6270_v30  ;;  %v5942_v23 = vor.u32 %v5940_v20, %v5939_v61  ;;  %v5505_v53 = vpop.f32.mrf.mxu0  ;;  %4788 = vst [vmem:[#allocation2 + $0x114] sm:$0xf] %v4787_v11  ;;  %v8835_v11 = vld [vmem:[#allocation2 + $0x108] sm:$0xff] }
 0x3ba   :  { %6400 = vrot.lane.b32.xlu2 %v6271_v39, %s8908_s12  ;;  %v6273_v33 = vor.u32 %v6272_v41, %v6270_v30  ;;  %4785 = vst.msk [vmem:[#allocation2 + $0x110] sm:$0xf] %vm1062_vm4, %v4690_v45 }
 0x3bb   :  { %v5710_v60 = vpack.c.bf16 %v5678_v10, %v5678_v10  ;;  %v11679_v48 = vsel %vm9168_vm11, %v5935_v36, %v5942_v23  ;;  %v5575_v34 = vadd.f32 %v5505_v53, %v5246_v47  ;;  %v8818_v10 = vld [vmem:[#allocation2 + $0x100] sm:$0xff] }
 0x3bc   :  { %8192 = vmatmul.msk.bf16.gmra.mxu2 %vm1283_vm13, %v8817_v3  ;;  %v6274_v4 = vrot.slane %v6273_v33, 4  ;;  %v8801_v3 = vld [vmem:[#allocation2 + $0xf8] sm:$0xff] }
 0x3bd   :  { %v5945_v27 = vshrl.u32 %v5710_v60, 16  ;;  %v5948_v55 = vshll.u32 %v5710_v60, 16  ;;  %v5611_v6 = vmul.f32 %v11530_v5, %v5575_v34  ;;  %8276 = vmatmul.msk.bf16.gmra.mxu3 %vm1283_vm13, %v8800_v58  ;;  %5780 = vrot.lane.b32.xlu0 %v5710_v60, %s8907_s11 }
 0x3be   :  { %6402 = vrot.lane.b32.xlu1 %v6274_v4, %s8908_s12 }
 0x3bf   :  { %v5947_v17 = vrot.slane %v5945_v27, 7  ;;  %v5647_v2 = vadd.f32 %v11541_v28, %v5611_v6  ;;  %v5023_v0 = vpop.f32.mrf.mxu2  ;;  %v6275_v44 = vrot.slane %v5945_v27, 4  ;;  %v6276_v15 = vrot.slane %v5948_v55, 5 }
 0x3c0   :  { %v5248_v29 = vpop.f32.mrf.mxu3 }
 0x3c1   :  { %v11692_v37 = vor.u32 %v5948_v55, %v5947_v17  ;;  %v5679_v26 = vmax.f32 %v5647_v2, 0.0  ;;  %v5249_v40 = vadd.f32 %v5248_v29, %v5023_v0  ;;  %v5508_v63 = vpop.f32.mrf.mxu0  ;;  %v6277_v50 = vor.u32 %v6276_v15, %v6275_v44 }
 0x3c2   :  { %v5951_v61 = vrot.slane %v5947_v17, 4 }
 0x3c3   :  { %v5711_v31 = vpack.c.bf16 %v5679_v26, %v5679_v26  ;;  %v5576_v13 = vadd.f32 %v5508_v63, %v5249_v40  ;;  %v6278_v18 = vrot.slane %v6277_v50, 4 }
 0x3c4   :  { %8362 = vmatmul.msk.bf16.gmra.mxu0 %vm1283_vm13, %v8834_v56 }
 0x3c5   :  { %v5953_v59 = vshrl.u32 %v5711_v31, 16  ;;  %v5612_v19 = vmul.f32 %v11530_v5, %v5576_v13  ;;  %v5956_v8 = vshll.u32 %v5711_v31, 16 }
 0x3c6   :  { %5782 = vrot.lane.b32.xlu1 %v5711_v31, %s8907_s11 }
 0x3c7   :  { %v5955_v14 = vrot.slane %v5953_v59, 7  ;;  %v5648_v16 = vadd.f32 %v11541_v28, %v5612_v19  ;;  %v5025_v12 = vpop.f32.mrf.mxu2  ;;  %v6279_v20 = vrot.slane %v5956_v8, 5  ;;  %v6281_v42 = vrot.slane %v5953_v59, 4 }
 0x3c8   :  { %v5250_v7 = vpop.f32.mrf.mxu3 }
 0x3c9   :  { %v5680_v57 = vmax.f32 %v5648_v16, 0.0  ;;  %v5251_v30 = vadd.f32 %v5250_v7, %v5025_v12  ;;  %v6280_v41 = vsel %vm9011_vm2, %v6278_v18, %v6279_v20  ;;  %v5958_v36 = vor.u32 %v5956_v8, %v5955_v14  ;;  %v5510_v54 = vpop.f32.mrf.mxu0 }
 0x3ca   :  { %6404 = vrot.lane.b32.xlu0 %v6280_v41, %s8908_s12  ;;  %v6282_v47 = vor.u32 %v6281_v42, %v6279_v20  ;;  %v8819_v20 = vld [vmem:[#allocation2 + $0x108] sm:$0xff] }
 0x3cb   :  { %v5712_v39 = vpack.c.bf16 %v5680_v57, %v5680_v57  ;;  %v11704_v23 = vsel %vm9168_vm11, %v5951_v61, %v5958_v36  ;;  %v5577_v53 = vadd.f32 %v5510_v54, %v5251_v30  ;;  %v8802_v30 = vld [vmem:[#allocation2 + $0x100] sm:$0xff] }
 0x3cc   :  { %8193 = vmatmul.msk.bf16.gmra.mxu2 %vm1283_vm13, %v8818_v10  ;;  %v6283_v33 = vrot.slane %v6282_v47, 4 }
 0x3cd   :  { %v5961_v60 = vshrl.u32 %v5712_v39, 16  ;;  %v5964_v34 = vshll.u32 %v5712_v39, 16  ;;  %v5613_v58 = vmul.f32 %v11530_v5, %v5577_v53  ;;  %8277 = vmatmul.msk.bf16.gmra.mxu3 %vm1283_vm13, %v8801_v3 }
 0x3ce   :  { %6406 = vrot.lane.b32.xlu2 %v6283_v33, %s8908_s12  ;;  %5784 = vrot.lane.b32.xlu1 %v5712_v39, %s8907_s11 }
 0x3cf   :  { %v5963_v4 = vrot.slane %v5961_v60, 7  ;;  %v5649_v25 = vadd.f32 %v11541_v28, %v5613_v58  ;;  %v5028_v9 = vpop.f32.mrf.mxu2  ;;  %v6284_v27 = vrot.slane %v5961_v60, 4  ;;  %v6285_v55 = vrot.slane %v5964_v34, 5 }
 0x3d0   :  { %v5253_v6 = vpop.f32.mrf.mxu3 }
 0x3d1   :  { %v11712_v46 = vor.u32 %v5964_v34, %v5963_v4  ;;  %v5681_v17 = vmax.f32 %v5649_v25, 0.0  ;;  %v5254_v2 = vadd.f32 %v5253_v6, %v5028_v9  ;;  %v5513_v0 = vpop.f32.mrf.mxu0  ;;  %v6286_v44 = vor.u32 %v6285_v55, %v6284_v27  ;;  %v8836_v34 = vld [vmem:[#allocation2 + $0x110] sm:$0xff] }
 0x3d2   :  { %v5967_v59 = vrot.slane %v5963_v4, 4 }
 0x3d3   :  { %v5713_v15 = vpack.c.bf16 %v5681_v17, %v5681_v17  ;;  %v5578_v45 = vadd.f32 %v5513_v0, %v5254_v2  ;;  %v6287_v26 = vrot.slane %v6286_v44, 4 }
 0x3d4   :  { %8363 = vmatmul.msk.bf16.gmra.mxu0 %vm1283_vm13, %v8835_v11 }
 0x3d5   :  { %v5969_v29 = vshrl.u32 %v5713_v15, 16  ;;  %v5614_v56 = vmul.f32 %v11530_v5, %v5578_v45  ;;  %v5972_v35 = vshll.u32 %v5713_v15, 16 }
 0x3d6   :  { %5786 = vrot.lane.b32.xlu2 %v5713_v15, %s8907_s11 }
 0x3d7   :  { %v5971_v40 = vrot.slane %v5969_v29, 7  ;;  %v5650_v63 = vadd.f32 %v11541_v28, %v5614_v56  ;;  %v5030_v50 = vpop.f32.mrf.mxu2  ;;  %v6288_v31 = vrot.slane %v5972_v35, 5  ;;  %v6290_v13 = vrot.slane %v5969_v29, 4 }
 0x3d8   :  { %v5255_v19 = vpop.f32.mrf.mxu3 }
 0x3d9   :  { %v5682_v8 = vmax.f32 %v5650_v63, 0.0  ;;  %v5256_v18 = vadd.f32 %v5255_v19, %v5030_v50  ;;  %v6289_v14 = vsel %vm9011_vm2, %v6287_v26, %v6288_v31  ;;  %v5974_v16 = vor.u32 %v5972_v35, %v5971_v40  ;;  %v5515_v12 = vpop.f32.mrf.mxu0 }
 0x3da   :  { %6408 = vrot.lane.b32.xlu1 %v6289_v14, %s8908_s12  ;;  %v6291_v42 = vor.u32 %v6290_v13, %v6288_v31  ;;  %v11742_v19 = vrot.slane %v5897_v1, 7 }
 0x3db   :  { %v5714_v61 = vpack.c.bf16 %v5682_v8, %v5682_v8  ;;  %v11723_v7 = vsel %vm9168_vm11, %v5967_v59, %v5974_v16  ;;  %v5579_v57 = vadd.f32 %v5515_v12, %v5256_v18  ;;  %v8820_v8 = vld [vmem:[#allocation2 + $0x110] sm:$0xff] }
 0x3dc   :  { %8194 = vmatmul.msk.bf16.gmra.mxu2 %vm1283_vm13, %v8819_v20  ;;  %v6292_v41 = vrot.slane %v6291_v42, 4  ;;  %v8803_v20 = vld [vmem:[#allocation2 + $0x108] sm:$0xff]  ;;  %v5902_v1 = vor.u32 %v5900_v22, %v11742_v19 }
 0x3dd   :  { %v5977_v36 = vshrl.u32 %v5714_v61, 16  ;;  %v5980_v54 = vshll.u32 %v5714_v61, 16  ;;  %v5615_v10 = vmul.f32 %v11530_v5, %v5579_v57  ;;  %8278 = vmatmul.msk.bf16.gmra.mxu3 %vm1283_vm13, %v8802_v30 }
 0x3de   :  { %6410 = vrot.lane.b32.xlu0 %v6292_v41, %s8908_s12  ;;  %5788 = vrot.lane.b32.xlu2 %v5714_v61, %s8907_s11 }
 0x3df   :  { %v5979_v47 = vrot.slane %v5977_v36, 7  ;;  %v5651_v39 = vadd.f32 %v11541_v28, %v5615_v10  ;;  %v5033_v53 = vpop.f32.mrf.mxu2  ;;  %v6293_v3 = vrot.slane %v5977_v36, 4  ;;  %v6294_v33 = vrot.slane %v5980_v54, 5 }
 0x3e0   :  { %v5258_v60 = vpop.f32.mrf.mxu3 }
 0x3e1   :  { %v11731_v58 = vor.u32 %v5980_v54, %v5979_v47  ;;  %v5683_v4 = vmax.f32 %v5651_v39, 0.0  ;;  %v5259_v25 = vadd.f32 %v5258_v60, %v5033_v53  ;;  %v5518_v9 = vpop.f32.mrf.mxu0  ;;  %v6295_v27 = vor.u32 %v6294_v33, %v6293_v3  ;;  %v8837_v33 = vld [vmem:[#allocation2 + $0x118] sm:$0xff] }
 0x3e2   :  { %v5983_v26 = vrot.slane %v5979_v47, 4 }
 0x3e3   :  { %v5715_v55 = vpack.c.bf16 %v5683_v4, %v5683_v4  ;;  %v5580_v6 = vadd.f32 %v5518_v9, %v5259_v25  ;;  %v6296_v0 = vrot.slane %v6295_v27, 4 }
 0x3e4   :  { %8364 = vmatmul.msk.bf16.gmra.mxu0 %vm1283_vm13, %v8836_v34 }
 0x3e5   :  { %v5985_v11 = vshrl.u32 %v5715_v55, 16  ;;  %v5616_v17 = vmul.f32 %v11530_v5, %v5580_v6  ;;  %v5988_v2 = vshll.u32 %v5715_v55, 16 }
 0x3e6   :  { %5790 = vrot.lane.b32.xlu0 %v5715_v55, %s8907_s11 }
 0x3e7   :  { %v5987_v44 = vrot.slane %v5985_v11, 7  ;;  %v5652_v15 = vadd.f32 %v11541_v28, %v5616_v17  ;;  %v5769_v45 = vpop.permute.xlu2 %5768  ;;  %v5035_v29 = vpop.f32.mrf.mxu2  ;;  %v6297_v56 = vrot.slane %v5988_v2, 5  ;;  %v6299_v35 = vrot.slane %v5985_v11, 4 }
 0x3e8   :  { %5864 = vst.msk [vmem:[#allocation2 + $0x98] sm:$0xf] %vm428_vm14, %v5769_v45  ;;  %v5260_v40 = vpop.f32.mrf.mxu3 }
 0x3e9   :  { %v5684_v63 = vmax.f32 %v5652_v15, 0.0  ;;  %v5261_v50 = vadd.f32 %v5260_v40, %v5035_v29  ;;  %v6298_v31 = vsel %vm9011_vm2, %v6296_v0, %v6297_v56  ;;  %v5990_v13 = vor.u32 %v5988_v2, %v5987_v44  ;;  %v5520_v59 = vpop.f32.mrf.mxu0 }
 0x3ea   :  { %6412 = vrot.lane.b32.xlu2 %v6298_v31, %s8908_s12  ;;  %v6300_v18 = vor.u32 %v6299_v35, %v6297_v56 }
 0x3eb   :  { %v5716_v14 = vpack.c.bf16 %v5684_v63, %v5684_v63  ;;  %v11747_v16 = vsel %vm9168_vm11, %v5983_v26, %v5990_v13  ;;  %v5581_v12 = vadd.f32 %v5520_v59, %v5261_v50 }
 0x3ec   :  { %8195 = vmatmul.msk.bf16.gmra.mxu2 %vm1283_vm13, %v8820_v8  ;;  %v6301_v42 = vrot.slane %v6300_v18, 4 }
 0x3ed   :  { %v5993_v61 = vshrl.u32 %v5716_v14, 16  ;;  %v5996_v57 = vshll.u32 %v5716_v14, 16  ;;  %v5617_v30 = vmul.f32 %v11530_v5, %v5581_v12  ;;  %8279 = vmatmul.msk.bf16.gmra.mxu3 %vm1283_vm13, %v8803_v20 }
 0x3ee   :  { %6414 = vrot.lane.b32.xlu1 %v6301_v42, %s8908_s12  ;;  %5792 = vrot.lane.b32.xlu0 %v5716_v14, %s8907_s11 }
 0x3ef   :  { %v5995_v41 = vrot.slane %v5993_v61, 7  ;;  %v6184_v36 = vld [vmem:[#allocation2 + $0x98] sm:$0xf]  ;;  %v5653_v54 = vadd.f32 %v11541_v28, %v5617_v30  ;;  %v5038_v10 = vpop.f32.mrf.mxu2  ;;  %v6302_v47 = vrot.slane %v5993_v61, 4  ;;  %v6303_v39 = vrot.slane %v5996_v57, 5 }
 0x3f0   :  { %v6185_v53 = vsel %vm9263_vm3, %v5902_v1, %v6184_v36  ;;  %v5263_v3 = vpop.f32.mrf.mxu3 }
 0x3f1   :  { %v11760_v60 = vor.u32 %v5996_v57, %v5995_v41  ;;  %6186 = vst [vmem:[#allocation2 + $0x98] sm:$0xf] %v6185_v53  ;;  %v5685_v24 = vmax.f32 %v5653_v54, 0.0  ;;  %v5264_v22 = vadd.f32 %v5263_v3, %v5038_v10  ;;  %v5523_v34 = vpop.f32.mrf.mxu0  ;;  %v6304_v4 = vor.u32 %v6303_v39, %v6302_v47  ;;  %v8839_v39 = vld [vmem:[#allocation2 + $0x90] sm:$0xff] }
 0x3f2   :  { %v5999_v45 = vrot.slane %v5995_v41, 4 }
 0x3f3   :  { %v5717_v25 = vpack.c.bf16 %v5685_v24, %v5685_v24  ;;  %v5582_v9 = vadd.f32 %v5523_v34, %v5264_v22  ;;  %v6305_v11 = vrot.slane %v6304_v4, 4  ;;  %v5903_v4 = vrot.slane %v11742_v19, 4 }
 0x3f4   :  { %8365 = vmatmul.msk.bf16.gmra.mxu0 %vm1283_vm13, %v8837_v33 }
 0x3f5   :  { %v6001_v27 = vshrl.u32 %v5717_v25, 16  ;;  %v5618_v55 = vmul.f32 %v11530_v5, %v5582_v9  ;;  %v6004_v6 = vshll.u32 %v5717_v25, 16 }
 0x3f6   :  { %5794 = vrot.lane.b32.xlu1 %v5717_v25, %s8907_s11 }
 0x3f7   :  { %v6003_v17 = vrot.slane %v6001_v27, 7  ;;  %v5654_v2 = vadd.f32 %v11541_v28, %v5618_v55  ;;  %v5040_v0 = vpop.f32.mrf.mxu2  ;;  %v6306_v44 = vrot.slane %v6004_v6, 5  ;;  %v6308_v15 = vrot.slane %v6001_v27, 4 }
 0x3f8   :  { %v5265_v29 = vpop.f32.mrf.mxu3 }
 0x3f9   :  { %v5686_v56 = vmax.f32 %v5654_v2, 0.0  ;;  %v5266_v35 = vadd.f32 %v5265_v29, %v5040_v0  ;;  %v6307_v26 = vsel %vm9011_vm2, %v6305_v11, %v6306_v44  ;;  %v6006_v40 = vor.u32 %v6004_v6, %v6003_v17  ;;  %v5525_v63 = vpop.f32.mrf.mxu0 }
 0x3fa   :  { %6416 = vrot.lane.b32.xlu0 %v6307_v26, %s8908_s12  ;;  %v6309_v50 = vor.u32 %v6308_v15, %v6306_v44  ;;  %v5911_v2 = vsel %vm9168_vm11, %v5903_v4, %v11594_v32 }
 0x3fb   :  { %v5718_v31 = vpack.c.bf16 %v5686_v56, %v5686_v56  ;;  %v11771_v13 = vsel %vm9168_vm11, %v5999_v45, %v6006_v40  ;;  %v5583_v59 = vadd.f32 %v5525_v63, %v5266_v35 }
 0x3fc   :  { %v6310_v8 = vrot.slane %v6309_v50, 4  ;;  %8520 = vmatmul.msk.bf16.vlgmr.msra.gmra.mxu2 %vm1283_vm13, %v8839_v39 }
 0x3fd   :  { %v6009_v18 = vshrl.u32 %v5718_v31, 16  ;;  %v6012_v14 = vshll.u32 %v5718_v31, 16  ;;  %v5619_v12 = vmul.f32 %v11530_v5, %v5583_v59 }
 0x3fe   :  { %6418 = vrot.lane.b32.xlu2 %v6310_v8, %s8908_s12  ;;  %5796 = vrot.lane.b32.xlu1 %v5718_v31, %s8907_s11 }
 0x3ff   :  { %v6011_v20 = vrot.slane %v6009_v18, 7  ;;  %v5655_v42 = vadd.f32 %v11541_v28, %v5619_v12  ;;  %v5043_v61 = vpop.f32.mrf.mxu2  ;;  %v6311_v57 = vrot.slane %v6009_v18, 4  ;;  %v6312_v30 = vrot.slane %v6012_v14, 5 }
 0x400   :  { %v5268_v1 = vpop.f32.mrf.mxu3 }
 0x401   :  { %v11777_v41 = vor.u32 %v6012_v14, %v6011_v20  ;;  %v5687_v36 = vmax.f32 %v5655_v42, 0.0  ;;  %v5269_v54 = vadd.f32 %v5268_v1, %v5043_v61  ;;  %v5528_v10 = vpop.f32.mrf.mxu0  ;;  %v6313_v47 = vor.u32 %v6312_v30, %v6311_v57 }
 0x402   :  { %v6015_v0 = vrot.slane %v6011_v20, 4 }
 0x403   :  { %v5719_v53 = vpack.c.bf16 %v5687_v36, %v5687_v36  ;;  %v5584_v3 = vadd.f32 %v5528_v10, %v5269_v54  ;;  %v6314_v25 = vrot.slane %v6313_v47, 4 }
 0x404   :  { %v11779_v33 = vpop.permute.xlu2 %6396 }
 0x405   :  { %v6017_v24 = vshrl.u32 %v5719_v53, 16  ;;  %v5620_v22 = vmul.f32 %v11530_v5, %v5584_v3  ;;  %v6020_v34 = vshll.u32 %v5719_v53, 16 }
 0x406   :  { %5798 = vrot.lane.b32.xlu2 %v5719_v53, %s8907_s11 }
 0x407   :  { %v6019_v9 = vrot.slane %v6017_v24, 7  ;;  %v5656_v27 = vadd.f32 %v11541_v28, %v5620_v22  ;;  %v5771_v55 = vpop.permute.xlu0 %5770  ;;  %v5045_v6 = vpop.f32.mrf.mxu2  ;;  %v6315_v11 = vrot.slane %v6020_v34, 5  ;;  %v6317_v17 = vrot.slane %v6017_v24, 4 }
 0x408   :  { %5865 = vst.msk [vmem:[#allocation2 + $0x9c] sm:$0xf] %vm428_vm14, %v5771_v55  ;;  %v5270_v44 = vpop.f32.mrf.mxu3 }
 0x409   :  { %v5688_v15 = vmax.f32 %v5656_v27, 0.0  ;;  %6187 = vst.msk [vmem:[#allocation2 + $0x9c] sm:$0xf] %vm751_vm15, %v5911_v2  ;;  %v5271_v19 = vadd.f32 %v5270_v44, %v5045_v6  ;;  %v6316_v45 = vsel %vm9011_vm2, %v6314_v25, %v6315_v11  ;;  %v6022_v29 = vor.u32 %v6020_v34, %v6019_v9  ;;  %v5530_v56 = vpop.f32.mrf.mxu0 }
 0x40a   :  { %6420 = vrot.lane.b32.xlu1 %v6316_v45, %s8908_s12  ;;  %v6318_v35 = vor.u32 %v6317_v17, %v6315_v11 }
 0x40b   :  { %v5720_v26 = vpack.c.bf16 %v5688_v15, %v5688_v15  ;;  %v11796_v32 = vsel %vm9168_vm11, %v6015_v0, %v6022_v29  ;;  %v5585_v40 = vadd.f32 %v5530_v56, %v5271_v19 }
 0x40c   :  { %v5777_v63 = vpop.permute.xlu2 %5776  ;;  %v6319_v50 = vrot.slane %v6318_v35, 4 }
 0x40d   :  { %v6025_v31 = vshrl.u32 %v5720_v26, 16  ;;  %v6028_v59 = vshll.u32 %v5720_v26, 16  ;;  %v5621_v8 = vmul.f32 %v11530_v5, %v5585_v40  ;;  %5868 = vst.msk [vmem:[#allocation2 + $0xa8] sm:$0xf] %vm428_vm14, %v5777_v63 }
 0x40e   :  { %6422 = vrot.lane.b32.xlu0 %v6319_v50, %s8908_s12  ;;  %5800 = vrot.lane.b32.xlu2 %v5720_v26, %s8907_s11 }
 0x40f   :  { %v6027_v18 = vrot.slane %v6025_v31, 7  ;;  %v5657_v14 = vadd.f32 %v11541_v28, %v5621_v8  ;;  %v5773_v12 = vpop.permute.xlu0 %5772  ;;  %v5048_v20 = vpop.f32.mrf.mxu2  ;;  %v6320_v42 = vrot.slane %v6025_v31, 4  ;;  %v6321_v61 = vrot.slane %v6028_v59, 5 }
 0x410   :  { %5866 = vst.msk [vmem:[#allocation2 + $0xa0] sm:$0xf] %vm428_vm14, %v5773_v12  ;;  %v5273_v57 = vpop.f32.mrf.mxu3  ;;  %v6489_v25 = vld [vmem:[#allocation2 + $0x9c] sm:$0xf] }
 0x411   :  { %v11804_v30 = vor.u32 %v6028_v59, %v6027_v18  ;;  %v5689_v1 = vmax.f32 %v5657_v14, 0.0  ;;  %v5274_v36 = vadd.f32 %v5273_v57, %v5048_v20  ;;  %v5533_v54 = vpop.f32.mrf.mxu0  ;;  %v6322_v10 = vor.u32 %v6321_v61, %v6320_v42 }
 0x412   :  { %v6031_v0 = vrot.slane %v6027_v18, 4 }
 0x413   :  { %v5721_v47 = vpack.c.bf16 %v5689_v1, %v5689_v1  ;;  %v5586_v39 = vadd.f32 %v5533_v54, %v5274_v36  ;;  %v6323_v9 = vrot.slane %v6322_v10, 4 }
 0x414   :  { %v6192_v53 = vld [vmem:[#allocation2 + $0xa8] sm:$0xf]  ;;  %v6401_v4 = vpop.permute.xlu2 %6400 }
 0x415   :  { %v6033_v3 = vshrl.u32 %v5721_v47, 16  ;;  %v6193_v24 = vsel %vm9263_vm3, %v11652_v52, %v6192_v53  ;;  %v5622_v22 = vmul.f32 %v11530_v5, %v5586_v39  ;;  %v6036_v34 = vshll.u32 %v5721_v47, 16 }
 0x416   :  { %6194 = vst [vmem:[#allocation2 + $0xa8] sm:$0xf] %v6193_v24  ;;  %5802 = vrot.lane.b32.xlu0 %v5721_v47, %s8907_s11 }
 0x417   :  { %v6035_v27 = vrot.slane %v6033_v3, 7  ;;  %v6188_v55 = vld [vmem:[#allocation2 + $0xa0] sm:$0xf]  ;;  %v5658_v6 = vadd.f32 %v11541_v28, %v5622_v22  ;;  %6496 = vst.msk [vmem:[#allocation2 + $0xa8] sm:$0xf] %vm1062_vm4, %v6401_v4  ;;  %v6395_v11 = vpop.permute.xlu0 %6394  ;;  %v5775_v17 = vpop.permute.xlu1 %5774  ;;  %v6324_v2 = vrot.slane %v6036_v34, 5 }
 0x418   :  { %v6189_v52 = vsel %vm9263_vm3, %v11609_v62, %v6188_v55  ;;  %v6490_v44 = vsel %vm9316_vm6, %v6395_v11, %v6489_v25  ;;  %5867 = vst.msk [vmem:[#allocation2 + $0xa4] sm:$0xf] %vm428_vm14, %v5775_v17  ;;  %v5050_v15 = vpop.f32.mrf.mxu2  ;;  %v5275_v19 = vpop.f32.mrf.mxu3  ;;  %v6326_v45 = vrot.slane %v6033_v3, 4 }
 0x419   :  { %6190 = vst [vmem:[#allocation2 + $0xa0] sm:$0xf] %v6189_v52  ;;  %v5690_v29 = vmax.f32 %v5658_v6, 0.0  ;;  %v5276_v56 = vadd.f32 %v5275_v19, %v5050_v15  ;;  %v6325_v35 = vsel %vm9011_vm2, %v6323_v9, %v6324_v2  ;;  %v6038_v26 = vor.u32 %v6036_v34, %v6035_v27  ;;  %v5535_v40 = vpop.f32.mrf.mxu0 }
 0x41a   :  { %6492 = vst.msk [vmem:[#allocation2 + $0xa0] sm:$0xf] %vm1062_vm4, %v11779_v33  ;;  %6424 = vrot.lane.b32.xlu2 %v6325_v35, %s8908_s12  ;;  %v6327_v62 = vor.u32 %v6326_v45, %v6324_v2 }
 0x41b   :  { %v5722_v63 = vpack.c.bf16 %v5690_v29, %v5690_v29  ;;  %6491 = vst [vmem:[#allocation2 + $0x9c] sm:$0xf] %v6490_v44  ;;  %v11826_v50 = vsel %vm9168_vm11, %v6031_v0, %v6038_v26  ;;  %v5587_v31 = vadd.f32 %v5535_v40, %v5276_v56 }
 0x41c   :  { %6191 = vst.msk [vmem:[#allocation2 + $0xa4] sm:$0xf] %vm751_vm15, %v11639_v43  ;;  %v6328_v59 = vrot.slane %v6327_v62, 4 }
 0x41d   :  { %v6041_v8 = vshrl.u32 %v5722_v63, 16  ;;  %v6044_v18 = vshll.u32 %v5722_v63, 16  ;;  %v5623_v14 = vmul.f32 %v11530_v5, %v5587_v31 }
 0x41e   :  { %6426 = vrot.lane.b32.xlu1 %v6328_v59, %s8908_s12  ;;  %5804 = vrot.lane.b32.xlu0 %v5722_v63, %s8907_s11 }
 0x41f   :  { %v6043_v33 = vrot.slane %v6041_v8, 7  ;;  %v5659_v12 = vadd.f32 %v11541_v28, %v5623_v14  ;;  %v6329_v20 = vrot.slane %v6041_v8, 4  ;;  %v6330_v42 = vrot.slane %v6044_v18, 5 }
 0x420   :  { %v6399_v61 = vpop.permute.xlu1 %6398  ;;  %v5053_v57 = vpop.f32.mrf.mxu2 }
 0x421   :  { %v11834_v1 = vor.u32 %v6044_v18, %v6043_v33  ;;  %v5691_v36 = vmax.f32 %v5659_v12, 0.0  ;;  %v5278_v43 = vpop.f32.mrf.mxu3  ;;  %v5538_v54 = vpop.f32.mrf.mxu0  ;;  %v6331_v53 = vor.u32 %v6330_v42, %v6329_v20  ;;  %v6047_v0 = vrot.slane %v6043_v33, 4 }
 0x422   :  { %v5279_v10 = vadd.f32 %v5278_v43, %v5053_v57 }
 0x423   :  { %v5723_v47 = vpack.c.bf16 %v5691_v36, %v5691_v36  ;;  %v6493_v39 = vld [vmem:[#allocation2 + $0xa4] sm:$0xf]  ;;  %v6332_v27 = vrot.slane %v6331_v53, 4 }
 0x424   :  { %v6494_v3 = vsel %vm9316_vm6, %v6399_v61, %v6493_v39  ;;  %v5588_v24 = vadd.f32 %v5538_v54, %v5279_v10 }
 0x425   :  { %v6049_v22 = vshrl.u32 %v5723_v47, 16  ;;  %6495 = vst [vmem:[#allocation2 + $0xa4] sm:$0xf] %v6494_v3  ;;  %v6052_v34 = vshll.u32 %v5723_v47, 16 }
 0x426   :  { %v5624_v4 = vmul.f32 %v11530_v5, %v5588_v24  ;;  %5806 = vrot.lane.b32.xlu1 %v5723_v47, %s8907_s11 }
 0x427   :  { %v6051_v25 = vrot.slane %v6049_v22, 7  ;;  %v5779_v9 = vpop.permute.xlu0 %5778  ;;  %v6333_v55 = vrot.slane %v6052_v34, 5  ;;  %v6335_v6 = vrot.slane %v6049_v22, 4 }
 0x428   :  { %v5660_v11 = vadd.f32 %v11541_v28, %v5624_v4  ;;  %v6393_v17 = vpop.permute.xlu1 %6392  ;;  %5869 = vst.msk [vmem:[#allocation2 + $0xac] sm:$0xf] %vm428_vm14, %v5779_v9  ;;  %v11842_v2 = vpop.permute.xlu2 %6406 }
 0x429   :  { %6488 = vst.msk [vmem:[#allocation2 + $0x98] sm:$0xf] %vm1062_vm4, %v6393_v17  ;;  %v5055_v52 = vpop.f32.mrf.mxu2  ;;  %v5280_v44 = vpop.f32.mrf.mxu3  ;;  %v6334_v15 = vsel %vm9011_vm2, %v6332_v27, %v6333_v55  ;;  %v6054_v19 = vor.u32 %v6052_v34, %v6051_v25  ;;  %v6336_v45 = vor.u32 %v6335_v6, %v6333_v55 }
 0x42a   :  { %v5692_v29 = vmax.f32 %v5660_v11, 0.0  ;;  %6195 = vst.msk [vmem:[#allocation2 + $0xac] sm:$0xf] %vm751_vm15, %v11679_v48  ;;  %v5281_v56 = vadd.f32 %v5280_v44, %v5055_v52  ;;  %6428 = vrot.lane.b32.xlu0 %v6334_v15, %s8908_s12  ;;  %v5540_v35 = vpop.f32.mrf.mxu0 }
 0x42b   :  { %v11852_v26 = vsel %vm9168_vm11, %v6047_v0, %v6054_v19  ;;  %v6337_v40 = vrot.slane %v6336_v45, 4 }
 0x42c   :  { %v5724_v62 = vpack.c.bf16 %v5692_v29, %v5692_v29  ;;  %v5589_v63 = vadd.f32 %v5540_v35, %v5281_v56  ;;  %v8873_v31 = vld [vmem:[#allocation2 + $0xa0] sm:$0xff] }
 0x42d   :  { %6430 = vrot.lane.b32.xlu2 %v6337_v40, %s8908_s12  ;;  %8606 = vmatmul.msk.bf16.vlgmr.msra.gmra.mxu3 %vm1283_vm13, %v8873_v31 }
 0x42e   :  { %v6057_v59 = vshrl.u32 %v5724_v62, 16  ;;  %v6060_v8 = vshll.u32 %v5724_v62, 16  ;;  %v5625_v18 = vmul.f32 %v11530_v5, %v5589_v63  ;;  %5808 = vrot.lane.b32.xlu1 %v5724_v62, %s8907_s11 }
 0x42f   :  { %v5781_v48 = vpop.permute.xlu0 %5780 }
 0x430   :  { %v6059_v14 = vrot.slane %v6057_v59, 7  ;;  %v5661_v33 = vadd.f32 %v11541_v28, %v5625_v18  ;;  %v6403_v12 = vpop.permute.xlu1 %6402  ;;  %5870 = vst.msk [vmem:[#allocation2 + $0xb0] sm:$0xf] %vm428_vm14, %v5781_v48  ;;  %v5787_v20 = vpop.permute.xlu2 %5786  ;;  %v8856_v42 = vld [vmem:[#allocation2 + $0x98] sm:$0xff]  ;;  %v6338_v57 = vrot.slane %v6057_v59, 4  ;;  %v6339_v10 = vrot.slane %v6060_v8, 5 }
 0x431   :  { %v8840_v61 = vld [vmem:[#allocation2 + $0x98] sm:$0xff]  ;;  %v6497_v36 = vld [vmem:[#allocation2 + $0xac] sm:$0xf]  ;;  %5873 = vst.msk [vmem:[#allocation2 + $0xbc] sm:$0xf] %vm428_vm14, %v5787_v20  ;;  %v5058_v43 = vpop.f32.mrf.mxu2  ;;  %v5283_v54 = vpop.f32.mrf.mxu3  ;;  %8436 = vmatmul.msk.bf16.vlgmr.msra.gmra.mxu1 %vm1283_vm13, %v8856_v42 }
 0x432   :  { %v11861_v47 = vor.u32 %v6060_v8, %v6059_v14  ;;  %v5693_v39 = vmax.f32 %v5661_v33, 0.0  ;;  %v6498_v53 = vsel %vm9316_vm6, %v6403_v12, %v6497_v36  ;;  %6203 = vst.msk [vmem:[#allocation2 + $0xbc] sm:$0xf] %vm751_vm15, %v11723_v7  ;;  %v5543_v3 = vpop.f32.mrf.mxu0  ;;  %8521 = vmatmul.msk.bf16.gmra.mxu2 %vm1283_vm13, %v8840_v61  ;;  %v5284_v24 = vadd.f32 %v5283_v54, %v5058_v43  ;;  %v8857_v61 = vld [vmem:[#allocation2 + $0xa0] sm:$0xff] }
 0x433   :  { %6499 = vst [vmem:[#allocation2 + $0xac] sm:$0xf] %v6498_v53  ;;  %v6340_v22 = vor.u32 %v6339_v10, %v6338_v57  ;;  %v6063_v15 = vrot.slane %v6059_v14, 4  ;;  %v8841_v57 = vld [vmem:[#allocation2 + $0xa0] sm:$0xff] }
 0x434   :  { %v5725_v34 = vpack.c.bf16 %v5693_v39, %v5693_v39  ;;  %v5590_v4 = vadd.f32 %v5543_v3, %v5284_v24 }
 0x435   :  { %v6341_v6 = vrot.slane %v6340_v22, 4 }
 0x436   :  { %v6065_v25 = vshrl.u32 %v5725_v34, 16  ;;  %5810 = vrot.lane.b32.xlu2 %v5725_v34, %s8907_s11  ;;  %v6068_v9 = vshll.u32 %v5725_v34, 16  ;;  %v5626_v55 = vmul.f32 %v11530_v5, %v5590_v4 }
 0x437   :  { %v6196_v27 = vld [vmem:[#allocation2 + $0xb0] sm:$0xf] }
 0x438   :  { %v6067_v11 = vrot.slane %v6065_v25, 7  ;;  %v6197_v7 = vsel %vm9263_vm3, %v11692_v37, %v6196_v27  ;;  %v5783_v17 = vpop.permute.xlu1 %5782  ;;  %v5789_v0 = vpop.permute.xlu2 %5788  ;;  %v6342_v52 = vrot.slane %v6068_v9, 5  ;;  %v6344_v44 = vrot.slane %v6065_v25, 4 }
 0x439   :  { %6198 = vst [vmem:[#allocation2 + $0xb0] sm:$0xf] %v6197_v7  ;;  %v5662_v19 = vadd.f32 %v11541_v28, %v5626_v55  ;;  %v5060_v45 = vpop.f32.mrf.mxu2  ;;  %v5285_v29 = vpop.f32.mrf.mxu3 }
 0x43a   :  { %5871 = vst.msk [vmem:[#allocation2 + $0xb4] sm:$0xf] %vm428_vm14, %v5783_v17  ;;  %v5286_v56 = vadd.f32 %v5285_v29, %v5060_v45  ;;  %v6343_v35 = vsel %vm9011_vm2, %v6341_v6, %v6342_v52  ;;  %v6070_v40 = vor.u32 %v6068_v9, %v6067_v11  ;;  %v5545_v62 = vpop.f32.mrf.mxu0  ;;  %v8874_v63 = vld [vmem:[#allocation2 + $0xa8] sm:$0xff]  ;;  %v6345_v37 = vor.u32 %v6344_v44, %v6342_v52 }
 0x43b   :  { %v5694_v31 = vmax.f32 %v5662_v19, 0.0  ;;  %6199 = vst.msk [vmem:[#allocation2 + $0xb4] sm:$0xf] %vm751_vm15, %v11704_v23  ;;  %6432 = vrot.lane.b32.xlu1 %v6343_v35, %s8908_s12 }
 0x43c   :  { %5874 = vst.msk [vmem:[#allocation2 + $0xc0] sm:$0xf] %vm428_vm14, %v5789_v0  ;;  %v11884_v59 = vsel %vm9168_vm11, %v6063_v15, %v6070_v40  ;;  %v5591_v8 = vadd.f32 %v5545_v62, %v5286_v56  ;;  %v6405_v18 = vpop.permute.xlu0 %6404  ;;  %v6346_v48 = vrot.slane %v6345_v37, 4 }
 0x43d   :  { %v5726_v14 = vpack.c.bf16 %v5694_v31, %v5694_v31  ;;  %6500 = vst.msk [vmem:[#allocation2 + $0xb0] sm:$0xf] %vm1062_vm4, %v6405_v18  ;;  %8607 = vmatmul.msk.bf16.gmra.mxu3 %vm1283_vm13, %v8874_v63 }
 0x43e   :  { %v5627_v33 = vmul.f32 %v11530_v5, %v5591_v8  ;;  %6434 = vrot.lane.b32.xlu0 %v6346_v48, %s8908_s12 }
 0x43f   :  { %v6073_v23 = vshrl.u32 %v5726_v14, 16  ;;  %v6076_v12 = vshll.u32 %v5726_v14, 16  ;;  %5812 = vrot.lane.b32.xlu2 %v5726_v14, %s8907_s11 }
 0x440   :  { %v5663_v20 = vadd.f32 %v11541_v28, %v5627_v33  ;;  %v5785_v42 = vpop.permute.xlu1 %5784 }
 0x441   :  { %v6075_v36 = vrot.slane %v6073_v23, 7  ;;  %5872 = vst.msk [vmem:[#allocation2 + $0xb8] sm:$0xf] %vm428_vm14, %v5785_v42  ;;  %v5063_v43 = vpop.f32.mrf.mxu2  ;;  %v5288_v54 = vpop.f32.mrf.mxu3  ;;  %v6347_v10 = vrot.slane %v6073_v23, 4  ;;  %v6348_v39 = vrot.slane %v6076_v12, 5  ;;  %8437 = vmatmul.msk.bf16.gmra.mxu1 %vm1283_vm13, %v8857_v61 }
 0x442   :  { %v5695_v53 = vmax.f32 %v5663_v20, 0.0  ;;  %v5289_v3 = vadd.f32 %v5288_v54, %v5063_v43  ;;  %v5548_v24 = vpop.f32.mrf.mxu0  ;;  %8522 = vmatmul.msk.bf16.gmra.mxu2 %vm1283_vm13, %v8841_v57  ;;  %v6501_v22 = vld [vmem:[#allocation2 + $0xb4] sm:$0xf]  ;;  %v6505_v61 = vld [vmem:[#allocation2 + $0xbc] sm:$0xf]  ;;  %v8858_v54 = vld [vmem:[#allocation2 + $0xa8] sm:$0xff] }
 0x443   :  { %v11895_v34 = vor.u32 %v6076_v12, %v6075_v36  ;;  %v6204_v4 = vld [vmem:[#allocation2 + $0xc0] sm:$0xf]  ;;  %v6349_v25 = vor.u32 %v6348_v39, %v6347_v10  ;;  %v6502_v9 = vsel %vm9316_vm6, %v11842_v2, %v6501_v22  ;;  %v6079_v45 = vrot.slane %v6075_v36, 4  ;;  %v8842_v10 = vld [vmem:[#allocation2 + $0xa8] sm:$0xff] }
 0x444   :  { %v6205_v27 = vsel %vm9263_vm3, %v11731_v58, %v6204_v4  ;;  %v5727_v55 = vpack.c.bf16 %v5695_v53, %v5695_v53  ;;  %v5592_v6 = vadd.f32 %v5548_v24, %v5289_v3  ;;  %v6413_v11 = vpop.permute.xlu2 %6412  ;;  %6503 = vst [vmem:[#allocation2 + $0xb4] sm:$0xf] %v6502_v9 }
 0x445   :  { %6206 = vst [vmem:[#allocation2 + $0xc0] sm:$0xf] %v6205_v27  ;;  %v6350_v52 = vrot.slane %v6349_v25, 4 }
 0x446   :  { %v6081_v7 = vshrl.u32 %v5727_v55, 16  ;;  %v5628_v17 = vmul.f32 %v11530_v5, %v5592_v6  ;;  %6508 = vst.msk [vmem:[#allocation2 + $0xc0] sm:$0xf] %vm1062_vm4, %v6413_v11  ;;  %5814 = vrot.lane.b32.xlu0 %v5727_v55, %s8907_s11  ;;  %v6084_v0 = vshll.u32 %v5727_v55, 16 }
 0x448   :  { %v6083_v44 = vrot.slane %v6081_v7, 7  ;;  %v6200_v2 = vld [vmem:[#allocation2 + $0xb8] sm:$0xf]  ;;  %v5664_v15 = vadd.f32 %v11541_v28, %v5628_v17  ;;  %v6351_v19 = vrot.slane %v6084_v0, 5  ;;  %v6353_v58 = vrot.slane %v6081_v7, 4 }
 0x449   :  { %v6201_v29 = vsel %vm9263_vm3, %v11712_v46, %v6200_v2  ;;  %v5065_v56 = vpop.f32.mrf.mxu2  ;;  %v5290_v35 = vpop.f32.mrf.mxu3 }
 0x44a   :  { %6202 = vst [vmem:[#allocation2 + $0xb8] sm:$0xf] %v6201_v29  ;;  %v5696_v40 = vmax.f32 %v5664_v15, 0.0  ;;  %v5291_v62 = vadd.f32 %v5290_v35, %v5065_v56  ;;  %v6352_v63 = vsel %vm9011_vm2, %v6350_v52, %v6351_v19  ;;  %v6086_v37 = vor.u32 %v6084_v0, %v6083_v44  ;;  %v5550_v31 = vpop.f32.mrf.mxu0 }
 0x44b   :  { %6436 = vrot.lane.b32.xlu2 %v6352_v63, %s8908_s12  ;;  %v8875_v8 = vld [vmem:[#allocation2 + $0xb0] sm:$0xff]  ;;  %v6354_v18 = vor.u32 %v6353_v58, %v6351_v19 }
 0x44c   :  { %v5728_v48 = vpack.c.bf16 %v5696_v40, %v5696_v40  ;;  %v11915_v14 = vsel %vm9168_vm11, %v6079_v45, %v6086_v37  ;;  %v5593_v46 = vadd.f32 %v5550_v31, %v5291_v62  ;;  %v6409_v33 = vpop.permute.xlu1 %6408 }
 0x44d   :  { %6504 = vst.msk [vmem:[#allocation2 + $0xb8] sm:$0xf] %vm1062_vm4, %v6409_v33  ;;  %v6355_v23 = vrot.slane %v6354_v18, 4  ;;  %8608 = vmatmul.msk.bf16.gmra.mxu3 %vm1283_vm13, %v8875_v8 }
 0x44e   :  { %v6089_v12 = vshrl.u32 %v5728_v48, 16  ;;  %v6092_v20 = vshll.u32 %v5728_v48, 16  ;;  %v5629_v42 = vmul.f32 %v11530_v5, %v5593_v46  ;;  %5816 = vrot.lane.b32.xlu0 %v5728_v48, %s8907_s11 }
 0x44f   :  { %6438 = vrot.lane.b32.xlu1 %v6355_v23, %s8908_s12 }
 0x450   :  { %v6091_v57 = vrot.slane %v6089_v12, 7  ;;  %v5665_v36 = vadd.f32 %v11541_v28, %v5629_v42  ;;  %v6411_v43 = vpop.permute.xlu0 %6410  ;;  %v6356_v39 = vrot.slane %v6089_v12, 4  ;;  %v6357_v53 = vrot.slane %v6092_v20, 5 }
 0x451   :  { %v6506_v3 = vsel %vm9316_vm6, %v6411_v43, %v6505_v61  ;;  %v5068_v24 = vpop.f32.mrf.mxu2  ;;  %v5293_v22 = vpop.f32.mrf.mxu3  ;;  %8438 = vmatmul.msk.bf16.gmra.mxu1 %vm1283_vm13, %v8858_v54  ;;  %v8859_v43 = vld [vmem:[#allocation2 + $0xb0] sm:$0xff] }
 0x452   :  { %v11925_v4 = vor.u32 %v6092_v20, %v6091_v57  ;;  %v5697_v25 = vmax.f32 %v5665_v36, 0.0  ;;  %6507 = vst [vmem:[#allocation2 + $0xbc] sm:$0xf] %v6506_v3  ;;  %v5294_v9 = vadd.f32 %v5293_v22, %v5068_v24  ;;  %v5553_v27 = vpop.f32.mrf.mxu0  ;;  %8523 = vmatmul.msk.bf16.gmra.mxu2 %vm1283_vm13, %v8842_v10  ;;  %v6358_v55 = vor.u32 %v6357_v53, %v6356_v39  ;;  %v8843_v54 = vld [vmem:[#allocation2 + $0xb0] sm:$0xff] }
 0x453   :  { %v6095_v29 = vrot.slane %v6091_v57, 4 }
 0x454   :  { %v5729_v6 = vpack.c.bf16 %v5697_v25, %v5697_v25  ;;  %v5594_v11 = vadd.f32 %v5553_v27, %v5294_v9  ;;  %v6359_v52 = vrot.slane %v6358_v55, 4 }
 0x456   :  { %v6097_v7 = vshrl.u32 %v5729_v6, 16  ;;  %v5630_v17 = vmul.f32 %v11530_v5, %v5594_v11  ;;  %v6100_v0 = vshll.u32 %v5729_v6, 16 }
 0x457   :  { %5818 = vrot.lane.b32.xlu1 %v5729_v6, %s8907_s11 }
 0x458   :  { %v6099_v44 = vrot.slane %v6097_v7, 7  ;;  %v5666_v2 = vadd.f32 %v11541_v28, %v5630_v17  ;;  %v5791_v15 = vpop.permute.xlu0 %5790  ;;  %v11932_v19 = vpop.permute.xlu2 %6418  ;;  %v6360_v58 = vrot.slane %v6100_v0, 5  ;;  %v6362_v45 = vrot.slane %v6097_v7, 4 }
 0x459   :  { %5875 = vst.msk [vmem:[#allocation2 + $0xc4] sm:$0xf] %vm428_vm14, %v5791_v15  ;;  %v5070_v56 = vpop.f32.mrf.mxu2  ;;  %v5295_v35 = vpop.f32.mrf.mxu3  ;;  %v8876_v8 = vld [vmem:[#allocation2 + $0xb8] sm:$0xff] }
 0x45a   :  { %v5698_v40 = vmax.f32 %v5666_v2, 0.0  ;;  %6207 = vst.msk [vmem:[#allocation2 + $0xc4] sm:$0xf] %vm751_vm15, %v11747_v16  ;;  %v5296_v62 = vadd.f32 %v5295_v35, %v5070_v56  ;;  %v6361_v63 = vsel %vm9011_vm2, %v6359_v52, %v6360_v58  ;;  %v6102_v37 = vor.u32 %v6100_v0, %v6099_v44  ;;  %v5555_v31 = vpop.f32.mrf.mxu0 }
 0x45b   :  { %6440 = vrot.lane.b32.xlu0 %v6361_v63, %s8908_s12  ;;  %v6363_v18 = vor.u32 %v6362_v45, %v6360_v58 }
 0x45c   :  { %v5730_v48 = vpack.c.bf16 %v5698_v40, %v5698_v40  ;;  %v11942_v46 = vsel %vm9168_vm11, %v6095_v29, %v6102_v37  ;;  %v5595_v33 = vadd.f32 %v5555_v31, %v5296_v62 }
 0x45d   :  { %v6364_v23 = vrot.slane %v6363_v18, 4  ;;  %8609 = vmatmul.msk.bf16.gmra.mxu3 %vm1283_vm13, %v8876_v8 }
 0x45e   :  { %v6105_v12 = vshrl.u32 %v5730_v48, 16  ;;  %v6108_v20 = vshll.u32 %v5730_v48, 16  ;;  %v5631_v16 = vmul.f32 %v11530_v5, %v5595_v33 }
 0x45f   :  { %6442 = vrot.lane.b32.xlu2 %v6364_v23, %s8908_s12  ;;  %5820 = vrot.lane.b32.xlu1 %v5730_v48, %s8907_s11 }
 0x460   :  { %v6107_v42 = vrot.slane %v6105_v12, 7  ;;  %v5667_v61 = vadd.f32 %v11541_v28, %v5631_v16  ;;  %v6415_v57 = vpop.permute.xlu1 %6414  ;;  %v5793_v36 = vpop.permute.xlu0 %5792  ;;  %v6365_v10 = vrot.slane %v6105_v12, 4  ;;  %v6366_v39 = vrot.slane %v6108_v20, 5 }
 0x461   :  { %v6509_v53 = vld [vmem:[#allocation2 + $0xc4] sm:$0xf]  ;;  %5876 = vst.msk [vmem:[#allocation2 + $0xc8] sm:$0xf] %vm428_vm14, %v5793_v36  ;;  %v5799_v3 = vpop.permute.xlu2 %5798  ;;  %v5073_v24 = vpop.f32.mrf.mxu2  ;;  %8439 = vmatmul.msk.bf16.gmra.mxu1 %vm1283_vm13, %v8859_v43 }
 0x462   :  { %v11950_v22 = vor.u32 %v6108_v20, %v6107_v42  ;;  %v5699_v25 = vmax.f32 %v5667_v61, 0.0  ;;  %v6510_v9 = vsel %vm9316_vm6, %v6415_v57, %v6509_v53  ;;  %5879 = vst.msk [vmem:[#allocation2 + $0xd4] sm:$0xf] %vm428_vm14, %v5799_v3  ;;  %v5298_v27 = vpop.f32.mrf.mxu3  ;;  %v5558_v55 = vpop.f32.mrf.mxu0  ;;  %8524 = vmatmul.msk.bf16.gmra.mxu2 %vm1283_vm13, %v8843_v54  ;;  %v6367_v7 = vor.u32 %v6366_v39, %v6365_v10  ;;  %v8860_v54 = vld [vmem:[#allocation2 + $0xb8] sm:$0xff] }
 0x463   :  { %6511 = vst [vmem:[#allocation2 + $0xc4] sm:$0xf] %v6510_v9  ;;  %v5299_v6 = vadd.f32 %v5298_v27, %v5073_v24  ;;  %v6111_v63 = vrot.slane %v6107_v42, 4  ;;  %v8844_v10 = vld [vmem:[#allocation2 + $0xb8] sm:$0xff] }
 0x464   :  { %v5731_v11 = vpack.c.bf16 %v5699_v25, %v5699_v25  ;;  %6215 = vst.msk [vmem:[#allocation2 + $0xd4] sm:$0xf] %vm751_vm15, %v11796_v32  ;;  %v6368_v45 = vrot.slane %v6367_v7, 4 }
 0x465   :  { %v5596_v17 = vadd.f32 %v5558_v55, %v5299_v6 }
 0x466   :  { %v6113_v0 = vshrl.u32 %v5731_v11, 16  ;;  %v6116_v52 = vshll.u32 %v5731_v11, 16 }
 0x467   :  { %v5632_v44 = vmul.f32 %v11530_v5, %v5596_v17  ;;  %5822 = vrot.lane.b32.xlu2 %v5731_v11, %s8907_s11 }
 0x468   :  { %v6115_v2 = vrot.slane %v6113_v0, 7  ;;  %v6208_v15 = vld [vmem:[#allocation2 + $0xc8] sm:$0xf]  ;;  %v5795_v58 = vpop.permute.xlu1 %5794  ;;  %v6369_v29 = vrot.slane %v6116_v52, 5  ;;  %v6371_v56 = vrot.slane %v6113_v0, 4 }
 0x469   :  { %v6209_v35 = vsel %vm9263_vm3, %v11760_v60, %v6208_v15  ;;  %v5668_v32 = vadd.f32 %v11541_v28, %v5632_v44  ;;  %5877 = vst.msk [vmem:[#allocation2 + $0xcc] sm:$0xf] %vm428_vm14, %v5795_v58  ;;  %v5801_v40 = vpop.permute.xlu2 %5800  ;;  %v5075_v62 = vpop.f32.mrf.mxu2 }
 0x46a   :  { %6210 = vst [vmem:[#allocation2 + $0xc8] sm:$0xf] %v6209_v35  ;;  %v5300_v37 = vpop.f32.mrf.mxu3  ;;  %v6370_v31 = vsel %vm9011_vm2, %v6368_v45, %v6369_v29  ;;  %v6118_v8 = vor.u32 %v6116_v52, %v6115_v2  ;;  %v5560_v18 = vpop.f32.mrf.mxu0  ;;  %v8877_v48 = vld [vmem:[#allocation2 + $0xc0] sm:$0xff]  ;;  %v6372_v33 = vor.u32 %v6371_v56, %v6369_v29 }
 0x46b   :  { %v5700_v23 = vmax.f32 %v5668_v32, 0.0  ;;  %6211 = vst.msk [vmem:[#allocation2 + $0xcc] sm:$0xf] %vm751_vm15, %v11771_v13  ;;  %v5301_v60 = vadd.f32 %v5300_v37, %v5075_v62  ;;  %6444 = vrot.lane.b32.xlu1 %v6370_v31, %s8908_s12 }
 0x46c   :  { %5880 = vst.msk [vmem:[#allocation2 + $0xd8] sm:$0xf] %vm428_vm14, %v5801_v40  ;;  %v11974_v12 = vsel %vm9168_vm11, %v6111_v63, %v6118_v8  ;;  %v6417_v20 = vpop.permute.xlu0 %6416  ;;  %v6373_v16 = vrot.slane %v6372_v33, 4 }
 0x46d   :  { %v5732_v42 = vpack.c.bf16 %v5700_v23, %v5700_v23  ;;  %v5597_v61 = vadd.f32 %v5560_v18, %v5301_v60  ;;  %6512 = vst.msk [vmem:[#allocation2 + $0xc8] sm:$0xf] %vm1062_vm4, %v6417_v20  ;;  %8610 = vmatmul.msk.bf16.gmra.mxu3 %vm1283_vm13, %v8877_v48 }
 0x46e   :  { %6446 = vrot.lane.b32.xlu0 %v6373_v16, %s8908_s12 }
 0x46f   :  { %v6121_v13 = vshrl.u32 %v5732_v42, 16  ;;  %v6124_v57 = vshll.u32 %v5732_v42, 16  ;;  %v5633_v36 = vmul.f32 %v11530_v5, %v5597_v61  ;;  %5824 = vrot.lane.b32.xlu2 %v5732_v42, %s8907_s11 }
 0x470   :  { %v5797_v43 = vpop.permute.xlu1 %5796 }
 0x471   :  { %v6123_v39 = vrot.slane %v6121_v13, 7  ;;  %v5669_v53 = vadd.f32 %v11541_v28, %v5633_v36  ;;  %5878 = vst.msk [vmem:[#allocation2 + $0xd0] sm:$0xf] %vm428_vm14, %v5797_v43  ;;  %v5078_v3 = vpop.f32.mrf.mxu2  ;;  %v6374_v24 = vrot.slane %v6121_v13, 4  ;;  %v6375_v25 = vrot.slane %v6124_v57, 5  ;;  %8440 = vmatmul.msk.bf16.gmra.mxu1 %vm1283_vm13, %v8860_v54 }
 0x472   :  { %v5303_v9 = vpop.f32.mrf.mxu3  ;;  %v5563_v27 = vpop.f32.mrf.mxu0  ;;  %8525 = vmatmul.msk.bf16.gmra.mxu2 %vm1283_vm13, %v8844_v10  ;;  %v6513_v55 = vld [vmem:[#allocation2 + $0xcc] sm:$0xf] }
 0x473   :  { %v11985_v6 = vor.u32 %v6124_v57, %v6123_v39  ;;  %v6216_v11 = vld [vmem:[#allocation2 + $0xd8] sm:$0xf]  ;;  %v5701_v7 = vmax.f32 %v5669_v53, 0.0  ;;  %v5304_v17 = vadd.f32 %v5303_v9, %v5078_v3  ;;  %v6376_v44 = vor.u32 %v6375_v25, %v6374_v24  ;;  %v8861_v53 = vld [vmem:[#allocation2 + $0xc0] sm:$0xff] }
 0x474   :  { %v6217_v0 = vsel %vm9263_vm3, %v11804_v30, %v6216_v11  ;;  %v6425_v52 = vpop.permute.xlu2 %6424  ;;  %v6514_v2 = vsel %vm9316_vm6, %v11932_v19, %v6513_v55  ;;  %v6127_v37 = vrot.slane %v6123_v39, 4  ;;  %v6517_v39 = vld [vmem:[#allocation2 + $0xd4] sm:$0xf]  ;;  %v8845_v3 = vld [vmem:[#allocation2 + $0xc0] sm:$0xff] }
 0x475   :  { %6218 = vst [vmem:[#allocation2 + $0xd8] sm:$0xf] %v6217_v0  ;;  %v5733_v15 = vpack.c.bf16 %v5701_v7, %v5701_v7  ;;  %v5598_v58 = vadd.f32 %v5563_v27, %v5304_v17  ;;  %v6377_v30 = vrot.slane %v6376_v44, 4 }
 0x476   :  { %6520 = vst.msk [vmem:[#allocation2 + $0xd8] sm:$0xf] %vm1062_vm4, %v6425_v52 }
 0x477   :  { %v6129_v45 = vshrl.u32 %v5733_v15, 16  ;;  %v5634_v29 = vmul.f32 %v11530_v5, %v5598_v58  ;;  %5826 = vrot.lane.b32.xlu0 %v5733_v15, %s8907_s11  ;;  %v6132_v56 = vshll.u32 %v5733_v15, 16  ;;  %6515 = vst [vmem:[#allocation2 + $0xcc] sm:$0xf] %v6514_v2 }
 0x478   :  { %v6212_v35 = vld [vmem:[#allocation2 + $0xd0] sm:$0xf] }
 0x479   :  { %v6131_v32 = vrot.slane %v6129_v45, 7  ;;  %v6213_v40 = vsel %vm9263_vm3, %v11777_v41, %v6212_v35  ;;  %v5670_v19 = vadd.f32 %v11541_v28, %v5634_v29  ;;  %v5080_v62 = vpop.f32.mrf.mxu2  ;;  %v6378_v63 = vrot.slane %v6132_v56, 5 }
 0x47a   :  { %6214 = vst [vmem:[#allocation2 + $0xd0] sm:$0xf] %v6213_v40  ;;  %v5305_v31 = vpop.f32.mrf.mxu3  ;;  %v5565_v8 = vpop.f32.mrf.mxu0  ;;  %v6380_v18 = vrot.slane %v6129_v45, 4 }
 0x47b   :  { %v5702_v48 = vmax.f32 %v5670_v19, 0.0  ;;  %v5306_v33 = vadd.f32 %v5305_v31, %v5080_v62  ;;  %v6379_v23 = vsel %vm9011_vm2, %v6377_v30, %v6378_v63  ;;  %v6134_v60 = vor.u32 %v6132_v56, %v6131_v32 }
 0x47c   :  { %6448 = vrot.lane.b32.xlu2 %v6379_v23, %s8908_s12  ;;  %v6421_v20 = vpop.permute.xlu1 %6420  ;;  %v6381_v16 = vor.u32 %v6380_v18, %v6378_v63 }
 0x47d   :  { %v5734_v41 = vpack.c.bf16 %v5702_v48, %v5702_v48  ;;  %v12005_v42 = vsel %vm9168_vm11, %v6127_v37, %v6134_v60  ;;  %v5599_v61 = vadd.f32 %v5565_v8, %v5306_v33  ;;  %6516 = vst.msk [vmem:[#allocation2 + $0xd0] sm:$0xf] %vm1062_vm4, %v6421_v20 }
 0x47e   :  { %v8878_v13 = vld [vmem:[#allocation2 + $0xc8] sm:$0xff]  ;;  %v6382_v57 = vrot.slane %v6381_v16, 4 }
 0x47f   :  { %v6137_v36 = vshrl.u32 %v5734_v41, 16  ;;  %v6140_v43 = vshll.u32 %v5734_v41, 16  ;;  %v5635_v54 = vmul.f32 %v11530_v5, %v5599_v61  ;;  %5828 = vrot.lane.b32.xlu0 %v5734_v41, %s8907_s11  ;;  %8611 = vmatmul.msk.bf16.gmra.mxu3 %vm1283_vm13, %v8878_v13  ;;  %v8862_v63 = vld [vmem:[#allocation2 + $0xc8] sm:$0xff] }
 0x480   :  { %6450 = vrot.lane.b32.xlu1 %v6382_v57, %s8908_s12  ;;  %v6423_v10 = vpop.permute.xlu0 %6422  ;;  %v8846_v37 = vld [vmem:[#allocation2 + $0xc8] sm:$0xff] }
 0x481   :  { %v6139_v24 = vrot.slane %v6137_v36, 7  ;;  %v5671_v25 = vadd.f32 %v11541_v28, %v5635_v54  ;;  %v6518_v9 = vsel %vm9316_vm6, %v6423_v10, %v6517_v39  ;;  %v6383_v27 = vrot.slane %v6137_v36, 4  ;;  %8441 = vmatmul.msk.bf16.gmra.mxu1 %vm1283_vm13, %v8861_v53 }
 0x482   :  { %6519 = vst [vmem:[#allocation2 + $0xd4] sm:$0xf] %v6518_v9  ;;  %8526 = vmatmul.msk.bf16.gmra.mxu2 %vm1283_vm13, %v8845_v3  ;;  %v6384_v5 = vrot.slane %v6140_v43, 5 }
 0x483   :  { %v12017_v55 = vor.u32 %v6140_v43, %v6139_v24  ;;  %v5703_v11 = vmax.f32 %v5671_v25, 0.0  ;;  %v6143_v29 = vrot.slane %v6139_v24, 4 }
 0x484   :  { %v6385_v17 = vor.u32 %v6384_v5, %v6383_v27 }
 0x485   :  { %v5735_v7 = vpack.c.bf16 %v5703_v11, %v5703_v11 }
 0x486   :  { %v6386_v15 = vrot.slane %v6385_v17, 4 }
 0x487   :  { %v6145_v0 = vshrl.u32 %v5735_v7, 16  ;;  %v6431_v52 = vpop.permute.xlu2 %6430  ;;  %v6148_v44 = vshll.u32 %v5735_v7, 16 }
 0x488   :  { %5830 = vrot.lane.b32.xlu1 %v5735_v7, %s8907_s11  ;;  %v5803_v28 = vpop.permute.xlu0 %5802  ;;  %v12073_v7 = vld [vmem:[%s12439_s6] ss:$0 sm:$0xff] }
 0x489   :  { %v6147_v2 = vrot.slane %v6145_v0, 7  ;;  %5881 = vst.msk [vmem:[#allocation2 + $0xdc] sm:$0xf] %vm428_vm14, %v5803_v28  ;;  %v6387_v58 = vrot.slane %v6148_v44, 5  ;;  %v6389_v45 = vrot.slane %v6145_v0, 4  ;;  %v8879_v32 = vld [vmem:[#allocation2 + $0xd0] sm:$0xff] }
 0x48a   :  { %6219 = vst.msk [vmem:[#allocation2 + $0xdc] sm:$0xf] %vm751_vm15, %v11826_v50  ;;  %v8863_v20 = vld [vmem:[#allocation2 + $0xd0] sm:$0xff]  ;;  %v8622_v0 = vld [vmem:[%s12433_s0 + $0x100] sm:$0xff] }
 0x48b   :  { %v6388_v56 = vsel %vm9011_vm2, %v6386_v15, %v6387_v58  ;;  %v6150_v35 = vor.u32 %v6148_v44, %v6147_v2  ;;  %v6390_v30 = vor.u32 %v6389_v45, %v6387_v58  ;;  %v8847_v16 = vld [vmem:[#allocation2 + $0xd0] sm:$0xff] }
 0x48c   :  { %6452 = vrot.lane.b32.xlu0 %v6388_v56, %s8908_s12 }
 0x48d   :  { %v12028_v40 = vsel %vm9168_vm11, %v6143_v29, %v6150_v35  ;;  %v6391_v19 = vrot.slane %v6390_v30, 4 }
 0x48f   :  { %6454 = vrot.lane.b32.xlu2 %v6391_v19, %s8908_s12  ;;  %8612 = vmatmul.msk.bf16.gmra.mxu3 %vm1283_vm13, %v8879_v32  ;;  %v8623_v19 = vld [vmem:[%s12433_s0 + $0x108] sm:$0xff] }
 0x490   :  { %v6427_v62 = vpop.permute.xlu1 %6426  ;;  %v5805_v50 = vpop.permute.xlu0 %5804 }
 0x491   :  { %v6521_v51 = vld [vmem:[#allocation2 + $0xdc] sm:$0xf]  ;;  %5882 = vst.msk [vmem:[#allocation2 + $0xe0] sm:$0xf] %vm428_vm14, %v5805_v50  ;;  %v5811_v31 = vpop.permute.xlu2 %5810  ;;  %8442 = vmatmul.msk.bf16.gmra.mxu1 %vm1283_vm13, %v8862_v63 }
 0x492   :  { %v6522_v8 = vsel %vm9316_vm6, %v6427_v62, %v6521_v51  ;;  %5885 = vst.msk [vmem:[#allocation2 + $0xec] sm:$0xf] %vm428_vm14, %v5811_v31  ;;  %8527 = vmatmul.msk.bf16.gmra.mxu2 %vm1283_vm13, %v8846_v37 }
 0x493   :  { %6523 = vst [vmem:[#allocation2 + $0xdc] sm:$0xf] %v6522_v8 }
 0x494   :  { %6227 = vst.msk [vmem:[#allocation2 + $0xec] sm:$0xf] %vm751_vm15, %v11884_v59 }
 0x498   :  { %v6220_v21 = vld [vmem:[#allocation2 + $0xe0] sm:$0xf]  ;;  %v5807_v18 = vpop.permute.xlu1 %5806 }
 0x499   :  { %v6221_v48 = vsel %vm9263_vm3, %v11834_v1, %v6220_v21  ;;  %5883 = vst.msk [vmem:[#allocation2 + $0xe4] sm:$0xf] %vm428_vm14, %v5807_v18  ;;  %v5813_v33 = vpop.permute.xlu2 %5812  ;;  %v6990_v1 = vpop.f32.mrf.mxu2 }
 0x49a   :  { %6222 = vst [vmem:[#allocation2 + $0xe0] sm:$0xf] %v6221_v48  ;;  %v8880_v23 = vld [vmem:[#allocation2 + $0xd8] sm:$0xff] }
 0x49b   :  { %6223 = vst.msk [vmem:[#allocation2 + $0xe4] sm:$0xf] %vm751_vm15, %v11852_v26  ;;  %v6529_v25 = vld [vmem:[#allocation2 + $0xec] sm:$0xf]  ;;  %v8864_v9 = vld [vmem:[#allocation2 + $0xd8] sm:$0xff] }
 0x49c   :  { %5886 = vst.msk [vmem:[#allocation2 + $0xf0] sm:$0xf] %vm428_vm14, %v5813_v33  ;;  %v6429_v60 = vpop.permute.xlu0 %6428  ;;  %v8848_v27 = vld [vmem:[#allocation2 + $0xd8] sm:$0xff] }
 0x49d   :  { %6524 = vst.msk [vmem:[#allocation2 + $0xe0] sm:$0xf] %vm1062_vm4, %v6429_v60 }
 0x49f   :  { %8613 = vmatmul.msk.bf16.gmra.mxu3 %vm1283_vm13, %v8880_v23 }
 0x4a0   :  { %v5809_v59 = vpop.permute.xlu1 %5808 }
 0x4a1   :  { %5884 = vst.msk [vmem:[#allocation2 + $0xe8] sm:$0xf] %vm428_vm14, %v5809_v59  ;;  %8443 = vmatmul.msk.bf16.gmra.mxu1 %vm1283_vm13, %v8863_v20  ;;  %v6992_v54 = vpop.f32.mrf.mxu2 }
 0x4a2   :  { %8528 = vmatmul.msk.bf16.gmra.mxu2 %vm1283_vm13, %v8847_v16  ;;  %v6525_v41 = vld [vmem:[#allocation2 + $0xe4] sm:$0xf]  ;;  %v8624_v16 = vld [vmem:[%s12433_s0 + $0x110] sm:$0xff] }
 0x4a3   :  { %v6228_v26 = vld [vmem:[#allocation2 + $0xf0] sm:$0xf]  ;;  %v6526_v61 = vsel %vm9316_vm6, %v6431_v52, %v6525_v41 }
 0x4a4   :  { %v6229_v13 = vsel %vm9263_vm3, %v11895_v34, %v6228_v26  ;;  %6527 = vst [vmem:[#allocation2 + $0xe4] sm:$0xf] %v6526_v61  ;;  %v12065_v34 = vld [vmem:[%s12438_s5] ss:$0 sm:$0xff] }
 0x4a5   :  { %6230 = vst [vmem:[#allocation2 + $0xf0] sm:$0xf] %v6229_v13  ;;  %v6437_v57 = vpop.permute.xlu2 %6436 }
 0x4a6   :  { %6532 = vst.msk [vmem:[#allocation2 + $0xf0] sm:$0xf] %vm1062_vm4, %v6437_v57 }
 0x4a8   :  { %v6224_v36 = vld [vmem:[#allocation2 + $0xe8] sm:$0xf] }
 0x4a9   :  { %v6225_v43 = vsel %vm9263_vm3, %v11861_v47, %v6224_v36 }
 0x4aa   :  { %6226 = vst [vmem:[#allocation2 + $0xe8] sm:$0xf] %v6225_v43 }
 0x4ab   :  { %v8881_v10 = vld [vmem:[#allocation2 + $0xe0] sm:$0xff] }
 0x4ac   :  { %v8865_v31 = vld [vmem:[#allocation2 + $0xe0] sm:$0xff] }
 0x4ad   :  { %v6433_v39 = vpop.permute.xlu1 %6432  ;;  %v8849_v8 = vld [vmem:[#allocation2 + $0xe0] sm:$0xff] }
 0x4ae   :  { %6528 = vst.msk [vmem:[#allocation2 + $0xe8] sm:$0xf] %vm1062_vm4, %v6433_v39  ;;  %v6765_v53 = vpop.f32.mrf.mxu1 }
 0x4af   :  { %8614 = vmatmul.msk.bf16.gmra.mxu3 %vm1283_vm13, %v8881_v10  ;;  %v6991_v3 = vadd.f32 %v6990_v1, %v6765_v53 }
 0x4b0   :  { %v6435_v24 = vpop.permute.xlu0 %6434  ;;  %v7249_v47 = vpop.f32.mrf.mxu3 }
 0x4b1   :  { %v6530_v5 = vsel %vm9316_vm6, %v6435_v24, %v6529_v25  ;;  %v7329_v11 = vadd.f32 %v7249_v47, %v6991_v3  ;;  %8444 = vmatmul.msk.bf16.gmra.mxu1 %vm1283_vm13, %v8864_v9 }
 0x4b2   :  { %6531 = vst [vmem:[#allocation2 + $0xec] sm:$0xf] %v6530_v5  ;;  %8529 = vmatmul.msk.bf16.gmra.mxu2 %vm1283_vm13, %v8848_v27 }
 0x4b3   :  { %v7365_v17 = vmul.f32 %v12065_v34, %v7329_v11 }
 0x4b5   :  { %v6995_v52 = vpop.f32.mrf.mxu2  ;;  %v7401_v44 = vadd.f32 %v12073_v7, %v7365_v17 }
 0x4b6   :  { %v6767_v28 = vpop.f32.mrf.mxu1 }
 0x4b7   :  { %v7465_v2 = vadd.f32 %v8622_v0, %v7401_v44  ;;  %v6993_v15 = vadd.f32 %v6992_v54, %v6767_v28 }
 0x4b8   :  { %v5815_v58 = vpop.permute.xlu0 %5814  ;;  %v7251_v45 = vpop.f32.mrf.mxu3 }
 0x4b9   :  { %5887 = vst.msk [vmem:[#allocation2 + $0xf4] sm:$0xf] %vm428_vm14, %v5815_v58  ;;  %v12083_v29 = vpop.permute.xlu2 %6442  ;;  %v7497_v56 = vmax.f32 %v7465_v2, 0.0  ;;  %v7330_v35 = vadd.f32 %v7251_v45, %v6993_v15  ;;  %v8882_v32 = vld [vmem:[#allocation2 + $0xe8] sm:$0xff]  ;;  %v8626_v58 = vld [vmem:[%s12433_s0 + $0x120] sm:$0xff] }
 0x4ba   :  { %6231 = vst.msk [vmem:[#allocation2 + $0xf4] sm:$0xf] %vm751_vm15, %v11915_v14  ;;  %v8866_v11 = vld [vmem:[#allocation2 + $0xe8] sm:$0xff] }
 0x4bb   :  { %8654 = vst.msk [vmem:[%s12440_s7 + $0x100] sm:$0xff] %vm3874_vm0, %v7497_v56  ;;  %v7366_v30 = vmul.f32 %v12065_v34, %v7330_v35  ;;  %v8850_v17 = vld [vmem:[#allocation2 + $0xe8] sm:$0xff] }
 0x4bd   :  { %v6997_v62 = vpop.f32.mrf.mxu2  ;;  %v7402_v50 = vadd.f32 %v12073_v7, %v7366_v30 }
 0x4be   :  { %v6770_v63 = vpop.f32.mrf.mxu1 }
 0x4bf   :  { %v7466_v37 = vadd.f32 %v8623_v19, %v7402_v50  ;;  %8615 = vmatmul.msk.bf16.gmra.mxu3 %vm1283_vm13, %v8882_v32  ;;  %v6996_v14 = vadd.f32 %v6995_v52, %v6770_v63 }
 0x4c0   :  { %v5817_v51 = vpop.permute.xlu0 %5816  ;;  %v7254_v21 = vpop.f32.mrf.mxu3 }
 0x4c1   :  { %v6439_v18 = vpop.permute.xlu1 %6438  ;;  %v6533_v48 = vld [vmem:[#allocation2 + $0xf4] sm:$0xf]  ;;  %5888 = vst.msk [vmem:[#allocation2 + $0xf8] sm:$0xf] %vm428_vm14, %v5817_v51  ;;  %v7498_v33 = vmax.f32 %v7466_v37, 0.0  ;;  %v7331_v23 = vadd.f32 %v7254_v21, %v6996_v14  ;;  %v5823_v59 = vpop.permute.xlu2 %5822  ;;  %8445 = vmatmul.msk.bf16.gmra.mxu1 %vm1283_vm13, %v8865_v31  ;;  %v8627_v31 = vld [vmem:[%s12433_s0 + $0x128] sm:$0xff] }
 0x4c2   :  { %v6534_v60 = vsel %vm9316_vm6, %v6439_v18, %v6533_v48  ;;  %8530 = vmatmul.msk.bf16.gmra.mxu2 %vm1283_vm13, %v8849_v8  ;;  %5891 = vst.msk [vmem:[#allocation2 + $0x104] sm:$0xf] %vm428_vm14, %v5823_v59 }
 0x4c3   :  { %6535 = vst [vmem:[#allocation2 + $0xf4] sm:$0xf] %v6534_v60  ;;  %v7367_v20 = vmul.f32 %v12065_v34, %v7331_v23 }
 0x4c4   :  { %8655 = vst.msk [vmem:[%s12440_s7 + $0x108] sm:$0xff] %vm3874_vm0, %v7498_v33 }
 0x4c5   :  { %v7000_v1 = vpop.f32.mrf.mxu2  ;;  %v7403_v41 = vadd.f32 %v12073_v7, %v7367_v20  ;;  %6239 = vst.msk [vmem:[#allocation2 + $0x104] sm:$0xf] %vm751_vm15, %v11974_v12 }
 0x4c6   :  { %v6772_v26 = vpop.f32.mrf.mxu1 }
 0x4c7   :  { %v7467_v61 = vadd.f32 %v8624_v16, %v7403_v41  ;;  %v6998_v57 = vadd.f32 %v6997_v62, %v6772_v26 }
 0x4c8   :  { %v6232_v13 = vld [vmem:[#allocation2 + $0xf8] sm:$0xf]  ;;  %v7256_v43 = vpop.f32.mrf.mxu3 }
 0x4c9   :  { %v6233_v36 = vsel %vm9263_vm3, %v11925_v4, %v6232_v13  ;;  %v5819_v54 = vpop.permute.xlu1 %5818  ;;  %v7499_v10 = vmax.f32 %v7467_v61, 0.0  ;;  %v7332_v39 = vadd.f32 %v7256_v43, %v6998_v57  ;;  %v5825_v53 = vpop.permute.xlu2 %5824  ;;  %v8625_v4 = vld [vmem:[%s12433_s0 + $0x118] sm:$0xff]  ;;  %v8628_v57 = vld [vmem:[%s12433_s0 + $0x130] sm:$0xff] }
 0x4ca   :  { %6234 = vst [vmem:[#allocation2 + $0xf8] sm:$0xf] %v6233_v36  ;;  %v8883_v3 = vld [vmem:[#allocation2 + $0xf0] sm:$0xff] }
 0x4cb   :  { %5889 = vst.msk [vmem:[#allocation2 + $0xfc] sm:$0xf] %vm428_vm14, %v5819_v54  ;;  %v7368_v12 = vmul.f32 %v12065_v34, %v7332_v39  ;;  %v8867_v20 = vld [vmem:[#allocation2 + $0xf0] sm:$0xff] }
 0x4cc   :  { %8656 = vst.msk [vmem:[%s12440_s7 + $0x110] sm:$0xff] %vm3874_vm0, %v7499_v10  ;;  %v6541_v59 = vld [vmem:[#allocation2 + $0x104] sm:$0xf]  ;;  %v8851_v16 = vld [vmem:[#allocation2 + $0xf0] sm:$0xff] }
 0x4cd   :  { %6235 = vst.msk [vmem:[#allocation2 + $0xfc] sm:$0xf] %vm751_vm15, %v11942_v46  ;;  %v6441_v24 = vpop.permute.xlu0 %6440  ;;  %v7002_v25 = vpop.f32.mrf.mxu2  ;;  %v7404_v9 = vadd.f32 %v12073_v7, %v7368_v12 }
 0x4ce   :  { %5892 = vst.msk [vmem:[#allocation2 + $0x108] sm:$0xf] %vm428_vm14, %v5825_v53  ;;  %v6775_v27 = vpop.f32.mrf.mxu1 }
 0x4cf   :  { %6536 = vst.msk [vmem:[#allocation2 + $0xf8] sm:$0xf] %vm1062_vm4, %v6441_v24  ;;  %v7468_v47 = vadd.f32 %v8625_v4, %v7404_v9  ;;  %8616 = vmatmul.msk.bf16.gmra.mxu3 %vm1283_vm13, %v8883_v3  ;;  %v7001_v5 = vadd.f32 %v7000_v1, %v6775_v27  ;;  %v8629_v9 = vld [vmem:[%s12433_s0 + $0x138] sm:$0xff] }
 0x4d0   :  { %v7259_v0 = vpop.f32.mrf.mxu3 }
 0x4d1   :  { %v5821_v52 = vpop.permute.xlu1 %5820  ;;  %v7500_v44 = vmax.f32 %v7468_v47, 0.0  ;;  %v7333_v28 = vadd.f32 %v7259_v0, %v7001_v5  ;;  %8446 = vmatmul.msk.bf16.gmra.mxu1 %vm1283_vm13, %v8866_v11 }
 0x4d2   :  { %5890 = vst.msk [vmem:[#allocation2 + $0x100] sm:$0xf] %vm428_vm14, %v5821_v52  ;;  %8531 = vmatmul.msk.bf16.gmra.mxu2 %vm1283_vm13, %v8850_v17 }
 0x4d3   :  { %8657 = vst.msk [vmem:[%s12440_s7 + $0x118] sm:$0xff] %vm3874_vm0, %v7500_v44  ;;  %v7369_v46 = vmul.f32 %v12065_v34, %v7333_v28 }
 0x4d4   :  { %v6537_v2 = vld [vmem:[#allocation2 + $0xfc] sm:$0xf] }
 0x4d5   :  { %v6240_v15 = vld [vmem:[#allocation2 + $0x108] sm:$0xf]  ;;  %v7005_v45 = vpop.f32.mrf.mxu2  ;;  %v6538_v56 = vsel %vm9316_vm6, %v12083_v29, %v6537_v2  ;;  %v7405_v30 = vadd.f32 %v12073_v7, %v7369_v46 }
 0x4d6   :  { %v6241_v35 = vsel %vm9263_vm3, %v11985_v6, %v6240_v15  ;;  %v6449_v32 = vpop.permute.xlu2 %6448  ;;  %6539 = vst [vmem:[#allocation2 + $0xfc] sm:$0xf] %v6538_v56  ;;  %v6777_v19 = vpop.f32.mrf.mxu1  ;;  %v8630_v56 = vld [vmem:[%s12433_s0 + $0x140] sm:$0xff] }
 0x4d7   :  { %6242 = vst [vmem:[#allocation2 + $0x108] sm:$0xf] %v6241_v35  ;;  %v7469_v62 = vadd.f32 %v8626_v58, %v7405_v30  ;;  %v7003_v50 = vadd.f32 %v7002_v25, %v6777_v19 }
 0x4d8   :  { %6544 = vst.msk [vmem:[#allocation2 + $0x108] sm:$0xf] %vm1062_vm4, %v6449_v32  ;;  %v7261_v37 = vpop.f32.mrf.mxu3 }
 0x4d9   :  { %v6236_v63 = vld [vmem:[#allocation2 + $0x100] sm:$0xf]  ;;  %v7501_v14 = vmax.f32 %v7469_v62, 0.0  ;;  %v7334_v51 = vadd.f32 %v7261_v37, %v7003_v50 }
 0x4da   :  { %v6237_v29 = vsel %vm9263_vm3, %v11950_v22, %v6236_v63 }
 0x4db   :  { %6238 = vst [vmem:[#allocation2 + $0x100] sm:$0xf] %v6237_v29  ;;  %v7370_v6 = vmul.f32 %v12065_v34, %v7334_v51 }
 0x4dc   :  { %8658 = vst.msk [vmem:[%s12440_s7 + $0x120] sm:$0xff] %vm3874_vm0, %v7501_v14 }
 0x4dd   :  { %v8884_v8 = vld [vmem:[#allocation2 + $0xf8] sm:$0xff]  ;;  %v6445_v21 = vpop.permute.xlu1 %6444  ;;  %v7007_v18 = vpop.f32.mrf.mxu2  ;;  %v7406_v48 = vadd.f32 %v12073_v7, %v7370_v6 }
 0x4de   :  { %6540 = vst.msk [vmem:[#allocation2 + $0x100] sm:$0xf] %vm1062_vm4, %v6445_v21  ;;  %v6780_v22 = vpop.f32.mrf.mxu1  ;;  %v8868_v17 = vld [vmem:[#allocation2 + $0xf8] sm:$0xff] }
 0x4df   :  { %v7470_v33 = vadd.f32 %v8627_v31, %v7406_v48  ;;  %8617 = vmatmul.msk.bf16.gmra.mxu3 %vm1283_vm13, %v8884_v8  ;;  %v7006_v23 = vadd.f32 %v7005_v45, %v6780_v22  ;;  %v8852_v0 = vld [vmem:[#allocation2 + $0xf8] sm:$0xff]  ;;  %v8631_v8 = vld [vmem:[%s12433_s0 + $0x148] sm:$0xff] }
 0x4e0   :  { %v6447_v60 = vpop.permute.xlu0 %6446  ;;  %v7264_v1 = vpop.f32.mrf.mxu3 }
 0x4e1   :  { %v6542_v41 = vsel %vm9316_vm6, %v6447_v60, %v6541_v59  ;;  %v7502_v26 = vmax.f32 %v7470_v33, 0.0  ;;  %v7335_v61 = vadd.f32 %v7264_v1, %v7006_v23  ;;  %8447 = vmatmul.msk.bf16.gmra.mxu1 %vm1283_vm13, %v8867_v20 }
 0x4e2   :  { %6543 = vst [vmem:[#allocation2 + $0x104] sm:$0xf] %v6542_v41  ;;  %8532 = vmatmul.msk.bf16.gmra.mxu2 %vm1283_vm13, %v8851_v16 }
 0x4e3   :  { %8659 = vst.msk [vmem:[%s12440_s7 + $0x128] sm:$0xff] %vm3874_vm0, %v7502_v26  ;;  %v7371_v13 = vmul.f32 %v12065_v34, %v7335_v61  ;;  %v8632_v61 = vld [vmem:[%s12433_s0 + $0x150] sm:$0xff] }
 0x4e5   :  { %v7010_v36 = vpop.f32.mrf.mxu2  ;;  %v7407_v43 = vadd.f32 %v12073_v7, %v7371_v13 }
 0x4e6   :  { %v6782_v54 = vpop.f32.mrf.mxu1 }
 0x4e7   :  { %v7471_v10 = vadd.f32 %v8628_v57, %v7407_v43  ;;  %v7008_v39 = vadd.f32 %v7007_v18, %v6782_v54 }
 0x4e8   :  { %v7266_v53 = vpop.f32.mrf.mxu3 }
 0x4e9   :  { %v5827_v12 = vpop.permute.xlu0 %5826  ;;  %v7503_v3 = vmax.f32 %v7471_v10, 0.0  ;;  %v7336_v4 = vadd.f32 %v7266_v53, %v7008_v39  ;;  %v8885_v25 = vld [vmem:[#allocation2 + $0x100] sm:$0xff]  ;;  %v6455_v20 = vpop.permute.xlu2 %6454 }
 0x4ea   :  { %5893 = vst.msk [vmem:[#allocation2 + $0x10c] sm:$0xf] %vm428_vm14, %v5827_v12  ;;  %v8869_v33 = vld [vmem:[#allocation2 + $0x100] sm:$0xff] }
 0x4eb   :  { %6243 = vst.msk [vmem:[#allocation2 + $0x10c] sm:$0xf] %vm751_vm15, %v12005_v42  ;;  %v7372_v24 = vmul.f32 %v12065_v34, %v7336_v4  ;;  %v8853_v23 = vld [vmem:[#allocation2 + $0x100] sm:$0xff] }
 0x4ec   :  { %8660 = vst.msk [vmem:[%s12440_s7 + $0x130] sm:$0xff] %vm3874_vm0, %v7503_v3  ;;  %v8633_v3 = vld [vmem:[%s12433_s0 + $0x158] sm:$0xff] }
 0x4ed   :  { %v7012_v27 = vpop.f32.mrf.mxu2  ;;  %v7408_v47 = vadd.f32 %v12073_v7, %v7372_v24 }
 0x4ee   :  { %v6785_v5 = vpop.f32.mrf.mxu1 }
 0x4ef   :  { %v7472_v11 = vadd.f32 %v8629_v9, %v7408_v47  ;;  %8618 = vmatmul.msk.bf16.gmra.mxu3 %vm1283_vm13, %v8885_v25  ;;  %v7011_v42 = vadd.f32 %v7010_v36, %v6785_v5 }
 0x4f0   :  { %v7269_v52 = vpop.f32.mrf.mxu3 }
 0x4f1   :  { %v5829_v44 = vpop.permute.xlu0 %5828  ;;  %v7504_v28 = vmax.f32 %v7472_v11, 0.0  ;;  %v7337_v46 = vadd.f32 %v7269_v52, %v7011_v42  ;;  %8448 = vmatmul.msk.bf16.gmra.mxu1 %vm1283_vm13, %v8868_v17  ;;  %v8634_v52 = vld [vmem:[%s12433_s0 + $0x160] sm:$0xff] }
 0x4f2   :  { %v6451_v2 = vpop.permute.xlu1 %6450  ;;  %v6545_v15 = vld [vmem:[#allocation2 + $0x10c] sm:$0xf]  ;;  %5894 = vst.msk [vmem:[#allocation2 + $0x110] sm:$0xf] %vm428_vm14, %v5829_v44  ;;  %8533 = vmatmul.msk.bf16.gmra.mxu2 %vm1283_vm13, %v8852_v0 }
 0x4f3   :  { %v6546_v58 = vsel %vm9316_vm6, %v6451_v2, %v6545_v15  ;;  %8661 = vst.msk [vmem:[%s12440_s7 + $0x138] sm:$0xff] %vm3874_vm0, %v7504_v28  ;;  %v7373_v45 = vmul.f32 %v12065_v34, %v7337_v46 }
 0x4f4   :  { %6547 = vst [vmem:[#allocation2 + $0x10c] sm:$0xf] %v6546_v58 }
 0x4f5   :  { %v7015_v35 = vpop.f32.mrf.mxu2  ;;  %v7409_v30 = vadd.f32 %v12073_v7, %v7373_v45 }
 0x4f6   :  { %v6787_v32 = vpop.f32.mrf.mxu1 }
 0x4f7   :  { %v7473_v19 = vadd.f32 %v8630_v56, %v7409_v30  ;;  %v7013_v62 = vadd.f32 %v7012_v27, %v6787_v32  ;;  %v8888_v56 = vld [vmem:[#allocation2 + $0x118] sm:$0xff]  ;;  %v8635_v32 = vld [vmem:[%s12433_s0 + $0x168] sm:$0xff] }
 0x4f8   :  { %v7271_v63 = vpop.f32.mrf.mxu3 }
 0x4f9   :  { %v6244_v50 = vld [vmem:[#allocation2 + $0x110] sm:$0xf]  ;;  %v7505_v37 = vmax.f32 %v7473_v19, 0.0  ;;  %v7338_v29 = vadd.f32 %v7271_v63, %v7013_v62 }
 0x4fa   :  { %v6245_v14 = vsel %vm9263_vm3, %v12017_v55, %v6244_v50  ;;  %v5831_v51 = vpop.permute.xlu1 %5830 }
 0x4fb   :  { %6246 = vst [vmem:[#allocation2 + $0x110] sm:$0xf] %v6245_v14  ;;  %v7374_v6 = vmul.f32 %v12065_v34, %v7338_v29  ;;  %v8886_v31 = vld [vmem:[#allocation2 + $0x108] sm:$0xff] }
 0x4fc   :  { %8662 = vst.msk [vmem:[%s12440_s7 + $0x140] sm:$0xff] %vm3874_vm0, %v7505_v37  ;;  %v8870_v9 = vld [vmem:[#allocation2 + $0x108] sm:$0xff] }
 0x4fd   :  { %5895 = vst.msk [vmem:[#allocation2 + $0x114] sm:$0xf] %vm428_vm14, %v5831_v51  ;;  %v7017_v21 = vpop.f32.mrf.mxu2  ;;  %v7410_v49 = vadd.f32 %v12073_v7, %v7374_v6  ;;  %v8854_v27 = vld [vmem:[#allocation2 + $0x108] sm:$0xff] }
 0x4fe   :  { %6247 = vst.msk [vmem:[#allocation2 + $0x114] sm:$0xf] %vm751_vm15, %v12028_v40  ;;  %v6453_v55 = vpop.permute.xlu0 %6452  ;;  %v6790_v18 = vpop.f32.mrf.mxu1 }
 0x4ff   :  { %6548 = vst.msk [vmem:[#allocation2 + $0x110] sm:$0xf] %vm1062_vm4, %v6453_v55  ;;  %v7474_v48 = vadd.f32 %v8631_v8, %v7410_v49  ;;  %8619 = vmatmul.msk.bf16.gmra.mxu3 %vm1283_vm13, %v8886_v31  ;;  %v7016_v22 = vadd.f32 %v7015_v35, %v6790_v18  ;;  %v8636_v8 = vld [vmem:[%s12433_s0 + $0x170] sm:$0xff] }
 0x501   :  { %v7506_v60 = vmax.f32 %v7474_v48, 0.0  ;;  %8449 = vmatmul.msk.bf16.gmra.mxu1 %vm1283_vm13, %v8869_v33 }
 0x502   :  { %8534 = vmatmul.msk.bf16.gmra.mxu2 %vm1283_vm13, %v8853_v23  ;;  %v7274_v59 = vpop.f32.mrf.mxu3 }
 0x503   :  { %8663 = vst.msk [vmem:[%s12440_s7 + $0x148] sm:$0xff] %vm3874_vm0, %v7506_v60  ;;  %v7339_v40 = vadd.f32 %v7274_v59, %v7016_v22  ;;  %v8637_v59 = vld [vmem:[%s12433_s0 + $0x178] sm:$0xff] }
 0x505   :  { %v6549_v16 = vld [vmem:[#allocation2 + $0x114] sm:$0xf]  ;;  %v7020_v1 = vpop.f32.mrf.mxu2  ;;  %v7375_v26 = vmul.f32 %v12065_v34, %v7339_v40 }
 0x506   :  { %v6550_v41 = vsel %vm9316_vm6, %v6455_v20, %v6549_v16  ;;  %v6792_v13 = vpop.f32.mrf.mxu1 }
 0x507   :  { %6551 = vst [vmem:[#allocation2 + $0x114] sm:$0xf] %v6550_v41  ;;  %v7411_v57 = vadd.f32 %v12073_v7, %v7375_v26  ;;  %v7018_v36 = vadd.f32 %v7017_v21, %v6792_v13 }
 0x509   :  { %v7475_v43 = vadd.f32 %v8632_v61, %v7411_v57 }
 0x50a   :  { %v7276_v54 = vpop.f32.mrf.mxu3 }
 0x50b   :  { %v7507_v10 = vmax.f32 %v7475_v43, 0.0  ;;  %v7340_v39 = vadd.f32 %v7276_v54, %v7018_v36  ;;  %v8638_v36 = vld [vmem:[%s12433_s0 + $0x180] sm:$0xff] }
 0x50d   :  { %v7022_v53 = vpop.f32.mrf.mxu2  ;;  %8664 = vst.msk [vmem:[%s12440_s7 + $0x150] sm:$0xff] %vm3874_vm0, %v7507_v10  ;;  %v7376_v38 = vmul.f32 %v12065_v34, %v7340_v39 }
 0x50e   :  { %v8887_v12 = vld [vmem:[#allocation2 + $0x110] sm:$0xff]  ;;  %v6795_v4 = vpop.f32.mrf.mxu1 }
 0x50f   :  { %v7412_v24 = vadd.f32 %v12073_v7, %v7376_v38  ;;  %8620 = vmatmul.msk.bf16.gmra.mxu3 %vm1283_vm13, %v8887_v12  ;;  %v7021_v25 = vadd.f32 %v7020_v1, %v6795_v4  ;;  %v8871_v63 = vld [vmem:[#allocation2 + $0x110] sm:$0xff] }
 0x511   :  { %v7476_v47 = vadd.f32 %v8633_v3, %v7412_v24  ;;  %8450 = vmatmul.msk.bf16.gmra.mxu1 %vm1283_vm13, %v8870_v9  ;;  %v8639_v24 = vld [vmem:[%s12433_s0 + $0x188] sm:$0xff] }
 0x512   :  { %8535 = vmatmul.msk.bf16.gmra.mxu2 %vm1283_vm13, %v8854_v27  ;;  %v7279_v5 = vpop.f32.mrf.mxu3 }
 0x513   :  { %v7508_v11 = vmax.f32 %v7476_v47, 0.0  ;;  %v7341_v42 = vadd.f32 %v7279_v5, %v7021_v25 }
 0x515   :  { %v7025_v17 = vpop.f32.mrf.mxu2  ;;  %8665 = vst.msk [vmem:[%s12440_s7 + $0x158] sm:$0xff] %vm3874_vm0, %v7508_v11  ;;  %v7377_v0 = vmul.f32 %v12065_v34, %v7341_v42 }
 0x516   :  { %v6797_v44 = vpop.f32.mrf.mxu1 }
 0x517   :  { %v7413_v28 = vadd.f32 %v12073_v7, %v7377_v0  ;;  %v7023_v46 = vadd.f32 %v7022_v53, %v6797_v44 }
 0x519   :  { %v7477_v2 = vadd.f32 %v8634_v52, %v7413_v28  ;;  %v8640_v52 = vld [vmem:[%s12433_s0 + $0x190] sm:$0xff] }
 0x51a   :  { %v7281_v15 = vpop.f32.mrf.mxu3 }
 0x51b   :  { %v7509_v58 = vmax.f32 %v7477_v2, 0.0  ;;  %v7342_v45 = vadd.f32 %v7281_v15, %v7023_v46 }
 0x51d   :  { %v7027_v35 = vpop.f32.mrf.mxu2  ;;  %8666 = vst.msk [vmem:[%s12440_s7 + $0x160] sm:$0xff] %vm3874_vm0, %v7509_v58  ;;  %v7378_v30 = vmul.f32 %v12065_v34, %v7342_v45 }
 0x51e   :  { %v6800_v19 = vpop.f32.mrf.mxu1 }
 0x51f   :  { %v7414_v62 = vadd.f32 %v12073_v7, %v7378_v30  ;;  %8621 = vmatmul.msk.bf16.gmra.mxu3 %vm1283_vm13, %v8888_v56  ;;  %v7026_v50 = vadd.f32 %v7025_v17, %v6800_v19  ;;  %v8641_v30 = vld [vmem:[%s12433_s0 + $0x198] sm:$0xff] }
 0x521   :  { %v7478_v37 = vadd.f32 %v8635_v32, %v7414_v62  ;;  %8451 = vmatmul.msk.bf16.gmra.mxu1 %vm1283_vm13, %v8871_v63 }
 0x522   :  { %v7284_v14 = vpop.f32.mrf.mxu3 }
 0x523   :  { %v7510_v29 = vmax.f32 %v7478_v37, 0.0  ;;  %v7343_v51 = vadd.f32 %v7284_v14, %v7026_v50 }
 0x525   :  { %v7030_v6 = vpop.f32.mrf.mxu2  ;;  %8667 = vst.msk [vmem:[%s12440_s7 + $0x168] sm:$0xff] %vm3874_vm0, %v7510_v29  ;;  %v7379_v31 = vmul.f32 %v12065_v34, %v7343_v51 }
 0x526   :  { %v6802_v21 = vpop.f32.mrf.mxu1 }
 0x527   :  { %v7415_v49 = vadd.f32 %v12073_v7, %v7379_v31  ;;  %v7028_v55 = vadd.f32 %v7027_v35, %v6802_v21 }
 0x529   :  { %v7479_v18 = vadd.f32 %v8636_v8, %v7415_v49 }
 0x52a   :  { %v7286_v48 = vpop.f32.mrf.mxu3 }
 0x52b   :  { %v7511_v22 = vmax.f32 %v7479_v18, 0.0  ;;  %v7344_v33 = vadd.f32 %v7286_v48, %v7028_v55 }
 0x52d   :  { %v7032_v23 = vpop.f32.mrf.mxu2  ;;  %8668 = vst.msk [vmem:[%s12440_s7 + $0x170] sm:$0xff] %vm3874_vm0, %v7511_v22  ;;  %v7380_v60 = vmul.f32 %v12065_v34, %v7344_v33 }
 0x52e   :  { %v6805_v40 = vpop.f32.mrf.mxu1 }
 0x52f   :  { %v7416_v20 = vadd.f32 %v12073_v7, %v7380_v60  ;;  %v7031_v16 = vadd.f32 %v7030_v6, %v6805_v40  ;;  %v8642_v6 = vld [vmem:[%s12433_s0 + $0x1a0] sm:$0xff] }
 0x531   :  { %v7480_v1 = vadd.f32 %v8637_v59, %v7416_v20 }
 0x532   :  { %v7289_v41 = vpop.f32.mrf.mxu3 }
 0x533   :  { %v7512_v26 = vmax.f32 %v7480_v1, 0.0  ;;  %v7345_v61 = vadd.f32 %v7289_v41, %v7031_v16 }
 0x535   :  { %v7035_v13 = vpop.f32.mrf.mxu2  ;;  %8669 = vst.msk [vmem:[%s12440_s7 + $0x178] sm:$0xff] %vm3874_vm0, %v7512_v26  ;;  %v7381_v57 = vmul.f32 %v12065_v34, %v7345_v61 }
 0x536   :  { %v6807_v43 = vpop.f32.mrf.mxu1 }
 0x537   :  { %v7417_v54 = vadd.f32 %v12073_v7, %v7381_v57  ;;  %v7033_v10 = vadd.f32 %v7032_v23, %v6807_v43  ;;  %v8643_v23 = vld [vmem:[%s12433_s0 + $0x1a8] sm:$0xff] }
 0x539   :  { %v7481_v39 = vadd.f32 %v8638_v36, %v7417_v54 }
 0x53a   :  { %v7291_v53 = vpop.f32.mrf.mxu3 }
 0x53b   :  { %v7513_v38 = vmax.f32 %v7481_v39, 0.0  ;;  %v7346_v12 = vadd.f32 %v7291_v53, %v7033_v10 }
 0x53d   :  { %v7037_v3 = vpop.f32.mrf.mxu2  ;;  %8670 = vst.msk [vmem:[%s12440_s7 + $0x180] sm:$0xff] %vm3874_vm0, %v7513_v38  ;;  %v7382_v4 = vmul.f32 %v12065_v34, %v7346_v12 }
 0x53e   :  { %v6810_v25 = vpop.f32.mrf.mxu1 }
 0x53f   :  { %v7418_v9 = vadd.f32 %v12073_v7, %v7382_v4  ;;  %v7036_v27 = vadd.f32 %v7035_v13, %v6810_v25  ;;  %v8644_v13 = vld [vmem:[%s12433_s0 + $0x1b0] sm:$0xff] }
 0x541   :  { %v7482_v47 = vadd.f32 %v8639_v24, %v7418_v9 }
 0x542   :  { %v7294_v5 = vpop.f32.mrf.mxu3 }
 0x543   :  { %v7514_v11 = vmax.f32 %v7482_v47, 0.0  ;;  %v7347_v42 = vadd.f32 %v7294_v5, %v7036_v27 }
 0x545   :  { %v7040_v17 = vpop.f32.mrf.mxu2  ;;  %8671 = vst.msk [vmem:[%s12440_s7 + $0x188] sm:$0xff] %vm3874_vm0, %v7514_v11  ;;  %v7383_v0 = vmul.f32 %v12065_v34, %v7347_v42 }
 0x546   :  { %v6812_v44 = vpop.f32.mrf.mxu1 }
 0x547   :  { %v7419_v28 = vadd.f32 %v12073_v7, %v7383_v0  ;;  %v7038_v46 = vadd.f32 %v7037_v3, %v6812_v44  ;;  %v8645_v3 = vld [vmem:[%s12433_s0 + $0x1b8] sm:$0xff] }
 0x549   :  { %v7483_v2 = vadd.f32 %v8640_v52, %v7419_v28 }
 0x54a   :  { %v7296_v15 = vpop.f32.mrf.mxu3 }
 0x54b   :  { %v7515_v58 = vmax.f32 %v7483_v2, 0.0  ;;  %v7348_v45 = vadd.f32 %v7296_v15, %v7038_v46 }
 0x54d   :  { %v7042_v56 = vpop.f32.mrf.mxu2  ;;  %8672 = vst.msk [vmem:[%s12440_s7 + $0x190] sm:$0xff] %vm3874_vm0, %v7515_v58  ;;  %v7384_v35 = vmul.f32 %v12065_v34, %v7348_v45  ;;  %v8647_v45 = vld [vmem:[%s12433_s0 + $0x1c8] sm:$0xff] }
 0x54e   :  { %v6815_v32 = vpop.f32.mrf.mxu1 }
 0x54f   :  { %v7420_v19 = vadd.f32 %v12073_v7, %v7384_v35  ;;  %v7041_v62 = vadd.f32 %v7040_v17, %v6815_v32  ;;  %v8646_v17 = vld [vmem:[%s12433_s0 + $0x1c0] sm:$0xff] }
 0x551   :  { %v7484_v50 = vadd.f32 %v8641_v30, %v7420_v19 }
 0x552   :  { %v7299_v63 = vpop.f32.mrf.mxu3 }
 0x553   :  { %v7516_v37 = vmax.f32 %v7484_v50, 0.0  ;;  %v7349_v14 = vadd.f32 %v7299_v63, %v7041_v62 }
 0x555   :  { %v7045_v29 = vpop.f32.mrf.mxu2  ;;  %8673 = vst.msk [vmem:[%s12440_s7 + $0x198] sm:$0xff] %vm3874_vm0, %v7516_v37  ;;  %v7385_v51 = vmul.f32 %v12065_v34, %v7349_v14  ;;  %v8648_v14 = vld [vmem:[%s12433_s0 + $0x1d0] sm:$0xff] }
 0x556   :  { %v6817_v31 = vpop.f32.mrf.mxu1 }
 0x557   :  { %v7421_v8 = vadd.f32 %v12073_v7, %v7385_v51  ;;  %v7043_v21 = vadd.f32 %v7042_v56, %v6817_v31 }
 0x559   :  { %v7485_v49 = vadd.f32 %v8642_v6, %v7421_v8 }
 0x55a   :  { %v7301_v55 = vpop.f32.mrf.mxu3 }
 0x55b   :  { %v7517_v18 = vmax.f32 %v7485_v49, 0.0  ;;  %v7350_v48 = vadd.f32 %v7301_v55, %v7043_v21 }
 0x55d   :  { %v7047_v22 = vpop.f32.mrf.mxu2  ;;  %8674 = vst.msk [vmem:[%s12440_s7 + $0x1a0] sm:$0xff] %vm3874_vm0, %v7517_v18  ;;  %v7386_v33 = vmul.f32 %v12065_v34, %v7350_v48  ;;  %v8649_v48 = vld [vmem:[%s12433_s0 + $0x1d8] sm:$0xff] }
 0x55e   :  { %v6820_v60 = vpop.f32.mrf.mxu1 }
 0x55f   :  { %v7422_v59 = vadd.f32 %v12073_v7, %v7386_v33  ;;  %v7046_v40 = vadd.f32 %v7045_v29, %v6820_v60 }
 0x561   :  { %v7486_v20 = vadd.f32 %v8643_v23, %v7422_v59 }
 0x562   :  { %v7304_v16 = vpop.f32.mrf.mxu3 }
 0x563   :  { %v7518_v1 = vmax.f32 %v7486_v20, 0.0  ;;  %v7351_v41 = vadd.f32 %v7304_v16, %v7046_v40 }
 0x565   :  { %v7050_v26 = vpop.f32.mrf.mxu2  ;;  %8675 = vst.msk [vmem:[%s12440_s7 + $0x1a8] sm:$0xff] %vm3874_vm0, %v7518_v1  ;;  %v7387_v61 = vmul.f32 %v12065_v34, %v7351_v41  ;;  %v8650_v41 = vld [vmem:[%s12433_s0 + $0x1e0] sm:$0xff] }
 0x566   :  { %v6822_v57 = vpop.f32.mrf.mxu1 }
 0x567   :  { %v7423_v36 = vadd.f32 %v12073_v7, %v7387_v61  ;;  %v7048_v43 = vadd.f32 %v7047_v22, %v6822_v57 }
 0x569   :  { %v7487_v54 = vadd.f32 %v8644_v13, %v7423_v36 }
 0x56a   :  { %v7306_v10 = vpop.f32.mrf.mxu3 }
 0x56b   :  { %v7519_v39 = vmax.f32 %v7487_v54, 0.0  ;;  %v7352_v53 = vadd.f32 %v7306_v10, %v7048_v43 }
 0x56d   :  { %v7052_v38 = vpop.f32.mrf.mxu2  ;;  %8676 = vst.msk [vmem:[%s12440_s7 + $0x1b0] sm:$0xff] %vm3874_vm0, %v7519_v39  ;;  %v7388_v12 = vmul.f32 %v12065_v34, %v7352_v53  ;;  %v8651_v53 = vld [vmem:[%s12433_s0 + $0x1e8] sm:$0xff] }
 0x56e   :  { %v6825_v4 = vpop.f32.mrf.mxu1 }
 0x56f   :  { %v7424_v24 = vadd.f32 %v12073_v7, %v7388_v12  ;;  %v7051_v25 = vadd.f32 %v7050_v26, %v6825_v4 }
 0x571   :  { %v7488_v9 = vadd.f32 %v8645_v3, %v7424_v24 }
 0x572   :  { %v7309_v27 = vpop.f32.mrf.mxu3 }
 0x573   :  { %v7520_v47 = vmax.f32 %v7488_v9, 0.0  ;;  %v7353_v5 = vadd.f32 %v7309_v27, %v7051_v25 }
 0x575   :  { %v7055_v11 = vpop.f32.mrf.mxu2  ;;  %8677 = vst.msk [vmem:[%s12440_s7 + $0x1b8] sm:$0xff] %vm3874_vm0, %v7520_v47  ;;  %v7389_v42 = vmul.f32 %v12065_v34, %v7353_v5  ;;  %v8652_v5 = vld [vmem:[%s12433_s0 + $0x1f0] sm:$0xff] }
 0x576   :  { %v6827_v0 = vpop.f32.mrf.mxu1 }
 0x577   :  { %v7425_v52 = vadd.f32 %v12073_v7, %v7389_v42  ;;  %v7053_v44 = vadd.f32 %v7052_v38, %v6827_v0 }
 0x579   :  { %v7489_v28 = vadd.f32 %v8646_v17, %v7425_v52 }
 0x57a   :  { %v7311_v46 = vpop.f32.mrf.mxu3 }
 0x57b   :  { %v7521_v2 = vmax.f32 %v7489_v28, 0.0  ;;  %v7354_v15 = vadd.f32 %v7311_v46, %v7053_v44 }
 0x57d   :  { %8678 = vst.msk [vmem:[%s12440_s7 + $0x1c0] sm:$0xff] %vm3874_vm0, %v7521_v2  ;;  %v7390_v58 = vmul.f32 %v12065_v34, %v7354_v15  ;;  %v7057_v56 = vpop.f32.mrf.mxu2  ;;  %v8653_v2 = vld [vmem:[%s12433_s0 + $0x1f8] sm:$0xff] }
 0x57e   :  { %v6830_v35 = vpop.f32.mrf.mxu1 }
 0x57f   :  { %v7426_v30 = vadd.f32 %v12073_v7, %v7390_v58  ;;  %v7056_v32 = vadd.f32 %v7055_v11, %v6830_v35 }
 0x581   :  { %v7490_v19 = vadd.f32 %v8647_v45, %v7426_v30 }
 0x582   :  { %v7314_v62 = vpop.f32.mrf.mxu3 }
 0x583   :  { %v7522_v50 = vmax.f32 %v7490_v19, 0.0  ;;  %v7355_v63 = vadd.f32 %v7314_v62, %v7056_v32 }
 0x585   :  { %8679 = vst.msk [vmem:[%s12440_s7 + $0x1c8] sm:$0xff] %vm3874_vm0, %v7522_v50  ;;  %v7391_v37 = vmul.f32 %v12065_v34, %v7355_v63  ;;  %v7060_v31 = vpop.f32.mrf.mxu2 }
 0x586   :  { %v6832_v29 = vpop.f32.mrf.mxu1 }
 0x587   :  { %v7427_v51 = vadd.f32 %v12073_v7, %v7391_v37  ;;  %v7058_v6 = vadd.f32 %v7057_v56, %v6832_v29 }
 0x589   :  { %v7491_v8 = vadd.f32 %v8648_v14, %v7427_v51 }
 0x58a   :  { %v7316_v21 = vpop.f32.mrf.mxu3 }
 0x58b   :  { %v7523_v49 = vmax.f32 %v7491_v8, 0.0  ;;  %v7356_v55 = vadd.f32 %v7316_v21, %v7058_v6 }
 0x58d   :  { %8680 = vst.msk [vmem:[%s12440_s7 + $0x1d0] sm:$0xff] %vm3874_vm0, %v7523_v49  ;;  %v7392_v18 = vmul.f32 %v12065_v34, %v7356_v55  ;;  %v7062_v59 = vpop.f32.mrf.mxu2 }
 0x58e   :  { %v6835_v22 = vpop.f32.mrf.mxu1 }
 0x58f   :  { %v7428_v33 = vadd.f32 %v12073_v7, %v7392_v18  ;;  %v7061_v23 = vadd.f32 %v7060_v31, %v6835_v22 }
 0x591   :  { %v7492_v60 = vadd.f32 %v8649_v48, %v7428_v33 }
 0x592   :  { %v7319_v40 = vpop.f32.mrf.mxu3 }
 0x593   :  { %v7524_v20 = vmax.f32 %v7492_v60, 0.0  ;;  %v7357_v16 = vadd.f32 %v7319_v40, %v7061_v23 }
 0x595   :  { %8681 = vst.msk [vmem:[%s12440_s7 + $0x1d8] sm:$0xff] %vm3874_vm0, %v7524_v20  ;;  %v7393_v1 = vmul.f32 %v12065_v34, %v7357_v16  ;;  %v7065_v10 = vpop.f32.mrf.mxu2 }
 0x596   :  { %v6837_v26 = vpop.f32.mrf.mxu1 }
 0x597   :  { %v7429_v61 = vadd.f32 %v12073_v7, %v7393_v1  ;;  %v7063_v13 = vadd.f32 %v7062_v59, %v6837_v26 }
 0x599   :  { %v7493_v57 = vadd.f32 %v8650_v41, %v7429_v61 }
 0x59a   :  { %v7321_v36 = vpop.f32.mrf.mxu3 }
 0x59b   :  { %v7525_v43 = vmax.f32 %v7493_v57, 0.0  ;;  %v7358_v54 = vadd.f32 %v7321_v36, %v7063_v13 }
 0x59d   :  { %8682 = vst.msk [vmem:[%s12440_s7 + $0x1e0] sm:$0xff] %vm3874_vm0, %v7525_v43  ;;  %v7394_v39 = vmul.f32 %v12065_v34, %v7358_v54  ;;  %v7067_v47 = vpop.f32.mrf.mxu2 }
 0x59e   :  { %v6840_v38 = vpop.f32.mrf.mxu1 }
 0x59f   :  { %v7430_v12 = vadd.f32 %v12073_v7, %v7394_v39  ;;  %v7066_v3 = vadd.f32 %v7065_v10, %v6840_v38 }
 0x5a1   :  { %v7494_v4 = vadd.f32 %v8651_v53, %v7430_v12 }
 0x5a2   :  { %v7324_v24 = vpop.f32.mrf.mxu3 }
 0x5a3   :  { %v7526_v25 = vmax.f32 %v7494_v4, 0.0  ;;  %v7359_v9 = vadd.f32 %v7324_v24, %v7066_v3 }
 0x5a5   :  { %8683 = vst.msk [vmem:[%s12440_s7 + $0x1e8] sm:$0xff] %vm3874_vm0, %v7526_v25  ;;  %v7395_v27 = vmul.f32 %v12065_v34, %v7359_v9 }
 0x5a6   :  { %v6842_v11 = vpop.f32.mrf.mxu1 }
 0x5a7   :  { %v7431_v42 = vadd.f32 %v12073_v7, %v7395_v27  ;;  %v7068_v17 = vadd.f32 %v7067_v47, %v6842_v11 }
 0x5a9   :  { %v7495_v0 = vadd.f32 %v8652_v5, %v7431_v42 }
 0x5aa   :  { %v7326_v52 = vpop.f32.mrf.mxu3 }
 0x5ab   :  { %v7527_v44 = vmax.f32 %v7495_v0, 0.0  ;;  %v7360_v28 = vadd.f32 %v7326_v52, %v7068_v17 }
 0x5ad   :  { %8684 = vst.msk [vmem:[%s12440_s7 + $0x1f0] sm:$0xff] %vm3874_vm0, %v7527_v44  ;;  %v7396_v46 = vmul.f32 %v12065_v34, %v7360_v28 }
 0x5af   :  { %v7432_v15 = vadd.f32 %v12073_v7, %v7396_v46 }
 0x5b1   :  { %v7496_v58 = vadd.f32 %v8653_v2, %v7432_v15 }
 0x5b3   :  { %v7528_v45 = vmax.f32 %v7496_v58, 0.0 }
 0x5b5   :  { %8685 = vst.msk [vmem:[%s12440_s7 + $0x1f8] sm:$0xff] %vm3874_vm0, %v7528_v45 }

</bundles_post_ra>
